<compile_context>
chip_gen: v7x
topology: tpu7x:2x2x1
jax: 0.10.0
libtpu: 0.0.40
codegen_flags: <defaults>
</compile_context>

<pallas_src>
import numpy as np

import jax
import jax.numpy as jnp
from jax import lax
from jax.experimental import pallas as pl
from jax.experimental.pallas import tpu as pltpu


# --------------------------- stage 1: conv1 + ReLU + pool -------------------


def _conv1_pool_kernel(x_ref, w_ref, b_ref, o_ref):
    # x_ref : (1, 66, 66)   f32   padded input, one sample (resident across steps)
    # w_ref : (3, 66, 2048) bf16  banded conv1 weights, cols ordered (parity, wo, c)
    # b_ref : (1, 1024)     f32   bias tiled per (wo, c)
    # o_ref : (1, 16, 1024) f32   pooled rows for this step, lanes = (wo, c)
    hb = pl.program_id(1)
    r0 = 32 * hb                                  # first conv row of this step

    acc = jnp.zeros((32, 2048), jnp.float32)
    for dh in range(3):                           # accumulate the 3 row taps
        lhs = x_ref[0, pl.ds(r0 + dh, 32), :].astype(jnp.bfloat16)   # (32, 66)
        acc = acc + jnp.dot(lhs, w_ref[dh], preferred_element_type=jnp.float32)

    # W-pool: even / odd output columns live in the two lane halves.
    m = jnp.maximum(acc[:, :1024], acc[:, 1024:])          # (32, 1024)
    m = jnp.maximum(m + b_ref[...], 0.0)                   # bias + ReLU

    # H-pool: pick even / odd conv rows with tiny 0/1 selection matmuls.
    rows = lax.broadcasted_iota(jnp.int32, (16, 32), 0)
    cols = lax.broadcasted_iota(jnp.int32, (16, 32), 1)
    sel_e = (cols == 2 * rows).astype(jnp.float32)
    sel_o = (cols == 2 * rows + 1).astype(jnp.float32)
    pooled = jnp.maximum(
        jnp.dot(sel_e, m, preferred_element_type=jnp.float32),
        jnp.dot(sel_o, m, preferred_element_type=jnp.float32))
    o_ref[0] = pooled


def conv1_relu_pool(x_pad, w_banded, b_tiled):
    n = x_pad.shape[0]
    return pl.pallas_call(
        _conv1_pool_kernel,
        out_shape=jax.ShapeDtypeStruct((n, 32, 1024), jnp.float32),
        grid_spec=pltpu.PrefetchScalarGridSpec(
            num_scalar_prefetch=0,
            grid=(n, 2),
            in_specs=[
                pl.BlockSpec((1, 66, 66), lambda i, h: (i, 0, 0)),
                pl.BlockSpec((3, 66, 2048), lambda i, h: (0, 0, 0)),
                pl.BlockSpec((1, 1024), lambda i, h: (0, 0)),
            ],
            out_specs=pl.BlockSpec((1, 16, 1024), lambda i, h: (i, h, 0)),
        ),
        compiler_params=pltpu.CompilerParams(
            dimension_semantics=("parallel", "parallel")),
    )(x_pad, w_banded, b_tiled)


# --------------------------- stage 2: conv2 + ReLU + pool -------------------

_TAPS = tuple((dh, dw) for dh in range(3) for dw in range(3))


def _conv2_pool_kernel(x_ref, w_ref, b_ref, o_ref, pat_ref):
    # x_ref : (1, 34, 34, 32) f32   padded pool1 output, one sample
    # w_ref : (288, 64)       bf16  conv2 weights, rows ordered (dh, dw, c_in)
    # b_ref : (1, 64)         f32
    # o_ref : (1, 128, 64)    bf16  pooled (ho, wo) rows x c_out for this step
    # pat_ref: (512, 288)     bf16  VMEM im2col scratch
    hb = pl.program_id(1)
    r0 = 16 * hb                                  # first conv row of this step

    # In-VMEM im2col: 9 contiguous tap slabs written side by side along lanes.
    for t, (dh, dw) in enumerate(_TAPS):
        slab = x_ref[0, pl.ds(r0 + dh, 16), pl.ds(dw, 32), :]          # (16,32,32)
        pat_ref[:, pl.ds(32 * t, 32)] = slab.reshape(512, 32).astype(jnp.bfloat16)

    conv = jnp.dot(pat_ref[...], w_ref[...],
                   preferred_element_type=jnp.float32)                 # (512, 64)
    conv = jnp.maximum(conv + b_ref[...], 0.0)                         # bias + ReLU

    # H-pool: rows are (h, w) with w minor; splitting leading dims is layout-free.
    conv = conv.reshape(8, 2, 32, 64)
    m = jnp.maximum(conv[:, 0], conv[:, 1]).reshape(256, 64)           # (ho, w) rows

    # W-pool: even / odd w rows selected with tiny 0/1 matmuls (row 2i / 2i+1).
    rows = lax.broadcasted_iota(jnp.int32, (128, 256), 0)
    cols = lax.broadcasted_iota(jnp.int32, (128, 256), 1)
    sel_e = (cols == 2 * rows).astype(jnp.float32)
    sel_o = (cols == 2 * rows + 1).astype(jnp.float32)
    pooled = jnp.maximum(
        jnp.dot(sel_e, m, preferred_element_type=jnp.float32),
        jnp.dot(sel_o, m, preferred_element_type=jnp.float32))         # (128, 64)
    o_ref[0] = pooled.astype(o_ref.dtype)


def conv2_relu_pool(y1_pad, w2, b2):
    n = y1_pad.shape[0]
    return pl.pallas_call(
        _conv2_pool_kernel,
        out_shape=jax.ShapeDtypeStruct((n, 256, 64), jnp.bfloat16),
        grid_spec=pltpu.PrefetchScalarGridSpec(
            num_scalar_prefetch=0,
            grid=(n, 2),
            in_specs=[
                pl.BlockSpec((1, 34, 34, 32), lambda i, h: (i, 0, 0, 0)),
                pl.BlockSpec((288, 64), lambda i, h: (0, 0)),
                pl.BlockSpec((1, 64), lambda i, h: (0, 0)),
            ],
            out_specs=pl.BlockSpec((1, 128, 64), lambda i, h: (i, h, 0)),
            scratch_shapes=[pltpu.VMEM((512, 288), jnp.bfloat16)],
        ),
        compiler_params=pltpu.CompilerParams(
            dimension_semantics=("parallel", "parallel")),
    )(y1_pad, w2, b2)


# --------------------------- fc1 (K-split, bf16 weights) --------------------


def _fc1_kernel(x_ref, w_ref, o_ref):
    o_ref[0] = jnp.dot(x_ref[...], w_ref[0], preferred_element_type=jnp.float32)


def fc1_partials(x_bf16, wf1_split):
    # x: (N, 16384) bf16; wf1_split: (2, 8192, 128) bf16.  Each grid step computes one
    # K-half partial product (dual-TC parallel on v7x); partials summed in XLA.
    n = x_bf16.shape[0]
    return pl.pallas_call(
        _fc1_kernel,
        out_shape=jax.ShapeDtypeStruct((2, n, 128), jnp.float32),
        grid_spec=pltpu.PrefetchScalarGridSpec(
            num_scalar_prefetch=0,
            grid=(2,),
            in_specs=[
                pl.BlockSpec((n, 8192), lambda k: (0, k)),
                pl.BlockSpec((1, 8192, 128), lambda k: (k, 0, 0)),
            ],
            out_specs=pl.BlockSpec((1, n, 128), lambda k: (k, 0, 0)),
        ),
        compiler_params=pltpu.CompilerParams(
            dimension_semantics=("parallel",)),
    )(x_bf16, wf1_split)


# --------------------------- weights / JAX glue ------------------------------


def _conv1_band_selector():
    # S[x, dw, parity, wo] = 1  iff  x == 2*wo + parity + dw   (x = padded input col)
    s = np.zeros((66, 3, 2, 32), np.float32)
    for dw in range(3):
        for p in range(2):
            for wo in range(32):
                s[2 * wo + p + dw, dw, p, wo] = 1.0
    return s


_S1 = _conv1_band_selector()


def build_conv1_banded(w1):
    # w1: (3, 3, 32) = (dh, dw, c_out).  -> (3, 66, 2048) bf16, cols = (parity, wo, c).
    b = jnp.einsum("xdpw,hdc->hxpwc", jnp.asarray(_S1), w1)     # (3, 66, 2, 32, 32)
    return b.reshape(3, 66, 2048).astype(jnp.bfloat16)


def init_params(key):
    ks = jax.random.split(key, 8)
    s = 0.02
    return {
        "w1": jax.random.normal(ks[0], (3, 3, 32), jnp.float32) * s,      # C_in = 1
        "b1": jax.random.normal(ks[1], (32,), jnp.float32) * s,
        "w2": jax.random.normal(ks[2], (3, 3, 32, 64), jnp.float32) * s,
        "b2": jax.random.normal(ks[3], (64,), jnp.float32) * s,
        # fc1 weights bf16, lane-dense (16384, 128); flatten order is (ho, wo, c)
        # (differs from PyTorch's CHW flatten; weights are random in-script).
        "wf1": (jax.random.normal(ks[4], (16384, 128), jnp.float32) * s
                ).astype(jnp.bfloat16),
        "bf1": jax.random.normal(ks[5], (128,), jnp.float32) * s,
        "wf2": jax.random.normal(ks[6], (128, 3), jnp.float32) * s,
        "bf2": jax.random.normal(ks[7], (3,), jnp.float32) * s,
    }


def cnn_forward(params, x_nchw):
    n = x_nchw.shape[0]
    x = x_nchw[:, 0]                                           # (N, 64, 64)
    x_pad = jnp.pad(x, ((0, 0), (1, 1), (1, 1)))               # (N, 66, 66)

    # conv1 + ReLU + pool1  (fused Pallas kernel, lane-dense pooled output)
    w1b = build_conv1_banded(params["w1"])
    b1t = jnp.tile(params["b1"], 32)[None, :]                  # (1, 1024)
    y1 = conv1_relu_pool(x_pad, w1b, b1t)                      # (N, 32, 1024)

    # conv2 + ReLU + pool2  (fused Pallas kernel, in-VMEM im2col)
    y1 = y1.reshape(n, 32, 32, 32)                             # free reshape (NHWC)
    y1_pad = jnp.pad(y1, ((0, 0), (1, 1), (1, 1), (0, 0)))     # (N, 34, 34, 32)
    w2 = params["w2"].reshape(288, 64).astype(jnp.bfloat16)
    y2 = conv2_relu_pool(y1_pad, w2, params["b2"][None, :])    # (N, 256, 64) bf16

    # flatten -> fc1 (+ ReLU); dropout1 / dropout2 are identity in eval mode.
    f = y2.reshape(n, 64 * 16 * 16)                            # (N, 16384) bf16
    parts = fc1_partials(f, params["wf1"].reshape(2, 8192, 128))
    h = jnp.maximum(parts[0] + parts[1] + params["bf1"], 0.0)  # (N, 128)

    # fc2 (128 -> 3): plain XLA matmul — a Pallas launch costs more than the FLOPs.
    return jnp.dot(h, params["wf2"]) + params["bf2"]           # (N, 3)


if __name__ == "__main__":
    key = jax.random.PRNGKey(0)
    pkey, xkey = jax.random.split(key)
    params = init_params(pkey)
    # fc1 (64*16*16) + two 2x2 pools imply a 64x64 single-channel input.
    x = jax.random.normal(xkey, (2, 1, 64, 64), jnp.float32)
    out = jax.jit(cnn_forward)(params, x)
    out = jax.block_until_ready(out)
    assert out.shape == (2, 3)
    print("KERNEL_OK")
</pallas_src>

<mosaic_0001>
module attributes {stable_mosaic.version = 11 : i64} {
  func.func @_conv1_pool_kernel(%arg0: i32, %arg1: i32, %arg2: memref<1x66x66xf32, #tpu.memory_space<vmem>>, %arg3: memref<3x66x2048xbf16, #tpu.memory_space<vmem>>, %arg4: memref<1x1024xf32, #tpu.memory_space<vmem>>, %arg5: memref<1x16x1024xf32, #tpu.memory_space<vmem>>) attributes {dimension_semantics = [#tpu.dimension_semantics<parallel>, #tpu.dimension_semantics<parallel>], iteration_bounds = array<i64: 2, 2>, scalar_prefetch = 0 : i64, scratch_operands = 0 : i64, tpu.core_type = #tpu.core_type<tc>, window_params = [{transform_indices = @transform_0, window_bounds = array<i64: 1, 66, 66>}, {pipeline_mode = #tpu.pipeline_mode<synchronous>, transform_indices = @transform_1, window_bounds = array<i64: 3, 66, 2048>}, {pipeline_mode = #tpu.pipeline_mode<synchronous>, transform_indices = @transform_2, window_bounds = array<i64: 1, 1024>}, {transform_indices = @transform_3, window_bounds = array<i64: 1, 16, 1024>}]} {
    %c32_i32 = arith.constant 32 : i32
    %0 = arith.muli %c32_i32, %arg1 : i32
    %cst = arith.constant 0.000000e+00 : f32
    %1 = vector.broadcast %cst : f32 to vector<32x2048xf32>
    %c0_i32 = arith.constant 0 : i32
    %2 = arith.addi %0, %c0_i32 : i32
    %c0 = arith.constant 0 : index
    %3 = arith.index_cast %2 : i32 to index
    %c0_0 = arith.constant 0 : index
    %4 = vector.load %arg2[%c0, %3, %c0_0] : memref<1x66x66xf32, #tpu.memory_space<vmem>>, vector<1x32x66xf32>
    %5 = vector.shape_cast %4 : vector<1x32x66xf32> to vector<32x66xf32>
    %6 = arith.truncf %5 : vector<32x66xf32> to vector<32x66xbf16>
    %c0_1 = arith.constant 0 : index
    %c0_2 = arith.constant 0 : index
    %c0_3 = arith.constant 0 : index
    %7 = vector.load %arg3[%c0_1, %c0_2, %c0_3] : memref<3x66x2048xbf16, #tpu.memory_space<vmem>>, vector<1x66x2048xbf16>
    %8 = vector.shape_cast %7 : vector<1x66x2048xbf16> to vector<66x2048xbf16>
    %cst_4 = arith.constant dense<0.000000e+00> : vector<32x2048xf32>
    %9 = tpu.matmul %6, %8, %cst_4 {dimension_numbers = #tpu.dot_dimension_numbers<[1], [0], [0], [1], [0, 0, 1, 1], [], []>} : vector<32x66xbf16>, vector<66x2048xbf16>, vector<32x2048xf32> -> vector<32x2048xf32>
    %10 = arith.addf %1, %9 : vector<32x2048xf32>
    %c1_i32 = arith.constant 1 : i32
    %11 = arith.addi %0, %c1_i32 : i32
    %c0_5 = arith.constant 0 : index
    %12 = arith.index_cast %11 : i32 to index
    %c0_6 = arith.constant 0 : index
    %13 = vector.load %arg2[%c0_5, %12, %c0_6] : memref<1x66x66xf32, #tpu.memory_space<vmem>>, vector<1x32x66xf32>
    %14 = vector.shape_cast %13 : vector<1x32x66xf32> to vector<32x66xf32>
    %15 = arith.truncf %14 : vector<32x66xf32> to vector<32x66xbf16>
    %c1 = arith.constant 1 : index
    %c0_7 = arith.constant 0 : index
    %c0_8 = arith.constant 0 : index
    %16 = vector.load %arg3[%c1, %c0_7, %c0_8] : memref<3x66x2048xbf16, #tpu.memory_space<vmem>>, vector<1x66x2048xbf16>
    %17 = vector.shape_cast %16 : vector<1x66x2048xbf16> to vector<66x2048xbf16>
    %cst_9 = arith.constant dense<0.000000e+00> : vector<32x2048xf32>
    %18 = tpu.matmul %15, %17, %cst_9 {dimension_numbers = #tpu.dot_dimension_numbers<[1], [0], [0], [1], [0, 0, 1, 1], [], []>} : vector<32x66xbf16>, vector<66x2048xbf16>, vector<32x2048xf32> -> vector<32x2048xf32>
    %19 = arith.addf %10, %18 : vector<32x2048xf32>
    %c2_i32 = arith.constant 2 : i32
    %20 = arith.addi %0, %c2_i32 : i32
    %c0_10 = arith.constant 0 : index
    %21 = arith.index_cast %20 : i32 to index
    %c0_11 = arith.constant 0 : index
    %22 = vector.load %arg2[%c0_10, %21, %c0_11] : memref<1x66x66xf32, #tpu.memory_space<vmem>>, vector<1x32x66xf32>
    %23 = vector.shape_cast %22 : vector<1x32x66xf32> to vector<32x66xf32>
    %24 = arith.truncf %23 : vector<32x66xf32> to vector<32x66xbf16>
    %c2 = arith.constant 2 : index
    %c0_12 = arith.constant 0 : index
    %c0_13 = arith.constant 0 : index
    %25 = vector.load %arg3[%c2, %c0_12, %c0_13] : memref<3x66x2048xbf16, #tpu.memory_space<vmem>>, vector<1x66x2048xbf16>
    %26 = vector.shape_cast %25 : vector<1x66x2048xbf16> to vector<66x2048xbf16>
    %cst_14 = arith.constant dense<0.000000e+00> : vector<32x2048xf32>
    %27 = tpu.matmul %24, %26, %cst_14 {dimension_numbers = #tpu.dot_dimension_numbers<[1], [0], [0], [1], [0, 0, 1, 1], [], []>} : vector<32x66xbf16>, vector<66x2048xbf16>, vector<32x2048xf32> -> vector<32x2048xf32>
    %28 = arith.addf %19, %27 : vector<32x2048xf32>
    %29 = vector.extract_strided_slice %28 {offsets = [0, 0], sizes = [32, 1024], strides = [1, 1]} : vector<32x2048xf32> to vector<32x1024xf32>
    %30 = vector.extract_strided_slice %28 {offsets = [0, 1024], sizes = [32, 1024], strides = [1, 1]} : vector<32x2048xf32> to vector<32x1024xf32>
    %31 = arith.maximumf %29, %30 : vector<32x1024xf32>
    %c0_15 = arith.constant 0 : index
    %c0_16 = arith.constant 0 : index
    %32 = vector.load %arg4[%c0_15, %c0_16] : memref<1x1024xf32, #tpu.memory_space<vmem>>, vector<1x1024xf32>
    %33 = vector.broadcast %32 : vector<1x1024xf32> to vector<32x1024xf32>
    %34 = arith.addf %31, %33 : vector<32x1024xf32>
    %cst_17 = arith.constant 0.000000e+00 : f32
    %35 = vector.broadcast %cst_17 : f32 to vector<32x1024xf32>
    %36 = arith.maximumf %34, %35 : vector<32x1024xf32>
    %37 = tpu.iota {dimensions = array<i32: 0>} : vector<16x32xi32>
    %38 = tpu.iota {dimensions = array<i32: 1>} : vector<16x32xi32>
    %c2_i32_18 = arith.constant 2 : i32
    %39 = vector.broadcast %c2_i32_18 : i32 to vector<16x32xi32>
    %40 = arith.muli %39, %37 : vector<16x32xi32>
    %41 = arith.cmpi eq, %38, %40 : vector<16x32xi32>
    %42 = arith.extui %41 : vector<16x32xi1> to vector<16x32xi32>
    %43 = arith.sitofp %42 : vector<16x32xi32> to vector<16x32xf32>
    %c2_i32_19 = arith.constant 2 : i32
    %44 = vector.broadcast %c2_i32_19 : i32 to vector<16x32xi32>
    %45 = arith.muli %44, %37 : vector<16x32xi32>
    %c1_i32_20 = arith.constant 1 : i32
    %46 = vector.broadcast %c1_i32_20 : i32 to vector<16x32xi32>
    %47 = arith.addi %45, %46 : vector<16x32xi32>
    %48 = arith.cmpi eq, %38, %47 : vector<16x32xi32>
    %49 = arith.extui %48 : vector<16x32xi1> to vector<16x32xi32>
    %50 = arith.sitofp %49 : vector<16x32xi32> to vector<16x32xf32>
    %cst_21 = arith.constant dense<0.000000e+00> : vector<16x1024xf32>
    %51 = tpu.matmul %43, %36, %cst_21 {dimension_numbers = #tpu.dot_dimension_numbers<[1], [0], [0], [1], [0, 0, 1, 1], [], []>} : vector<16x32xf32>, vector<32x1024xf32>, vector<16x1024xf32> -> vector<16x1024xf32>
    %cst_22 = arith.constant dense<0.000000e+00> : vector<16x1024xf32>
    %52 = tpu.matmul %50, %36, %cst_22 {dimension_numbers = #tpu.dot_dimension_numbers<[1], [0], [0], [1], [0, 0, 1, 1], [], []>} : vector<16x32xf32>, vector<32x1024xf32>, vector<16x1024xf32> -> vector<16x1024xf32>
    %53 = arith.maximumf %51, %52 : vector<16x1024xf32>
    %c0_23 = arith.constant 0 : index
    %c0_24 = arith.constant 0 : index
    %c0_25 = arith.constant 0 : index
    %54 = vector.load %arg5[%c0_23, %c0_24, %c0_25] : memref<1x16x1024xf32, #tpu.memory_space<vmem>>, vector<1x16x1024xf32>
    %55 = vector.shape_cast %54 : vector<1x16x1024xf32> to vector<16x1024xf32>
    %56 = vector.shape_cast %53 : vector<16x1024xf32> to vector<1x16x1024xf32>
    tpu.vector_store %arg5[%c0_23, %c0_24, %c0_25], %56 {strides = array<i32>} : memref<1x16x1024xf32, #tpu.memory_space<vmem>>, vector<1x16x1024xf32>,
    return
  }
  func.func @transform_0(%arg0: i32, %arg1: i32) -> (i32, i32, i32) {
    %c0_i32 = arith.constant 0 : i32
    %c0_i32_0 = arith.constant 0 : i32
    %c0_i32_1 = arith.constant 0 : i32
    return %arg0, %c0_i32, %c0_i32_0 : i32, i32, i32
  }
  func.func @transform_1(%arg0: i32, %arg1: i32) -> (i32, i32, i32) {
    %c0_i32 = arith.constant 0 : i32
    %c0_i32_0 = arith.constant 0 : i32
    %c0_i32_1 = arith.constant 0 : i32
    %c0_i32_2 = arith.constant 0 : i32
    return %c0_i32, %c0_i32_0, %c0_i32_1 : i32, i32, i32
  }
  func.func @transform_2(%arg0: i32, %arg1: i32) -> (i32, i32) {
    %c0_i32 = arith.constant 0 : i32
    %c0_i32_0 = arith.constant 0 : i32
    %c0_i32_1 = arith.constant 0 : i32
    return %c0_i32, %c0_i32_0 : i32, i32
  }
  func.func @transform_3(%arg0: i32, %arg1: i32) -> (i32, i32, i32) {
    %c0_i32 = arith.constant 0 : i32
    %c0_i32_0 = arith.constant 0 : i32
    return %arg0, %arg1, %c0_i32 : i32, i32, i32
  }
}

module attributes {stable_mosaic.version = 11 : i64} {
  func.func @_conv2_pool_kernel(%arg0: i32, %arg1: i32, %arg2: memref<1x34x34x32xf32, #tpu.memory_space<vmem>>, %arg3: memref<288x64xbf16, #tpu.memory_space<vmem>>, %arg4: memref<1x64xf32, #tpu.memory_space<vmem>>, %arg5: memref<1x128x64xbf16, #tpu.memory_space<vmem>>, %arg6: memref<512x288xbf16, #tpu.memory_space<vmem>>) attributes {dimension_semantics = [#tpu.dimension_semantics<parallel>, #tpu.dimension_semantics<parallel>], iteration_bounds = array<i64: 2, 2>, scalar_prefetch = 0 : i64, scratch_operands = 1 : i64, tpu.core_type = #tpu.core_type<tc>, window_params = [{transform_indices = @transform_0, window_bounds = array<i64: 1, 34, 34, 32>}, {pipeline_mode = #tpu.pipeline_mode<synchronous>, transform_indices = @transform_1, window_bounds = array<i64: 288, 64>}, {pipeline_mode = #tpu.pipeline_mode<synchronous>, transform_indices = @transform_2, window_bounds = array<i64: 1, 64>}, {transform_indices = @transform_3, window_bounds = array<i64: 1, 128, 64>}]} {
    %c16_i32 = arith.constant 16 : i32
    %0 = arith.muli %c16_i32, %arg1 : i32
    %c0_i32 = arith.constant 0 : i32
    %1 = arith.addi %0, %c0_i32 : i32
    %c0 = arith.constant 0 : index
    %2 = arith.index_cast %1 : i32 to index
    %c0_0 = arith.constant 0 : index
    %c0_1 = arith.constant 0 : index
    %3 = vector.load %arg2[%c0, %2, %c0_0, %c0_1] : memref<1x34x34x32xf32, #tpu.memory_space<vmem>>, vector<1x16x32x32xf32>
    %4 = vector.shape_cast %3 : vector<1x16x32x32xf32> to vector<16x32x32xf32>
    %5 = vector.shape_cast %4 : vector<16x32x32xf32> to vector<512x32xf32>
    %6 = arith.truncf %5 : vector<512x32xf32> to vector<512x32xbf16>
    %c0_2 = arith.constant 0 : index
    %c0_3 = arith.constant 0 : index
    %7 = vector.load %arg6[%c0_2, %c0_3] : memref<512x288xbf16, #tpu.memory_space<vmem>>, vector<512x32xbf16>
    tpu.vector_store %arg6[%c0_2, %c0_3], %6 {strides = array<i32>} : memref<512x288xbf16, #tpu.memory_space<vmem>>, vector<512x32xbf16>,
    %c0_i32_4 = arith.constant 0 : i32
    %8 = arith.addi %0, %c0_i32_4 : i32
    %c0_5 = arith.constant 0 : index
    %9 = arith.index_cast %8 : i32 to index
    %c1 = arith.constant 1 : index
    %c0_6 = arith.constant 0 : index
    %10 = vector.load %arg2[%c0_5, %9, %c1, %c0_6] : memref<1x34x34x32xf32, #tpu.memory_space<vmem>>, vector<1x16x32x32xf32>
    %11 = vector.shape_cast %10 : vector<1x16x32x32xf32> to vector<16x32x32xf32>
    %12 = vector.shape_cast %11 : vector<16x32x32xf32> to vector<512x32xf32>
    %13 = arith.truncf %12 : vector<512x32xf32> to vector<512x32xbf16>
    %c0_7 = arith.constant 0 : index
    %c32 = arith.constant 32 : index
    %14 = vector.load %arg6[%c0_7, %c32] : memref<512x288xbf16, #tpu.memory_space<vmem>>, vector<512x32xbf16>
    tpu.vector_store %arg6[%c0_7, %c32], %13 {strides = array<i32>} : memref<512x288xbf16, #tpu.memory_space<vmem>>, vector<512x32xbf16>,
    %c0_i32_8 = arith.constant 0 : i32
    %15 = arith.addi %0, %c0_i32_8 : i32
    %c0_9 = arith.constant 0 : index
    %16 = arith.index_cast %15 : i32 to index
    %c2 = arith.constant 2 : index
    %c0_10 = arith.constant 0 : index
    %17 = vector.load %arg2[%c0_9, %16, %c2, %c0_10] : memref<1x34x34x32xf32, #tpu.memory_space<vmem>>, vector<1x16x32x32xf32>
    %18 = vector.shape_cast %17 : vector<1x16x32x32xf32> to vector<16x32x32xf32>
    %19 = vector.shape_cast %18 : vector<16x32x32xf32> to vector<512x32xf32>
    %20 = arith.truncf %19 : vector<512x32xf32> to vector<512x32xbf16>
    %c0_11 = arith.constant 0 : index
    %c64 = arith.constant 64 : index
    %21 = vector.load %arg6[%c0_11, %c64] : memref<512x288xbf16, #tpu.memory_space<vmem>>, vector<512x32xbf16>
    tpu.vector_store %arg6[%c0_11, %c64], %20 {strides = array<i32>} : memref<512x288xbf16, #tpu.memory_space<vmem>>, vector<512x32xbf16>,
    %c1_i32 = arith.constant 1 : i32
    %22 = arith.addi %0, %c1_i32 : i32
    %c0_12 = arith.constant 0 : index
    %23 = arith.index_cast %22 : i32 to index
    %c0_13 = arith.constant 0 : index
    %c0_14 = arith.constant 0 : index
    %24 = vector.load %arg2[%c0_12, %23, %c0_13, %c0_14] : memref<1x34x34x32xf32, #tpu.memory_space<vmem>>, vector<1x16x32x32xf32>
    %25 = vector.shape_cast %24 : vector<1x16x32x32xf32> to vector<16x32x32xf32>
    %26 = vector.shape_cast %25 : vector<16x32x32xf32> to vector<512x32xf32>
    %27 = arith.truncf %26 : vector<512x32xf32> to vector<512x32xbf16>
    %c0_15 = arith.constant 0 : index
    %c96 = arith.constant 96 : index
    %28 = vector.load %arg6[%c0_15, %c96] : memref<512x288xbf16, #tpu.memory_space<vmem>>, vector<512x32xbf16>
    tpu.vector_store %arg6[%c0_15, %c96], %27 {strides = array<i32>} : memref<512x288xbf16, #tpu.memory_space<vmem>>, vector<512x32xbf16>,
    %c1_i32_16 = arith.constant 1 : i32
    %29 = arith.addi %0, %c1_i32_16 : i32
    %c0_17 = arith.constant 0 : index
    %30 = arith.index_cast %29 : i32 to index
    %c1_18 = arith.constant 1 : index
    %c0_19 = arith.constant 0 : index
    %31 = vector.load %arg2[%c0_17, %30, %c1_18, %c0_19] : memref<1x34x34x32xf32, #tpu.memory_space<vmem>>, vector<1x16x32x32xf32>
    %32 = vector.shape_cast %31 : vector<1x16x32x32xf32> to vector<16x32x32xf32>
    %33 = vector.shape_cast %32 : vector<16x32x32xf32> to vector<512x32xf32>
    %34 = arith.truncf %33 : vector<512x32xf32> to vector<512x32xbf16>
    %c0_20 = arith.constant 0 : index
    %c128 = arith.constant 128 : index
    %35 = vector.load %arg6[%c0_20, %c128] : memref<512x288xbf16, #tpu.memory_space<vmem>>, vector<512x32xbf16>
    tpu.vector_store %arg6[%c0_20, %c128], %34 {strides = array<i32>} : memref<512x288xbf16, #tpu.memory_space<vmem>>, vector<512x32xbf16>,
    %c1_i32_21 = arith.constant 1 : i32
    %36 = arith.addi %0, %c1_i32_21 : i32
    %c0_22 = arith.constant 0 : index
    %37 = arith.index_cast %36 : i32 to index
    %c2_23 = arith.constant 2 : index
    %c0_24 = arith.constant 0 : index
    %38 = vector.load %arg2[%c0_22, %37, %c2_23, %c0_24] : memref<1x34x34x32xf32, #tpu.memory_space<vmem>>, vector<1x16x32x32xf32>
    %39 = vector.shape_cast %38 : vector<1x16x32x32xf32> to vector<16x32x32xf32>
    %40 = vector.shape_cast %39 : vector<16x32x32xf32> to vector<512x32xf32>
    %41 = arith.truncf %40 : vector<512x32xf32> to vector<512x32xbf16>
    %c0_25 = arith.constant 0 : index
    %c160 = arith.constant 160 : index
    %42 = vector.load %arg6[%c0_25, %c160] : memref<512x288xbf16, #tpu.memory_space<vmem>>, vector<512x32xbf16>
    tpu.vector_store %arg6[%c0_25, %c160], %41 {strides = array<i32>} : memref<512x288xbf16, #tpu.memory_space<vmem>>, vector<512x32xbf16>,
    %c2_i32 = arith.constant 2 : i32
    %43 = arith.addi %0, %c2_i32 : i32
    %c0_26 = arith.constant 0 : index
    %44 = arith.index_cast %43 : i32 to index
    %c0_27 = arith.constant 0 : index
    %c0_28 = arith.constant 0 : index
    %45 = vector.load %arg2[%c0_26, %44, %c0_27, %c0_28] : memref<1x34x34x32xf32, #tpu.memory_space<vmem>>, vector<1x16x32x32xf32>
    %46 = vector.shape_cast %45 : vector<1x16x32x32xf32> to vector<16x32x32xf32>
    %47 = vector.shape_cast %46 : vector<16x32x32xf32> to vector<512x32xf32>
    %48 = arith.truncf %47 : vector<512x32xf32> to vector<512x32xbf16>
    %c0_29 = arith.constant 0 : index
    %c192 = arith.constant 192 : index
    %49 = vector.load %arg6[%c0_29, %c192] : memref<512x288xbf16, #tpu.memory_space<vmem>>, vector<512x32xbf16>
    tpu.vector_store %arg6[%c0_29, %c192], %48 {strides = array<i32>} : memref<512x288xbf16, #tpu.memory_space<vmem>>, vector<512x32xbf16>,
    %c2_i32_30 = arith.constant 2 : i32
    %50 = arith.addi %0, %c2_i32_30 : i32
    %c0_31 = arith.constant 0 : index
    %51 = arith.index_cast %50 : i32 to index
    %c1_32 = arith.constant 1 : index
    %c0_33 = arith.constant 0 : index
    %52 = vector.load %arg2[%c0_31, %51, %c1_32, %c0_33] : memref<1x34x34x32xf32, #tpu.memory_space<vmem>>, vector<1x16x32x32xf32>
    %53 = vector.shape_cast %52 : vector<1x16x32x32xf32> to vector<16x32x32xf32>
    %54 = vector.shape_cast %53 : vector<16x32x32xf32> to vector<512x32xf32>
    %55 = arith.truncf %54 : vector<512x32xf32> to vector<512x32xbf16>
    %c0_34 = arith.constant 0 : index
    %c224 = arith.constant 224 : index
    %56 = vector.load %arg6[%c0_34, %c224] : memref<512x288xbf16, #tpu.memory_space<vmem>>, vector<512x32xbf16>
    tpu.vector_store %arg6[%c0_34, %c224], %55 {strides = array<i32>} : memref<512x288xbf16, #tpu.memory_space<vmem>>, vector<512x32xbf16>,
    %c2_i32_35 = arith.constant 2 : i32
    %57 = arith.addi %0, %c2_i32_35 : i32
    %c0_36 = arith.constant 0 : index
    %58 = arith.index_cast %57 : i32 to index
    %c2_37 = arith.constant 2 : index
    %c0_38 = arith.constant 0 : index
    %59 = vector.load %arg2[%c0_36, %58, %c2_37, %c0_38] : memref<1x34x34x32xf32, #tpu.memory_space<vmem>>, vector<1x16x32x32xf32>
    %60 = vector.shape_cast %59 : vector<1x16x32x32xf32> to vector<16x32x32xf32>
    %61 = vector.shape_cast %60 : vector<16x32x32xf32> to vector<512x32xf32>
    %62 = arith.truncf %61 : vector<512x32xf32> to vector<512x32xbf16>
    %c0_39 = arith.constant 0 : index
    %c256 = arith.constant 256 : index
    %63 = vector.load %arg6[%c0_39, %c256] : memref<512x288xbf16, #tpu.memory_space<vmem>>, vector<512x32xbf16>
    tpu.vector_store %arg6[%c0_39, %c256], %62 {strides = array<i32>} : memref<512x288xbf16, #tpu.memory_space<vmem>>, vector<512x32xbf16>,
    %c0_40 = arith.constant 0 : index
    %c0_41 = arith.constant 0 : index
    %64 = vector.load %arg6[%c0_40, %c0_41] : memref<512x288xbf16, #tpu.memory_space<vmem>>, vector<512x288xbf16>
    %c0_42 = arith.constant 0 : index
    %c0_43 = arith.constant 0 : index
    %65 = vector.load %arg3[%c0_42, %c0_43] : memref<288x64xbf16, #tpu.memory_space<vmem>>, vector<288x64xbf16>
    %cst = arith.constant dense<0.000000e+00> : vector<512x64xf32>
    %66 = tpu.matmul %64, %65, %cst {dimension_numbers = #tpu.dot_dimension_numbers<[1], [0], [0], [1], [0, 0, 1, 1], [], []>} : vector<512x288xbf16>, vector<288x64xbf16>, vector<512x64xf32> -> vector<512x64xf32>
    %c0_44 = arith.constant 0 : index
    %c0_45 = arith.constant 0 : index
    %67 = vector.load %arg4[%c0_44, %c0_45] : memref<1x64xf32, #tpu.memory_space<vmem>>, vector<1x64xf32>
    %68 = vector.broadcast %67 : vector<1x64xf32> to vector<512x64xf32>
    %69 = arith.addf %66, %68 : vector<512x64xf32>
    %cst_46 = arith.constant 0.000000e+00 : f32
    %70 = vector.broadcast %cst_46 : f32 to vector<512x64xf32>
    %71 = arith.maximumf %69, %70 : vector<512x64xf32>
    %72 = vector.shape_cast %71 : vector<512x64xf32> to vector<8x2x32x64xf32>
    %73 = vector.extract_strided_slice %72 {offsets = [0, 0, 0, 0], sizes = [8, 1, 32, 64], strides = [1, 1, 1, 1]} : vector<8x2x32x64xf32> to vector<8x1x32x64xf32>
    %74 = vector.shape_cast %73 : vector<8x1x32x64xf32> to vector<8x32x64xf32>
    %75 = vector.extract_strided_slice %72 {offsets = [0, 1, 0, 0], sizes = [8, 1, 32, 64], strides = [1, 1, 1, 1]} : vector<8x2x32x64xf32> to vector<8x1x32x64xf32>
    %76 = vector.shape_cast %75 : vector<8x1x32x64xf32> to vector<8x32x64xf32>
    %77 = arith.maximumf %74, %76 : vector<8x32x64xf32>
    %78 = vector.shape_cast %77 : vector<8x32x64xf32> to vector<256x64xf32>
    %79 = tpu.iota {dimensions = array<i32: 0>} : vector<128x256xi32>
    %80 = tpu.iota {dimensions = array<i32: 1>} : vector<128x256xi32>
    %c2_i32_47 = arith.constant 2 : i32
    %81 = vector.broadcast %c2_i32_47 : i32 to vector<128x256xi32>
    %82 = arith.muli %81, %79 : vector<128x256xi32>
    %83 = arith.cmpi eq, %80, %82 : vector<128x256xi32>
    %84 = arith.extui %83 : vector<128x256xi1> to vector<128x256xi32>
    %85 = arith.sitofp %84 : vector<128x256xi32> to vector<128x256xf32>
    %c2_i32_48 = arith.constant 2 : i32
    %86 = vector.broadcast %c2_i32_48 : i32 to vector<128x256xi32>
    %87 = arith.muli %86, %79 : vector<128x256xi32>
    %c1_i32_49 = arith.constant 1 : i32
    %88 = vector.broadcast %c1_i32_49 : i32 to vector<128x256xi32>
    %89 = arith.addi %87, %88 : vector<128x256xi32>
    %90 = arith.cmpi eq, %80, %89 : vector<128x256xi32>
    %91 = arith.extui %90 : vector<128x256xi1> to vector<128x256xi32>
    %92 = arith.sitofp %91 : vector<128x256xi32> to vector<128x256xf32>
    %cst_50 = arith.constant dense<0.000000e+00> : vector<128x64xf32>
    %93 = tpu.matmul %85, %78, %cst_50 {dimension_numbers = #tpu.dot_dimension_numbers<[1], [0], [0], [1], [0, 0, 1, 1], [], []>} : vector<128x256xf32>, vector<256x64xf32>, vector<128x64xf32> -> vector<128x64xf32>
    %cst_51 = arith.constant dense<0.000000e+00> : vector<128x64xf32>
    %94 = tpu.matmul %92, %78, %cst_51 {dimension_numbers = #tpu.dot_dimension_numbers<[1], [0], [0], [1], [0, 0, 1, 1], [], []>} : vector<128x256xf32>, vector<256x64xf32>, vector<128x64xf32> -> vector<128x64xf32>
    %95 = arith.maximumf %93, %94 : vector<128x64xf32>
    %96 = arith.truncf %95 : vector<128x64xf32> to vector<128x64xbf16>
    %c0_52 = arith.constant 0 : index
    %c0_53 = arith.constant 0 : index
    %c0_54 = arith.constant 0 : index
    %97 = vector.load %arg5[%c0_52, %c0_53, %c0_54] : memref<1x128x64xbf16, #tpu.memory_space<vmem>>, vector<1x128x64xbf16>
    %98 = vector.shape_cast %97 : vector<1x128x64xbf16> to vector<128x64xbf16>
    %99 = vector.shape_cast %96 : vector<128x64xbf16> to vector<1x128x64xbf16>
    tpu.vector_store %arg5[%c0_52, %c0_53, %c0_54], %99 {strides = array<i32>} : memref<1x128x64xbf16, #tpu.memory_space<vmem>>, vector<1x128x64xbf16>,
    return
  }
  func.func @transform_0(%arg0: i32, %arg1: i32) -> (i32, i32, i32, i32) {
    %c0_i32 = arith.constant 0 : i32
    %c0_i32_0 = arith.constant 0 : i32
    %c0_i32_1 = arith.constant 0 : i32
    %c0_i32_2 = arith.constant 0 : i32
    return %arg0, %c0_i32, %c0_i32_0, %c0_i32_1 : i32, i32, i32, i32
  }
  func.func @transform_1(%arg0: i32, %arg1: i32) -> (i32, i32) {
    %c0_i32 = arith.constant 0 : i32
    %c0_i32_0 = arith.constant 0 : i32
    %c0_i32_1 = arith.constant 0 : i32
    return %c0_i32, %c0_i32_0 : i32, i32
  }
  func.func @transform_2(%arg0: i32, %arg1: i32) -> (i32, i32) {
    %c0_i32 = arith.constant 0 : i32
    %c0_i32_0 = arith.constant 0 : i32
    %c0_i32_1 = arith.constant 0 : i32
    return %c0_i32, %c0_i32_0 : i32, i32
  }
  func.func @transform_3(%arg0: i32, %arg1: i32) -> (i32, i32, i32) {
    %c0_i32 = arith.constant 0 : i32
    %c0_i32_0 = arith.constant 0 : i32
    return %arg0, %arg1, %c0_i32 : i32, i32, i32
  }
}

module attributes {stable_mosaic.version = 11 : i64} {
  func.func @_fc1_kernel(%arg0: i32, %arg1: memref<2x8192xbf16, #tpu.memory_space<vmem>>, %arg2: memref<1x8192x128xbf16, #tpu.memory_space<vmem>>, %arg3: memref<1x2x128xf32, #tpu.memory_space<vmem>>) attributes {dimension_semantics = [#tpu.dimension_semantics<parallel>], iteration_bounds = array<i64: 2>, scalar_prefetch = 0 : i64, scratch_operands = 0 : i64, tpu.core_type = #tpu.core_type<tc>, window_params = [{transform_indices = @transform_0, window_bounds = array<i64: 2, 8192>}, {transform_indices = @transform_1, window_bounds = array<i64: 1, 8192, 128>}, {transform_indices = @transform_2, window_bounds = array<i64: 1, 2, 128>}]} {
    %c0 = arith.constant 0 : index
    %c0_0 = arith.constant 0 : index
    %0 = vector.load %arg1[%c0, %c0_0] : memref<2x8192xbf16, #tpu.memory_space<vmem>>, vector<2x8192xbf16>
    %c0_1 = arith.constant 0 : index
    %c0_2 = arith.constant 0 : index
    %c0_3 = arith.constant 0 : index
    %1 = vector.load %arg2[%c0_1, %c0_2, %c0_3] : memref<1x8192x128xbf16, #tpu.memory_space<vmem>>, vector<1x8192x128xbf16>
    %2 = vector.shape_cast %1 : vector<1x8192x128xbf16> to vector<8192x128xbf16>
    %cst = arith.constant dense<0.000000e+00> : vector<2x128xf32>
    %3 = tpu.matmul %0, %2, %cst {dimension_numbers = #tpu.dot_dimension_numbers<[1], [0], [0], [1], [0, 0, 1, 1], [], []>} : vector<2x8192xbf16>, vector<8192x128xbf16>, vector<2x128xf32> -> vector<2x128xf32>
    %c0_4 = arith.constant 0 : index
    %c0_5 = arith.constant 0 : index
    %c0_6 = arith.constant 0 : index
    %4 = vector.load %arg3[%c0_4, %c0_5, %c0_6] : memref<1x2x128xf32, #tpu.memory_space<vmem>>, vector<1x2x128xf32>
    %5 = vector.shape_cast %4 : vector<1x2x128xf32> to vector<2x128xf32>
    %6 = vector.shape_cast %3 : vector<2x128xf32> to vector<1x2x128xf32>
    tpu.vector_store %arg3[%c0_4, %c0_5, %c0_6], %6 {strides = array<i32>} : memref<1x2x128xf32, #tpu.memory_space<vmem>>, vector<1x2x128xf32>,
    return
  }
  func.func @transform_0(%arg0: i32) -> (i32, i32) {
    %c0_i32 = arith.constant 0 : i32
    %c0_i32_0 = arith.constant 0 : i32
    return %c0_i32, %arg0 : i32, i32
  }
  func.func @transform_1(%arg0: i32) -> (i32, i32, i32) {
    %c0_i32 = arith.constant 0 : i32
    %c0_i32_0 = arith.constant 0 : i32
    %c0_i32_1 = arith.constant 0 : i32
    return %arg0, %c0_i32, %c0_i32_0 : i32, i32, i32
  }
  func.func @transform_2(%arg0: i32) -> (i32, i32, i32) {
    %c0_i32 = arith.constant 0 : i32
    %c0_i32_0 = arith.constant 0 : i32
    %c0_i32_1 = arith.constant 0 : i32
    return %arg0, %c0_i32, %c0_i32_0 : i32, i32, i32
  }
}

</mosaic_0001>

<bundles_post_ra>
// kernel: tile.8
= control target key start
LH: loop header
LB: loop body
LE: loop exit
PB: predicated region body
PF: predicated region fallthrough
CT: control target
= control target key end

     0   :  { %s40_s0 = inlined_call_operand.vmem [shape: f32[32], index: 0, kind: input, shape index: {}]   ;;  %s41_s1 = inlined_call_operand.vmem [shape: f32[32,32], index: 1, kind: output, shape index: {}]  }
   0x1   :  { %v4_v0 = vld [vmem:[%s40_s0] ss:$0 sm:$0xff] }
   0x2   :  { %5 = vst [vmem:[%s41_s1] sm:$0xff] %v4_v0  ;;  %12 = vst [vmem:[%s41_s1 + $0x8] sm:$0xff] %v4_v0 }
   0x3   :  { %13 = vst [vmem:[%s41_s1 + $0x10] sm:$0xff] %v4_v0  ;;  %14 = vst [vmem:[%s41_s1 + $0x18] sm:$0xff] %v4_v0 }

// kernel: tile.9
= control target key start
LH: loop header
LB: loop body
LE: loop exit
PB: predicated region body
PF: predicated region fallthrough
CT: control target
= control target key end

     0   :  { %s93_s8 = smov 96   ;;  %vm3_vm0 = vcmask 261120   ;;  %s95_s15 = smov 64   ;;  %vm10_vm1 = vcmask 1048320   ;;  %vm17_vm2 = vcmask 785920   ;;  %vm24_vm3 = vcmask 523520   ;;  %s142_s0 = inlined_call_operand.vmem [shape: f32[32,32], index: 0, kind: input, shape index: {}]   ;;  %s143_s1 = inlined_call_operand.vmem [shape: f32[1,1024], index: 1, kind: output, shape index: {}]  }
   0x1   :  { %v80_v0 = vld [vmem:[%s142_s0 + $0x3] ss:$4 sm:$0xff]   ;;  %v82_v1 = vld [vmem:[%s142_s0 + $0x1] ss:$4 sm:$0xff]   ;;  %v2_v2 = vld [vmem:[%s142_s0] ss:$4 sm:$0xff]  }
   0x2   :  { %8 = vrot.lane.b32.xlu0 %v80_v0, %s93_s8  ;;  %v81_v3 = vld [vmem:[%s142_s0 + $0x2] ss:$4 sm:$0xff]   ;;  %s94_s0 = smov 32   ;;  %4 = vst.msk [vmem:[#allocation0] ss:$8 sm:$0xf] %vm3_vm0, %v2_v2  }
   0x3   :  { %22 = vrot.lane.b32.xlu1 %v82_v1, %s94_s0  ;;  %5 = vst.msk [vmem:[#allocation0] ss:$8 sm:$0xf0] %vm3_vm0, %v2_v2  }
   0x6   :  { %15 = vrot.lane.b32.xlu0 %v81_v3, %s95_s15 }
  0x74   :  { %v9_v4 = vpop.permute.xlu0 %8  }
  0x75   :  { %11 = vst.msk [vmem:[#allocation0] ss:$8 sm:$0xf] %vm10_vm1, %v9_v4   ;;  %12 = vst.msk [vmem:[#allocation0] ss:$8 sm:$0xf0] %vm10_vm1, %v9_v4   ;;  %v23_v5 = vpop.permute.xlu1 %22  }
  0x78   :  { %v16_v6 = vpop.permute.xlu0 %15  }
  0x79   :  { %18 = vst.msk [vmem:[#allocation0] ss:$8 sm:$0xf] %vm17_vm2, %v16_v6   ;;  %19 = vst.msk [vmem:[#allocation0] ss:$8 sm:$0xf0] %vm17_vm2, %v16_v6  }
  0x7a   :  { %25 = vst.msk [vmem:[#allocation0] ss:$8 sm:$0xf] %vm24_vm3, %v23_v5   ;;  %26 = vst.msk [vmem:[#allocation0] ss:$8 sm:$0xf0] %vm24_vm3, %v23_v5  }
  0x81   :  { %v30_v7 = vld [vmem:[#allocation0] sm:$0x1]  ;;  %v34_v8 = vld [vmem:[#allocation0 + $0x8] sm:$0x1]  ;;  %v39_v9 = vld [vmem:[#allocation0 + $0x10] sm:$0x1] }
  0x82   :  { %32 = vst [vmem:[%s143_s1] sm:$0x1] %v30_v7  ;;  %83 = vst [vmem:[%s143_s1 + $0x1] sm:$0x1] %v34_v8  ;;  %v45_v10 = vld [vmem:[#allocation0 + $0x18] sm:$0x1] }
  0x83   :  { %84 = vst [vmem:[%s143_s1 + $0x2] sm:$0x1] %v39_v9  ;;  %v51_v11 = vld [vmem:[#allocation0 + $0x20] sm:$0x1]  ;;  %v57_v12 = vld [vmem:[#allocation0 + $0x28] sm:$0x1] }
  0x84   :  { %85 = vst [vmem:[%s143_s1 + $0x3] sm:$0x1] %v45_v10  ;;  %86 = vst [vmem:[%s143_s1 + $0x4] sm:$0x1] %v51_v11  ;;  %v63_v13 = vld [vmem:[#allocation0 + $0x30] sm:$0x1] }
  0x85   :  { %87 = vst [vmem:[%s143_s1 + $0x5] sm:$0x1] %v57_v12  ;;  %v69_v14 = vld [vmem:[#allocation0 + $0x38] sm:$0x1]  ;;  %88 = vst [vmem:[%s143_s1 + $0x6] sm:$0x1] %v63_v13 }
  0x86   :  { %89 = vst [vmem:[%s143_s1 + $0x7] sm:$0x1] %v69_v14 }

// kernel: cnn_forward.3
= control target key start
LH: loop header
LB: loop body
LE: loop exit
PB: predicated region body
PF: predicated region fallthrough
CT: control target
= control target key end

     0   :  { %s4781_s12 = smov 0   ;;  %s4783_s13 = smov 0   ;;  %s5985_s0 = inlined_call_operand.vmem [shape: f32[2,66,66], index: 0, kind: input, shape index: {}]   ;;  %s5986_s1 = inlined_call_operand.vmem [shape: bf16[3,66,2048], index: 1, kind: input, shape index: {}]   ;;  %s5987_s2 = inlined_call_operand.vmem [shape: f32[1,1024], index: 2, kind: input, shape index: {}]   ;;  %s5988_s3 = inlined_call_operand.vmem [shape: f32[2,32,1024], index: 3, kind: output, shape index: {}]  }
   0x1   :  { %s4785_s14 = smov 0   ;;  %s4787_s15 = smov 0  }
   0x2   :  { %s4789_s16 = smov 0  }
   0x3 LB: > { %s22_s17 = sadd.s32 1, %s4749_s14  ;;  %s25_s18 = sadd.s32 1, %s4753_s15  ;;  %s4757_s16 = sphi %s4789_s16, %s13_s16   ;;  %s4753_s15 = sphi %s4787_s15, %s5994_s15   ;;  %s4749_s14 = sphi %s4785_s14, %s5993_s14   ;;  %s4745_s13 = sphi %s4783_s13, %s5992_s13   ;;  %s4741_s12 = sphi %s4781_s12, %s5991_s12  }
   0x4   : > { %p23_p0 = scmp.ge.s32.totalorder %s22_s17, 2  ;;  %p3941_p1 = scmp.ge.s32.totalorder %s4757_s16, 1 }
   0x5   : > { %p151_p2 = scmp.lt.s32.totalorder %s4757_s16, 5 }
   0x6   : > { %s5996_s17 = smov (%p23_p0, %s22_s17), 0  ;;  %s5998_s18 = smov (!%p23_p0, %s25_s18), %s4753_s15 }
   0x7   : > { %p152_p3 = pnand %p3941_p1, %p151_p2  ;;  %p27_p4 = scmp.ge.s32.totalorder %s5998_s18, 2 }
   0x8   : > { %v3953_v0 = vld [vmem:[%s5986_s1 + $0x240] sm:$0xff] (!%p152_p3)  ;;  %v3954_v2 = vld [vmem:[%s5986_s1 + $0x248] sm:$0xff] (!%p152_p3)  ;;  %p180_p5 = scmp.lt.s32.totalorder (!%p152_p3), %s4745_s13, 1  ;;  %v4759_v8 = vmov (!%p152_p3), 0   ;;  %s3947_s10 = sshll.u32 (!%p152_p3), %s4741_s12, 5  ;;  %vm725_vm0 = vcmask (!%p152_p3), 1040384  }
   0x9   : > { %s6000_s18 = smov (%p27_p4, %s5998_s18), 0  ;;  %155 = sbr.rel (%p152_p3) target bundleno = 725 (0x2d5), region = 32 }
   0xa   : > { %v3961_v1 = vld [vmem:[%s5986_s1 + $0x280] sm:$0xff] (!%p152_p3)  ;;  %v3962_v4 = vld [vmem:[%s5986_s1 + $0x288] sm:$0xff] (!%p152_p3)  ;;  %806 = vmatprep.mubr.bf16.mxu0 (!%p152_p3), %v4759_v8  ;;  %859 = vmatprep.mubr.bf16.mxu1 (!%p152_p3), %v4759_v8  ;;  %v3955_v39 = vld [vmem:[%s5986_s1 + $0x250] sm:$0xff] (!%p152_p3)  ;;  %vm718_vm1 = vcmask (!%p152_p3), 539648   ;;  %vm3178_vm3 = vcmask (!%p152_p3), 261120   ;;  %s3943_s7 = sshll.u32 (!%p152_p3), %s4741_s12, 1 }
   0xb   : > { %v4026_v3 = vcombine.high (!%p152_p3), %v3953_v0, %v3961_v1  ;;  %v4025_v5 = vcombine.low (!%p152_p3), %v3953_v0, %v3961_v1  ;;  %v3969_v6 = vld [vmem:[%s5986_s1 + $0x2c0] sm:$0xff] (!%p152_p3)  ;;  %v4028_v9 = vcombine.high (!%p152_p3), %v3954_v2, %v3962_v4  ;;  %v4027_v10 = vcombine.low (!%p152_p3), %v3954_v2, %v3962_v4  ;;  %v3970_v12 = vld [vmem:[%s5986_s1 + $0x2c8] sm:$0xff] (!%p152_p3)  ;;  %v3963_v40 = vld [vmem:[%s5986_s1 + $0x290] sm:$0xff] (!%p152_p3)  ;;  %p188_p6 = scmp.lt.s32.totalorder (!%p152_p3), %s3943_s7, 3 }
   0xc   : > { %v3977_v7 = vld [vmem:[%s5986_s1 + $0x300] sm:$0xff] (!%p152_p3)  ;;  %v3978_v13 = vld [vmem:[%s5986_s1 + $0x308] sm:$0xff] (!%p152_p3)  ;;  %v3956_v41 = vld [vmem:[%s5986_s1 + $0x258] sm:$0xff] (!%p152_p3)  ;;  %v4030_v46 = vcombine.high (!%p152_p3), %v3955_v39, %v3963_v40  ;;  %v4029_v54 = vcombine.low (!%p152_p3), %v3955_v39, %v3963_v40 }
   0xd   : > { %v4042_v11 = vcombine.high (!%p152_p3), %v3969_v6, %v3977_v7  ;;  %v3985_v14 = vld [vmem:[%s5986_s1 + $0x340] sm:$0xff] (!%p152_p3)  ;;  %774 = vmatprep.subr.bf16.mxu0 (!%p152_p3), %v4026_v3  ;;  %v4044_v15 = vcombine.high (!%p152_p3), %v3970_v12, %v3978_v13  ;;  %v3986_v17 = vld [vmem:[%s5986_s1 + $0x348] sm:$0xff] (!%p152_p3)  ;;  %827 = vmatprep.subr.bf16.mxu1 (!%p152_p3), %v4028_v9  ;;  %v4041_v19 = vcombine.low (!%p152_p3), %v3969_v6, %v3977_v7  ;;  %v3964_v42 = vld [vmem:[%s5986_s1 + $0x298] sm:$0xff] (!%p152_p3) }
   0xe   : > { %v3993_v16 = vld [vmem:[%s5986_s1 + $0x380] sm:$0xff] (!%p152_p3)  ;;  %v3994_v18 = vld [vmem:[%s5986_s1 + $0x388] sm:$0xff] (!%p152_p3)  ;;  %775 = vmatpush1.bf16.msra.mxu0 (!%p152_p3), %v4025_v5  ;;  %828 = vmatpush1.bf16.msra.mxu1 (!%p152_p3), %v4027_v10  ;;  %v4043_v20 = vcombine.low (!%p152_p3), %v3970_v12, %v3978_v13  ;;  %v4032_v48 = vcombine.high (!%p152_p3), %v3956_v41, %v3964_v42  ;;  %v3971_v49 = vld [vmem:[%s5986_s1 + $0x2d0] sm:$0xff] (!%p152_p3)  ;;  %v4031_v55 = vcombine.low (!%p152_p3), %v3956_v41, %v3964_v42 }
   0xf   : > { %776 = vmatprep.subr.bf16.mxu0 (!%p152_p3), %v4042_v11  ;;  %v4058_v21 = vcombine.high (!%p152_p3), %v3985_v14, %v3993_v16  ;;  %829 = vmatprep.subr.bf16.mxu1 (!%p152_p3), %v4044_v15  ;;  %v4060_v22 = vcombine.high (!%p152_p3), %v3986_v17, %v3994_v18  ;;  %v4001_v23 = vld [vmem:[%s5986_s1 + $0x3c0] sm:$0xff] (!%p152_p3)  ;;  %v4002_v25 = vld [vmem:[%s5986_s1 + $0x3c8] sm:$0xff] (!%p152_p3)  ;;  %v4057_v27 = vcombine.low (!%p152_p3), %v3985_v14, %v3993_v16  ;;  %v3979_v50 = vld [vmem:[%s5986_s1 + $0x310] sm:$0xff] (!%p152_p3) }
  0x10   : > { %s6002_s13 = smov (!%p180_p5, %s4745_s13), 1  ;;  %v4009_v24 = vld [vmem:[%s5986_s1 + $0x400] sm:$0xff]  ;;  %v4010_v26 = vld [vmem:[%s5986_s1 + $0x408] sm:$0xff]  ;;  %v4059_v28 = vcombine.low %v3986_v17, %v3994_v18  ;;  %v3972_v52 = vld [vmem:[%s5986_s1 + $0x2d8] sm:$0xff]  ;;  %v4046_v56 = vcombine.high %v3971_v49, %v3979_v50  ;;  %v4045_v62 = vcombine.low %v3971_v49, %v3979_v50  ;;  %s6004_s7 = smov (!%p188_p6, %s3943_s7), 3 }
  0x11   : > { %s4628_s27 = smul.u32 72, %s6002_s13  ;;  %v4074_v29 = vcombine.high %v4001_v23, %v4009_v24  ;;  %v4076_v30 = vcombine.high %v4002_v25, %v4010_v26  ;;  %v4017_v31 = vld [vmem:[%s5986_s1 + $0x440] sm:$0x11]  ;;  %v4018_v32 = vld [vmem:[%s5986_s1 + $0x448] sm:$0x11]  ;;  %v4073_v33 = vcombine.low %v4001_v23, %v4009_v24  ;;  %v4075_v34 = vcombine.low %v4002_v25, %v4010_v26  ;;  %v3980_v53 = vld [vmem:[%s5986_s1 + $0x318] sm:$0xff] }
  0x12   : > { %777 = vmatpush1.bf16.msra.mxu0 %v4041_v19  ;;  %830 = vmatpush1.bf16.msra.mxu1 %v4043_v20  ;;  %v4090_v35 = vcombine.high %v4017_v31, %v4017_v31  ;;  %v4089_v36 = vcombine.low %v4017_v31, %v4017_v31  ;;  %v4092_v37 = vcombine.high %v4018_v32, %v4018_v32  ;;  %v3987_v58 = vld [vmem:[%s5986_s1 + $0x350] sm:$0xff]  ;;  %v3988_v60 = vld [vmem:[%s5986_s1 + $0x358] sm:$0xff]  ;;  %v3965_v23 = vld [vmem:[%s5986_s1 + $0x2a0] sm:$0xff]  ;;  %s3944_s8 = sshll.u32 %s6004_s7, 3 }
  0x13   : > { %778 = vmatprep.subr.bf16.mxu0 %v4058_v21  ;;  %831 = vmatprep.subr.bf16.mxu1 %v4060_v22  ;;  %s184_s9 = scalar_lea.vmem %s5985_s0, %s4628_s27  ;;  %v4091_v38 = vcombine.low %v4018_v32, %v4018_v32  ;;  %v4048_v57 = vcombine.high %v3972_v52, %v3980_v53  ;;  %v3995_v59 = vld [vmem:[%s5986_s1 + $0x390] sm:$0xff]  ;;  %v3996_v61 = vld [vmem:[%s5986_s1 + $0x398] sm:$0xff]  ;;  %v4047_v1 = vcombine.low %v3972_v52, %v3980_v53  ;;  %v3957_v22 = vld [vmem:[%s5986_s1 + $0x260] sm:$0xff] }
  0x14   : > { %s4882_s20 = scalar_lea.vmem %s184_s9, %s3947_s10  ;;  %v727_v45 = vsel %vm725_vm0, %v4089_v36, 0  ;;  %v4062_v2 = vcombine.high %v3987_v58, %v3995_v59  ;;  %v4064_v3 = vcombine.high %v3988_v60, %v3996_v61  ;;  %v4003_v4 = vld [vmem:[%s5986_s1 + $0x3d0] sm:$0xff]  ;;  %v4004_v6 = vld [vmem:[%s5986_s1 + $0x3d8] sm:$0xff]  ;;  %v4061_v10 = vcombine.low %v3987_v58, %v3995_v59  ;;  %v3958_v24 = vld [vmem:[%s5986_s1 + $0x268] sm:$0xff]  ;;  %s3945_s9 = sshll.u32 %s6002_s13, 5 }
  0x15   : > { %v3949_v43 = vld [vmem:[%s4882_s20 + $0x1] sm:$0xff]  ;;  %v3950_v44 = vld [vmem:[%s4882_s20 + $0x9] sm:$0xff]  ;;  %v733_v47 = vsel %vm725_vm0, %v4091_v38, 0  ;;  %v3951_v63 = vld [vmem:[%s4882_s20 + $0x11] sm:$0xff]  ;;  %v4063_v11 = vcombine.low %v3988_v60, %v3996_v61  ;;  %s192_s10 = sadd.s32 %s3945_s9, %s3944_s8 }
  0x16   : > { %779 = vmatpush1.bf16.msra.mxu0 %v4057_v27  ;;  %832 = vmatpush1.bf16.msra.mxu1 %v4059_v28  ;;  %v4908_v51 = vpack.c.bf16 %v3950_v44, %v3949_v43  ;;  %v3952_v0 = vld [vmem:[%s4882_s20 + $0x19] sm:$0xff]  ;;  %v4011_v5 = vld [vmem:[%s5986_s1 + $0x410] sm:$0xff]  ;;  %v3966_v25 = vld [vmem:[%s5986_s1 + $0x2a8] sm:$0xff]  ;;  %v4034_v27 = vcombine.high %v3957_v22, %v3965_v23  ;;  %s3946_s11 = sshll.u32 %s192_s10, 3 }
  0x17   : > { %780 = vmatprep.subr.bf16.mxu0 %v4074_v29  ;;  %833 = vmatprep.subr.bf16.mxu1 %v4076_v30  ;;  %v4012_v7 = vld [vmem:[%s5986_s1 + $0x418] sm:$0xff]  ;;  %v4948_v9 = vpack.c.bf16 %v3952_v0, %v3951_v63  ;;  %v4078_v12 = vcombine.high %v4003_v4, %v4011_v5  ;;  %v4019_v14 = vld [vmem:[%s5986_s1 + $0x450] sm:$0x11]  ;;  %v4077_v16 = vcombine.low %v4003_v4, %v4011_v5  ;;  %v3973_v30 = vld [vmem:[%s5986_s1 + $0x2e0] sm:$0xff]  ;;  %s5952_s22 = scalar_lea.vmem %s5988_s3, %s3946_s11 }
  0x18   : > { %v4080_v13 = vcombine.high %v4004_v6, %v4012_v7  ;;  %v4020_v15 = vld [vmem:[%s5986_s1 + $0x458] sm:$0x11]  ;;  %v4079_v17 = vcombine.low %v4004_v6, %v4012_v7  ;;  %v4094_v18 = vcombine.high %v4019_v14, %v4019_v14  ;;  %v4093_v19 = vcombine.low %v4019_v14, %v4019_v14  ;;  %v3981_v31 = vld [vmem:[%s5986_s1 + $0x320] sm:$0xff]  ;;  %v3974_v32 = vld [vmem:[%s5986_s1 + $0x2e8] sm:$0xff] }
  0x19   : > { %v4096_v20 = vcombine.high %v4020_v15, %v4020_v15  ;;  %v4095_v21 = vcombine.low %v4020_v15, %v4020_v15  ;;  %v4036_v29 = vcombine.high %v3958_v24, %v3966_v25  ;;  %v4050_v36 = vcombine.high %v3973_v30, %v3981_v31  ;;  %v3989_v38 = vld [vmem:[%s5986_s1 + $0x360] sm:$0xff]  ;;  %v3990_v40 = vld [vmem:[%s5986_s1 + $0x368] sm:$0xff]  ;;  %v3959_v63 = vld [vmem:[%s5986_s1 + $0x270] sm:$0xff] }
  0x1a   : > { %781 = vmatpush1.bf16.msra.mxu0 %v4073_v33  ;;  %834 = vmatpush1.bf16.msra.mxu1 %v4075_v34  ;;  %v739_v26 = vsel %vm725_vm0, %v4093_v19, 0  ;;  %v3982_v33 = vld [vmem:[%s5986_s1 + $0x328] sm:$0xff]  ;;  %v4033_v34 = vcombine.low %v3957_v22, %v3965_v23  ;;  %v3997_v39 = vld [vmem:[%s5986_s1 + $0x3a0] sm:$0xff]  ;;  %v4049_v42 = vcombine.low %v3973_v30, %v3981_v31  ;;  %v3967_v0 = vld [vmem:[%s5986_s1 + $0x2b0] sm:$0xff] }
  0x1b   : > { %4105 = vmatprep.subr.msk.bf16.mxu0 %vm725_vm0, %v4090_v35  ;;  %4108 = vmatprep.subr.msk.bf16.mxu1 %vm725_vm0, %v4092_v37  ;;  %v745_v28 = vsel %vm725_vm0, %v4095_v21, 0  ;;  %v4035_v35 = vcombine.low %v3958_v24, %v3966_v25  ;;  %v4052_v37 = vcombine.high %v3974_v32, %v3982_v33  ;;  %v3998_v41 = vld [vmem:[%s5986_s1 + $0x3a8] sm:$0xff]  ;;  %v4051_v43 = vcombine.low %v3974_v32, %v3982_v33  ;;  %v3975_v7 = vld [vmem:[%s5986_s1 + $0x2f0] sm:$0xff]  ;;  %v3992_v19 = vld [vmem:[%s5986_s1 + $0x378] sm:$0xff] }
  0x1c   : > { %v4066_v44 = vcombine.high %v3989_v38, %v3997_v39  ;;  %v4014_v49 = vld [vmem:[%s5986_s1 + $0x428] sm:$0xff]  ;;  %v4065_v50 = vcombine.low %v3989_v38, %v3997_v39  ;;  %v4067_v52 = vcombine.low %v3990_v40, %v3998_v41  ;;  %v4038_v4 = vcombine.high %v3959_v63, %v3967_v0  ;;  %v4007_v25 = vld [vmem:[%s5986_s1 + $0x3f0] sm:$0xff] }
  0x1d   : > { %v4023_v33 = vld [vmem:[%s5986_s1 + $0x470] sm:$0x11] }
  0x1e   : > { %783 = vmatpush1.bf16.msra.mxu0 %v727_v45  ;;  %836 = vmatpush1.bf16.msra.mxu1 %v733_v47  ;;  %v4068_v45 = vcombine.high %v3990_v40, %v3998_v41  ;;  %v4013_v47 = vld [vmem:[%s5986_s1 + $0x420] sm:$0xff]  ;;  %v4101_v38 = vcombine.low %v4023_v33, %v4023_v33 }
  0x1f   : > { %880 = vmatprep.subr.bf16.mxu0 %v4030_v46  ;;  %933 = vmatprep.subr.bf16.mxu1 %v4032_v48  ;;  %v4005_v46 = vld [vmem:[%s5986_s1 + $0x3e0] sm:$0xff]  ;;  %v4006_v48 = vld [vmem:[%s5986_s1 + $0x3e8] sm:$0xff] }
  0x20   : > { %v4082_v53 = vcombine.high %v4005_v46, %v4013_v47  ;;  %v4083_v58 = vcombine.low %v4006_v48, %v4014_v49  ;;  %v205_v41 = vld [vmem:[%s5986_s1] sm:$0xff] }
  0x21   : > { %4106 = vmatmul.mubr.msk.bf16.vlgmr.msra.gmra.mrb[0].mxu0 %vm718_vm1, %v4908_v51  ;;  %4109 = vmatmul.mubr.msk.bf16.vlgmr.msra.gmra.mrb[0].mxu1 %vm718_vm1, %v4908_v51 }
  0x22   : > { %881 = vmatpush1.bf16.msra.mxu0 %v4029_v54  ;;  %934 = vmatpush1.bf16.msra.mxu1 %v4031_v55  ;;  %v4084_v54 = vcombine.high %v4006_v48, %v4014_v49  ;;  %v4021_v55 = vld [vmem:[%s5986_s1 + $0x460] sm:$0x11] }
  0x23   : > { %882 = vmatprep.subr.bf16.mxu0 %v4046_v56  ;;  %935 = vmatprep.subr.bf16.mxu1 %v4048_v57  ;;  %v4022_v56 = vld [vmem:[%s5986_s1 + $0x468] sm:$0x11]  ;;  %v4081_v57 = vcombine.low %v4005_v46, %v4013_v47  ;;  %v4098_v59 = vcombine.high %v4021_v55, %v4021_v55  ;;  %v4097_v60 = vcombine.low %v4021_v55, %v4021_v55  ;;  %v221_v49 = vld [vmem:[%s5986_s1 + $0x80] sm:$0xff] }
  0x24   : > { %816 = vmatprep.mubr.bf16.mxu0 %v4759_v8  ;;  %869 = vmatprep.mubr.bf16.mxu1 %v4759_v8  ;;  %v4100_v61 = vcombine.high %v4022_v56, %v4022_v56 }
  0x26   : > { %883 = vmatpush1.bf16.msra.mxu0 %v4045_v62  ;;  %936 = vmatpush1.bf16.msra.mxu1 %v4047_v1  ;;  %v4099_v62 = vcombine.low %v4022_v56, %v4022_v56  ;;  %v3960_v1 = vld [vmem:[%s5986_s1 + $0x278] sm:$0xff] }
  0x27   : > { %884 = vmatprep.subr.bf16.mxu0 %v4062_v2  ;;  %937 = vmatprep.subr.bf16.mxu1 %v4064_v3  ;;  %v3968_v2 = vld [vmem:[%s5986_s1 + $0x2b8] sm:$0xff]  ;;  %v751_v3 = vsel %vm725_vm0, %v4097_v60, 0  ;;  %v238_v60 = vld [vmem:[%s5986_s1 + $0x108] sm:$0xff] }
  0x28   : > { %v757_v5 = vsel %vm725_vm0, %v4099_v62, 0  ;;  %v4040_v6 = vcombine.high %v3960_v1, %v3968_v2  ;;  %v4039_v14 = vcombine.low %v3960_v1, %v3968_v2  ;;  %v253_v2 = vld [vmem:[%s5986_s1 + $0x180] sm:$0xff] }
  0x29   : > { %4107 = vmatmul.mubr.msk.bf16.gmra.mrb[4].mxu0 %vm718_vm1, %v4948_v9  ;;  %4110 = vmatmul.mubr.msk.bf16.gmra.mrb[4].mxu1 %vm718_vm1, %v4948_v9 }
  0x2a   : > { %885 = vmatpush1.bf16.msra.mxu0 %v4061_v10  ;;  %938 = vmatpush1.bf16.msra.mxu1 %v4063_v11  ;;  %v3983_v10 = vld [vmem:[%s5986_s1 + $0x330] sm:$0xff]  ;;  %v3976_v11 = vld [vmem:[%s5986_s1 + $0x2f8] sm:$0xff] }
  0x2b   : > { %886 = vmatprep.subr.bf16.mxu0 %v4078_v12  ;;  %939 = vmatprep.subr.bf16.mxu1 %v4080_v13  ;;  %v3984_v12 = vld [vmem:[%s5986_s1 + $0x338] sm:$0xff]  ;;  %v4037_v13 = vcombine.low %v3959_v63, %v3967_v0  ;;  %v4054_v15 = vcombine.high %v3975_v7, %v3983_v10  ;;  %v4053_v21 = vcombine.low %v3975_v7, %v3983_v10 }
  0x2c   : > { %912 = vmatprep.mubr.bf16.mxu0 %v4759_v8  ;;  %965 = vmatprep.mubr.bf16.mxu1 %v4759_v8  ;;  %v4055_v22 = vcombine.low %v3976_v11, %v3984_v12 }
  0x2e   : > { %887 = vmatpush1.bf16.msra.mxu0 %v4077_v16  ;;  %940 = vmatpush1.bf16.msra.mxu1 %v4079_v17  ;;  %v4056_v16 = vcombine.high %v3976_v11, %v3984_v12  ;;  %v3991_v17 = vld [vmem:[%s5986_s1 + $0x370] sm:$0xff]  ;;  %v269_v11 = vld [vmem:[%s5986_s1 + $0x200] sm:$0x11]  ;;  %v270_v12 = vld [vmem:[%s5986_s1 + $0x208] sm:$0x11] }
  0x2f   : > { %4111 = vmatprep.subr.msk.bf16.mxu0 %vm725_vm0, %v4094_v18  ;;  %4114 = vmatprep.subr.msk.bf16.mxu1 %vm725_vm0, %v4096_v20  ;;  %v3999_v18 = vld [vmem:[%s5986_s1 + $0x3b0] sm:$0xff]  ;;  %v4000_v20 = vld [vmem:[%s5986_s1 + $0x3b8] sm:$0xff] }
  0x30   : > { %v4070_v23 = vcombine.high %v3991_v17, %v3999_v18  ;;  %v4072_v24 = vcombine.high %v3992_v19, %v4000_v20  ;;  %v4071_v30 = vcombine.low %v3992_v19, %v4000_v20  ;;  %v207_v19 = vld [vmem:[%s5986_s1 + $0x10] sm:$0xff]  ;;  %v208_v20 = vld [vmem:[%s5986_s1 + $0x18] sm:$0xff] }
  0x32   : > { %889 = vmatpush1.bf16.msra.mxu0 %v739_v26  ;;  %942 = vmatpush1.bf16.msra.mxu1 %v745_v28  ;;  %v4015_v26 = vld [vmem:[%s5986_s1 + $0x430] sm:$0xff]  ;;  %v4016_v28 = vld [vmem:[%s5986_s1 + $0x438] sm:$0xff] }
  0x33   : > { %986 = vmatprep.subr.bf16.mxu0 %v4034_v27  ;;  %1039 = vmatprep.subr.bf16.mxu1 %v4036_v29  ;;  %v4008_v27 = vld [vmem:[%s5986_s1 + $0x3f8] sm:$0xff]  ;;  %v4069_v29 = vcombine.low %v3991_v17, %v3999_v18  ;;  %v4086_v31 = vcombine.high %v4007_v25, %v4015_v26  ;;  %v4196_v17 = vcombine.high %v270_v12, %v270_v12 }
  0x34   : > { %v4088_v32 = vcombine.high %v4008_v27, %v4016_v28  ;;  %v4195_v18 = vcombine.low %v270_v12, %v270_v12  ;;  %v226_v12 = vld [vmem:[%s5986_s1 + $0xa8] sm:$0xff] }
  0x35   : > { %4112 = vmatmul.mubr.msk.bf16.vlgmr.msra.gmra.mrb[8].mxu0 %vm718_vm1, %v4908_v51  ;;  %4115 = vmatmul.mubr.msk.bf16.vlgmr.msra.gmra.mrb[8].mxu1 %vm718_vm1, %v4908_v51 }
  0x36   : > { %987 = vmatpush1.bf16.msra.mxu0 %v4033_v34  ;;  %1040 = vmatpush1.bf16.msra.mxu1 %v4035_v35  ;;  %v4024_v34 = vld [vmem:[%s5986_s1 + $0x478] sm:$0x11]  ;;  %v4085_v35 = vcombine.low %v4007_v25, %v4015_v26  ;;  %v1571_v26 = vsel %vm725_vm0, %v4195_v18, 0  ;;  %v241_v18 = vld [vmem:[%s5986_s1 + $0x120] sm:$0xff] }
  0x37   : > { %988 = vmatprep.subr.bf16.mxu0 %v4050_v36  ;;  %1041 = vmatprep.subr.bf16.mxu1 %v4052_v37  ;;  %v4087_v36 = vcombine.low %v4008_v27, %v4016_v28  ;;  %v4102_v37 = vcombine.high %v4023_v33, %v4023_v33  ;;  %v4104_v39 = vcombine.high %v4024_v34, %v4024_v34  ;;  %v223_v28 = vld [vmem:[%s5986_s1 + $0x90] sm:$0xff] }
  0x38   : > { %922 = vmatprep.mubr.bf16.mxu0 %v4759_v8  ;;  %975 = vmatprep.mubr.bf16.mxu1 %v4759_v8  ;;  %v4103_v40 = vcombine.low %v4024_v34, %v4024_v34 }
  0x3a   : > { %989 = vmatpush1.bf16.msra.mxu0 %v4049_v42  ;;  %1042 = vmatpush1.bf16.msra.mxu1 %v4051_v43  ;;  %v213_v42 = vld [vmem:[%s5986_s1 + $0x40] sm:$0xff]  ;;  %v206_v43 = vld [vmem:[%s5986_s1 + $0x8] sm:$0xff]  ;;  %v769_v47 = vsel %vm725_vm0, %v4103_v40, 0  ;;  %v248_v40 = vld [vmem:[%s5986_s1 + $0x158] sm:$0xff] }
  0x3b   : > { %990 = vmatprep.subr.bf16.mxu0 %v4066_v44  ;;  %1043 = vmatprep.subr.bf16.mxu1 %v4068_v45  ;;  %v214_v44 = vld [vmem:[%s5986_s1 + $0x48] sm:$0xff]  ;;  %v763_v45 = vsel %vm725_vm0, %v4101_v38, 0  ;;  %v4130_v46 = vcombine.high %v205_v41, %v213_v42  ;;  %v247_v38 = vld [vmem:[%s5986_s1 + $0x150] sm:$0xff] }
  0x3c   : > { %v4132_v48 = vcombine.high %v206_v43, %v214_v44  ;;  %v4131_v55 = vcombine.low %v206_v43, %v214_v44  ;;  %v202_v43 = vld [vmem:[%s4882_s20 + $0x18] sm:$0xff] }
  0x3d   : > { %4113 = vmatmul.mubr.msk.bf16.gmra.mrb[12].mxu0 %vm718_vm1, %v4948_v9  ;;  %4116 = vmatmul.mubr.msk.bf16.gmra.mrb[12].mxu1 %vm718_vm1, %v4948_v9 }
  0x3e   : > { %991 = vmatpush1.bf16.msra.mxu0 %v4065_v50  ;;  %1044 = vmatpush1.bf16.msra.mxu1 %v4067_v52  ;;  %v229_v50 = vld [vmem:[%s5986_s1 + $0xc0] sm:$0xff]  ;;  %v222_v52 = vld [vmem:[%s5986_s1 + $0x88] sm:$0xff] }
  0x3f   : > { %992 = vmatprep.subr.bf16.mxu0 %v4082_v53  ;;  %1045 = vmatprep.subr.bf16.mxu1 %v4084_v54  ;;  %v230_v53 = vld [vmem:[%s5986_s1 + $0xc8] sm:$0xff]  ;;  %v4129_v54 = vcombine.low %v205_v41, %v213_v42  ;;  %v4146_v56 = vcombine.high %v221_v49, %v229_v50  ;;  %v4145_v62 = vcombine.low %v221_v49, %v229_v50  ;;  %v201_v42 = vld [vmem:[%s4882_s20 + $0x10] sm:$0xff]  ;;  %v256_v49 = vld [vmem:[%s5986_s1 + $0x198] sm:$0xff] }
  0x40   : > { %1018 = vmatprep.mubr.bf16.mxu0 %v4759_v8  ;;  %1071 = vmatprep.mubr.bf16.mxu1 %v4759_v8  ;;  %v4147_v63 = vcombine.low %v222_v52, %v230_v53  ;;  %v264_v50 = vld [vmem:[%s5986_s1 + $0x1d8] sm:$0xff] }
  0x42   : > { %993 = vmatpush1.bf16.msra.mxu0 %v4081_v57  ;;  %1046 = vmatpush1.bf16.msra.mxu1 %v4083_v58  ;;  %v4148_v57 = vcombine.high %v222_v52, %v230_v53  ;;  %v237_v58 = vld [vmem:[%s5986_s1 + $0x100] sm:$0xff]  ;;  %v5236_v52 = vpack.c.bf16 %v202_v43, %v201_v42  ;;  %v211_v42 = vld [vmem:[%s5986_s1 + $0x30] sm:$0xff] }
  0x43   : > { %4117 = vmatprep.subr.msk.bf16.mxu0 %vm725_vm0, %v4098_v59  ;;  %4120 = vmatprep.subr.msk.bf16.mxu1 %vm725_vm0, %v4100_v61  ;;  %v245_v59 = vld [vmem:[%s5986_s1 + $0x140] sm:$0xff]  ;;  %v246_v61 = vld [vmem:[%s5986_s1 + $0x148] sm:$0xff]  ;;  %v219_v43 = vld [vmem:[%s5986_s1 + $0x70] sm:$0xff] }
  0x44   : > { %v4162_v0 = vcombine.high %v237_v58, %v245_v59  ;;  %v4164_v1 = vcombine.high %v238_v60, %v246_v61 }
  0x46   : > { %995 = vmatpush1.bf16.msra.mxu0 %v751_v3  ;;  %1048 = vmatpush1.bf16.msra.mxu1 %v757_v5  ;;  %v261_v3 = vld [vmem:[%s5986_s1 + $0x1c0] sm:$0xff]  ;;  %v4161_v5 = vcombine.low %v237_v58, %v245_v59  ;;  %v272_v58 = vld [vmem:[%s5986_s1 + $0x218] sm:$0x11] }
  0x47   : > { %1092 = vmatprep.subr.bf16.mxu0 %v4038_v4  ;;  %1145 = vmatprep.subr.bf16.mxu1 %v4040_v6  ;;  %v262_v4 = vld [vmem:[%s5986_s1 + $0x1c8] sm:$0xff]  ;;  %v4163_v6 = vcombine.low %v238_v60, %v246_v61  ;;  %v4178_v7 = vcombine.high %v253_v2, %v261_v3  ;;  %v4183_v60 = vcombine.low %v256_v49, %v264_v50 }
  0x49   : > { %4118 = vmatmul.mubr.msk.bf16.vlgmr.msra.gmra.mrb[16].mxu0 %vm718_vm1, %v4908_v51  ;;  %4121 = vmatmul.mubr.msk.bf16.vlgmr.msra.gmra.mrb[16].mxu1 %vm718_vm1, %v4908_v51 }
  0x4a   : > { %1093 = vmatpush1.bf16.msra.mxu0 %v4037_v13  ;;  %1146 = vmatpush1.bf16.msra.mxu1 %v4039_v14  ;;  %v4177_v13 = vcombine.low %v253_v2, %v261_v3  ;;  %v217_v2 = vld [vmem:[%s5986_s1 + $0x60] sm:$0xff]  ;;  %v210_v3 = vld [vmem:[%s5986_s1 + $0x28] sm:$0xff] }
  0x4b   : > { %1094 = vmatprep.subr.bf16.mxu0 %v4054_v15  ;;  %1147 = vmatprep.subr.bf16.mxu1 %v4056_v16  ;;  %v4194_v15 = vcombine.high %v269_v11, %v269_v11  ;;  %v4193_v16 = vcombine.low %v269_v11, %v269_v11  ;;  %v233_v11 = vld [vmem:[%s5986_s1 + $0xe0] sm:$0xff] }
  0x4c   : > { %1028 = vmatprep.mubr.bf16.mxu0 %v4759_v8  ;;  %1081 = vmatprep.mubr.bf16.mxu1 %v4759_v8 }
  0x4e   : > { %1095 = vmatpush1.bf16.msra.mxu0 %v4053_v21  ;;  %1148 = vmatpush1.bf16.msra.mxu1 %v4055_v22  ;;  %v216_v21 = vld [vmem:[%s5986_s1 + $0x58] sm:$0xff]  ;;  %v199_v22 = vld [vmem:[%s4882_s20] sm:$0xff] }
  0x4f   : > { %1096 = vmatprep.subr.bf16.mxu0 %v4070_v23  ;;  %1149 = vmatprep.subr.bf16.mxu1 %v4072_v24  ;;  %v200_v23 = vld [vmem:[%s4882_s20 + $0x8] sm:$0xff]  ;;  %v1565_v24 = vsel %vm725_vm0, %v4193_v16, 0  ;;  %v4136_v27 = vcombine.high %v208_v20, %v216_v21  ;;  %v4135_v34 = vcombine.low %v208_v20, %v216_v21 }
  0x50   : > { %v250_v20 = vld [vmem:[%s5986_s1 + $0x168] sm:$0xff] }
  0x51   : > { %4119 = vmatmul.mubr.msk.bf16.gmra.mrb[20].mxu0 %vm718_vm1, %v4948_v9  ;;  %4122 = vmatmul.mubr.msk.bf16.gmra.mrb[20].mxu1 %vm718_vm1, %v4948_v9 }
  0x52   : > { %1097 = vmatpush1.bf16.msra.mxu0 %v4069_v29  ;;  %1150 = vmatpush1.bf16.msra.mxu1 %v4071_v30  ;;  %v231_v29 = vld [vmem:[%s5986_s1 + $0xd0] sm:$0xff]  ;;  %v5196_v30 = vpack.c.bf16 %v200_v23, %v199_v22 }
  0x53   : > { %1098 = vmatprep.subr.bf16.mxu0 %v4086_v31  ;;  %1151 = vmatprep.subr.bf16.mxu1 %v4088_v32  ;;  %v224_v31 = vld [vmem:[%s5986_s1 + $0x98] sm:$0xff]  ;;  %v4149_v41 = vcombine.low %v223_v28, %v231_v29 }
  0x54   : > { %1124 = vmatprep.mubr.bf16.mxu0 %v4759_v8  ;;  %1177 = vmatprep.mubr.bf16.mxu1 %v4759_v8  ;;  %v232_v32 = vld [vmem:[%s5986_s1 + $0xd8] sm:$0xff] }
  0x55   : > { %v4151_v44 = vcombine.low %v224_v31, %v232_v32 }
  0x56   : > { %1099 = vmatpush1.bf16.msra.mxu0 %v4085_v35  ;;  %1152 = vmatpush1.bf16.msra.mxu1 %v4087_v36  ;;  %v4150_v35 = vcombine.high %v223_v28, %v231_v29  ;;  %v4152_v36 = vcombine.high %v224_v31, %v232_v32  ;;  %v266_v28 = vld [vmem:[%s5986_s1 + $0x1e8] sm:$0xff] }
  0x57   : > { %4123 = vmatprep.subr.msk.bf16.mxu0 %vm725_vm0, %v4102_v37  ;;  %4126 = vmatprep.subr.msk.bf16.mxu1 %vm725_vm0, %v4104_v39  ;;  %v239_v37 = vld [vmem:[%s5986_s1 + $0x110] sm:$0xff]  ;;  %v240_v39 = vld [vmem:[%s5986_s1 + $0x118] sm:$0xff] }
  0x58   : > { %v4165_v53 = vcombine.low %v239_v37, %v247_v38 }
  0x5a   : > { %1101 = vmatpush1.bf16.msra.mxu0 %v763_v45  ;;  %1154 = vmatpush1.bf16.msra.mxu1 %v769_v47  ;;  %v4166_v45 = vcombine.high %v239_v37, %v247_v38  ;;  %v255_v47 = vld [vmem:[%s5986_s1 + $0x190] sm:$0xff] }
  0x5b   : > { %1612 = vmatprep.subr.bf16.mxu0 %v4130_v46  ;;  %1665 = vmatprep.subr.bf16.mxu1 %v4132_v48  ;;  %v4168_v46 = vcombine.high %v240_v39, %v248_v40  ;;  %v263_v48 = vld [vmem:[%s5986_s1 + $0x1d0] sm:$0xff] }
  0x5c   : > { %v4181_v59 = vcombine.low %v255_v47, %v263_v48 }
  0x5d   : > { %4124 = vmatmul.mubr.msk.bf16.vlgmr.msra.gmra.mrb[24].mxu0 %vm718_vm1, %v4908_v51  ;;  %4127 = vmatmul.mubr.msk.bf16.vlgmr.msra.gmra.mrb[24].mxu1 %vm718_vm1, %v4908_v51  ;;  %v254_v51 = vld [vmem:[%s5986_s1 + $0x188] sm:$0xff] }
  0x5e   : > { %1613 = vmatpush1.bf16.msra.mxu0 %v4129_v54  ;;  %1666 = vmatpush1.bf16.msra.mxu1 %v4131_v55  ;;  %v4180_v10 = vcombine.high %v254_v51, %v262_v4  ;;  %v4179_v14 = vcombine.low %v254_v51, %v262_v4  ;;  %v4167_v54 = vcombine.low %v240_v39, %v248_v40  ;;  %v218_v51 = vld [vmem:[%s5986_s1 + $0x68] sm:$0xff] }
  0x5f   : > { %1614 = vmatprep.subr.bf16.mxu0 %v4146_v56  ;;  %1667 = vmatprep.subr.bf16.mxu1 %v4148_v57  ;;  %v4182_v55 = vcombine.high %v255_v47, %v263_v48  ;;  %v4184_v56 = vcombine.high %v256_v49, %v264_v50  ;;  %v271_v57 = vld [vmem:[%s5986_s1 + $0x210] sm:$0x11]  ;;  %v4142_v47 = vcombine.high %v211_v42, %v219_v43 }
  0x60   : > { %1134 = vmatprep.mubr.bf16.mxu0 %v4759_v8  ;;  %1187 = vmatprep.mubr.bf16.mxu1 %v4759_v8  ;;  %v4198_v61 = vcombine.high %v271_v57, %v271_v57  ;;  %v227_v50 = vld [vmem:[%s5986_s1 + $0xb0] sm:$0xff] }
  0x62   : > { %1615 = vmatpush1.bf16.msra.mxu0 %v4145_v62  ;;  %1668 = vmatpush1.bf16.msra.mxu1 %v4147_v63  ;;  %v4197_v62 = vcombine.low %v271_v57, %v271_v57  ;;  %v4200_v63 = vcombine.high %v272_v58, %v272_v58 }
  0x63   : > { %1616 = vmatprep.subr.bf16.mxu0 %v4162_v0  ;;  %1669 = vmatprep.subr.bf16.mxu1 %v4164_v1  ;;  %v4199_v0 = vcombine.low %v272_v58, %v272_v58  ;;  %v209_v1 = vld [vmem:[%s5986_s1 + $0x20] sm:$0xff] }
  0x64   : > { %v1577_v4 = vsel %vm725_vm0, %v4197_v62, 0  ;;  %v244_v62 = vld [vmem:[%s5986_s1 + $0x138] sm:$0xff] }
  0x65   : > { %4125 = vmatmul.mubr.msk.bf16.gmra.mrb[28].mxu0 %vm718_vm1, %v4948_v9  ;;  %4128 = vmatmul.mubr.msk.bf16.gmra.mrb[28].mxu1 %vm718_vm1, %v4948_v9  ;;  %v215_v9 = vld [vmem:[%s5986_s1 + $0x50] sm:$0xff] }
  0x66   : > { %1617 = vmatpush1.bf16.msra.mxu0 %v4161_v5  ;;  %1670 = vmatpush1.bf16.msra.mxu1 %v4163_v6  ;;  %v4134_v25 = vcombine.high %v207_v19, %v215_v9  ;;  %v4133_v33 = vcombine.low %v207_v19, %v215_v9  ;;  %v4138_v5 = vcombine.high %v209_v1, %v217_v2  ;;  %v1583_v6 = vsel %vm725_vm0, %v4199_v0, 0  ;;  %v249_v19 = vld [vmem:[%s5986_s1 + $0x160] sm:$0xff]  ;;  %v242_v9 = vld [vmem:[%s5986_s1 + $0x128] sm:$0xff] }
  0x67   : > { %1618 = vmatprep.subr.bf16.mxu0 %v4178_v7  ;;  %1671 = vmatprep.subr.bf16.mxu1 %v4180_v10  ;;  %v4140_v7 = vcombine.high %v210_v3, %v218_v51  ;;  %v225_v10 = vld [vmem:[%s5986_s1 + $0xa0] sm:$0xff]  ;;  %v4170_v23 = vcombine.high %v241_v18, %v249_v19  ;;  %v4169_v29 = vcombine.low %v241_v18, %v249_v19 }
  0x68   : > { %1644 = vmatprep.mubr.bf16.mxu0 %v4759_v8  ;;  %1697 = vmatprep.mubr.bf16.mxu1 %v4759_v8  ;;  %v4154_v16 = vcombine.high %v225_v10, %v233_v11  ;;  %v4153_v21 = vcombine.low %v225_v10, %v233_v11  ;;  %v4171_v31 = vcombine.low %v242_v9, %v250_v20 }
  0x6a   : > { %1619 = vmatpush1.bf16.msra.mxu0 %v4177_v13  ;;  %1672 = vmatpush1.bf16.msra.mxu1 %v4179_v14  ;;  %v234_v13 = vld [vmem:[%s5986_s1 + $0xe8] sm:$0xff]  ;;  %v4137_v14 = vcombine.low %v209_v1, %v217_v2 }
  0x6b   : > { %4209 = vmatprep.subr.msk.bf16.mxu0 %vm725_vm0, %v4194_v15  ;;  %4212 = vmatprep.subr.msk.bf16.mxu1 %vm725_vm0, %v4196_v17  ;;  %v4139_v15 = vcombine.low %v210_v3, %v218_v51  ;;  %v4156_v17 = vcombine.high %v226_v12, %v234_v13  ;;  %v4155_v22 = vcombine.low %v226_v12, %v234_v13  ;;  %v259_v51 = vld [vmem:[%s5986_s1 + $0x1b0] sm:$0xff] }
  0x6c   : > { %v275_v13 = vld [vmem:[%s5986_s1 + $0x230] sm:$0x11] }
  0x6d   : > { %v4205_v18 = vcombine.low %v275_v13, %v275_v13 }
  0x6e   : > { %1621 = vmatpush1.bf16.msra.mxu0 %v1565_v24  ;;  %1674 = vmatpush1.bf16.msra.mxu1 %v1571_v26  ;;  %v4172_v24 = vcombine.high %v242_v9, %v250_v20  ;;  %v265_v26 = vld [vmem:[%s5986_s1 + $0x1e0] sm:$0xff] }
  0x6f   : > { %1718 = vmatprep.subr.bf16.mxu0 %v4134_v25  ;;  %1771 = vmatprep.subr.bf16.mxu1 %v4136_v27  ;;  %v257_v25 = vld [vmem:[%s5986_s1 + $0x1a0] sm:$0xff]  ;;  %v258_v27 = vld [vmem:[%s5986_s1 + $0x1a8] sm:$0xff] }
  0x70   : > { %v4186_v32 = vcombine.high %v257_v25, %v265_v26  ;;  %v4187_v37 = vcombine.low %v258_v27, %v266_v28  ;;  %v4238_v20 = vld [vmem:[%s5986_s1 + $0x480] sm:$0xff] }
  0x71   : > { %4210 = vmatmul.mubr.msk.bf16.vlgmr.msra.gmra.mrb[0].mxu0 %vm718_vm1, %v5196_v30  ;;  %4213 = vmatmul.mubr.msk.bf16.vlgmr.msra.gmra.mrb[0].mxu1 %vm718_vm1, %v5196_v30 }
  0x72   : > { %1719 = vmatpush1.bf16.msra.mxu0 %v4133_v33  ;;  %1772 = vmatpush1.bf16.msra.mxu1 %v4135_v34  ;;  %v4188_v33 = vcombine.high %v258_v27, %v266_v28  ;;  %v273_v34 = vld [vmem:[%s5986_s1 + $0x220] sm:$0x11] }
  0x73   : > { %1720 = vmatprep.subr.bf16.mxu0 %v4150_v35  ;;  %1773 = vmatprep.subr.bf16.mxu1 %v4152_v36  ;;  %v274_v35 = vld [vmem:[%s5986_s1 + $0x228] sm:$0x11]  ;;  %v4185_v36 = vcombine.low %v257_v25, %v265_v26  ;;  %v4202_v38 = vcombine.high %v273_v34, %v273_v34  ;;  %v4201_v39 = vcombine.low %v273_v34, %v273_v34  ;;  %v4254_v28 = vld [vmem:[%s5986_s1 + $0x500] sm:$0xff] }
  0x74   : > { %1654 = vmatprep.mubr.bf16.mxu0 %v4759_v8  ;;  %1707 = vmatprep.mubr.bf16.mxu1 %v4759_v8  ;;  %v4204_v40 = vcombine.high %v274_v35, %v274_v35 }
  0x76   : > { %1721 = vmatpush1.bf16.msra.mxu0 %v4149_v41  ;;  %1774 = vmatpush1.bf16.msra.mxu1 %v4151_v44  ;;  %v4203_v41 = vcombine.low %v274_v35, %v274_v35  ;;  %v212_v44 = vld [vmem:[%s5986_s1 + $0x38] sm:$0xff] }
  0x77   : > { %1722 = vmatprep.subr.bf16.mxu0 %v4166_v45  ;;  %1775 = vmatprep.subr.bf16.mxu1 %v4168_v46  ;;  %v220_v45 = vld [vmem:[%s5986_s1 + $0x78] sm:$0xff]  ;;  %v1589_v46 = vsel %vm725_vm0, %v4201_v39, 0  ;;  %v4271_v39 = vld [vmem:[%s5986_s1 + $0x588] sm:$0xff] }
  0x78   : > { %v1595_v48 = vsel %vm725_vm0, %v4203_v41, 0  ;;  %v4144_v49 = vcombine.high %v212_v44, %v220_v45  ;;  %v4143_v57 = vcombine.low %v212_v44, %v220_v45  ;;  %v4286_v45 = vld [vmem:[%s5986_s1 + $0x600] sm:$0xff] }
  0x79   : > { %4211 = vmatmul.mubr.msk.bf16.gmra.mrb[4].mxu0 %vm718_vm1, %v5236_v52  ;;  %4214 = vmatmul.mubr.msk.bf16.gmra.mrb[4].mxu1 %vm718_vm1, %v5236_v52 }
  0x7a   : > { %1723 = vmatpush1.bf16.msra.mxu0 %v4165_v53  ;;  %1776 = vmatpush1.bf16.msra.mxu1 %v4167_v54  ;;  %v235_v53 = vld [vmem:[%s5986_s1 + $0xf0] sm:$0xff]  ;;  %v228_v54 = vld [vmem:[%s5986_s1 + $0xb8] sm:$0xff] }
  0x7b   : > { %1724 = vmatprep.subr.bf16.mxu0 %v4182_v55  ;;  %1777 = vmatprep.subr.bf16.mxu1 %v4184_v56  ;;  %v236_v55 = vld [vmem:[%s5986_s1 + $0xf8] sm:$0xff]  ;;  %v4141_v56 = vcombine.low %v211_v42, %v219_v43  ;;  %v4158_v58 = vcombine.high %v227_v50, %v235_v53  ;;  %v4157_v0 = vcombine.low %v227_v50, %v235_v53 }
  0x7c   : > { %1750 = vmatprep.mubr.bf16.mxu0 %v4759_v8  ;;  %1803 = vmatprep.mubr.bf16.mxu1 %v4759_v8  ;;  %v4159_v1 = vcombine.low %v228_v54, %v236_v55 }
  0x7e   : > { %1725 = vmatpush1.bf16.msra.mxu0 %v4181_v59  ;;  %1778 = vmatpush1.bf16.msra.mxu1 %v4183_v60  ;;  %v4160_v59 = vcombine.high %v228_v54, %v236_v55  ;;  %v243_v60 = vld [vmem:[%s5986_s1 + $0x130] sm:$0xff]  ;;  %v4302_v54 = vld [vmem:[%s5986_s1 + $0x680] sm:$0x11]  ;;  %v4303_v55 = vld [vmem:[%s5986_s1 + $0x688] sm:$0x11] }
  0x7f   : > { %4215 = vmatprep.subr.msk.bf16.mxu0 %vm725_vm0, %v4198_v61  ;;  %4218 = vmatprep.subr.msk.bf16.mxu1 %vm725_vm0, %v4200_v63  ;;  %v251_v61 = vld [vmem:[%s5986_s1 + $0x170] sm:$0xff]  ;;  %v252_v63 = vld [vmem:[%s5986_s1 + $0x178] sm:$0xff] }
  0x80   : > { %v4174_v2 = vcombine.high %v243_v60, %v251_v61  ;;  %v4176_v3 = vcombine.high %v244_v62, %v252_v63  ;;  %v4175_v10 = vcombine.low %v244_v62, %v252_v63  ;;  %v4240_v62 = vld [vmem:[%s5986_s1 + $0x490] sm:$0xff]  ;;  %v4241_v63 = vld [vmem:[%s5986_s1 + $0x498] sm:$0xff] }
  0x82   : > { %1727 = vmatpush1.bf16.msra.mxu0 %v1577_v4  ;;  %1780 = vmatpush1.bf16.msra.mxu1 %v1583_v6  ;;  %v267_v4 = vld [vmem:[%s5986_s1 + $0x1f0] sm:$0xff]  ;;  %v268_v6 = vld [vmem:[%s5986_s1 + $0x1f8] sm:$0xff] }
  0x83   : > { %1824 = vmatprep.subr.bf16.mxu0 %v4138_v5  ;;  %1877 = vmatprep.subr.bf16.mxu1 %v4140_v7  ;;  %v260_v5 = vld [vmem:[%s5986_s1 + $0x1b8] sm:$0xff]  ;;  %v4173_v7 = vcombine.low %v243_v60, %v251_v61  ;;  %v4190_v11 = vcombine.high %v259_v51, %v267_v4  ;;  %v4377_v60 = vcombine.high %v4303_v55, %v4303_v55 }
  0x84   : > { %v4192_v12 = vcombine.high %v260_v5, %v268_v6  ;;  %v4376_v61 = vcombine.low %v4303_v55, %v4303_v55  ;;  %v4259_v55 = vld [vmem:[%s5986_s1 + $0x528] sm:$0xff] }
  0x85   : > { %4216 = vmatmul.mubr.msk.bf16.vlgmr.msra.gmra.mrb[8].mxu0 %vm718_vm1, %v5196_v30  ;;  %4219 = vmatmul.mubr.msk.bf16.vlgmr.msra.gmra.mrb[8].mxu1 %vm718_vm1, %v5196_v30 }
  0x86   : > { %1825 = vmatpush1.bf16.msra.mxu0 %v4137_v14  ;;  %1878 = vmatpush1.bf16.msra.mxu1 %v4139_v15  ;;  %v276_v14 = vld [vmem:[%s5986_s1 + $0x238] sm:$0x11]  ;;  %v4189_v15 = vcombine.low %v259_v51, %v267_v4  ;;  %v2490_v4 = vsel %vm725_vm0, %v4376_v61, 0  ;;  %v4274_v61 = vld [vmem:[%s5986_s1 + $0x5a0] sm:$0xff] }
  0x87   : > { %1826 = vmatprep.subr.bf16.mxu0 %v4154_v16  ;;  %1879 = vmatprep.subr.bf16.mxu1 %v4156_v17  ;;  %v4191_v16 = vcombine.low %v260_v5, %v268_v6  ;;  %v4206_v17 = vcombine.high %v275_v13, %v275_v13  ;;  %v4208_v19 = vcombine.high %v276_v14, %v276_v14  ;;  %v4256_v6 = vld [vmem:[%s5986_s1 + $0x510] sm:$0xff] }
  0x88   : > { %1760 = vmatprep.mubr.bf16.mxu0 %v4759_v8  ;;  %1813 = vmatprep.mubr.bf16.mxu1 %v4759_v8  ;;  %v4207_v9 = vcombine.low %v276_v14, %v276_v14 }
  0x8a   : > { %1827 = vmatpush1.bf16.msra.mxu0 %v4153_v21  ;;  %1880 = vmatpush1.bf16.msra.mxu1 %v4155_v22  ;;  %v4246_v21 = vld [vmem:[%s5986_s1 + $0x4c0] sm:$0xff]  ;;  %v4239_v22 = vld [vmem:[%s5986_s1 + $0x488] sm:$0xff]  ;;  %v1607_v26 = vsel %vm725_vm0, %v4207_v9, 0  ;;  %v4281_v9 = vld [vmem:[%s5986_s1 + $0x5d8] sm:$0xff] }
  0x8b   : > { %1828 = vmatprep.subr.bf16.mxu0 %v4170_v23  ;;  %1881 = vmatprep.subr.bf16.mxu1 %v4172_v24  ;;  %v4247_v23 = vld [vmem:[%s5986_s1 + $0x4c8] sm:$0xff]  ;;  %v1601_v24 = vsel %vm725_vm0, %v4205_v18, 0  ;;  %v4311_v25 = vcombine.high %v4238_v20, %v4246_v21  ;;  %v4280_v18 = vld [vmem:[%s5986_s1 + $0x5d0] sm:$0xff] }
  0x8c   : > { %v4313_v27 = vcombine.high %v4239_v22, %v4247_v23  ;;  %v4312_v34 = vcombine.low %v4239_v22, %v4247_v23  ;;  %v4237_v22 = vld [vmem:[%s4882_s20 + $0x1a] sm:$0xff] }
  0x8d   : > { %4217 = vmatmul.mubr.msk.bf16.gmra.mrb[12].mxu0 %vm718_vm1, %v5236_v52  ;;  %4220 = vmatmul.mubr.msk.bf16.gmra.mrb[12].mxu1 %vm718_vm1, %v5236_v52 }
  0x8e   : > { %1829 = vmatpush1.bf16.msra.mxu0 %v4169_v29  ;;  %1882 = vmatpush1.bf16.msra.mxu1 %v4171_v31  ;;  %v4262_v29 = vld [vmem:[%s5986_s1 + $0x540] sm:$0xff]  ;;  %v4255_v31 = vld [vmem:[%s5986_s1 + $0x508] sm:$0xff] }
  0x8f   : > { %1830 = vmatprep.subr.bf16.mxu0 %v4186_v32  ;;  %1883 = vmatprep.subr.bf16.mxu1 %v4188_v33  ;;  %v4263_v32 = vld [vmem:[%s5986_s1 + $0x548] sm:$0xff]  ;;  %v4310_v33 = vcombine.low %v4238_v20, %v4246_v21  ;;  %v4327_v35 = vcombine.high %v4254_v28, %v4262_v29  ;;  %v4326_v41 = vcombine.low %v4254_v28, %v4262_v29  ;;  %v4236_v21 = vld [vmem:[%s4882_s20 + $0x12] sm:$0xff] }
  0x90   : > { %1856 = vmatprep.mubr.bf16.mxu0 %v4759_v8  ;;  %1909 = vmatprep.mubr.bf16.mxu1 %v4759_v8  ;;  %v4328_v42 = vcombine.low %v4255_v31, %v4263_v32  ;;  %v5518_v28 = vpack.c.bf16 %v4237_v22, %v4236_v21  ;;  %v4289_v29 = vld [vmem:[%s5986_s1 + $0x618] sm:$0xff]  ;;  %v4244_v21 = vld [vmem:[%s5986_s1 + $0x4b0] sm:$0xff] }
  0x91   : > { %v4252_v22 = vld [vmem:[%s5986_s1 + $0x4f0] sm:$0xff] }
  0x92   : > { %1831 = vmatpush1.bf16.msra.mxu0 %v4185_v36  ;;  %1884 = vmatpush1.bf16.msra.mxu1 %v4187_v37  ;;  %v4329_v36 = vcombine.high %v4255_v31, %v4263_v32  ;;  %v4270_v37 = vld [vmem:[%s5986_s1 + $0x580] sm:$0xff]  ;;  %v4297_v31 = vld [vmem:[%s5986_s1 + $0x658] sm:$0xff] }
  0x93   : > { %4221 = vmatprep.subr.msk.bf16.mxu0 %vm725_vm0, %v4202_v38  ;;  %4224 = vmatprep.subr.msk.bf16.mxu1 %vm725_vm0, %v4204_v40  ;;  %v4278_v38 = vld [vmem:[%s5986_s1 + $0x5c0] sm:$0xff]  ;;  %v4279_v40 = vld [vmem:[%s5986_s1 + $0x5c8] sm:$0xff] }
  0x94   : > { %v4343_v43 = vcombine.high %v4270_v37, %v4278_v38  ;;  %v4345_v44 = vcombine.high %v4271_v39, %v4279_v40 }
  0x96   : > { %1833 = vmatpush1.bf16.msra.mxu0 %v1589_v46  ;;  %1886 = vmatpush1.bf16.msra.mxu1 %v1595_v48  ;;  %v4294_v46 = vld [vmem:[%s5986_s1 + $0x640] sm:$0xff]  ;;  %v4342_v48 = vcombine.low %v4270_v37, %v4278_v38  ;;  %v4305_v37 = vld [vmem:[%s5986_s1 + $0x698] sm:$0x11] }
  0x97   : > { %1930 = vmatprep.subr.bf16.mxu0 %v4142_v47  ;;  %1983 = vmatprep.subr.bf16.mxu1 %v4144_v49  ;;  %v4295_v47 = vld [vmem:[%s5986_s1 + $0x648] sm:$0xff]  ;;  %v4344_v49 = vcombine.low %v4271_v39, %v4279_v40  ;;  %v4359_v50 = vcombine.high %v4286_v45, %v4294_v46  ;;  %v4364_v39 = vcombine.low %v4289_v29, %v4297_v31 }
  0x99   : > { %4222 = vmatmul.mubr.msk.bf16.vlgmr.msra.gmra.mrb[16].mxu0 %vm718_vm1, %v5196_v30  ;;  %4225 = vmatmul.mubr.msk.bf16.vlgmr.msra.gmra.mrb[16].mxu1 %vm718_vm1, %v5196_v30 }
  0x9a   : > { %1931 = vmatpush1.bf16.msra.mxu0 %v4141_v56  ;;  %1984 = vmatpush1.bf16.msra.mxu1 %v4143_v57  ;;  %v4358_v56 = vcombine.low %v4286_v45, %v4294_v46  ;;  %v4250_v45 = vld [vmem:[%s5986_s1 + $0x4e0] sm:$0xff]  ;;  %v4243_v46 = vld [vmem:[%s5986_s1 + $0x4a8] sm:$0xff] }
  0x9b   : > { %1932 = vmatprep.subr.bf16.mxu0 %v4158_v58  ;;  %1985 = vmatprep.subr.bf16.mxu1 %v4160_v59  ;;  %v4375_v58 = vcombine.high %v4302_v54, %v4302_v54  ;;  %v4374_v59 = vcombine.low %v4302_v54, %v4302_v54  ;;  %v4266_v54 = vld [vmem:[%s5986_s1 + $0x560] sm:$0xff] }
  0x9c   : > { %1866 = vmatprep.mubr.bf16.mxu0 %v4759_v8  ;;  %1919 = vmatprep.mubr.bf16.mxu1 %v4759_v8 }
  0x9e   : > { %1933 = vmatpush1.bf16.msra.mxu0 %v4157_v0  ;;  %1986 = vmatpush1.bf16.msra.mxu1 %v4159_v1  ;;  %v4249_v0 = vld [vmem:[%s5986_s1 + $0x4d8] sm:$0xff]  ;;  %v4234_v1 = vld [vmem:[%s4882_s20 + $0x2] sm:$0xff] }
  0x9f   : > { %1934 = vmatprep.subr.bf16.mxu0 %v4174_v2  ;;  %1987 = vmatprep.subr.bf16.mxu1 %v4176_v3  ;;  %v4235_v2 = vld [vmem:[%s4882_s20 + $0xa] sm:$0xff]  ;;  %v2484_v3 = vsel %vm725_vm0, %v4374_v59, 0  ;;  %v4317_v5 = vcombine.high %v4241_v63, %v4249_v0  ;;  %v4316_v14 = vcombine.low %v4241_v63, %v4249_v0 }
  0xa0   : > { %v4283_v63 = vld [vmem:[%s5986_s1 + $0x5e8] sm:$0xff] }
  0xa1   : > { %4223 = vmatmul.mubr.msk.bf16.gmra.mrb[20].mxu0 %vm718_vm1, %v5236_v52  ;;  %4226 = vmatmul.mubr.msk.bf16.gmra.mrb[20].mxu1 %vm718_vm1, %v5236_v52 }
  0xa2   : > { %1935 = vmatpush1.bf16.msra.mxu0 %v4173_v7  ;;  %1988 = vmatpush1.bf16.msra.mxu1 %v4175_v10  ;;  %v4264_v7 = vld [vmem:[%s5986_s1 + $0x550] sm:$0xff]  ;;  %v5484_v10 = vpack.c.bf16 %v4235_v2, %v4234_v1 }
  0xa3   : > { %1936 = vmatprep.subr.bf16.mxu0 %v4190_v11  ;;  %1989 = vmatprep.subr.bf16.mxu1 %v4192_v12  ;;  %v4257_v11 = vld [vmem:[%s5986_s1 + $0x518] sm:$0xff]  ;;  %v4330_v20 = vcombine.low %v4256_v6, %v4264_v7 }
  0xa4   : > { %1962 = vmatprep.mubr.bf16.mxu0 %v4759_v8  ;;  %2015 = vmatprep.mubr.bf16.mxu1 %v4759_v8  ;;  %v4265_v12 = vld [vmem:[%s5986_s1 + $0x558] sm:$0xff] }
  0xa5   : > { %v4332_v23 = vcombine.low %v4257_v11, %v4265_v12 }
  0xa6   : > { %1937 = vmatpush1.bf16.msra.mxu0 %v4189_v15  ;;  %1990 = vmatpush1.bf16.msra.mxu1 %v4191_v16  ;;  %v4331_v15 = vcombine.high %v4256_v6, %v4264_v7  ;;  %v4333_v16 = vcombine.high %v4257_v11, %v4265_v12  ;;  %v4299_v6 = vld [vmem:[%s5986_s1 + $0x668] sm:$0xff] }
  0xa7   : > { %4227 = vmatprep.subr.msk.bf16.mxu0 %vm725_vm0, %v4206_v17  ;;  %4230 = vmatprep.subr.msk.bf16.mxu1 %vm725_vm0, %v4208_v19  ;;  %v4272_v17 = vld [vmem:[%s5986_s1 + $0x590] sm:$0xff]  ;;  %v4273_v19 = vld [vmem:[%s5986_s1 + $0x598] sm:$0xff] }
  0xa8   : > { %v4346_v32 = vcombine.low %v4272_v17, %v4280_v18 }
  0xaa   : > { %1939 = vmatpush1.bf16.msra.mxu0 %v1601_v24  ;;  %1992 = vmatpush1.bf16.msra.mxu1 %v1607_v26  ;;  %v4347_v24 = vcombine.high %v4272_v17, %v4280_v18  ;;  %v4288_v26 = vld [vmem:[%s5986_s1 + $0x610] sm:$0xff] }
  0xab   : > { %2531 = vmatprep.subr.bf16.mxu0 %v4311_v25  ;;  %2584 = vmatprep.subr.bf16.mxu1 %v4313_v27  ;;  %v4349_v25 = vcombine.high %v4273_v19, %v4281_v9  ;;  %v4296_v27 = vld [vmem:[%s5986_s1 + $0x650] sm:$0xff] }
  0xac   : > { %v4362_v38 = vcombine.low %v4288_v26, %v4296_v27 }
  0xad   : > { %4228 = vmatmul.mubr.msk.bf16.vlgmr.msra.gmra.mrb[24].mxu0 %vm718_vm1, %v5196_v30  ;;  %4231 = vmatmul.mubr.msk.bf16.vlgmr.msra.gmra.mrb[24].mxu1 %vm718_vm1, %v5196_v30  ;;  %v4287_v30 = vld [vmem:[%s5986_s1 + $0x608] sm:$0xff] }
  0xae   : > { %2532 = vmatpush1.bf16.msra.mxu0 %v4310_v33  ;;  %2585 = vmatpush1.bf16.msra.mxu1 %v4312_v34  ;;  %v4361_v53 = vcombine.high %v4287_v30, %v4295_v47  ;;  %v4360_v57 = vcombine.low %v4287_v30, %v4295_v47  ;;  %v4348_v33 = vcombine.low %v4273_v19, %v4281_v9  ;;  %v4251_v30 = vld [vmem:[%s5986_s1 + $0x4e8] sm:$0xff] }
  0xaf   : > { %2533 = vmatprep.subr.bf16.mxu0 %v4327_v35  ;;  %2586 = vmatprep.subr.bf16.mxu1 %v4329_v36  ;;  %v4363_v34 = vcombine.high %v4288_v26, %v4296_v27  ;;  %v4365_v35 = vcombine.high %v4289_v29, %v4297_v31  ;;  %v4304_v36 = vld [vmem:[%s5986_s1 + $0x690] sm:$0x11]  ;;  %v4323_v26 = vcombine.high %v4244_v21, %v4252_v22 }
  0xb0   : > { %1972 = vmatprep.mubr.bf16.mxu0 %v4759_v8  ;;  %2025 = vmatprep.mubr.bf16.mxu1 %v4759_v8  ;;  %v4379_v40 = vcombine.high %v4304_v36, %v4304_v36  ;;  %v4260_v31 = vld [vmem:[%s5986_s1 + $0x530] sm:$0xff] }
  0xb2   : > { %2534 = vmatpush1.bf16.msra.mxu0 %v4326_v41  ;;  %2587 = vmatpush1.bf16.msra.mxu1 %v4328_v42  ;;  %v4378_v41 = vcombine.low %v4304_v36, %v4304_v36  ;;  %v4381_v42 = vcombine.high %v4305_v37, %v4305_v37 }
  0xb3   : > { %2535 = vmatprep.subr.bf16.mxu0 %v4343_v43  ;;  %2588 = vmatprep.subr.bf16.mxu1 %v4345_v44  ;;  %v4380_v43 = vcombine.low %v4305_v37, %v4305_v37  ;;  %v4242_v44 = vld [vmem:[%s5986_s1 + $0x4a0] sm:$0xff] }
  0xb4   : > { %v2496_v47 = vsel %vm725_vm0, %v4378_v41, 0  ;;  %v4277_v41 = vld [vmem:[%s5986_s1 + $0x5b8] sm:$0xff] }
  0xb5   : > { %4229 = vmatmul.mubr.msk.bf16.gmra.mrb[28].mxu0 %vm718_vm1, %v5236_v52  ;;  %4232 = vmatmul.mubr.msk.bf16.gmra.mrb[28].mxu1 %vm718_vm1, %v5236_v52  ;;  %v4248_v52 = vld [vmem:[%s5986_s1 + $0x4d0] sm:$0xff] }
  0xb6   : > { %2536 = vmatpush1.bf16.msra.mxu0 %v4342_v48  ;;  %2589 = vmatpush1.bf16.msra.mxu1 %v4344_v49  ;;  %v4315_v51 = vcombine.high %v4240_v62, %v4248_v52  ;;  %v4314_v13 = vcombine.low %v4240_v62, %v4248_v52  ;;  %v4319_v48 = vcombine.high %v4242_v44, %v4250_v45  ;;  %v2502_v49 = vsel %vm725_vm0, %v4380_v43, 0  ;;  %v4282_v62 = vld [vmem:[%s5986_s1 + $0x5e0] sm:$0xff]  ;;  %v4275_v52 = vld [vmem:[%s5986_s1 + $0x5a8] sm:$0xff] }
  0xb7   : > { %2537 = vmatprep.subr.bf16.mxu0 %v4359_v50  ;;  %2590 = vmatprep.subr.bf16.mxu1 %v4361_v53  ;;  %v4321_v50 = vcombine.high %v4243_v46, %v4251_v30  ;;  %v4258_v53 = vld [vmem:[%s5986_s1 + $0x520] sm:$0xff]  ;;  %v4351_v2 = vcombine.high %v4274_v61, %v4282_v62  ;;  %v4350_v7 = vcombine.low %v4274_v61, %v4282_v62 }
  0xb8   : > { %2563 = vmatprep.mubr.bf16.mxu0 %v4759_v8  ;;  %2616 = vmatprep.mubr.bf16.mxu1 %v4759_v8  ;;  %v4335_v59 = vcombine.high %v4258_v53, %v4266_v54  ;;  %v4334_v0 = vcombine.low %v4258_v53, %v4266_v54  ;;  %v4352_v11 = vcombine.low %v4275_v52, %v4283_v63 }
  0xba   : > { %2538 = vmatpush1.bf16.msra.mxu0 %v4358_v56  ;;  %2591 = vmatpush1.bf16.msra.mxu1 %v4360_v57  ;;  %v4267_v56 = vld [vmem:[%s5986_s1 + $0x568] sm:$0xff]  ;;  %v4318_v57 = vcombine.low %v4242_v44, %v4250_v45 }
  0xbb   : > { %4390 = vmatprep.subr.msk.bf16.mxu0 %vm725_vm0, %v4375_v58  ;;  %4393 = vmatprep.subr.msk.bf16.mxu1 %vm725_vm0, %v4377_v60  ;;  %v4320_v58 = vcombine.low %v4243_v46, %v4251_v30  ;;  %v4337_v60 = vcombine.high %v4259_v55, %v4267_v56  ;;  %v4336_v1 = vcombine.low %v4259_v55, %v4267_v56  ;;  %v4292_v30 = vld [vmem:[%s5986_s1 + $0x630] sm:$0xff] }
  0xbc   : > { %v4308_v56 = vld [vmem:[%s5986_s1 + $0x6b0] sm:$0x11] }
  0xbd   : > { %v4386_v61 = vcombine.low %v4308_v56, %v4308_v56 }
  0xbe   : > { %2540 = vmatpush1.bf16.msra.mxu0 %v2484_v3  ;;  %2593 = vmatpush1.bf16.msra.mxu1 %v2490_v4  ;;  %v4353_v3 = vcombine.high %v4275_v52, %v4283_v63  ;;  %v4298_v4 = vld [vmem:[%s5986_s1 + $0x660] sm:$0xff] }
  0xbf   : > { %2637 = vmatprep.subr.bf16.mxu0 %v4315_v51  ;;  %2690 = vmatprep.subr.bf16.mxu1 %v4317_v5  ;;  %v4290_v51 = vld [vmem:[%s5986_s1 + $0x620] sm:$0xff]  ;;  %v4291_v5 = vld [vmem:[%s5986_s1 + $0x628] sm:$0xff]  ;;  %v2520_v63 = vsel %vm725_vm0, %v4386_v61, 0 }
  0xc0   : > { %v4367_v12 = vcombine.high %v4290_v51, %v4298_v4  ;;  %v4368_v17 = vcombine.low %v4291_v5, %v4299_v6 }
  0xc1   : > { %4391 = vmatmul.mubr.msk.bf16.vlgmr.msra.gmra.mrb[0].mxu0 %vm718_vm1, %v5484_v10  ;;  %4394 = vmatmul.mubr.msk.bf16.vlgmr.msra.gmra.mrb[0].mxu1 %vm718_vm1, %v5484_v10 }
  0xc2   : > { %2638 = vmatpush1.bf16.msra.mxu0 %v4314_v13  ;;  %2691 = vmatpush1.bf16.msra.mxu1 %v4316_v14  ;;  %v4369_v13 = vcombine.high %v4291_v5, %v4299_v6  ;;  %v4306_v14 = vld [vmem:[%s5986_s1 + $0x6a0] sm:$0x11] }
  0xc3   : > { %2639 = vmatprep.subr.bf16.mxu0 %v4331_v15  ;;  %2692 = vmatprep.subr.bf16.mxu1 %v4333_v16  ;;  %v4307_v15 = vld [vmem:[%s5986_s1 + $0x6a8] sm:$0x11]  ;;  %v4366_v16 = vcombine.low %v4290_v51, %v4298_v4  ;;  %v4383_v18 = vcombine.high %v4306_v14, %v4306_v14  ;;  %v4382_v19 = vcombine.low %v4306_v14, %v4306_v14 }
  0xc4   : > { %2573 = vmatprep.mubr.bf16.mxu0 %v4759_v8  ;;  %2626 = vmatprep.mubr.bf16.mxu1 %v4759_v8  ;;  %v4385_v9 = vcombine.high %v4307_v15, %v4307_v15 }
  0xc6   : > { %2640 = vmatpush1.bf16.msra.mxu0 %v4330_v20  ;;  %2693 = vmatpush1.bf16.msra.mxu1 %v4332_v23  ;;  %v4384_v20 = vcombine.low %v4307_v15, %v4307_v15  ;;  %v4245_v23 = vld [vmem:[%s5986_s1 + $0x4b8] sm:$0xff] }
  0xc7   : > { %2641 = vmatprep.subr.bf16.mxu0 %v4347_v24  ;;  %2694 = vmatprep.subr.bf16.mxu1 %v4349_v25  ;;  %v4253_v24 = vld [vmem:[%s5986_s1 + $0x4f8] sm:$0xff]  ;;  %v2508_v25 = vsel %vm725_vm0, %v4382_v19, 0 }
  0xc8   : > { %v2514_v27 = vsel %vm725_vm0, %v4384_v20, 0  ;;  %v4325_v29 = vcombine.high %v4245_v23, %v4253_v24  ;;  %v4324_v36 = vcombine.low %v4245_v23, %v4253_v24  ;;  %v3053_v24 = vlaneseq }
  0xc9   : > { %4392 = vmatmul.mubr.msk.bf16.gmra.mrb[4].mxu0 %vm718_vm1, %v5518_v28  ;;  %4395 = vmatmul.mubr.msk.bf16.gmra.mrb[4].mxu1 %vm718_vm1, %v5518_v28 }
  0xca   : > { %2642 = vmatpush1.bf16.msra.mxu0 %v4346_v32  ;;  %2695 = vmatpush1.bf16.msra.mxu1 %v4348_v33  ;;  %v4268_v32 = vld [vmem:[%s5986_s1 + $0x570] sm:$0xff]  ;;  %v4261_v33 = vld [vmem:[%s5986_s1 + $0x538] sm:$0xff] }
  0xcb   : > { %2643 = vmatprep.subr.bf16.mxu0 %v4363_v34  ;;  %2696 = vmatprep.subr.bf16.mxu1 %v4365_v35  ;;  %v4269_v34 = vld [vmem:[%s5986_s1 + $0x578] sm:$0xff]  ;;  %v4322_v35 = vcombine.low %v4244_v21, %v4252_v22  ;;  %v4339_v37 = vcombine.high %v4260_v31, %v4268_v32  ;;  %v4338_v43 = vcombine.low %v4260_v31, %v4268_v32 }
  0xcc   : > { %2669 = vmatprep.mubr.bf16.mxu0 %v4759_v8  ;;  %2722 = vmatprep.mubr.bf16.mxu1 %v4759_v8  ;;  %v4340_v44 = vcombine.low %v4261_v33, %v4269_v34 }
  0xce   : > { %2644 = vmatpush1.bf16.msra.mxu0 %v4362_v38  ;;  %2697 = vmatpush1.bf16.msra.mxu1 %v4364_v39  ;;  %v4341_v38 = vcombine.high %v4261_v33, %v4269_v34  ;;  %v4276_v39 = vld [vmem:[%s5986_s1 + $0x5b0] sm:$0xff]  ;;  %v5743_v34 = vshrl.u32 %v3053_v24, 7 }
  0xcf   : > { %4396 = vmatprep.subr.msk.bf16.mxu0 %vm725_vm0, %v4379_v40  ;;  %4399 = vmatprep.subr.msk.bf16.mxu1 %vm725_vm0, %v4381_v42  ;;  %v4284_v40 = vld [vmem:[%s5986_s1 + $0x5f0] sm:$0xff]  ;;  %v4285_v42 = vld [vmem:[%s5986_s1 + $0x5f8] sm:$0xff] }
  0xd0   : > { %v4355_v45 = vcombine.high %v4276_v39, %v4284_v40  ;;  %v4357_v46 = vcombine.high %v4277_v41, %v4285_v42  ;;  %v4356_v53 = vcombine.low %v4277_v41, %v4285_v42 }
  0xd2   : > { %2646 = vmatpush1.bf16.msra.mxu0 %v2496_v47  ;;  %2699 = vmatpush1.bf16.msra.mxu1 %v2502_v49  ;;  %v4300_v47 = vld [vmem:[%s5986_s1 + $0x670] sm:$0xff]  ;;  %v4301_v49 = vld [vmem:[%s5986_s1 + $0x678] sm:$0xff] }
  0xd3   : > { %2743 = vmatprep.subr.bf16.mxu0 %v4319_v48  ;;  %2796 = vmatprep.subr.bf16.mxu1 %v4321_v50  ;;  %v4293_v48 = vld [vmem:[%s5986_s1 + $0x638] sm:$0xff]  ;;  %v4354_v50 = vcombine.low %v4276_v39, %v4284_v40  ;;  %v4371_v54 = vcombine.high %v4292_v30, %v4300_v47  ;;  %v3059_v39 = vsub.s32 1, %v5743_v34  ;;  %v3067_v40 = vsub.s32 3, %v5743_v34 }
  0xd4   : > { %v4373_v55 = vcombine.high %v4293_v48, %v4301_v49 }
  0xd5   : > { %4397 = vmatmul.mubr.msk.bf16.vlgmr.msra.gmra.mrb[8].mxu0 %vm718_vm1, %v5484_v10  ;;  %4400 = vmatmul.mubr.msk.bf16.vlgmr.msra.gmra.mrb[8].mxu1 %vm718_vm1, %v5484_v10 }
  0xd6   : > { %2744 = vmatpush1.bf16.msra.mxu0 %v4318_v57  ;;  %2797 = vmatpush1.bf16.msra.mxu1 %v4320_v58  ;;  %v4309_v57 = vld [vmem:[%s5986_s1 + $0x6b8] sm:$0x11]  ;;  %v4370_v58 = vcombine.low %v4292_v30, %v4300_v47 }
  0xd7   : > { %2745 = vmatprep.subr.bf16.mxu0 %v4335_v59  ;;  %2798 = vmatprep.subr.bf16.mxu1 %v4337_v60  ;;  %v4372_v59 = vcombine.low %v4293_v48, %v4301_v49  ;;  %v4387_v60 = vcombine.high %v4308_v56, %v4308_v56  ;;  %v4389_v62 = vcombine.high %v4309_v57, %v4309_v57 }
  0xd8   : > { %2679 = vmatprep.mubr.bf16.mxu0 %v4759_v8  ;;  %2732 = vmatprep.mubr.bf16.mxu1 %v4759_v8  ;;  %v4388_v52 = vcombine.low %v4309_v57, %v4309_v57 }
  0xda   : > { %2746 = vmatpush1.bf16.msra.mxu0 %v4334_v0  ;;  %2799 = vmatpush1.bf16.msra.mxu1 %v4336_v1  ;;  %v2526_v0 = vsel %vm725_vm0, %v4388_v52, 0  ;;  %v4760_v1 = vmov 0.0  }
  0xdb   : > { %2747 = vmatprep.subr.bf16.mxu0 %v4351_v2  ;;  %2800 = vmatprep.subr.bf16.mxu1 %v4353_v3 }
  0xdd   : > { %4398 = vmatmul.mubr.msk.bf16.gmra.mrb[12].mxu0 %vm718_vm1, %v5518_v28  ;;  %4401 = vmatmul.mubr.msk.bf16.gmra.mrb[12].mxu1 %vm718_vm1, %v5518_v28 }
  0xde   : > { %2748 = vmatpush1.bf16.msra.mxu0 %v4350_v7  ;;  %2801 = vmatpush1.bf16.msra.mxu1 %v4352_v11 }
  0xdf   : > { %2749 = vmatprep.subr.bf16.mxu0 %v4367_v12  ;;  %2802 = vmatprep.subr.bf16.mxu1 %v4369_v13 }
  0xe0   : > { %2775 = vmatprep.mubr.bf16.mxu0 %v4759_v8  ;;  %2828 = vmatprep.mubr.bf16.mxu1 %v4759_v8 }
  0xe2   : > { %2750 = vmatpush1.bf16.msra.mxu0 %v4366_v16  ;;  %2803 = vmatpush1.bf16.msra.mxu1 %v4368_v17 }
  0xe3   : > { %4402 = vmatprep.subr.msk.bf16.mxu0 %vm725_vm0, %v4383_v18  ;;  %4405 = vmatprep.subr.msk.bf16.mxu1 %vm725_vm0, %v4385_v9 }
  0xe6   : > { %2752 = vmatpush1.bf16.msra.mxu0 %v2508_v25  ;;  %2805 = vmatpush1.bf16.msra.mxu1 %v2514_v27 }
  0xe7   : > { %2849 = vmatprep.subr.bf16.mxu0 %v4323_v26  ;;  %2902 = vmatprep.subr.bf16.mxu1 %v4325_v29 }
  0xe9   : > { %4403 = vmatmul.mubr.msk.bf16.vlgmr.msra.gmra.mrb[16].mxu0 %vm718_vm1, %v5484_v10  ;;  %4406 = vmatmul.mubr.msk.bf16.vlgmr.msra.gmra.mrb[16].mxu1 %vm718_vm1, %v5484_v10 }
  0xea   : > { %2850 = vmatpush1.bf16.msra.mxu0 %v4322_v35  ;;  %2903 = vmatpush1.bf16.msra.mxu1 %v4324_v36  ;;  %v3055_v36 = vsub.s32 0, %v5743_v34 }
  0xeb   : > { %2851 = vmatprep.subr.bf16.mxu0 %v4339_v37  ;;  %2904 = vmatprep.subr.bf16.mxu1 %v4341_v38  ;;  %v5751_v37 = vld [vmem:[%s5987_s2] sm:$0xff]  ;;  %v3063_v38 = vsub.s32 2, %v5743_v34 }
  0xec   : > { %2785 = vmatprep.mubr.bf16.mxu0 %v4759_v8  ;;  %2838 = vmatprep.mubr.bf16.mxu1 %v4759_v8  ;;  %v3056_v41 = vrot.slane %v5751_v37, %v3055_v36  ;;  %v5764_v47 = vrot.slane %v5751_v37, %v3067_v40 }
  0xee   : > { %2852 = vmatpush1.bf16.msra.mxu0 %v4338_v43  ;;  %2905 = vmatpush1.bf16.msra.mxu1 %v4340_v44  ;;  %v5758_v43 = vrot.slane %v5751_v37, %v3063_v38  ;;  %v5761_v44 = vrot.slane %v5751_v37, %v3059_v39  ;;  %v3079_v39 = vsub.s32 6, %v5743_v34 }
  0xef   : > { %2853 = vmatprep.subr.bf16.mxu0 %v4355_v45  ;;  %2906 = vmatprep.subr.bf16.mxu1 %v4357_v46 }
  0xf1   : > { %4404 = vmatmul.mubr.msk.bf16.gmra.mrb[20].mxu0 %vm718_vm1, %v5518_v28  ;;  %4407 = vmatmul.mubr.msk.bf16.gmra.mrb[20].mxu1 %vm718_vm1, %v5518_v28 }
  0xf2   : > { %2854 = vmatpush1.bf16.msra.mxu0 %v4354_v50  ;;  %2907 = vmatpush1.bf16.msra.mxu1 %v4356_v53 }
  0xf3   : > { %2855 = vmatprep.subr.bf16.mxu0 %v4371_v54  ;;  %2908 = vmatprep.subr.bf16.mxu1 %v4373_v55 }
  0xf4   : > { %2881 = vmatprep.mubr.bf16.mxu0 %v4759_v8  ;;  %2934 = vmatprep.mubr.bf16.mxu1 %v4759_v8 }
  0xf6   : > { %2856 = vmatpush1.bf16.msra.mxu0 %v4370_v58  ;;  %2909 = vmatpush1.bf16.msra.mxu1 %v4372_v59 }
  0xf7   : > { %4408 = vmatprep.subr.msk.bf16.mxu0 %vm725_vm0, %v4387_v60  ;;  %4411 = vmatprep.subr.msk.bf16.mxu1 %vm725_vm0, %v4389_v62 }
  0xfa   : > { %2858 = vmatpush1.bf16.msra.mxu0 %v2520_v63  ;;  %2911 = vmatpush1.bf16.msra.mxu1 %v2526_v0 }
  0xfd   : > { %4409 = vmatmul.mubr.msk.bf16.vlgmr.msra.gmra.mrb[24].mxu0 %vm718_vm1, %v5484_v10  ;;  %4412 = vmatmul.mubr.msk.bf16.vlgmr.msra.gmra.mrb[24].mxu1 %vm718_vm1, %v5484_v10 }
  0xfe   : > { %2891 = vmatprep.mubr.bf16.mxu0 %v4759_v8  ;;  %2944 = vmatprep.mubr.bf16.mxu1 %v4759_v8 }
 0x105   : > { %4410 = vmatmul.mubr.msk.bf16.gmra.mrb[28].mxu0 %vm718_vm1, %v5518_v28  ;;  %4413 = vmatmul.mubr.msk.bf16.gmra.mrb[28].mxu1 %vm718_vm1, %v5518_v28 }
 0x106   : > { %3249 = vmatprep.mubr.f32.mxu0 %v4760_v1  ;;  %3326 = vmatprep.mubr.f32.mxu1 %v4760_v1 }
 0x194   : > { %v2565_v2 = vpop.f32.mrb[0].mxu0  ;;  %v2618_v3 = vpop.f32.mrb[0].mxu1 }
 0x195   : > { %v2567_v51 = vpop.f32.mrb[1].mxu0  ;;  %v2620_v4 = vpop.f32.mrb[1].mxu1 }
 0x196   : > { %v2569_v10 = vpop.f32.mrb[2].mxu0  ;;  %v2622_v5 = vpop.f32.mrb[2].mxu1 }
 0x197   : > { %v2571_v6 = vpop.f32.mrb[3].mxu0  ;;  %v5694_v7 = vpop.f32.mrb[3].mxu1 }
 0x19c   : > { %v5696_v8 = vpop.f32.mrb[4].mxu0  ;;  %v5698_v11 = vpop.f32.mrb[4].mxu1 }
 0x19d   : > { %v5700_v12 = vpop.f32.mrb[5].mxu0  ;;  %v5702_v28 = vpop.f32.mrb[5].mxu1 }
 0x19e   : > { %v5704_v13 = vpop.f32.mrb[6].mxu0  ;;  %v5706_v14 = vpop.f32.mrb[6].mxu1 }
 0x19f   : > { %v5708_v15 = vpop.f32.mrb[7].mxu0  ;;  %v5710_v16 = vpop.f32.mrb[7].mxu1 }
 0x1a8   : > { %v5712_v17 = vpop.f32.mrb[8].mxu0  ;;  %v5714_v18 = vpop.f32.mrb[8].mxu1 }
 0x1a9   : > { %v5716_v19 = vpop.f32.mrb[9].mxu0  ;;  %v5718_v9 = vpop.f32.mrb[9].mxu1 }
 0x1aa   : > { %v5720_v20 = vpop.f32.mrb[10].mxu0  ;;  %v5722_v21 = vpop.f32.mrb[10].mxu1 }
 0x1ab   : > { %v5724_v22 = vpop.f32.mrb[11].mxu0  ;;  %v5726_v23 = vpop.f32.mrb[11].mxu1 }
 0x1b0   : > { %v5728_v25 = vpop.f32.mrb[12].mxu0  ;;  %v5730_v26 = vpop.f32.mrb[12].mxu1 }
 0x1b1   : > { %v5732_v27 = vpop.f32.mrb[13].mxu0  ;;  %v5734_v29 = vpop.f32.mrb[13].mxu1 }
 0x1b2   : > { %v5736_v31 = vpop.f32.mrb[14].mxu0  ;;  %v5738_v32 = vpop.f32.mrb[14].mxu1 }
 0x1b3   : > { %v5740_v33 = vpop.f32.mrb[15].mxu0  ;;  %v5745_v35 = vpop.f32.mrb[15].mxu1 }
 0x1bc   : > { %v2777_v42 = vpop.f32.mrb[16].mxu0  ;;  %v2830_v46 = vpop.f32.mrb[16].mxu1 }
 0x1bd   : > { %v3019_v45 = vmax.f32 %v2565_v2, %v2777_v42  ;;  %v2779_v30 = vpop.f32.mrb[17].mxu0  ;;  %v3021_v48 = vmax.f32 %v2618_v3, %v2830_v46  ;;  %v2832_v50 = vpop.f32.mrb[17].mxu1 }
 0x1be   : > { %v3020_v49 = vmax.f32 %v2567_v51, %v2779_v30  ;;  %v2781_v53 = vpop.f32.mrb[18].mxu0  ;;  %v3022_v55 = vmax.f32 %v2620_v4, %v2832_v50  ;;  %v2834_v57 = vpop.f32.mrb[18].mxu1  ;;  %v3071_v4 = vsub.s32 4, %v5743_v34 }
 0x1bf   : > { %v3093_v54 = vadd.f32 %v3056_v41, %v3019_v45  ;;  %v3027_v56 = vmax.f32 %v2569_v10, %v2781_v53  ;;  %v2783_v58 = vpop.f32.mrb[19].mxu0  ;;  %v3095_v59 = vadd.f32 %v5758_v43, %v3021_v48  ;;  %v3029_v61 = vmax.f32 %v2622_v5, %v2834_v57  ;;  %v2836_v52 = vpop.f32.mrb[19].mxu1 }
 0x1c0   : > { %v3094_v60 = vadd.f32 %v5761_v44, %v3020_v49  ;;  %v3028_v62 = vmax.f32 %v2571_v6, %v2783_v58  ;;  %v3096_v63 = vadd.f32 %v5764_v47, %v3022_v55  ;;  %v3030_v2 = vmax.f32 %v5694_v7, %v2836_v52 }
 0x1c1   : > { %v3101_v0 = vadd.f32 %v3056_v41, %v3027_v56  ;;  %v3103_v3 = vadd.f32 %v5758_v43, %v3029_v61  ;;  %v3125_v10 = vmax.f32 %v3093_v54, 0.0  ;;  %v3127_v5 = vmax.f32 %v3095_v59, 0.0 }
 0x1c2   : > { %v3102_v51 = vadd.f32 %v5761_v44, %v3028_v62  ;;  %v3104_v38 = vadd.f32 %v5764_v47, %v3030_v2  ;;  %v3126_v6 = vmax.f32 %v3094_v60, 0.0  ;;  %v3128_v46 = vmax.f32 %v3096_v63, 0.0 }
 0x1c3   : > { %v3133_v36 = vmax.f32 %v3101_v0, 0.0  ;;  %v3135_v40 = vmax.f32 %v3103_v3, 0.0 }
 0x1c4   : > { %v3134_v42 = vmax.f32 %v3102_v51, 0.0  ;;  %v2787_v45 = vpop.f32.mrb[20].mxu0  ;;  %v3136_v7 = vmax.f32 %v3104_v38, 0.0  ;;  %v2840_v49 = vpop.f32.mrb[20].mxu1  ;;  %v5798_v51 = vand.u32 127, %v3053_v24 }
 0x1c5   : > { %v5775_v30 = vpack.c.bf16 %v3133_v36, %v3125_v10  ;;  %v3035_v48 = vmax.f32 %v5696_v8, %v2787_v45  ;;  %v2789_v50 = vpop.f32.mrb[21].mxu0  ;;  %v5778_v53 = vpack.c.bf16 %v3135_v40, %v3127_v5  ;;  %v3037_v54 = vmax.f32 %v5698_v11, %v2840_v49  ;;  %v2842_v56 = vpop.f32.mrb[21].mxu1 }
 0x1c6   : > { %v3036_v55 = vmax.f32 %v5700_v12, %v2789_v50  ;;  %v2791_v57 = vpop.f32.mrb[22].mxu0  ;;  %v5782_v58 = vpack.c.bf16 %v3134_v42, %v3126_v6  ;;  %v3038_v60 = vmax.f32 %v5702_v28, %v2842_v56  ;;  %v2844_v62 = vpop.f32.mrb[22].mxu1  ;;  %v5786_v8 = vpack.c.bf16 %v3136_v7, %v3128_v46 }
 0x1c7   : > { %v3109_v59 = vadd.f32 %v3056_v41, %v3035_v48  ;;  %v3043_v61 = vmax.f32 %v5704_v13, %v2791_v57  ;;  %v2793_v52 = vpop.f32.mrb[23].mxu0  ;;  %v3111_v63 = vadd.f32 %v5758_v43, %v3037_v54  ;;  %v3045_v11 = vmax.f32 %v5706_v14, %v2844_v62  ;;  %v2846_v2 = vpop.f32.mrb[23].mxu1 }
 0x1c8   : > { %v3110_v0 = vadd.f32 %v5761_v44, %v3036_v55  ;;  %v3044_v12 = vmax.f32 %v5708_v15, %v2793_v52  ;;  %4437 = vmatprep.subr.bf16.mxu0 %v5782_v58  ;;  %v3112_v3 = vadd.f32 %v5764_v47, %v3038_v60  ;;  %v3046_v13 = vmax.f32 %v5710_v16, %v2846_v2 }
 0x1c9   : > { %v3117_v28 = vadd.f32 %v3056_v41, %v3043_v61  ;;  %4445 = vmatprep.subr.bf16.mxu1 %v5786_v8  ;;  %4439 = vmatpush1.bf16.msra.mxu0 %v5775_v30  ;;  %v3119_v10 = vadd.f32 %v5758_v43, %v3045_v11  ;;  %v3162_v15 = vmul.u32 2, %v5743_v34  ;;  %v5805_v36 = vadd.s32 8, %v5743_v34 }
 0x1ca   : > { %v3118_v14 = vadd.f32 %v5761_v44, %v3044_v12  ;;  %4447 = vmatpush1.bf16.msra.mxu1 %v5778_v53  ;;  %v3141_v41 = vmax.f32 %v3109_v59, 0.0  ;;  %v3120_v38 = vadd.f32 %v5764_v47, %v3046_v13  ;;  %v3075_v5 = vsub.s32 5, %v5743_v34 }
 0x1cb   : > { %v3149_v16 = vmax.f32 %v3117_v28, 0.0  ;;  %v3143_v6 = vmax.f32 %v3111_v63, 0.0  ;;  %v3142_v24 = vmax.f32 %v3110_v0, 0.0  ;;  %v3151_v40 = vmax.f32 %v3119_v10, 0.0 }
 0x1cc   : > { %v3150_v42 = vmax.f32 %v3118_v14, 0.0  ;;  %v3144_v43 = vmax.f32 %v3112_v3, 0.0  ;;  %v3152_v44 = vmax.f32 %v3120_v38, 0.0  ;;  %v3083_v46 = vsub.s32 7, %v5743_v34 }
 0x1cd   : > { %v5809_v45 = vpack.c.bf16 %v3149_v16, %v3141_v41  ;;  %v5812_v7 = vpack.c.bf16 %v3151_v40, %v3143_v6  ;;  %vm3164_vm2 = vcmp.eq.s32.totalorder %v5798_v51, %v3162_v15  ;;  %v3163_v47 = vmul.u32 2, %v5805_v36 }
 0x1ce   : > { %v5814_v48 = vpack.c.bf16 %v3150_v42, %v3142_v24  ;;  %v5821_v49 = vrot.slane %v5751_v37, %v3071_v4  ;;  %v5823_v50 = vpack.c.bf16 %v3152_v44, %v3144_v43  ;;  %v5826_v55 = vrot.slane %v5751_v37, %v3079_v39 }
 0x1cf   : > { %v5830_v56 = vrot.slane %v5751_v37, %v3075_v5  ;;  %v5835_v4 = vrot.slane %v5751_v37, %v3083_v46  ;;  %v5839_v61 = vsel %vm3164_vm2, 1.0, %v4760_v1  ;;  %vm5847_vm4 = vcmp.eq.s32.totalorder %v5798_v51, %v3163_v47 }
 0x1d0   : > { %v2883_v54 = vpop.f32.mrb[24].mxu0  ;;  %4441 = vmatprep.subr.bf16.mxu0 %v5814_v48  ;;  %v2936_v59 = vpop.f32.mrb[24].mxu1  ;;  %4449 = vmatprep.subr.bf16.mxu1 %v5823_v50  ;;  %v3171_v34 = vadd.s32 1, %v3163_v47 }
 0x1d1   : > { %v3023_v57 = vmax.f32 %v5712_v17, %v2883_v54  ;;  %v2885_v60 = vpop.f32.mrb[25].mxu0  ;;  %4443 = vmatpush1.bf16.msra.mxu0 %v5809_v45  ;;  %v3025_v39 = vmax.f32 %v5714_v18, %v2936_v59  ;;  %v2938_v52 = vpop.f32.mrb[25].mxu1  ;;  %4451 = vmatpush1.bf16.msra.mxu1 %v5812_v7 }
 0x1d2   : > { %v3024_v62 = vmax.f32 %v5716_v19, %v2885_v60  ;;  %v2887_v17 = vpop.f32.mrb[26].mxu0  ;;  %v3026_v0 = vmax.f32 %v5718_v9, %v2938_v52  ;;  %v2940_v18 = vpop.f32.mrb[26].mxu1  ;;  %vm3173_vm6 = vcmp.eq.s32.totalorder %v5798_v51, %v3171_v34 }
 0x1d3   : > { %v3097_v63 = vadd.f32 %v5821_v49, %v3023_v57  ;;  %v3031_v11 = vmax.f32 %v5720_v20, %v2887_v17  ;;  %v2889_v12 = vpop.f32.mrb[27].mxu0  ;;  %v3099_v19 = vadd.f32 %v5826_v55, %v3025_v39  ;;  %v3033_v3 = vmax.f32 %v5722_v21, %v2940_v18  ;;  %v2942_v13 = vpop.f32.mrb[27].mxu1 }
 0x1d4   : > { %v3098_v2 = vadd.f32 %v5830_v56, %v3024_v62  ;;  %v3032_v28 = vmax.f32 %v5724_v22, %v2889_v12  ;;  %4418 = vmatmul.mubr.msk.f32.vlgmr.msra.gmra.mrb[32].mxu0 %vm3178_vm3, %v5839_v61  ;;  %v3100_v10 = vadd.f32 %v5835_v4, %v3026_v0  ;;  %v3034_v20 = vmax.f32 %v5726_v23, %v2942_v13 }
 0x1d5   : > { %v3105_v9 = vadd.f32 %v5821_v49, %v3031_v11  ;;  %4420 = vmatmul.mubr.msk.f32.vlgmr.msra.gmra.mrb[32].mxu1 %vm3178_vm3, %v5839_v61  ;;  %3255 = vmatprep.mubr.f32.mxu0 %v4760_v1  ;;  %v5869_v21 = vsel %vm5847_vm4, 1.0, %v4760_v1  ;;  %v3107_v22 = vadd.f32 %v5826_v55, %v3033_v3  ;;  %v3129_v41 = vmax.f32 %v3097_v63, 0.0 }
 0x1d6   : > { %v3106_v14 = vadd.f32 %v5830_v56, %v3032_v28  ;;  %3332 = vmatprep.mubr.f32.mxu1 %v4760_v1  ;;  %v3108_v23 = vadd.f32 %v5835_v4, %v3034_v20  ;;  %v3131_v38 = vmax.f32 %v3099_v19, 0.0  ;;  %v3130_v5 = vmax.f32 %v3098_v2, 0.0 }
 0x1d7   : > { %v3137_v16 = vmax.f32 %v3105_v9, 0.0  ;;  %v3139_v6 = vmax.f32 %v3107_v22, 0.0  ;;  %v3132_v42 = vmax.f32 %v3100_v10, 0.0 }
 0x1d8   : > { %v3138_v24 = vmax.f32 %v3106_v14, 0.0  ;;  %v2893_v40 = vpop.f32.mrb[28].mxu0  ;;  %4419 = vmatmul.mubr.msk.f32.gmra.mrb[34].mxu0 %vm3178_vm3, %v5869_v21  ;;  %v3140_v44 = vmax.f32 %v3108_v23, 0.0  ;;  %v2946_v54 = vpop.f32.mrb[28].mxu1 }
 0x1d9   : > { %v5877_v43 = vpack.c.bf16 %v3137_v16, %v3129_v41  ;;  %v3039_v46 = vmax.f32 %v5728_v25, %v2893_v40  ;;  %v2895_v57 = vpop.f32.mrb[29].mxu0  ;;  %4421 = vmatmul.mubr.msk.f32.gmra.mrb[34].mxu1 %vm3178_vm3, %v5869_v21  ;;  %3403 = vmatprep.mubr.f32.mxu0 %v4760_v1  ;;  %v5883_v59 = vpack.c.bf16 %v3139_v6, %v3131_v38  ;;  %v2948_v62 = vpop.f32.mrb[29].mxu1 }
 0x1da   : > { %v3041_v60 = vmax.f32 %v5730_v26, %v2946_v54  ;;  %v3040_v39 = vmax.f32 %v5732_v27, %v2895_v57  ;;  %v2897_v52 = vpop.f32.mrb[30].mxu0  ;;  %v4452_v17 = vpack.c.bf16 %v3138_v24, %v3130_v5  ;;  %3480 = vmatprep.mubr.f32.mxu1 %v4760_v1  ;;  %v3042_v37 = vmax.f32 %v5734_v29, %v2948_v62  ;;  %v2950_v0 = vpop.f32.mrb[30].mxu1 }
 0x1db   : > { %v3113_v25 = vadd.f32 %v5821_v49, %v3039_v46  ;;  %v3047_v63 = vmax.f32 %v5736_v31, %v2897_v52  ;;  %v2899_v11 = vpop.f32.mrb[31].mxu0  ;;  %v4460_v18 = vpack.c.bf16 %v3140_v44, %v3132_v42  ;;  %v3049_v27 = vmax.f32 %v5738_v32, %v2950_v0  ;;  %v2952_v2 = vpop.f32.mrb[31].mxu1 }
 0x1dc   : > { %v3115_v12 = vadd.f32 %v5826_v55, %v3041_v60  ;;  %v3114_v26 = vadd.f32 %v5830_v56, %v3040_v39  ;;  %v3048_v19 = vmax.f32 %v5740_v33, %v2899_v11  ;;  %4453 = vmatprep.subr.bf16.mxu0 %v4452_v17  ;;  %v3116_v3 = vadd.f32 %v5835_v4, %v3042_v37 }
 0x1dd   : > { %v3121_v28 = vadd.f32 %v5821_v49, %v3047_v63  ;;  %v3050_v29 = vmax.f32 %v5745_v35, %v2952_v2  ;;  %4461 = vmatprep.subr.bf16.mxu1 %v4460_v18  ;;  %4455 = vmatpush1.bf16.msra.mxu0 %v5877_v43  ;;  %v3123_v31 = vadd.f32 %v5826_v55, %v3049_v27  ;;  %v3145_v32 = vmax.f32 %v3113_v25, 0.0 }
 0x1de   : > { %v3122_v13 = vadd.f32 %v5830_v56, %v3048_v19  ;;  %4463 = vmatpush1.bf16.msra.mxu1 %v5883_v59  ;;  %v3147_v9 = vmax.f32 %v3115_v12, 0.0  ;;  %v3146_v20 = vmax.f32 %v3114_v26, 0.0  ;;  %v3148_v49 = vmax.f32 %v3116_v3, 0.0 }
 0x1df   : > { %v3153_v10 = vmax.f32 %v3121_v28, 0.0  ;;  %v3124_v33 = vadd.f32 %v5835_v4, %v3050_v29  ;;  %v3155_v22 = vmax.f32 %v3123_v31, 0.0  ;;  %v3170_v55 = vadd.s32 1, %v3162_v15 }
 0x1e0   : > { %v3154_v14 = vmax.f32 %v3122_v13, 0.0 }
 0x1e1   : > { %v4458_v41 = vpack.c.bf16 %v3153_v10, %v3145_v32  ;;  %v3156_v35 = vmax.f32 %v3124_v33, 0.0  ;;  %v4466_v16 = vpack.c.bf16 %v3155_v22, %v3147_v9  ;;  %vm3172_vm5 = vcmp.eq.s32.totalorder %v5798_v51, %v3170_v55 }
 0x1e2   : > { %v4456_v23 = vpack.c.bf16 %v3154_v14, %v3146_v20 }
 0x1e3   : > { %v4464_v38 = vpack.c.bf16 %v3156_v35, %v3148_v49 }
 0x1e4   : > { %4457 = vmatprep.subr.bf16.mxu0 %v4456_v23 }
 0x1e5   : > { %4465 = vmatprep.subr.bf16.mxu1 %v4464_v38  ;;  %4459 = vmatpush1.bf16.msra.mxu0 %v4458_v41 }
 0x1e6   : > { %4467 = vmatpush1.bf16.msra.mxu1 %v4466_v16  ;;  %4469 = vmatprep.subr.bf16.mxu0 %v5782_v58 }
 0x1e7   : > { %4477 = vmatprep.subr.bf16.mxu1 %v5786_v8 }
 0x1e8   : > { %4422 = vmatmul.mubr.msk.f32.vlgmr.msra.gmra.mrb[36].mxu0 %vm3178_vm3, %v5839_v61 }
 0x1e9   : > { %4424 = vmatmul.mubr.msk.f32.vlgmr.msra.gmra.mrb[36].mxu1 %vm3178_vm3, %v5839_v61  ;;  %4471 = vmatpush1.bf16.msra.mxu0 %v5775_v30  ;;  %v4416_v30 = vsel %vm3172_vm5, 1.0, %v4760_v1 }
 0x1ea   : > { %4479 = vmatpush1.bf16.msra.mxu1 %v5778_v53  ;;  %4473 = vmatprep.subr.bf16.mxu0 %v5814_v48  ;;  %v4417_v53 = vsel %vm3173_vm6, 1.0, %v4760_v1 }
 0x1eb   : > { %4481 = vmatprep.subr.bf16.mxu1 %v5823_v50  ;;  %3409 = vmatprep.mubr.f32.mxu0 %v4760_v1 }
 0x1ec   : > { %3486 = vmatprep.mubr.f32.mxu1 %v4760_v1  ;;  %4423 = vmatmul.mubr.msk.f32.gmra.mrb[38].mxu0 %vm3178_vm3, %v5869_v21 }
 0x1ed   : > { %4425 = vmatmul.mubr.msk.f32.gmra.mrb[38].mxu1 %vm3178_vm3, %v5869_v21  ;;  %4475 = vmatpush1.bf16.msra.mxu0 %v5809_v45 }
 0x1ee   : > { %4483 = vmatpush1.bf16.msra.mxu1 %v5812_v7  ;;  %4485 = vmatprep.subr.bf16.mxu0 %v4452_v17 }
 0x1ef   : > { %4493 = vmatprep.subr.bf16.mxu1 %v4460_v18  ;;  %3563 = vmatprep.mubr.f32.mxu0 %v4760_v1 }
 0x1f0   : > { %3640 = vmatprep.mubr.f32.mxu1 %v4760_v1  ;;  %4426 = vmatmul.mubr.msk.f32.vlgmr.msra.gmra.mrb[40].mxu0 %vm3178_vm3, %v4416_v30 }
 0x1f1   : > { %4428 = vmatmul.mubr.msk.f32.vlgmr.msra.gmra.mrb[40].mxu1 %vm3178_vm3, %v4416_v30  ;;  %4487 = vmatpush1.bf16.msra.mxu0 %v5877_v43 }
 0x1f2   : > { %4495 = vmatpush1.bf16.msra.mxu1 %v5883_v59  ;;  %4489 = vmatprep.subr.bf16.mxu0 %v4456_v23 }
 0x1f3   : > { %4497 = vmatprep.subr.bf16.mxu1 %v4464_v38  ;;  %3569 = vmatprep.mubr.f32.mxu0 %v4760_v1 }
 0x1f4   : > { %3646 = vmatprep.mubr.f32.mxu1 %v4760_v1  ;;  %4427 = vmatmul.mubr.msk.f32.gmra.mrb[42].mxu0 %vm3178_vm3, %v4417_v53 }
 0x1f5   : > { %4429 = vmatmul.mubr.msk.f32.gmra.mrb[42].mxu1 %vm3178_vm3, %v4417_v53  ;;  %4491 = vmatpush1.bf16.msra.mxu0 %v4458_v41 }
 0x1f6   : > { %4499 = vmatpush1.bf16.msra.mxu1 %v4466_v16  ;;  %3717 = vmatprep.mubr.f32.mxu0 %v4760_v1 }
 0x1f7   : > { %3794 = vmatprep.mubr.f32.mxu1 %v4760_v1 }
 0x1f8   : > { %4430 = vmatmul.mubr.msk.f32.vlgmr.msra.gmra.mrb[44].mxu0 %vm3178_vm3, %v4416_v30 }
 0x1f9   : > { %4432 = vmatmul.mubr.msk.f32.vlgmr.msra.gmra.mrb[44].mxu1 %vm3178_vm3, %v4416_v30  ;;  %3723 = vmatprep.mubr.f32.mxu0 %v4760_v1 }
 0x1fa   : > { %3800 = vmatprep.mubr.f32.mxu1 %v4760_v1 }
 0x1fc   : > { %4431 = vmatmul.mubr.msk.f32.gmra.mrb[46].mxu0 %vm3178_vm3, %v4417_v53 }
 0x1fd   : > { %4433 = vmatmul.mubr.msk.f32.gmra.mrb[46].mxu1 %vm3178_vm3, %v4417_v53 }
 0x2a7   : > { %v3251_v58 = vpop.f32.mrb[32].mxu0 }
 0x2a8   : > { %v3328_v8 = vpop.f32.mrb[32].mxu1  ;;  %v3253_v51 = vpop.f32.mrb[33].mxu0 }
 0x2a9   : > { %v3330_v15 = vpop.f32.mrb[33].mxu1 }
 0x2ab   : > { %v3257_v36 = vpop.f32.mrb[34].mxu0 }
 0x2ac   : > { %v3334_v45 = vpop.f32.mrb[34].mxu1  ;;  %v3259_v7 = vpop.f32.mrb[35].mxu0 }
 0x2ad   : > { %v3336_v48 = vpop.f32.mrb[35].mxu1 }
 0x2bb   : > { %v3405_v47 = vpop.f32.mrb[36].mxu0 }
 0x2bc   : > { %v3482_v50 = vpop.f32.mrb[36].mxu1  ;;  %v3407_v1 = vpop.f32.mrb[37].mxu0 }
 0x2bd   : > { %v3484_v56 = vpop.f32.mrb[37].mxu1 }
 0x2bf   : > { %v3411_v4 = vpop.f32.mrb[38].mxu0 }
 0x2c0   : > { %v3488_v61 = vpop.f32.mrb[38].mxu1  ;;  %v3413_v21 = vpop.f32.mrb[39].mxu0 }
 0x2c1   : > { %v3490_v5 = vpop.f32.mrb[39].mxu1 }
 0x2c3   : > { %v3565_v6 = vpop.f32.mrb[40].mxu0 }
 0x2c4   : > { %v3807_v24 = vmax.f32 %v3251_v58, %v3565_v6  ;;  %v3642_v40 = vpop.f32.mrb[40].mxu1  ;;  %v3567_v42 = vpop.f32.mrb[41].mxu0 }
 0x2c5   : > { %v3809_v43 = vmax.f32 %v3328_v8, %v3642_v40  ;;  %v3808_v44 = vmax.f32 %v3253_v51, %v3567_v42  ;;  %v3644_v46 = vpop.f32.mrb[41].mxu1 }
 0x2c6   : > { %3823 = vst [vmem:[%s5952_s22] sm:$0xff] %v3807_v24  ;;  %v3810_v54 = vmax.f32 %v3330_v15, %v3644_v46 }
 0x2c7   : > { %3825 = vst [vmem:[%s5952_s22 + $0x10] sm:$0xff] %v3809_v43  ;;  %3824 = vst [vmem:[%s5952_s22 + $0x8] sm:$0xff] %v3808_v44  ;;  %v3571_v57 = vpop.f32.mrb[42].mxu0 }
 0x2c8   : > { %3826 = vst [vmem:[%s5952_s22 + $0x18] sm:$0xff] %v3810_v54  ;;  %v3815_v59 = vmax.f32 %v3257_v36, %v3571_v57  ;;  %v3648_v60 = vpop.f32.mrb[42].mxu1  ;;  %v3573_v39 = vpop.f32.mrb[43].mxu0 }
 0x2c9   : > { %v3817_v62 = vmax.f32 %v3334_v45, %v3648_v60  ;;  %v3816_v52 = vmax.f32 %v3259_v7, %v3573_v39  ;;  %v3650_v17 = vpop.f32.mrb[43].mxu1 }
 0x2ca   : > { %3831 = vst [vmem:[%s5952_s22 + $0x40] sm:$0xff] %v3815_v59  ;;  %v3818_v25 = vmax.f32 %v3336_v48, %v3650_v17 }
 0x2cb   : > { %3833 = vst [vmem:[%s5952_s22 + $0x50] sm:$0xff] %v3817_v62  ;;  %3832 = vst [vmem:[%s5952_s22 + $0x48] sm:$0xff] %v3816_v52  ;;  %v3719_v37 = vpop.f32.mrb[44].mxu0 }
 0x2cc   : > { %3834 = vst [vmem:[%s5952_s22 + $0x58] sm:$0xff] %v3818_v25  ;;  %v3811_v63 = vmax.f32 %v3405_v47, %v3719_v37  ;;  %v3796_v0 = vpop.f32.mrb[44].mxu1  ;;  %v3721_v11 = vpop.f32.mrb[45].mxu0 }
 0x2cd   : > { %v3813_v18 = vmax.f32 %v3482_v50, %v3796_v0  ;;  %v3812_v12 = vmax.f32 %v3407_v1, %v3721_v11  ;;  %v3798_v26 = vpop.f32.mrb[45].mxu1 }
 0x2ce   : > { %3827 = vst [vmem:[%s5952_s22 + $0x20] sm:$0xff] %v3811_v63  ;;  %v3814_v27 = vmax.f32 %v3484_v56, %v3798_v26 }
 0x2cf   : > { %3829 = vst [vmem:[%s5952_s22 + $0x30] sm:$0xff] %v3813_v18  ;;  %3828 = vst [vmem:[%s5952_s22 + $0x28] sm:$0xff] %v3812_v12  ;;  %v3725_v19 = vpop.f32.mrb[46].mxu0 }
 0x2d0   : > { %3830 = vst [vmem:[%s5952_s22 + $0x38] sm:$0xff] %v3814_v27  ;;  %v3819_v2 = vmax.f32 %v3411_v4, %v3725_v19  ;;  %v3802_v3 = vpop.f32.mrb[46].mxu1  ;;  %v3727_v28 = vpop.f32.mrb[47].mxu0 }
 0x2d1   : > { %v3821_v29 = vmax.f32 %v3488_v61, %v3802_v3  ;;  %v3820_v31 = vmax.f32 %v3413_v21, %v3727_v28  ;;  %v3804_v13 = vpop.f32.mrb[47].mxu1 }
 0x2d2   : > { %3835 = vst [vmem:[%s5952_s22 + $0x60] sm:$0xff] %v3819_v2  ;;  %v3822_v32 = vmax.f32 %v3490_v5, %v3804_v13 }
 0x2d3   : > { %3837 = vst [vmem:[%s5952_s22 + $0x70] sm:$0xff] %v3821_v29  ;;  %3836 = vst [vmem:[%s5952_s22 + $0x68] sm:$0xff] %v3820_v31 }
 0x2d4   : > { %3838 = vst [vmem:[%s5952_s22 + $0x78] sm:$0xff] %v3822_v32 }
 0x2d5 PF: > { %s13_s16 = sadd.s32 1, %s4757_s16   ;;  %s5991_s12 = smov %s4749_s14 }
 0x2d6   : > { %p10_p7 = scmp.ge.s32.totalorder %s13_s16, 6   ;;  %s5992_s13 = smov %s4753_s15 }
 0x2d7   : > { %s5993_s14 = smov %s5996_s17  ;;  %s5994_s15 = smov %s6000_s18 }
 0x2d8   :  { %12 = sbr.rel (!%p10_p7) target bundleno = 3 (0x3), region = 67 }

// kernel: cnn_forward.4
= control target key start
LH: loop header
LB: loop body
LE: loop exit
PB: predicated region body
PF: predicated region fallthrough
CT: control target
= control target key end

     0   :  { %s4938_s12 = smov 0   ;;  %s4940_s13 = smov 0   ;;  %s6982_s0 = inlined_call_operand.vmem [shape: f32[2,34,34,32], index: 0, kind: input, shape index: {}]   ;;  %s6983_s1 = inlined_call_operand.vmem [shape: bf16[288,64], index: 1, kind: input, shape index: {}]   ;;  %s6984_s2 = inlined_call_operand.vmem [shape: f32[1,64], index: 2, kind: input, shape index: {}]   ;;  %s6985_s3 = inlined_call_operand.vmem [shape: bf16[2,256,64], index: 3, kind: output, shape index: {}]  }
   0x1   :  { %s4942_s14 = smov 0   ;;  %s4944_s15 = smov 0  }
   0x2   :  { %s4946_s16 = smov 0  }
   0x3 LB: > { %s22_s17 = sadd.s32 1, %s4903_s14  ;;  %s25_s18 = sadd.s32 1, %s4907_s15  ;;  %s4911_s16 = sphi %s4946_s16, %s13_s16   ;;  %s4907_s15 = sphi %s4944_s15, %s6989_s15   ;;  %s4903_s14 = sphi %s4942_s14, %s6988_s14   ;;  %s4899_s13 = sphi %s4940_s13, %s6987_s13   ;;  %s4895_s12 = sphi %s4938_s12, %s6986_s12  }
   0x4   : > { %p23_p0 = scmp.ge.s32.totalorder %s22_s17, 2  ;;  %p3874_p1 = scmp.ge.s32.totalorder %s4911_s16, 1 }
   0x5   : > { %p151_p2 = scmp.lt.s32.totalorder %s4911_s16, 5 }
   0x6   : > { %s6991_s17 = smov (%p23_p0, %s22_s17), 0  ;;  %s6993_s18 = smov (!%p23_p0, %s25_s18), %s4907_s15 }
   0x7   : > { %p152_p3 = pnand %p3874_p1, %p151_p2  ;;  %p27_p4 = scmp.ge.s32.totalorder %s6993_s18, 2 }
   0x8   : > { %p179_p5 = scmp.lt.s32.totalorder (!%p152_p3), %s4899_s13, 1  ;;  %v4854_v0 = vld [vmem:[%s6983_s1] sm:$0xff] (!%p152_p3)   ;;  %v4913_v1 = vmov (!%p152_p3), 0   ;;  %v4855_v2 = vld [vmem:[%s6983_s1 + $0x8] sm:$0xff] (!%p152_p3)   ;;  %s3880_s23 = smul.u32 (!%p152_p3), 640, %s4895_s12  ;;  %v4856_v3 = vld [vmem:[%s6983_s1 + $0x10] sm:$0xff] (!%p152_p3)  }
   0x9   : > { %s6995_s18 = smov (%p27_p4, %s6993_s18), 0  ;;  %155 = sbr.rel (%p152_p3) target bundleno = 1100 (0x44c), region = 32 }
   0xa   : > { %2471 = vmatprep.subr.bf16.mxu0 (!%p152_p3), %v4913_v1  ;;  %v4857_v7 = vld [vmem:[%s6983_s1 + $0x18] sm:$0xff] (!%p152_p3)   ;;  %s4914_s6 = smov (!%p152_p3), 32   ;;  %s4915_s7 = smov (!%p152_p3), 64   ;;  %v4858_v23 = vld [vmem:[%s6983_s1 + $0x20] sm:$0xff] (!%p152_p3)   ;;  %vm294_vm0 = vcmask (!%p152_p3), 261120   ;;  %v4859_v35 = vld [vmem:[%s6983_s1 + $0x28] sm:$0xff] (!%p152_p3)  }
   0xb   : > { %2472 = vmatpush1.bf16.msra.mxu0 (!%p152_p3), %v4854_v0  ;;  %s4916_s19 = smov (!%p152_p3), 96   ;;  %v4860_v62 = vld [vmem:[%s6983_s1 + $0x30] sm:$0xff] (!%p152_p3)   ;;  %vm551_vm1 = vcmask (!%p152_p3), 523520   ;;  %vm808_vm2 = vcmask (!%p152_p3), 785920   ;;  %vm1068_vm3 = vcmask (!%p152_p3), 1048320  }
   0xc   : > { %2473 = vmatprep.subr.bf16.mxu0 (!%p152_p3), %v4913_v1 }
   0xf   : > { %2474 = vmatpush1.bf16.msra.mxu0 (!%p152_p3), %v4855_v2 }
  0x10   : > { %s6997_s13 = smov (!%p179_p5, %s4899_s13), 1  ;;  %2475 = vmatprep.subr.bf16.mxu0 %v4913_v1 }
  0x11   : > { %s4808_s24 = smul.u32 1360, %s6997_s13 }
  0x13   : > { %s183_s27 = scalar_lea.vmem %s6982_s0, %s4808_s24  ;;  %2476 = vmatpush1.bf16.msra.mxu0 %v4856_v3 }
  0x14   : > { %s4988_s30 = scalar_lea.vmem %s183_s27, %s3880_s23  ;;  %2477 = vmatprep.subr.bf16.mxu0 %v4913_v1 }
  0x15   : > { %v4011_v4 = vld [vmem:[%s4988_s30 + $0x2a] sm:$0xff]  ;;  %v4012_v5 = vld [vmem:[%s4988_s30 + $0x32] sm:$0xff]  ;;  %v327_v10 = vld [vmem:[%s4988_s30 + $0x1] sm:$0xff] }
  0x16   : > { %v4077_v6 = vld [vmem:[%s4988_s30 + $0x50] sm:$0xff]  ;;  %v4997_v8 = vpack.c.bf16 %v4012_v5, %v4011_v4  ;;  %v4078_v9 = vld [vmem:[%s4988_s30 + $0x58] sm:$0xff]  ;;  %v584_v13 = vld [vmem:[%s4988_s30 + $0x2] sm:$0xff] }
  0x17   : > { %v328_v11 = vld [vmem:[%s4988_s30 + $0x9] sm:$0xff]  ;;  %v5002_v12 = vpack.c.bf16 %v4078_v9, %v4077_v6  ;;  %v4141_v15 = vld [vmem:[%s4988_s30 + $0x51] sm:$0xff]  ;;  %v4142_v17 = vld [vmem:[%s4988_s30 + $0x59] sm:$0xff]  ;;  %2478 = vmatpush1.bf16.msra.mxu0 %v4857_v7 }
  0x18   : > { %v585_v14 = vld [vmem:[%s4988_s30 + $0xa] sm:$0xff]  ;;  %1357 = vrot.lane.b32.xlu0 %v4997_v8, %s4914_s6  ;;  %v391_v16 = vpack.c.bf16 %v328_v11, %v327_v10  ;;  %v5015_v21 = vpack.c.bf16 %v4142_v17, %v4141_v15  ;;  %v4013_v24 = vld [vmem:[%s4988_s30 + $0x3a] sm:$0xff]  ;;  %v4014_v25 = vld [vmem:[%s4988_s30 + $0x42] sm:$0xff]  ;;  %2479 = vmatprep.subr.bf16.mxu0 %v4913_v1 }
  0x19   : > { %v3883_v18 = vld [vmem:[%s4988_s30 + $0x28] sm:$0xff]  ;;  %v3884_v19 = vld [vmem:[%s4988_s30 + $0x30] sm:$0xff]  ;;  %1616 = vrot.lane.b32.xlu1 %v5002_v12, %s4915_s7  ;;  %v648_v20 = vpack.c.bf16 %v585_v14, %v584_v13  ;;  %v3885_v28 = vld [vmem:[%s4988_s30 + $0x38] sm:$0xff]  ;;  %v5060_v46 = vpack.c.bf16 %v4014_v25, %v4013_v24 }
  0x1a   : > { %v908_v22 = vpack.c.bf16 %v3884_v19, %v3883_v18  ;;  %v4143_v26 = vld [vmem:[%s4988_s30 + $0x61] sm:$0xff]  ;;  %1199 = vst.msk [vmem:[#allocation2 + $0x38] sm:$0xff] %vm294_vm0, %v5015_v21  ;;  %v4144_v27 = vld [vmem:[%s4988_s30 + $0x69] sm:$0xff]  ;;  %v4015_v32 = vld [vmem:[%s4988_s30 + $0x52] sm:$0xff] }
  0x1b   : > { %v3886_v29 = vld [vmem:[%s4988_s30 + $0x40] sm:$0xff]  ;;  %v5032_v30 = vpack.c.bf16 %v4144_v27, %v4143_v26  ;;  %v331_v34 = vld [vmem:[%s4988_s30 + $0x29] sm:$0xff]  ;;  %v329_v36 = vld [vmem:[%s4988_s30 + $0x11] sm:$0xff]  ;;  %2480 = vmatpush1.bf16.msra.mxu0 %v4858_v23 }
  0x1c   : > { %297 = vst.msk [vmem:[#allocation2 + $0x30] sm:$0xff] %vm294_vm0, %v908_v22  ;;  %455 = vrot.lane.b32.xlu0 %v391_v16, %s4914_s6  ;;  %v5034_v31 = vpack.c.bf16 %v3886_v29, %v3885_v28  ;;  %v4016_v33 = vld [vmem:[%s4988_s30 + $0x5a] sm:$0xff]  ;;  %v332_v39 = vld [vmem:[%s4988_s30 + $0x31] sm:$0xff]  ;;  %v4080_v41 = vld [vmem:[%s4988_s30 + $0x68] sm:$0xff]  ;;  %2481 = vmatprep.subr.bf16.mxu0 %v4913_v1 }
  0x1d   : > { %712 = vrot.lane.b32.xlu1 %v648_v20, %s4915_s7  ;;  %v330_v37 = vld [vmem:[%s4988_s30 + $0x19] sm:$0xff]  ;;  %v5044_v38 = vpack.c.bf16 %v4016_v33, %v4015_v32  ;;  %v5049_v42 = vpack.c.bf16 %v332_v39, %v331_v34  ;;  %v4146_v44 = vld [vmem:[%s4988_s30 + $0x81] sm:$0xff]  ;;  %1200 = vst.msk [vmem:[#allocation2 + $0x50] sm:$0xff] %vm294_vm0, %v5032_v30  ;;  %v4018_v48 = vld [vmem:[%s4988_s30 + $0x6a] sm:$0xff] }
  0x1e   : > { %v4079_v40 = vld [vmem:[%s4988_s30 + $0x60] sm:$0xff]  ;;  %298 = vst.msk [vmem:[#allocation2 + $0x48] sm:$0xff] %vm294_vm0, %v5034_v31  ;;  %v392_v51 = vpack.c.bf16 %v330_v37, %v329_v36  ;;  %v586_v52 = vld [vmem:[%s4988_s30 + $0x12] sm:$0xff]  ;;  %v4147_v56 = vld [vmem:[%s4988_s30 + $0x89] sm:$0xff] }
  0x1f   : > { %v4145_v43 = vld [vmem:[%s4988_s30 + $0x79] sm:$0xff]  ;;  %v4017_v45 = vld [vmem:[%s4988_s30 + $0x62] sm:$0xff]  ;;  %2096 = vst.msk [vmem:[#allocation2 + $0x10] sm:$0xff] %vm294_vm0, %v5044_v38  ;;  %1197 = vst.msk [vmem:[#allocation2 + $0x8] sm:$0xff] %vm294_vm0, %v5049_v42  ;;  %2482 = vmatpush1.bf16.msra.mxu0 %v4859_v35  ;;  %v5098_v63 = vpack.c.bf16 %v4080_v41, %v4079_v40 }
  0x20   : > { %1872 = vrot.lane.b32.xlu0 %v5015_v21, %s4916_s19  ;;  %v5062_v47 = vpack.c.bf16 %v4146_v44, %v4145_v43  ;;  %v333_v49 = vld [vmem:[%s4988_s30 + $0x39] sm:$0xff]  ;;  %v334_v50 = vld [vmem:[%s4988_s30 + $0x41] sm:$0xff]  ;;  %v5073_v54 = vpack.c.bf16 %v4018_v48, %v4017_v45  ;;  %v4148_v57 = vld [vmem:[%s4988_s30 + $0x91] sm:$0xff]  ;;  %2483 = vmatprep.subr.bf16.mxu0 %v4913_v1 }
  0x21   : > { %972 = vrot.lane.b32.xlu1 %v908_v22, %s4916_s19  ;;  %v587_v53 = vld [vmem:[%s4988_s30 + $0x1a] sm:$0xff]  ;;  %v5075_v55 = vpack.c.bf16 %v334_v50, %v333_v49  ;;  %v4020_v59 = vld [vmem:[%s4988_s30 + $0x82] sm:$0xff]  ;;  %v5085_v60 = vpack.c.bf16 %v4148_v57, %v4147_v56  ;;  %v4021_v0 = vld [vmem:[%s4988_s30 + $0x8a] sm:$0xff] }
  0x22   : > { %v4019_v58 = vld [vmem:[%s4988_s30 + $0x7a] sm:$0xff]  ;;  %1201 = vst.msk [vmem:[#allocation2 + $0x68] sm:$0xff] %vm294_vm0, %v5062_v47  ;;  %2097 = vst.msk [vmem:[#allocation2 + $0x28] sm:$0xff] %vm294_vm0, %v5073_v54  ;;  %v4022_v2 = vld [vmem:[%s4988_s30 + $0x92] sm:$0xff]  ;;  %v649_v3 = vpack.c.bf16 %v587_v53, %v586_v52 }
  0x23   : > { %v5087_v61 = vpack.c.bf16 %v4020_v59, %v4019_v58  ;;  %1198 = vst.msk [vmem:[#allocation2 + $0x20] sm:$0xff] %vm294_vm0, %v5075_v55  ;;  %v5104_v4 = vpack.c.bf16 %v4022_v2, %v4021_v0  ;;  %1202 = vst.msk [vmem:[#allocation2 + $0x80] sm:$0xff] %vm294_vm0, %v5085_v60  ;;  %v4023_v5 = vld [vmem:[%s4988_s30 + $0xa2] sm:$0xff]  ;;  %v4024_v6 = vld [vmem:[%s4988_s30 + $0xaa] sm:$0xff]  ;;  %2484 = vmatpush1.bf16.msra.mxu0 %v4860_v62 }
  0x24   : > { %1359 = vrot.lane.b32.xlu0 %v5060_v46, %s4914_s6  ;;  %v5112_v7 = vpack.c.bf16 %v4024_v6, %v4023_v5  ;;  %v4025_v9 = vld [vmem:[%s4988_s30 + $0xb2] sm:$0xff]  ;;  %v4026_v10 = vld [vmem:[%s4988_s30 + $0xba] sm:$0xff]  ;;  %2485 = vmatprep.subr.bf16.mxu0 %v4913_v1  ;;  %v4027_v13 = vld [vmem:[%s4988_s30 + $0xca] sm:$0xff] }
  0x25   : > { %457 = vrot.lane.b32.xlu1 %v392_v51, %s4914_s6  ;;  %2098 = vst.msk [vmem:[#allocation2 + $0x40] sm:$0xff] %vm294_vm0, %v5087_v61  ;;  %2099 = vst.msk [vmem:[#allocation2 + $0x58] sm:$0xff] %vm294_vm0, %v5104_v4  ;;  %v5122_v11 = vpack.c.bf16 %v4026_v10, %v4025_v9  ;;  %v4028_v14 = vld [vmem:[%s4988_s30 + $0xd2] sm:$0xff]  ;;  %v4082_v18 = vld [vmem:[%s4988_s30 + $0x80] sm:$0xff] }
  0x26   : > { %2100 = vst.msk [vmem:[#allocation2 + $0x70] sm:$0xff] %vm294_vm0, %v5112_v7  ;;  %v5128_v15 = vpack.c.bf16 %v4028_v14, %v4027_v13  ;;  %v4861_v16 = vld [vmem:[%s6983_s1 + $0x38] sm:$0xff]   ;;  %v4862_v19 = vld [vmem:[%s6983_s1 + $0x40] sm:$0xff]   ;;  %v4863_v25 = vld [vmem:[%s6983_s1 + $0x48] sm:$0xff]  }
  0x27   : > { %2101 = vst.msk [vmem:[#allocation2 + $0x88] sm:$0xff] %vm294_vm0, %v5122_v11  ;;  %v4081_v17 = vld [vmem:[%s4988_s30 + $0x78] sm:$0xff]  ;;  %2486 = vmatpush1.bf16.msra.mxu0 %v4861_v16  ;;  %v4030_v22 = vld [vmem:[%s4988_s30 + $0xe2] sm:$0xff]  ;;  %v4864_v26 = vld [vmem:[%s6983_s1 + $0x50] sm:$0xff]  }
  0x28   : > { %1618 = vrot.lane.b32.xlu0 %v5098_v63, %s4915_s7  ;;  %2102 = vst.msk [vmem:[#allocation2 + $0xa0] sm:$0xff] %vm294_vm0, %v5128_v15  ;;  %2487 = vmatprep.subr.bf16.mxu0 %v4913_v1  ;;  %v4029_v20 = vld [vmem:[%s4988_s30 + $0xda] sm:$0xff]  ;;  %v5151_v23 = vpack.c.bf16 %v4082_v18, %v4081_v17  ;;  %v199_v28 = vld [vmem:[%s4988_s30 + $0x8] sm:$0xff]  ;;  %v4031_v29 = vld [vmem:[%s4988_s30 + $0xf2] sm:$0xff] }
  0x29   : > { %714 = vrot.lane.b32.xlu1 %v649_v3, %s4915_s7  ;;  %v5153_v24 = vpack.c.bf16 %v4030_v22, %v4029_v20  ;;  %v198_v27 = vld [vmem:[%s4988_s30] sm:$0xff]  ;;  %v4083_v34 = vld [vmem:[%s4988_s30 + $0x88] sm:$0xff]  ;;  %v4084_v35 = vld [vmem:[%s4988_s30 + $0x90] sm:$0xff] }
  0x2a   : > { %v4032_v32 = vld [vmem:[%s4988_s30 + $0xfa] sm:$0xff]  ;;  %v200_v37 = vld [vmem:[%s4988_s30 + $0x10] sm:$0xff]  ;;  %v5197_v41 = vpack.c.bf16 %v4084_v35, %v4083_v34  ;;  %v4033_v43 = vld [vmem:[%s4988_s30 + $0x102] sm:$0xff] }
  0x2b   : > { %2488 = vmatpush1.bf16.msra.mxu0 %v4862_v19  ;;  %2103 = vst.msk [vmem:[#allocation2 + $0xb8] sm:$0xff] %vm294_vm0, %v5153_v24  ;;  %v5175_v33 = vpack.c.bf16 %v4032_v32, %v4031_v29  ;;  %v4869_v36 = vld [vmem:[%s6983_s1 + $0x80] sm:$0xff]   ;;  %v201_v39 = vld [vmem:[%s4988_s30 + $0x18] sm:$0xff]  ;;  %v4034_v45 = vld [vmem:[%s4988_s30 + $0x10a] sm:$0xff] }
  0x2c   : > { %1874 = vrot.lane.b32.xlu0 %v5032_v30, %s4916_s19  ;;  %2489 = vmatprep.subr.bf16.mxu0 %v4913_v1  ;;  %v263_v40 = vpack.c.bf16 %v201_v39, %v200_v37  ;;  %v4866_v44 = vld [vmem:[%s6983_s1 + $0x60] sm:$0xff]   ;;  %v5211_v48 = vpack.c.bf16 %v4034_v45, %v4033_v43  ;;  %v2133_v49 = vld [vmem:[#allocation2 + $0x28] sm:$0xff]  ;;  %v4038_v57 = vld [vmem:[%s4988_s30 + $0x132] sm:$0xff] }
  0x2d   : > { %974 = vrot.lane.b32.xlu1 %v5034_v31, %s4916_s19  ;;  %v262_v31 = vpack.c.bf16 %v199_v28, %v198_v27  ;;  %2104 = vst.msk [vmem:[#allocation2 + $0xd0] sm:$0xff] %vm294_vm0, %v5175_v33  ;;  %4676 = vmatprep.subr.bf16.mxu1 %v4869_v36  ;;  %v4035_v50 = vld [vmem:[%s4988_s30 + $0x11a] sm:$0xff]  ;;  %v4036_v51 = vld [vmem:[%s4988_s30 + $0x122] sm:$0xff]  ;;  %v4037_v56 = vld [vmem:[%s4988_s30 + $0x12a] sm:$0xff] }
  0x2e   : > { %4677 = vmatpush3.bf16.msra.mxu1 %v4869_v36  ;;  %296 = vst.msk [vmem:[#allocation2 + $0x18] sm:$0xff] %vm294_vm0, %v263_v40  ;;  %v4867_v52 = vld [vmem:[%s6983_s1 + $0x68] sm:$0xff]   ;;  %v5221_v53 = vpack.c.bf16 %v4036_v51, %v4035_v50  ;;  %2105 = vst.msk [vmem:[#allocation2 + $0xe8] sm:$0xff] %vm294_vm0, %v5211_v48  ;;  %v5231_v58 = vpack.c.bf16 %v4038_v57, %v4037_v56  ;;  %v206_v59 = vld [vmem:[%s4988_s30 + $0x50] sm:$0xff] }
  0x2f   : > { %2490 = vmatpush1.bf16.msra.mxu0 %v4863_v25  ;;  %295 = vst.msk [vmem:[#allocation2] sm:$0xff] %vm294_vm0, %v262_v31  ;;  %v4085_v62 = vld [vmem:[%s4988_s30 + $0xa0] sm:$0xff]  ;;  %v4040_v3 = vld [vmem:[%s4988_s30 + $0x14a] sm:$0xff]  ;;  %v2139_v14 = vld [vmem:[#allocation2 + $0x58] sm:$0xff] }
  0x30   : > { %1361 = vrot.lane.b32.xlu0 %v5044_v38, %s4914_s6  ;;  %2491 = vmatprep.subr.bf16.mxu0 %v4913_v1  ;;  %2106 = vst.msk [vmem:[#allocation2 + $0x100] sm:$0xff] %vm294_vm0, %v5221_v53  ;;  %v4039_v2 = vld [vmem:[%s4988_s30 + $0x142] sm:$0xff]  ;;  %2107 = vst.msk [vmem:[#allocation2 + $0x118] sm:$0xff] %vm294_vm0, %v5231_v58  ;;  %v4868_v6 = vld [vmem:[%s6983_s1 + $0x70] sm:$0xff]  }
  0x31   : > { %459 = vrot.lane.b32.xlu1 %v5049_v42, %s4914_s6  ;;  %v2130_v42 = vld [vmem:[#allocation2 + $0x10] sm:$0xff]  ;;  %v4086_v5 = vld [vmem:[%s4988_s30 + $0xa8] sm:$0xff]  ;;  %v5251_v9 = vpack.c.bf16 %v4040_v3, %v4039_v2  ;;  %v208_v10 = vld [vmem:[%s4988_s30 + $0x60] sm:$0xff] }
  0x32   : > { %4680 = vmatprep.mubr.msk.bf16.mxu1 %vm294_vm0, %v2130_v42  ;;  %v209_v13 = vld [vmem:[%s4988_s30 + $0x68] sm:$0xff]  ;;  %v4870_v19 = vld [vmem:[%s6983_s1 + $0x78] sm:$0xff]   ;;  %v211_v32 = vld [vmem:[%s4988_s30 + $0x80] sm:$0xff] }
  0x33   : > { %2492 = vmatpush1.bf16.msra.mxu0 %v4864_v26  ;;  %v267_v16 = vpack.c.bf16 %v209_v13, %v208_v10  ;;  %2108 = vst.msk [vmem:[#allocation2 + $0x130] sm:$0xff] %vm294_vm0, %v5251_v9  ;;  %v4149_v17 = vld [vmem:[%s4988_s30 + $0xa1] sm:$0xff]  ;;  %v4150_v18 = vld [vmem:[%s4988_s30 + $0xa9] sm:$0xff]  ;;  %v4041_v20 = vld [vmem:[%s4988_s30 + $0x152] sm:$0xff] }
  0x34   : > { %1620 = vrot.lane.b32.xlu0 %v5151_v23, %s4915_s7  ;;  %2493 = vmatprep.subr.bf16.mxu0 %v4913_v1  ;;  %v4042_v22 = vld [vmem:[%s4988_s30 + $0x15a] sm:$0xff]  ;;  %v5279_v26 = vpack.c.bf16 %v4150_v18, %v4149_v17  ;;  %v3960_v28 = vld [vmem:[%s4988_s30 + $0xa9] sm:$0xff]  ;;  %v4044_v39 = vld [vmem:[%s4988_s30 + $0x172] sm:$0xff] }
  0x35   : > { %716 = vrot.lane.b32.xlu1 %v4997_v8, %s4915_s7  ;;  %v4865_v8 = vld [vmem:[%s6983_s1 + $0x58] sm:$0xff]   ;;  %300 = vst.msk [vmem:[#allocation2 + $0x78] sm:$0xff] %vm294_vm0, %v267_v16  ;;  %v5275_v25 = vpack.c.bf16 %v4042_v22, %v4041_v20  ;;  %v3959_v27 = vld [vmem:[%s4988_s30 + $0xa1] sm:$0xff]  ;;  %v4087_v34 = vld [vmem:[%s4988_s30 + $0xb0] sm:$0xff] }
  0x36   : > { %v1171_v29 = vpack.c.bf16 %v3960_v28, %v3959_v27  ;;  %v210_v31 = vld [vmem:[%s4988_s30 + $0x78] sm:$0xff]  ;;  %v4043_v37 = vld [vmem:[%s4988_s30 + $0x16a] sm:$0xff]  ;;  %v4046_v56 = vld [vmem:[%s4988_s30 + $0x182] sm:$0xff] }
  0x37   : > { %2494 = vmatpush1.bf16.msra.mxu0 %v4865_v8  ;;  %2109 = vst.msk [vmem:[#allocation2 + $0x148] sm:$0xff] %vm294_vm0, %v5275_v25  ;;  %v4088_v35 = vld [vmem:[%s4988_s30 + $0xb8] sm:$0xff]  ;;  %v5309_v40 = vpack.c.bf16 %v4044_v39, %v4043_v37  ;;  %v213_v45 = vld [vmem:[%s4988_s30 + $0x90] sm:$0xff]  ;;  %v214_v3 = vld [vmem:[%s4988_s30 + $0xa0] sm:$0xff] }
  0x38   : > { %1876 = vrot.lane.b32.xlu0 %v5062_v47, %s4916_s19  ;;  %2495 = vmatprep.subr.bf16.mxu0 %v4913_v1  ;;  %1203 = vst.msk [vmem:[#allocation2 + $0x98] sm:$0xff] %vm294_vm0, %v1171_v29  ;;  %v5301_v36 = vpack.c.bf16 %v4088_v35, %v4087_v34  ;;  %v4151_v8 = vld [vmem:[%s4988_s30 + $0xb1] sm:$0xff]  ;;  %v3962_v42 = vld [vmem:[%s4988_s30 + $0xb9] sm:$0xff]  ;;  %v4156_v16 = vld [vmem:[%s4988_s30 + $0xe1] sm:$0xff] }
  0x39   : > { %976 = vrot.lane.b32.xlu1 %v5002_v12, %s4916_s19  ;;  %v4871_v12 = vld [vmem:[%s6983_s1 + $0x88] sm:$0xff]   ;;  %2110 = vst.msk [vmem:[#allocation2 + $0x160] sm:$0xff] %vm294_vm0, %v5309_v40  ;;  %v4090_v50 = vld [vmem:[%s4988_s30 + $0xd0] sm:$0xff]  ;;  %v4092_v10 = vld [vmem:[%s4988_s30 + $0xe0] sm:$0xff] }
  0x3a   : > { %4678 = vmatprep.subr.bf16.mxu1 %v4871_v12  ;;  %v4048_v17 = vld [vmem:[%s4988_s30 + $0x19a] sm:$0xff]  ;;  %v4093_v27 = vld [vmem:[%s4988_s30 + $0xf0] sm:$0xff]  ;;  %v4049_v34 = vld [vmem:[%s4988_s30 + $0x1a2] sm:$0xff] }
  0x3b   : > { %4679 = vmatpush3.bf16.msra.mxu1 %v4871_v12  ;;  %2496 = vmatpush1.bf16.msra.mxu0 %v4866_v44  ;;  %v212_v44 = vld [vmem:[%s4988_s30 + $0x88] sm:$0xff]  ;;  %v4094_v28 = vld [vmem:[%s4988_s30 + $0xf8] sm:$0xff] }
  0x3c   : > { %1363 = vrot.lane.b32.xlu0 %v5073_v54, %s4914_s6  ;;  %2497 = vmatprep.subr.bf16.mxu0 %v4913_v1  ;;  %v269_v51 = vpack.c.bf16 %v213_v45, %v212_v44  ;;  %v3966_v20 = vld [vmem:[%s4988_s30 + $0xe1] sm:$0xff]  ;;  %v4050_v35 = vld [vmem:[%s4988_s30 + $0x1aa] sm:$0xff]  ;;  %v3968_v37 = vld [vmem:[%s4988_s30 + $0xf9] sm:$0xff] }
  0x3d   : > { %461 = vrot.lane.b32.xlu1 %v5075_v55, %s4914_s6  ;;  %v2136_v55 = vld [vmem:[#allocation2 + $0x40] sm:$0xff]  ;;  %v4096_v44 = vld [vmem:[%s4988_s30 + $0x108] sm:$0xff] }
  0x3e   : > { %4681 = vmatmul.mubr.msk.bf16.vlgmr.msra.gmra.mrb[0].mxu1 %vm294_vm0, %v2133_v49  ;;  %v4089_v49 = vld [vmem:[%s4988_s30 + $0xc8] sm:$0xff]  ;;  %302 = vst.msk [vmem:[#allocation2 + $0xa8] sm:$0xff] %vm294_vm0, %v269_v51  ;;  %v4051_v51 = vld [vmem:[%s4988_s30 + $0x1ba] sm:$0xff] }
  0x3f   : > { %4684 = vmatprep.mubr.msk.bf16.mxu1 %vm294_vm0, %v2136_v55  ;;  %2498 = vmatpush1.bf16.msra.mxu0 %v4867_v52  ;;  %v4153_v52 = vld [vmem:[%s4988_s30 + $0xc9] sm:$0xff]  ;;  %v4154_v55 = vld [vmem:[%s4988_s30 + $0xd1] sm:$0xff] }
  0x40   : > { %1622 = vrot.lane.b32.xlu0 %v5197_v41, %s4915_s7  ;;  %2499 = vmatprep.subr.bf16.mxu0 %v4913_v1 }
  0x41   : > { %718 = vrot.lane.b32.xlu1 %v5060_v46, %s4915_s7  ;;  %v207_v46 = vld [vmem:[%s4988_s30 + $0x58] sm:$0xff] }
  0x42   : > { %v266_v0 = vpack.c.bf16 %v207_v46, %v206_v59  ;;  %v2148_v59 = vld [vmem:[#allocation2 + $0xa0] sm:$0xff]  ;;  %v5345_v46 = vpack.c.bf16 %v4154_v55, %v4153_v52 }
  0x43   : > { %2500 = vmatpush1.bf16.msra.mxu0 %v4868_v6  ;;  %v4091_v6 = vld [vmem:[%s4988_s30 + $0xd8] sm:$0xff] }
  0x44   : > { %1878 = vrot.lane.b32.xlu0 %v5085_v60, %s4916_s19  ;;  %299 = vst.msk [vmem:[#allocation2 + $0x60] sm:$0xff] %vm294_vm0, %v266_v0  ;;  %2501 = vmatprep.subr.bf16.mxu0 %v4913_v1  ;;  %v2145_v1 = vld [vmem:[#allocation2 + $0x88] sm:$0xff]  ;;  %v3964_v0 = vld [vmem:[%s4988_s30 + $0xd1] sm:$0xff]  ;;  %v5367_v13 = vpack.c.bf16 %v4092_v10, %v4091_v6 }
  0x45   : > { %978 = vrot.lane.b32.xlu1 %v5098_v63, %s4916_s19  ;;  %v5261_v63 = vpack.c.bf16 %v4086_v5, %v4085_v62  ;;  %v2151_v62 = vld [vmem:[#allocation2 + $0xb8] sm:$0xff]  ;;  %v215_v5 = vld [vmem:[%s4988_s30 + $0xa8] sm:$0xff] }
  0x46   : > { %4685 = vmatmul.mubr.msk.bf16.gmra.mrb[4].mxu1 %vm294_vm0, %v2139_v14  ;;  %v4155_v14 = vld [vmem:[%s4988_s30 + $0xd9] sm:$0xff] }
  0x47   : > { %2502 = vmatpush1.bf16.msra.mxu0 %v4870_v19  ;;  %v5379_v19 = vpack.c.bf16 %v4156_v16, %v4155_v14  ;;  %v4053_v14 = vld [vmem:[%s4988_s30 + $0x1ca] sm:$0xff]  ;;  %v4054_v16 = vld [vmem:[%s4988_s30 + $0x1d2] sm:$0xff] }
  0x48   : > { %1365 = vrot.lane.b32.xlu0 %v5087_v61, %s4914_s6 }
  0x49   : > { %463 = vrot.lane.b32.xlu1 %v5015_v21, %s4914_s6  ;;  %v2142_v21 = vld [vmem:[#allocation2 + $0x70] sm:$0xff] }
  0x4a   : > { %4688 = vmatprep.mubr.msk.bf16.mxu1 %vm294_vm0, %v2142_v21  ;;  %v216_v21 = vld [vmem:[%s4988_s30 + $0xb0] sm:$0xff] }
  0x4c   : > { %1624 = vrot.lane.b32.xlu0 %v5261_v63, %s4915_s7 }
  0x4d   : > { %720 = vrot.lane.b32.xlu1 %v5044_v38, %s4915_s7  ;;  %v268_v38 = vpack.c.bf16 %v211_v32, %v210_v31  ;;  %v4157_v31 = vld [vmem:[%s4988_s30 + $0xf1] sm:$0xff]  ;;  %v4158_v32 = vld [vmem:[%s4988_s30 + $0xf9] sm:$0xff] }
  0x4e   : > { %4689 = vmatmul.mubr.msk.bf16.gmra.mrb[8].mxu1 %vm294_vm0, %v2145_v1  ;;  %v217_v1 = vld [vmem:[%s4988_s30 + $0xb8] sm:$0xff] }
  0x4f   : > { %301 = vst.msk [vmem:[#allocation2 + $0x90] sm:$0xff] %vm294_vm0, %v268_v38  ;;  %4692 = vmatprep.mubr.msk.bf16.mxu1 %vm294_vm0, %v2148_v59  ;;  %v271_v29 = vpack.c.bf16 %v217_v1, %v216_v21  ;;  %v5407_v38 = vpack.c.bf16 %v4050_v35, %v4049_v34  ;;  %v3970_v59 = vld [vmem:[%s4988_s30 + $0x109] sm:$0xff] }
  0x50   : > { %1880 = vrot.lane.b32.xlu0 %v5279_v26, %s4916_s19  ;;  %v4100_v34 = vld [vmem:[%s4988_s30 + $0x130] sm:$0xff] }
  0x51   : > { %980 = vrot.lane.b32.xlu1 %v5151_v23, %s4916_s19  ;;  %v4152_v23 = vld [vmem:[%s4988_s30 + $0xb9] sm:$0xff]  ;;  %304 = vst.msk [vmem:[#allocation2 + $0xd8] sm:$0xff] %vm294_vm0, %v271_v29  ;;  %2113 = vst.msk [vmem:[#allocation2 + $0x1a8] sm:$0xff] %vm294_vm0, %v5407_v38 }
  0x52   : > { %v5313_v12 = vpack.c.bf16 %v4152_v23, %v4151_v8  ;;  %v5411_v8 = vpack.c.bf16 %v4158_v32, %v4157_v31  ;;  %v2157_v23 = vld [vmem:[#allocation2 + $0xe8] sm:$0xff]  ;;  %v222_v31 = vld [vmem:[%s4988_s30 + $0xf0] sm:$0xff]  ;;  %v223_v32 = vld [vmem:[%s4988_s30 + $0xf8] sm:$0xff] }
  0x53   : > { %v274_v35 = vpack.c.bf16 %v223_v32, %v222_v31 }
  0x54   : > { %1367 = vrot.lane.b32.xlu0 %v5104_v4, %s4914_s6 }
  0x55   : > { %465 = vrot.lane.b32.xlu1 %v5032_v30, %s4914_s6  ;;  %v3961_v30 = vld [vmem:[%s4988_s30 + $0xb1] sm:$0xff]  ;;  %307 = vst.msk [vmem:[#allocation2 + $0x120] sm:$0xff] %vm294_vm0, %v274_v35 }
  0x56   : > { %v1172_v43 = vpack.c.bf16 %v3962_v42, %v3961_v30  ;;  %4693 = vmatmul.mubr.msk.bf16.gmra.mrb[12].mxu1 %vm294_vm0, %v2151_v62  ;;  %v218_v30 = vld [vmem:[%s4988_s30 + $0xc8] sm:$0xff]  ;;  %v219_v42 = vld [vmem:[%s4988_s30 + $0xd0] sm:$0xff] }
  0x57   : > { %v4167_v35 = vld [vmem:[%s4988_s30 + $0x151] sm:$0xff] }
  0x58   : > { %1626 = vrot.lane.b32.xlu0 %v5301_v36, %s4915_s7  ;;  %1204 = vst.msk [vmem:[#allocation2 + $0xb0] sm:$0xff] %vm294_vm0, %v1172_v43  ;;  %v4095_v43 = vld [vmem:[%s4988_s30 + $0x100] sm:$0xff] }
  0x59   : > { %722 = vrot.lane.b32.xlu1 %v5073_v54, %s4915_s7  ;;  %v5333_v54 = vpack.c.bf16 %v4090_v50, %v4089_v49  ;;  %v5433_v45 = vpack.c.bf16 %v4096_v44, %v4095_v43  ;;  %v4159_v49 = vld [vmem:[%s4988_s30 + $0x101] sm:$0xff]  ;;  %v4160_v50 = vld [vmem:[%s4988_s30 + $0x109] sm:$0xff] }
  0x5a   : > { %v5445_v55 = vpack.c.bf16 %v4160_v50, %v4159_v49  ;;  %v3973_v49 = vld [vmem:[%s4988_s30 + $0x129] sm:$0xff]  ;;  %v3974_v50 = vld [vmem:[%s4988_s30 + $0x131] sm:$0xff] }
  0x5c   : > { %1882 = vrot.lane.b32.xlu0 %v5313_v12, %s4916_s19 }
  0x5d   : > { %982 = vrot.lane.b32.xlu1 %v5197_v41, %s4916_s19  ;;  %v4045_v41 = vld [vmem:[%s4988_s30 + $0x17a] sm:$0xff] }
  0x5e   : > { %v5341_v57 = vpack.c.bf16 %v4046_v56, %v4045_v41  ;;  %v3969_v56 = vld [vmem:[%s4988_s30 + $0x101] sm:$0xff] }
  0x5f   : > { %v1176_v62 = vpack.c.bf16 %v3970_v59, %v3969_v56 }
  0x60   : > { %1369 = vrot.lane.b32.xlu0 %v5112_v7, %s4914_s6  ;;  %2111 = vst.msk [vmem:[#allocation2 + $0x178] sm:$0xff] %vm294_vm0, %v5341_v57 }
  0x61   : > { %467 = vrot.lane.b32.xlu1 %v5062_v47, %s4914_s6  ;;  %v3963_v47 = vld [vmem:[%s4988_s30 + $0xc9] sm:$0xff]  ;;  %1208 = vst.msk [vmem:[#allocation2 + $0x110] sm:$0xff] %vm294_vm0, %v1176_v62 }
  0x62   : > { %v1173_v2 = vpack.c.bf16 %v3964_v0, %v3963_v47  ;;  %v220_v47 = vld [vmem:[%s4988_s30 + $0xd8] sm:$0xff]  ;;  %v221_v0 = vld [vmem:[%s4988_s30 + $0xe0] sm:$0xff] }
  0x64   : > { %1628 = vrot.lane.b32.xlu0 %v5333_v54, %s4915_s7  ;;  %1205 = vst.msk [vmem:[#allocation2 + $0xc8] sm:$0xff] %vm294_vm0, %v1173_v2  ;;  %v4098_v2 = vld [vmem:[%s4988_s30 + $0x120] sm:$0xff] }
  0x65   : > { %724 = vrot.lane.b32.xlu1 %v5087_v61, %s4915_s7  ;;  %v270_v61 = vpack.c.bf16 %v215_v5, %v214_v3  ;;  %v273_v3 = vpack.c.bf16 %v221_v0, %v220_v47 }
  0x67   : > { %303 = vst.msk [vmem:[#allocation2 + $0xc0] sm:$0xff] %vm294_vm0, %v270_v61  ;;  %306 = vst.msk [vmem:[#allocation2 + $0x108] sm:$0xff] %vm294_vm0, %v273_v3  ;;  %v4161_v61 = vld [vmem:[%s4988_s30 + $0x119] sm:$0xff] }
  0x68   : > { %1884 = vrot.lane.b32.xlu0 %v5345_v46, %s4916_s19  ;;  %v4057_v3 = vld [vmem:[%s4988_s30 + $0x1f2] sm:$0xff] }
  0x69   : > { %984 = vrot.lane.b32.xlu1 %v5261_v63, %s4916_s19  ;;  %v4047_v63 = vld [vmem:[%s4988_s30 + $0x192] sm:$0xff] }
  0x6a   : > { %v5375_v18 = vpack.c.bf16 %v4048_v17, %v4047_v63  ;;  %v5477_v17 = vpack.c.bf16 %v4054_v16, %v4053_v14  ;;  %v2166_v14 = vld [vmem:[#allocation2 + $0x130] sm:$0xff]  ;;  %v2169_v16 = vld [vmem:[#allocation2 + $0x148] sm:$0xff] }
  0x6c   : > { %1371 = vrot.lane.b32.xlu0 %v5122_v11, %s4914_s6  ;;  %2112 = vst.msk [vmem:[#allocation2 + $0x190] sm:$0xff] %vm294_vm0, %v5375_v18  ;;  %2115 = vst.msk [vmem:[#allocation2 + $0x1d8] sm:$0xff] %vm294_vm0, %v5477_v17 }
  0x6d   : > { %469 = vrot.lane.b32.xlu1 %v5085_v60, %s4914_s6  ;;  %v3965_v60 = vld [vmem:[%s4988_s30 + $0xd9] sm:$0xff] }
  0x6e   : > { %v1174_v22 = vpack.c.bf16 %v3966_v20, %v3965_v60  ;;  %v2160_v20 = vld [vmem:[#allocation2 + $0x100] sm:$0xff] }
  0x70   : > { %1630 = vrot.lane.b32.xlu0 %v5367_v13, %s4915_s7  ;;  %1206 = vst.msk [vmem:[#allocation2 + $0xe0] sm:$0xff] %vm294_vm0, %v1174_v22  ;;  %v2163_v22 = vld [vmem:[#allocation2 + $0x118] sm:$0xff] }
  0x71   : > { %726 = vrot.lane.b32.xlu1 %v5104_v4, %s4915_s7  ;;  %v5399_v4 = vpack.c.bf16 %v4094_v28, %v4093_v27  ;;  %v3971_v27 = vld [vmem:[%s4988_s30 + $0x119] sm:$0xff]  ;;  %v3972_v28 = vld [vmem:[%s4988_s30 + $0x121] sm:$0xff] }
  0x72   : > { %v1177_v29 = vpack.c.bf16 %v3972_v28, %v3971_v27  ;;  %v227_v27 = vld [vmem:[%s4988_s30 + $0x120] sm:$0xff]  ;;  %v4104_v28 = vld [vmem:[%s4988_s30 + $0x158] sm:$0xff] }
  0x74   : > { %1886 = vrot.lane.b32.xlu0 %v5379_v19, %s4916_s19  ;;  %1209 = vst.msk [vmem:[#allocation2 + $0x128] sm:$0xff] %vm294_vm0, %v1177_v29 }
  0x75   : > { %986 = vrot.lane.b32.xlu1 %v5301_v36, %s4916_s19  ;;  %v2154_v36 = vld [vmem:[#allocation2 + $0xd0] sm:$0xff] }
  0x76   : > { %4696 = vmatprep.mubr.msk.bf16.mxu1 %vm294_vm0, %v2154_v36 }
  0x77   : > { %4697 = vmatmul.mubr.msk.bf16.gmra.mrb[16].mxu1 %vm294_vm0, %v2157_v23 }
  0x78   : > { %1373 = vrot.lane.b32.xlu0 %v5128_v15, %s4914_s6  ;;  %4700 = vmatprep.mubr.msk.bf16.mxu1 %vm294_vm0, %v2160_v20  ;;  %v3975_v20 = vld [vmem:[%s4988_s30 + $0x141] sm:$0xff] }
  0x79   : > { %471 = vrot.lane.b32.xlu1 %v5279_v26, %s4914_s6  ;;  %v3967_v26 = vld [vmem:[%s4988_s30 + $0xf1] sm:$0xff] }
  0x7a   : > { %v1175_v39 = vpack.c.bf16 %v3968_v37, %v3967_v26 }
  0x7c   : > { %1632 = vrot.lane.b32.xlu0 %v5399_v4, %s4915_s7  ;;  %1207 = vst.msk [vmem:[#allocation2 + $0xf8] sm:$0xff] %vm294_vm0, %v1175_v39  ;;  %v4163_v39 = vld [vmem:[%s4988_s30 + $0x129] sm:$0xff] }
  0x7d   : > { %728 = vrot.lane.b32.xlu1 %v5112_v7, %s4915_s7  ;;  %v272_v7 = vpack.c.bf16 %v219_v42, %v218_v30  ;;  %v4164_v30 = vld [vmem:[%s4988_s30 + $0x131] sm:$0xff] }
  0x7e   : > { %v5519_v44 = vpack.c.bf16 %v4164_v30, %v4163_v39  ;;  %v3977_v30 = vld [vmem:[%s4988_s30 + $0x151] sm:$0xff] }
  0x7f   : > { %305 = vst.msk [vmem:[#allocation2 + $0xf0] sm:$0xff] %vm294_vm0, %v272_v7  ;;  %4701 = vmatmul.mubr.msk.bf16.gmra.mrb[20].mxu1 %vm294_vm0, %v2163_v22  ;;  %v3976_v22 = vld [vmem:[%s4988_s30 + $0x149] sm:$0xff] }
  0x80   : > { %1888 = vrot.lane.b32.xlu0 %v5411_v8, %s4916_s19  ;;  %4704 = vmatprep.mubr.msk.bf16.mxu1 %vm294_vm0, %v2166_v14  ;;  %v3980_v14 = vld [vmem:[%s4988_s30 + $0x171] sm:$0xff] }
  0x81   : > { %988 = vrot.lane.b32.xlu1 %v5333_v54, %s4916_s19  ;;  %v4052_v54 = vld [vmem:[%s4988_s30 + $0x1c2] sm:$0xff] }
  0x82   : > { %v5441_v52 = vpack.c.bf16 %v4052_v54, %v4051_v51  ;;  %v1178_v51 = vpack.c.bf16 %v3974_v50, %v3973_v49  ;;  %v224_v54 = vld [vmem:[%s4988_s30 + $0x100] sm:$0xff]  ;;  %v4105_v49 = vld [vmem:[%s4988_s30 + $0x168] sm:$0xff] }
  0x84   : > { %1375 = vrot.lane.b32.xlu0 %v5153_v24, %s4914_s6  ;;  %2114 = vst.msk [vmem:[#allocation2 + $0x1c0] sm:$0xff] %vm294_vm0, %v5441_v52  ;;  %1210 = vst.msk [vmem:[#allocation2 + $0x140] sm:$0xff] %vm294_vm0, %v1178_v51 }
  0x85   : > { %473 = vrot.lane.b32.xlu1 %v5313_v12, %s4914_s6 }
  0x87   : > { %4705 = vmatmul.mubr.msk.bf16.gmra.mrb[24].mxu1 %vm294_vm0, %v2169_v16 }
  0x88   : > { %1634 = vrot.lane.b32.xlu0 %v5433_v45, %s4915_s7 }
  0x89   : > { %730 = vrot.lane.b32.xlu1 %v5122_v11, %s4915_s7  ;;  %v4097_v11 = vld [vmem:[%s4988_s30 + $0x118] sm:$0xff] }
  0x8a   : > { %v1358_v12 = vpop.permute.xlu0 %1357  ;;  %v5469_v10 = vpack.c.bf16 %v4098_v2, %v4097_v11  ;;  %v4165_v11 = vld [vmem:[%s4988_s30 + $0x141] sm:$0xff]  ;;  %v4166_v2 = vld [vmem:[%s4988_s30 + $0x149] sm:$0xff] }
  0x8b   : > { %1453 = vst.msk [vmem:[#allocation2 + $0x8] sm:$0xff] %vm551_vm1, %v1358_v12  ;;  %v1617_v41 = vpop.permute.xlu1 %1616  ;;  %v225_v12 = vld [vmem:[%s4988_s30 + $0x108] sm:$0xff] }
  0x8c   : > { %1712 = vst.msk [vmem:[#allocation2 + $0x8] sm:$0xff] %vm808_vm2, %v1617_v41  ;;  %1890 = vrot.lane.b32.xlu0 %v5445_v55, %s4916_s19  ;;  %v4101_v41 = vld [vmem:[%s4988_s30 + $0x140] sm:$0xff]  ;;  %v275_v56 = vpack.c.bf16 %v225_v12, %v224_v54 }
  0x8d   : > { %990 = vrot.lane.b32.xlu1 %v5367_v13, %s4916_s19  ;;  %v4162_v13 = vld [vmem:[%s4988_s30 + $0x121] sm:$0xff] }
  0x8e   : > { %v456_v5 = vpop.permute.xlu0 %455  ;;  %308 = vst.msk [vmem:[#allocation2 + $0x138] sm:$0xff] %vm294_vm0, %v275_v56  ;;  %v4170_v56 = vld [vmem:[%s4988_s30 + $0x171] sm:$0xff] }
  0x8f   : > { %552 = vst.msk [vmem:[#allocation2] sm:$0xff] %vm551_vm1, %v456_v5  ;;  %v713_v6 = vpop.permute.xlu1 %712  ;;  %v4058_v5 = vld [vmem:[%s4988_s30 + $0x1fa] sm:$0xff] }
  0x90   : > { %809 = vst.msk [vmem:[#allocation2] sm:$0xff] %vm808_vm2, %v713_v6  ;;  %1377 = vrot.lane.b32.xlu0 %v5175_v33, %s4914_s6 }
  0x91   : > { %475 = vrot.lane.b32.xlu1 %v5345_v46, %s4914_s6  ;;  %v5483_v46 = vpack.c.bf16 %v4162_v13, %v4161_v61  ;;  %v5549_v61 = vpack.c.bf16 %v4058_v5, %v4057_v3  ;;  %v2175_v3 = vld [vmem:[#allocation2 + $0x178] sm:$0xff] }
  0x92   : > { %v1873_v63 = vpop.permute.xlu0 %1872 }
  0x93   : > { %1968 = vst.msk [vmem:[#allocation2 + $0x8] sm:$0xff] %vm1068_vm3, %v1873_v63  ;;  %v973_v60 = vpop.permute.xlu1 %972 }
  0x94   : > { %1069 = vst.msk [vmem:[#allocation2] sm:$0xff] %vm1068_vm3, %v973_v60  ;;  %1636 = vrot.lane.b32.xlu0 %v5469_v10, %s4915_s7 }
  0x95   : > { %732 = vrot.lane.b32.xlu1 %v5128_v15, %s4915_s7  ;;  %v4099_v15 = vld [vmem:[%s4988_s30 + $0x128] sm:$0xff]  ;;  %2117 = vst.msk [vmem:[#allocation2 + $0x208] sm:$0xff] %vm294_vm0, %v5549_v61 }
  0x96   : > { %v1360_v21 = vpop.permute.xlu0 %1359 }
  0x97   : > { %1454 = vst.msk [vmem:[#allocation2 + $0x20] sm:$0xff] %vm551_vm1, %v1360_v21  ;;  %v458_v1 = vpop.permute.xlu1 %457  ;;  %v1179_v21 = vpack.c.bf16 %v3976_v22, %v3975_v20  ;;  %v4108_v20 = vld [vmem:[%s4988_s30 + $0x180] sm:$0xff] }
  0x98   : > { %553 = vst.msk [vmem:[#allocation2 + $0x18] sm:$0xff] %vm551_vm1, %v458_v1  ;;  %1892 = vrot.lane.b32.xlu0 %v5483_v46, %s4916_s19  ;;  %v226_v1 = vld [vmem:[%s4988_s30 + $0x118] sm:$0xff] }
  0x99   : > { %992 = vrot.lane.b32.xlu1 %v5399_v4, %s4916_s19  ;;  %v5509_v4 = vpack.c.bf16 %v4100_v34, %v4099_v15  ;;  %v276_v29 = vpack.c.bf16 %v227_v27, %v226_v1  ;;  %1211 = vst.msk [vmem:[#allocation2 + $0x158] sm:$0xff] %vm294_vm0, %v1179_v21 }
  0x9a   : > { %v1619_v36 = vpop.permute.xlu0 %1618  ;;  %v2129_v23 = vld [vmem:[#allocation2 + $0x8] sm:$0xff] }
  0x9b   : > { %1713 = vst.msk [vmem:[#allocation2 + $0x20] sm:$0xff] %vm808_vm2, %v1619_v36  ;;  %v715_v26 = vpop.permute.xlu1 %714  ;;  %2503 = vmatprep.mubr.bf16.mxu0 %v2129_v23  ;;  %v2128_v37 = vld [vmem:[#allocation2] sm:$0xff] }
  0x9c   : > { %810 = vst.msk [vmem:[#allocation2 + $0x18] sm:$0xff] %vm808_vm2, %v715_v26  ;;  %1379 = vrot.lane.b32.xlu0 %v5211_v48, %s4914_s6  ;;  %2504 = vmatmul.mubr.bf16.vlgmr.msra.gmra.mrb[0].mxu0 %v2128_v37  ;;  %v4168_v36 = vld [vmem:[%s4988_s30 + $0x159] sm:$0xff] }
  0x9d   : > { %477 = vrot.lane.b32.xlu1 %v5379_v19, %s4914_s6  ;;  %309 = vst.msk [vmem:[#allocation2 + $0x150] sm:$0xff] %vm294_vm0, %v276_v29  ;;  %v5591_v37 = vpack.c.bf16 %v4168_v36, %v4167_v35  ;;  %v4172_v29 = vld [vmem:[%s4988_s30 + $0x181] sm:$0xff] }
  0x9e   : > { %v1875_v42 = vpop.permute.xlu0 %1874 }
  0x9f   : > { %1969 = vst.msk [vmem:[#allocation2 + $0x20] sm:$0xff] %vm1068_vm3, %v1875_v42  ;;  %v975_v43 = vpop.permute.xlu1 %974  ;;  %v3978_v42 = vld [vmem:[%s4988_s30 + $0x159] sm:$0xff] }
  0xa0   : > { %1070 = vst.msk [vmem:[#allocation2 + $0x18] sm:$0xff] %vm1068_vm3, %v975_v43  ;;  %1638 = vrot.lane.b32.xlu0 %v5509_v4, %s4915_s7  ;;  %v1180_v43 = vpack.c.bf16 %v3978_v42, %v3977_v30  ;;  %v232_v30 = vld [vmem:[%s4988_s30 + $0x150] sm:$0xff]  ;;  %v233_v42 = vld [vmem:[%s4988_s30 + $0x158] sm:$0xff] }
  0xa1   : > { %734 = vrot.lane.b32.xlu1 %v5153_v24, %s4915_s7  ;;  %v4102_v24 = vld [vmem:[%s4988_s30 + $0x148] sm:$0xff] }
  0xa2   : > { %v1362_v19 = vpop.permute.xlu0 %1361  ;;  %1212 = vst.msk [vmem:[#allocation2 + $0x170] sm:$0xff] %vm294_vm0, %v1180_v43  ;;  %v4109_v43 = vld [vmem:[%s4988_s30 + $0x190] sm:$0xff] }
  0xa3   : > { %1455 = vst.msk [vmem:[#allocation2 + $0x38] sm:$0xff] %vm551_vm1, %v1362_v19  ;;  %v460_v7 = vpop.permute.xlu1 %459  ;;  %v228_v19 = vld [vmem:[%s4988_s30 + $0x128] sm:$0xff] }
  0xa4   : > { %554 = vst.msk [vmem:[#allocation2 + $0x30] sm:$0xff] %vm551_vm1, %v460_v7  ;;  %1894 = vrot.lane.b32.xlu0 %v5519_v44, %s4916_s19  ;;  %v229_v7 = vld [vmem:[%s4988_s30 + $0x130] sm:$0xff] }
  0xa5   : > { %994 = vrot.lane.b32.xlu1 %v5433_v45, %s4916_s19  ;;  %v5541_v45 = vpack.c.bf16 %v4102_v24, %v4101_v41  ;;  %v277_v50 = vpack.c.bf16 %v229_v7, %v228_v19  ;;  %v4169_v24 = vld [vmem:[%s4988_s30 + $0x169] sm:$0xff]  ;;  %v279_v19 = vpack.c.bf16 %v233_v42, %v232_v30 }
  0xa6   : > { %v1621_v59 = vpop.permute.xlu0 %1620  ;;  %v2132_v62 = vld [vmem:[#allocation2 + $0x20] sm:$0xff] }
  0xa7   : > { %1714 = vst.msk [vmem:[#allocation2 + $0x38] sm:$0xff] %vm808_vm2, %v1621_v59  ;;  %v717_v47 = vpop.permute.xlu1 %716  ;;  %2511 = vmatprep.mubr.bf16.mxu0 %v2132_v62  ;;  %v2131_v0 = vld [vmem:[#allocation2 + $0x18] sm:$0xff]  ;;  %v4062_v62 = vld [vmem:[%s4988_s30 + $0x222] sm:$0xff] }
  0xa8   : > { %811 = vst.msk [vmem:[#allocation2 + $0x30] sm:$0xff] %vm808_vm2, %v717_v47  ;;  %1381 = vrot.lane.b32.xlu0 %v5221_v53, %s4914_s6  ;;  %2512 = vmatmul.mubr.bf16.gmra.mrb[4].mxu0 %v2131_v0  ;;  %v4061_v59 = vld [vmem:[%s4988_s30 + $0x21a] sm:$0xff] }
  0xa9   : > { %479 = vrot.lane.b32.xlu1 %v5411_v8, %s4914_s6  ;;  %v5555_v8 = vpack.c.bf16 %v4166_v2, %v4165_v11  ;;  %310 = vst.msk [vmem:[#allocation2 + $0x168] sm:$0xff] %vm294_vm0, %v277_v50  ;;  %v5621_v0 = vpack.c.bf16 %v4062_v62, %v4061_v59  ;;  %v2172_v2 = vld [vmem:[#allocation2 + $0x160] sm:$0xff]  ;;  %312 = vst.msk [vmem:[#allocation2 + $0x198] sm:$0xff] %vm294_vm0, %v279_v19  ;;  %v2178_v62 = vld [vmem:[#allocation2 + $0x190] sm:$0xff] }
  0xaa   : > { %v1877_v6 = vpop.permute.xlu0 %1876  ;;  %4708 = vmatprep.mubr.msk.bf16.mxu1 %vm294_vm0, %v2172_v2 }
  0xab   : > { %1970 = vst.msk [vmem:[#allocation2 + $0x38] sm:$0xff] %vm1068_vm3, %v1877_v6  ;;  %v977_v13 = vpop.permute.xlu1 %976  ;;  %4709 = vmatmul.mubr.msk.bf16.gmra.mrb[28].mxu1 %vm294_vm0, %v2175_v3  ;;  %v3983_v3 = vld [vmem:[%s4988_s30 + $0x191] sm:$0xff] }
  0xac   : > { %1071 = vst.msk [vmem:[#allocation2 + $0x30] sm:$0xff] %vm1068_vm3, %v977_v13  ;;  %1640 = vrot.lane.b32.xlu0 %v5541_v45, %s4915_s7  ;;  %v3979_v13 = vld [vmem:[%s4988_s30 + $0x169] sm:$0xff]  ;;  %4712 = vmatprep.mubr.msk.bf16.mxu1 %vm294_vm0, %v2178_v62 }
  0xad   : > { %736 = vrot.lane.b32.xlu1 %v5175_v33, %s4915_s7  ;;  %v4103_v33 = vld [vmem:[%s4988_s30 + $0x150] sm:$0xff]  ;;  %2119 = vst.msk [vmem:[#allocation2 + $0x238] sm:$0xff] %vm294_vm0, %v5621_v0  ;;  %v1181_v16 = vpack.c.bf16 %v3980_v14, %v3979_v13  ;;  %v234_v13 = vld [vmem:[%s4988_s30 + $0x168] sm:$0xff] }
  0xae   : > { %v1364_v63 = vpop.permute.xlu0 %1363  ;;  %v235_v14 = vld [vmem:[%s4988_s30 + $0x170] sm:$0xff] }
  0xaf   : > { %1456 = vst.msk [vmem:[#allocation2 + $0x50] sm:$0xff] %vm551_vm1, %v1364_v63  ;;  %v462_v60 = vpop.permute.xlu1 %461  ;;  %v230_v63 = vld [vmem:[%s4988_s30 + $0x140] sm:$0xff] }
  0xb0   : > { %555 = vst.msk [vmem:[#allocation2 + $0x48] sm:$0xff] %vm551_vm1, %v462_v60  ;;  %1896 = vrot.lane.b32.xlu0 %v5555_v8, %s4916_s19  ;;  %v231_v60 = vld [vmem:[%s4988_s30 + $0x148] sm:$0xff] }
  0xb1   : > { %996 = vrot.lane.b32.xlu1 %v5469_v10, %s4916_s19  ;;  %v5581_v10 = vpack.c.bf16 %v4104_v28, %v4103_v33  ;;  %v278_v22 = vpack.c.bf16 %v231_v60, %v230_v63  ;;  %1213 = vst.msk [vmem:[#allocation2 + $0x188] sm:$0xff] %vm294_vm0, %v1181_v16  ;;  %v4171_v28 = vld [vmem:[%s4988_s30 + $0x179] sm:$0xff]  ;;  %v4112_v16 = vld [vmem:[%s4988_s30 + $0x1a8] sm:$0xff]  ;;  %v280_v63 = vpack.c.bf16 %v235_v14, %v234_v13  ;;  %v4199_v14 = vld [vmem:[%s4988_s30 + $0x291] sm:$0xff] }
  0xb2   : > { %v1623_v31 = vpop.permute.xlu0 %1622  ;;  %v2135_v32 = vld [vmem:[#allocation2 + $0x38] sm:$0xff] }
  0xb3   : > { %1715 = vst.msk [vmem:[#allocation2 + $0x50] sm:$0xff] %vm808_vm2, %v1623_v31  ;;  %v719_v15 = vpop.permute.xlu1 %718  ;;  %2519 = vmatprep.mubr.bf16.mxu0 %v2135_v32  ;;  %v2134_v34 = vld [vmem:[#allocation2 + $0x30] sm:$0xff]  ;;  %v4064_v32 = vld [vmem:[%s4988_s30 + $0x23a] sm:$0xff] }
  0xb4   : > { %812 = vst.msk [vmem:[#allocation2 + $0x48] sm:$0xff] %vm808_vm2, %v719_v15  ;;  %1383 = vrot.lane.b32.xlu0 %v5231_v58, %s4914_s6  ;;  %2520 = vmatmul.mubr.bf16.gmra.mrb[8].mxu0 %v2134_v34  ;;  %v4063_v31 = vld [vmem:[%s4988_s30 + $0x232] sm:$0xff] }
  0xb5   : > { %481 = vrot.lane.b32.xlu1 %v5445_v55, %s4914_s6  ;;  %311 = vst.msk [vmem:[#allocation2 + $0x180] sm:$0xff] %vm294_vm0, %v278_v22  ;;  %v5661_v34 = vpack.c.bf16 %v4064_v32, %v4063_v31  ;;  %313 = vst.msk [vmem:[#allocation2 + $0x1b0] sm:$0xff] %vm294_vm0, %v280_v63 }
  0xb6   : > { %v1879_v23 = vpop.permute.xlu0 %1878 }
  0xb7   : > { %1971 = vst.msk [vmem:[#allocation2 + $0x50] sm:$0xff] %vm1068_vm3, %v1879_v23  ;;  %v979_v26 = vpop.permute.xlu1 %978 }
  0xb8   : > { %1072 = vst.msk [vmem:[#allocation2 + $0x48] sm:$0xff] %vm1068_vm3, %v979_v26  ;;  %1642 = vrot.lane.b32.xlu0 %v5581_v10, %s4915_s7  ;;  %v3981_v26 = vld [vmem:[%s4988_s30 + $0x179] sm:$0xff] }
  0xb9   : > { %738 = vrot.lane.b32.xlu1 %v5211_v48, %s4915_s7  ;;  %v4106_v48 = vld [vmem:[%s4988_s30 + $0x170] sm:$0xff]  ;;  %2120 = vst.msk [vmem:[#allocation2 + $0x250] sm:$0xff] %vm294_vm0, %v5661_v34 }
  0xba   : > { %v1366_v55 = vpop.permute.xlu0 %1365 }
  0xbb   : > { %1457 = vst.msk [vmem:[#allocation2 + $0x68] sm:$0xff] %vm551_vm1, %v1366_v55  ;;  %v464_v39 = vpop.permute.xlu1 %463  ;;  %v3982_v55 = vld [vmem:[%s4988_s30 + $0x181] sm:$0xff] }
  0xbc   : > { %556 = vst.msk [vmem:[#allocation2 + $0x60] sm:$0xff] %vm551_vm1, %v464_v39  ;;  %1898 = vrot.lane.b32.xlu0 %v5591_v37, %s4916_s19  ;;  %v1182_v39 = vpack.c.bf16 %v3982_v55, %v3981_v26  ;;  %v236_v26 = vld [vmem:[%s4988_s30 + $0x178] sm:$0xff]  ;;  %v237_v55 = vld [vmem:[%s4988_s30 + $0x180] sm:$0xff] }
  0xbd   : > { %998 = vrot.lane.b32.xlu1 %v5509_v4, %s4916_s19  ;;  %v5613_v4 = vpack.c.bf16 %v4106_v48, %v4105_v49  ;;  %v281_v30 = vpack.c.bf16 %v237_v55, %v236_v26  ;;  %v3990_v26 = vld [vmem:[%s4988_s30 + $0x1d1] sm:$0xff] }
  0xbe   : > { %v1625_v51 = vpop.permute.xlu0 %1624  ;;  %v2138_v54 = vld [vmem:[#allocation2 + $0x50] sm:$0xff]  ;;  %1214 = vst.msk [vmem:[#allocation2 + $0x1a0] sm:$0xff] %vm294_vm0, %v1182_v39  ;;  %v4113_v39 = vld [vmem:[%s4988_s30 + $0x1b8] sm:$0xff] }
  0xbf   : > { %1716 = vst.msk [vmem:[#allocation2 + $0x68] sm:$0xff] %vm808_vm2, %v1625_v51  ;;  %v721_v12 = vpop.permute.xlu1 %720  ;;  %2527 = vmatprep.mubr.bf16.mxu0 %v2138_v54  ;;  %v2137_v41 = vld [vmem:[#allocation2 + $0x48] sm:$0xff]  ;;  %v4173_v51 = vld [vmem:[%s4988_s30 + $0x191] sm:$0xff]  ;;  %v4174_v54 = vld [vmem:[%s4988_s30 + $0x199] sm:$0xff] }
  0xc0   : > { %813 = vst.msk [vmem:[#allocation2 + $0x60] sm:$0xff] %vm808_vm2, %v721_v12  ;;  %1385 = vrot.lane.b32.xlu0 %v5251_v9, %s4914_s6  ;;  %2528 = vmatmul.mubr.bf16.gmra.mrb[12].mxu0 %v2137_v41  ;;  %v4065_v12 = vld [vmem:[%s4988_s30 + $0x242] sm:$0xff]  ;;  %v4066_v41 = vld [vmem:[%s4988_s30 + $0x24a] sm:$0xff] }
  0xc1   : > { %483 = vrot.lane.b32.xlu1 %v5483_v46, %s4914_s6  ;;  %v5627_v46 = vpack.c.bf16 %v4170_v56, %v4169_v24  ;;  %v5699_v56 = vpack.c.bf16 %v4066_v41, %v4065_v12  ;;  %314 = vst.msk [vmem:[#allocation2 + $0x1c8] sm:$0xff] %vm294_vm0, %v281_v30  ;;  %v2184_v41 = vld [vmem:[#allocation2 + $0x1c0] sm:$0xff]  ;;  %v241_v30 = vld [vmem:[%s4988_s30 + $0x1a8] sm:$0xff] }
  0xc2   : > { %v1881_v47 = vpop.permute.xlu0 %1880 }
  0xc3   : > { %1972 = vst.msk [vmem:[#allocation2 + $0x68] sm:$0xff] %vm1068_vm3, %v1881_v47  ;;  %v981_v11 = vpop.permute.xlu1 %980  ;;  %v2181_v47 = vld [vmem:[#allocation2 + $0x1a8] sm:$0xff] }
  0xc4   : > { %1073 = vst.msk [vmem:[#allocation2 + $0x60] sm:$0xff] %vm1068_vm3, %v981_v11  ;;  %1644 = vrot.lane.b32.xlu0 %v5613_v4, %s4915_s7  ;;  %4713 = vmatmul.mubr.msk.bf16.gmra.mrb[32].mxu1 %vm294_vm0, %v2181_v47  ;;  %v3987_v47 = vld [vmem:[%s4988_s30 + $0x1b9] sm:$0xff] }
  0xc5   : > { %740 = vrot.lane.b32.xlu1 %v5221_v53, %s4915_s7  ;;  %v4107_v53 = vld [vmem:[%s4988_s30 + $0x178] sm:$0xff]  ;;  %2121 = vst.msk [vmem:[#allocation2 + $0x268] sm:$0xff] %vm294_vm0, %v5699_v56  ;;  %4716 = vmatprep.mubr.msk.bf16.mxu1 %vm294_vm0, %v2184_v41 }
  0xc6   : > { %v1368_v5 = vpop.permute.xlu0 %1367 }
  0xc7   : > { %1458 = vst.msk [vmem:[#allocation2 + $0x80] sm:$0xff] %vm551_vm1, %v1368_v5  ;;  %v466_v6 = vpop.permute.xlu1 %465  ;;  %v3984_v5 = vld [vmem:[%s4988_s30 + $0x199] sm:$0xff] }
  0xc8   : > { %557 = vst.msk [vmem:[#allocation2 + $0x78] sm:$0xff] %vm551_vm1, %v466_v6  ;;  %1900 = vrot.lane.b32.xlu0 %v5627_v46, %s4916_s19  ;;  %v1183_v6 = vpack.c.bf16 %v3984_v5, %v3983_v3  ;;  %v238_v5 = vld [vmem:[%s4988_s30 + $0x190] sm:$0xff] }
  0xc9   : > { %1000 = vrot.lane.b32.xlu1 %v5541_v45, %s4916_s19  ;;  %v5653_v45 = vpack.c.bf16 %v4108_v20, %v4107_v53 }
  0xca   : > { %v1627_v21 = vpop.permute.xlu0 %1626  ;;  %v2141_v1 = vld [vmem:[#allocation2 + $0x68] sm:$0xff]  ;;  %1215 = vst.msk [vmem:[#allocation2 + $0x1b8] sm:$0xff] %vm294_vm0, %v1183_v6  ;;  %v239_v6 = vld [vmem:[%s4988_s30 + $0x198] sm:$0xff] }
  0xcb   : > { %1717 = vst.msk [vmem:[#allocation2 + $0x80] sm:$0xff] %vm808_vm2, %v1627_v21  ;;  %v723_v27 = vpop.permute.xlu1 %722  ;;  %2535 = vmatprep.mubr.bf16.mxu0 %v2141_v1  ;;  %v2140_v33 = vld [vmem:[#allocation2 + $0x60] sm:$0xff]  ;;  %v4176_v1 = vld [vmem:[%s4988_s30 + $0x1a9] sm:$0xff]  ;;  %v282_v13 = vpack.c.bf16 %v239_v6, %v238_v5 }
  0xcc   : > { %814 = vst.msk [vmem:[#allocation2 + $0x78] sm:$0xff] %vm808_vm2, %v723_v27  ;;  %1387 = vrot.lane.b32.xlu0 %v5275_v25, %s4914_s6  ;;  %2536 = vmatmul.mubr.bf16.gmra.mrb[16].mxu0 %v2140_v33  ;;  %v4175_v21 = vld [vmem:[%s4988_s30 + $0x1a1] sm:$0xff]  ;;  %v3992_v5 = vld [vmem:[%s4988_s30 + $0x1e9] sm:$0xff] }
  0xcd   : > { %485 = vrot.lane.b32.xlu1 %v5519_v44, %s4914_s6  ;;  %v5667_v44 = vpack.c.bf16 %v4172_v29, %v4171_v28  ;;  %v4067_v27 = vld [vmem:[%s4988_s30 + $0x25a] sm:$0xff]  ;;  %v4068_v33 = vld [vmem:[%s4988_s30 + $0x262] sm:$0xff]  ;;  %315 = vst.msk [vmem:[#allocation2 + $0x1e0] sm:$0xff] %vm294_vm0, %v282_v13 }
  0xce   : > { %v1883_v15 = vpop.permute.xlu0 %1882  ;;  %v5739_v29 = vpack.c.bf16 %v4068_v33, %v4067_v27  ;;  %v4072_v27 = vld [vmem:[%s4988_s30 + $0x28a] sm:$0xff]  ;;  %v243_v13 = vld [vmem:[%s4988_s30 + $0x1c0] sm:$0xff] }
  0xcf   : > { %1973 = vst.msk [vmem:[#allocation2 + $0x80] sm:$0xff] %vm1068_vm3, %v1883_v15  ;;  %v983_v35 = vpop.permute.xlu1 %982 }
  0xd0   : > { %1074 = vst.msk [vmem:[#allocation2 + $0x78] sm:$0xff] %vm1068_vm3, %v983_v35  ;;  %1646 = vrot.lane.b32.xlu0 %v5653_v45, %s4915_s7  ;;  %v3985_v35 = vld [vmem:[%s4988_s30 + $0x1a1] sm:$0xff] }
  0xd1   : > { %742 = vrot.lane.b32.xlu1 %v5231_v58, %s4915_s7  ;;  %v4110_v58 = vld [vmem:[%s4988_s30 + $0x198] sm:$0xff]  ;;  %2122 = vst.msk [vmem:[#allocation2 + $0x280] sm:$0xff] %vm294_vm0, %v5739_v29 }
  0xd2   : > { %v1370_v36 = vpop.permute.xlu0 %1369 }
  0xd3   : > { %1459 = vst.msk [vmem:[#allocation2 + $0x98] sm:$0xff] %vm551_vm1, %v1370_v36  ;;  %v468_v23 = vpop.permute.xlu1 %467  ;;  %v3986_v36 = vld [vmem:[%s4988_s30 + $0x1a9] sm:$0xff] }
  0xd4   : > { %558 = vst.msk [vmem:[#allocation2 + $0x90] sm:$0xff] %vm551_vm1, %v468_v23  ;;  %1902 = vrot.lane.b32.xlu0 %v5667_v44, %s4916_s19  ;;  %v1184_v23 = vpack.c.bf16 %v3986_v36, %v3985_v35  ;;  %v4246_v35 = vld [vmem:[%s4988_s30 + $0x1ea] sm:$0xff] }
  0xd5   : > { %1002 = vrot.lane.b32.xlu1 %v5581_v10, %s4916_s19  ;;  %v5691_v10 = vpack.c.bf16 %v4110_v58, %v4109_v43 }
  0xd6   : > { %v1629_v7 = vpop.permute.xlu0 %1628  ;;  %v2144_v49 = vld [vmem:[#allocation2 + $0x80] sm:$0xff]  ;;  %1216 = vst.msk [vmem:[#allocation2 + $0x1d0] sm:$0xff] %vm294_vm0, %v1184_v23  ;;  %v3989_v23 = vld [vmem:[%s4988_s30 + $0x1c9] sm:$0xff] }
  0xd7   : > { %1718 = vst.msk [vmem:[#allocation2 + $0x98] sm:$0xff] %vm808_vm2, %v1629_v7  ;;  %v725_v48 = vpop.permute.xlu1 %724  ;;  %2543 = vmatprep.mubr.bf16.mxu0 %v2144_v49  ;;  %v2143_v50 = vld [vmem:[#allocation2 + $0x78] sm:$0xff]  ;;  %v4178_v49 = vld [vmem:[%s4988_s30 + $0x1c1] sm:$0xff] }
  0xd8   : > { %815 = vst.msk [vmem:[#allocation2 + $0x90] sm:$0xff] %vm808_vm2, %v725_v48  ;;  %1389 = vrot.lane.b32.xlu0 %v5309_v40, %s4914_s6  ;;  %2544 = vmatmul.mubr.bf16.gmra.mrb[20].mxu0 %v2143_v50  ;;  %v4177_v7 = vld [vmem:[%s4988_s30 + $0x1b9] sm:$0xff]  ;;  %v4069_v48 = vld [vmem:[%s4988_s30 + $0x26a] sm:$0xff] }
  0xd9   : > { %487 = vrot.lane.b32.xlu1 %v5555_v8, %s4914_s6  ;;  %v5705_v8 = vpack.c.bf16 %v4174_v54, %v4173_v51  ;;  %v4070_v50 = vld [vmem:[%s4988_s30 + $0x272] sm:$0xff] }
  0xda   : > { %v1885_v24 = vpop.permute.xlu0 %1884  ;;  %v5777_v54 = vpack.c.bf16 %v4070_v50, %v4069_v48  ;;  %v4181_v48 = vld [vmem:[%s4988_s30 + $0x1e1] sm:$0xff]  ;;  %v4182_v50 = vld [vmem:[%s4988_s30 + $0x1e9] sm:$0xff] }
  0xdb   : > { %1974 = vst.msk [vmem:[#allocation2 + $0x98] sm:$0xff] %vm1068_vm3, %v1885_v24  ;;  %v985_v59 = vpop.permute.xlu1 %984  ;;  %v2187_v24 = vld [vmem:[#allocation2 + $0x1d8] sm:$0xff] }
  0xdc   : > { %1075 = vst.msk [vmem:[#allocation2 + $0x90] sm:$0xff] %vm1068_vm3, %v985_v59  ;;  %1648 = vrot.lane.b32.xlu0 %v5691_v10, %s4915_s7  ;;  %4717 = vmatmul.mubr.msk.bf16.gmra.mrb[36].mxu1 %vm294_vm0, %v2187_v24 }
  0xdd   : > { %744 = vrot.lane.b32.xlu1 %v5251_v9, %s4915_s7  ;;  %v4111_v9 = vld [vmem:[%s4988_s30 + $0x1a0] sm:$0xff]  ;;  %2123 = vst.msk [vmem:[#allocation2 + $0x298] sm:$0xff] %vm294_vm0, %v5777_v54 }
  0xde   : > { %v1372_v11 = vpop.permute.xlu0 %1371 }
  0xdf   : > { %1460 = vst.msk [vmem:[#allocation2 + $0xb0] sm:$0xff] %vm551_vm1, %v1372_v11  ;;  %v470_v2 = vpop.permute.xlu1 %469  ;;  %v3988_v11 = vld [vmem:[%s4988_s30 + $0x1c1] sm:$0xff] }
  0xe0   : > { %559 = vst.msk [vmem:[#allocation2 + $0xa8] sm:$0xff] %vm551_vm1, %v470_v2  ;;  %1904 = vrot.lane.b32.xlu0 %v5705_v8, %s4916_s19  ;;  %v4115_v2 = vld [vmem:[%s4988_s30 + $0x1c8] sm:$0xff]  ;;  %v1185_v3 = vpack.c.bf16 %v3988_v11, %v3987_v47 }
  0xe1   : > { %1004 = vrot.lane.b32.xlu1 %v5613_v4, %s4916_s19  ;;  %v5731_v4 = vpack.c.bf16 %v4112_v16, %v4111_v9  ;;  %v4200_v9 = vld [vmem:[%s4988_s30 + $0x299] sm:$0xff]  ;;  %v2193_v47 = vld [vmem:[#allocation2 + $0x208] sm:$0xff] }
  0xe2   : > { %v1631_v60 = vpop.permute.xlu0 %1630  ;;  %v2147_v53 = vld [vmem:[#allocation2 + $0x98] sm:$0xff]  ;;  %1217 = vst.msk [vmem:[#allocation2 + $0x1e8] sm:$0xff] %vm294_vm0, %v1185_v3  ;;  %v3991_v3 = vld [vmem:[%s4988_s30 + $0x1e1] sm:$0xff] }
  0xe3   : > { %1719 = vst.msk [vmem:[#allocation2 + $0xb0] sm:$0xff] %vm808_vm2, %v1631_v60  ;;  %v727_v20 = vpop.permute.xlu1 %726  ;;  %2551 = vmatprep.mubr.bf16.mxu0 %v2147_v53  ;;  %v2146_v22 = vld [vmem:[#allocation2 + $0x90] sm:$0xff]  ;;  %v5806_v60 = vpack.c.bf16 %v4200_v9, %v4199_v14  ;;  %v1187_v6 = vpack.c.bf16 %v3992_v5, %v3991_v3  ;;  %v4120_v14 = vld [vmem:[%s4988_s30 + $0x1f8] sm:$0xff] }
  0xe4   : > { %816 = vst.msk [vmem:[#allocation2 + $0xa8] sm:$0xff] %vm808_vm2, %v727_v20  ;;  %1391 = vrot.lane.b32.xlu0 %v5341_v57, %s4914_s6  ;;  %2552 = vmatmul.mubr.bf16.gmra.mrb[24].mxu0 %v2146_v22  ;;  %v4179_v22 = vld [vmem:[%s4988_s30 + $0x1c9] sm:$0xff] }
  0xe5   : > { %489 = vrot.lane.b32.xlu1 %v5591_v37, %s4914_s6  ;;  %v5745_v37 = vpack.c.bf16 %v4176_v1, %v4175_v21  ;;  %1228 = vst.msk [vmem:[#allocation2 + $0x2f0] sm:$0xff] %vm294_vm0, %v5806_v60  ;;  %v4180_v21 = vld [vmem:[%s4988_s30 + $0x1d1] sm:$0xff]  ;;  %v4071_v1 = vld [vmem:[%s4988_s30 + $0x282] sm:$0xff]  ;;  %1219 = vst.msk [vmem:[#allocation2 + $0x218] sm:$0xff] %vm294_vm0, %v1187_v6 }
  0xe6   : > { %v1887_v28 = vpop.permute.xlu0 %1886 }
  0xe7   : > { %1975 = vst.msk [vmem:[#allocation2 + $0xb0] sm:$0xff] %vm1068_vm3, %v1887_v28  ;;  %v987_v31 = vpop.permute.xlu1 %986  ;;  %v5823_v28 = vpack.c.bf16 %v4072_v27, %v4071_v1 }
  0xe8   : > { %1076 = vst.msk [vmem:[#allocation2 + $0xa8] sm:$0xff] %vm1068_vm3, %v987_v31  ;;  %1650 = vrot.lane.b32.xlu0 %v5731_v4, %s4915_s7 }
  0xe9   : > { %746 = vrot.lane.b32.xlu1 %v5275_v25, %s4915_s7  ;;  %v4114_v25 = vld [vmem:[%s4988_s30 + $0x1c0] sm:$0xff]  ;;  %2124 = vst.msk [vmem:[#allocation2 + $0x2b0] sm:$0xff] %vm294_vm0, %v5823_v28 }
  0xea   : > { %v1374_v32 = vpop.permute.xlu0 %1373 }
  0xeb   : > { %1461 = vst.msk [vmem:[#allocation2 + $0xc8] sm:$0xff] %vm551_vm1, %v1374_v32  ;;  %v472_v15 = vpop.permute.xlu1 %471  ;;  %v5829_v32 = vpack.c.bf16 %v4180_v21, %v4179_v22  ;;  %v4183_v22 = vld [vmem:[%s4988_s30 + $0x1f1] sm:$0xff]  ;;  %v4184_v21 = vld [vmem:[%s4988_s30 + $0x1f9] sm:$0xff] }
  0xec   : > { %560 = vst.msk [vmem:[#allocation2 + $0xc0] sm:$0xff] %vm551_vm1, %v472_v15  ;;  %1906 = vrot.lane.b32.xlu0 %v5745_v37, %s4916_s19 }
  0xed   : > { %1006 = vrot.lane.b32.xlu1 %v5653_v45, %s4916_s19  ;;  %v5769_v45 = vpack.c.bf16 %v4114_v25, %v4113_v39  ;;  %v1186_v39 = vpack.c.bf16 %v3990_v26, %v3989_v23  ;;  %v240_v25 = vld [vmem:[%s4988_s30 + $0x1a0] sm:$0xff]  ;;  %v4249_v23 = vld [vmem:[%s4988_s30 + $0x20a] sm:$0xff]  ;;  %v4250_v26 = vld [vmem:[%s4988_s30 + $0x212] sm:$0xff] }
  0xee   : > { %v1633_v42 = vpop.permute.xlu0 %1632  ;;  %v2150_v43 = vld [vmem:[#allocation2 + $0xb0] sm:$0xff] }
  0xef   : > { %1720 = vst.msk [vmem:[#allocation2 + $0xc8] sm:$0xff] %vm808_vm2, %v1633_v42  ;;  %v729_v58 = vpop.permute.xlu1 %728  ;;  %2559 = vmatprep.mubr.bf16.mxu0 %v2150_v43  ;;  %v2149_v19 = vld [vmem:[#allocation2 + $0xa8] sm:$0xff]  ;;  %v283_v43 = vpack.c.bf16 %v241_v30, %v240_v25  ;;  %v3993_v30 = vld [vmem:[%s4988_s30 + $0x1f1] sm:$0xff] }
  0xf0   : > { %817 = vst.msk [vmem:[#allocation2 + $0xc0] sm:$0xff] %vm808_vm2, %v729_v58  ;;  %1393 = vrot.lane.b32.xlu0 %v5375_v18, %s4914_s6  ;;  %2560 = vmatmul.mubr.bf16.gmra.mrb[28].mxu0 %v2149_v19  ;;  %v4118_v42 = vld [vmem:[%s4988_s30 + $0x1e8] sm:$0xff] }
  0xf1   : > { %491 = vrot.lane.b32.xlu1 %v5627_v46, %s4914_s6  ;;  %v5783_v46 = vpack.c.bf16 %v4178_v49, %v4177_v7  ;;  %1218 = vst.msk [vmem:[#allocation2 + $0x200] sm:$0xff] %vm294_vm0, %v1186_v39  ;;  %316 = vst.msk [vmem:[#allocation2 + $0x1f8] sm:$0xff] %vm294_vm0, %v283_v43  ;;  %v2086_v39 = vpack.c.bf16 %v4250_v26, %v4249_v23  ;;  %v244_v43 = vld [vmem:[%s4988_s30 + $0x1c8] sm:$0xff] }
  0xf2   : > { %v1889_v51 = vpop.permute.xlu0 %1888 }
  0xf3   : > { %1976 = vst.msk [vmem:[#allocation2 + $0xc8] sm:$0xff] %vm1068_vm3, %v1889_v51  ;;  %v989_v12 = vpop.permute.xlu1 %988  ;;  %v4073_v51 = vld [vmem:[%s4988_s30 + $0x292] sm:$0xff] }
  0xf4   : > { %1077 = vst.msk [vmem:[#allocation2 + $0xc0] sm:$0xff] %vm1068_vm3, %v989_v12  ;;  %1652 = vrot.lane.b32.xlu0 %v5769_v45, %s4915_s7  ;;  %v4074_v12 = vld [vmem:[%s4988_s30 + $0x29a] sm:$0xff] }
  0xf5   : > { %748 = vrot.lane.b32.xlu1 %v5309_v40, %s4915_s7  ;;  %v4116_v40 = vld [vmem:[%s4988_s30 + $0x1d0] sm:$0xff]  ;;  %v5864_v24 = vpack.c.bf16 %v4074_v12, %v4073_v51  ;;  %2118 = vst.msk [vmem:[#allocation2 + $0x220] sm:$0xff] %vm294_vm0, %v2086_v39  ;;  %v4187_v39 = vld [vmem:[%s4988_s30 + $0x219] sm:$0xff] }
  0xf6   : > { %v1376_v59 = vpop.permute.xlu0 %1375 }
  0xf7   : > { %1462 = vst.msk [vmem:[#allocation2 + $0xe0] sm:$0xff] %vm551_vm1, %v1376_v59  ;;  %v474_v62 = vpop.permute.xlu1 %473 }
  0xf8   : > { %561 = vst.msk [vmem:[#allocation2 + $0xd8] sm:$0xff] %vm551_vm1, %v474_v62  ;;  %1908 = vrot.lane.b32.xlu0 %v5783_v46, %s4916_s19  ;;  %v5870_v62 = vpack.c.bf16 %v4182_v50, %v4181_v48 }
  0xf9   : > { %1008 = vrot.lane.b32.xlu1 %v5691_v10, %s4916_s19  ;;  %v5813_v10 = vpack.c.bf16 %v4116_v40, %v4115_v2  ;;  %2125 = vst.msk [vmem:[#allocation2 + $0x2c8] sm:$0xff] %vm294_vm0, %v5864_v24  ;;  %v242_v40 = vld [vmem:[%s4988_s30 + $0x1b8] sm:$0xff] }
  0xfa   : > { %v1635_v16 = vpop.permute.xlu0 %1634  ;;  %v2153_v63 = vld [vmem:[#allocation2 + $0xc8] sm:$0xff]  ;;  %v284_v9 = vpack.c.bf16 %v243_v13, %v242_v40 }
  0xfb   : > { %1721 = vst.msk [vmem:[#allocation2 + $0xe0] sm:$0xff] %vm808_vm2, %v1635_v16  ;;  %v731_v53 = vpop.permute.xlu1 %730  ;;  %2567 = vmatprep.mubr.bf16.mxu0 %v2153_v63  ;;  %v2152_v20 = vld [vmem:[#allocation2 + $0xc0] sm:$0xff] }
  0xfc   : > { %818 = vst.msk [vmem:[#allocation2 + $0xd8] sm:$0xff] %vm808_vm2, %v731_v53  ;;  %1395 = vrot.lane.b32.xlu0 %v5407_v38, %s4914_s6  ;;  %2568 = vmatmul.mubr.bf16.gmra.mrb[32].mxu0 %v2152_v20  ;;  %v2196_v6 = vld [vmem:[#allocation2 + $0x220] sm:$0xff] }
  0xfd   : > { %493 = vrot.lane.b32.xlu1 %v5667_v44, %s4914_s6  ;;  %v4245_v44 = vld [vmem:[%s4988_s30 + $0x1e2] sm:$0xff]  ;;  %317 = vst.msk [vmem:[#allocation2 + $0x210] sm:$0xff] %vm294_vm0, %v284_v9 }
  0xfe   : > { %v1891_v33 = vpop.permute.xlu0 %1890  ;;  %v2084_v55 = vpack.c.bf16 %v4246_v35, %v4245_v44 }
  0xff   : > { %1977 = vst.msk [vmem:[#allocation2 + $0xe0] sm:$0xff] %vm1068_vm3, %v1891_v33  ;;  %v991_v31 = vpop.permute.xlu1 %990 }
 0x100   : > { %1078 = vst.msk [vmem:[#allocation2 + $0xd8] sm:$0xff] %vm1068_vm3, %v991_v31  ;;  %1654 = vrot.lane.b32.xlu0 %v5813_v10, %s4915_s7 }
 0x101   : > { %750 = vrot.lane.b32.xlu1 %v5341_v57, %s4915_s7  ;;  %v4117_v57 = vld [vmem:[%s4988_s30 + $0x1e0] sm:$0xff]  ;;  %2116 = vst.msk [vmem:[#allocation2 + $0x1f0] sm:$0xff] %vm294_vm0, %v2084_v55 }
 0x102   : > { %v1378_v15 = vpop.permute.xlu0 %1377 }
 0x103   : > { %1463 = vst.msk [vmem:[#allocation2 + $0xf8] sm:$0xff] %vm551_vm1, %v1378_v15  ;;  %v476_v36 = vpop.permute.xlu1 %475  ;;  %v4055_v15 = vld [vmem:[%s4988_s30 + $0x1e2] sm:$0xff] }
 0x104   : > { %562 = vst.msk [vmem:[#allocation2 + $0xf0] sm:$0xff] %vm551_vm1, %v476_v36  ;;  %1910 = vrot.lane.b32.xlu0 %v5829_v32, %s4916_s19  ;;  %v4056_v36 = vld [vmem:[%s4988_s30 + $0x1ea] sm:$0xff] }
 0x105   : > { %1010 = vrot.lane.b32.xlu1 %v5731_v4, %s4916_s19  ;;  %v5856_v4 = vpack.c.bf16 %v4118_v42, %v4117_v57  ;;  %v3994_v57 = vld [vmem:[%s4988_s30 + $0x1f9] sm:$0xff]  ;;  %v5928_v42 = vpack.c.bf16 %v4056_v36, %v4055_v15 }
 0x106   : > { %v1637_v58 = vpop.permute.xlu0 %1636  ;;  %v2156_v19 = vld [vmem:[#allocation2 + $0xe0] sm:$0xff] }
 0x107   : > { %1722 = vst.msk [vmem:[#allocation2 + $0xf8] sm:$0xff] %vm808_vm2, %v1637_v58  ;;  %v733_v7 = vpop.permute.xlu1 %732  ;;  %2575 = vmatprep.mubr.bf16.mxu0 %v2156_v19  ;;  %v2155_v49 = vld [vmem:[#allocation2 + $0xd8] sm:$0xff]  ;;  %v245_v58 = vld [vmem:[%s4988_s30 + $0x1d0] sm:$0xff]  ;;  %v4121_v19 = vld [vmem:[%s4988_s30 + $0x208] sm:$0xff] }
 0x108   : > { %819 = vst.msk [vmem:[#allocation2 + $0xf0] sm:$0xff] %vm808_vm2, %v733_v7  ;;  %1397 = vrot.lane.b32.xlu0 %v5441_v52, %s4914_s6  ;;  %2576 = vmatmul.mubr.bf16.gmra.mrb[36].mxu0 %v2155_v49  ;;  %v4122_v7 = vld [vmem:[%s4988_s30 + $0x210] sm:$0xff]  ;;  %v285_v48 = vpack.c.bf16 %v245_v58, %v244_v43 }
 0x109   : > { %495 = vrot.lane.b32.xlu1 %v5705_v8, %s4914_s6  ;;  %v2190_v8 = vld [vmem:[#allocation2 + $0x1f0] sm:$0xff] }
 0x10a   : > { %v1893_v41 = vpop.permute.xlu0 %1892  ;;  %4720 = vmatprep.mubr.msk.bf16.mxu1 %vm294_vm0, %v2190_v8  ;;  %318 = vst.msk [vmem:[#allocation2 + $0x228] sm:$0xff] %vm294_vm0, %v285_v48  ;;  %v4060_v43 = vld [vmem:[%s4988_s30 + $0x212] sm:$0xff]  ;;  %v3998_v48 = vld [vmem:[%s4988_s30 + $0x221] sm:$0xff] }
 0x10b   : > { %1978 = vst.msk [vmem:[#allocation2 + $0xf8] sm:$0xff] %vm1068_vm3, %v1893_v41  ;;  %v993_v59 = vpop.permute.xlu1 %992  ;;  %4721 = vmatmul.mubr.msk.bf16.gmra.mrb[40].mxu1 %vm294_vm0, %v2193_v47 }
 0x10c   : > { %1079 = vst.msk [vmem:[#allocation2 + $0xf0] sm:$0xff] %vm1068_vm3, %v993_v59  ;;  %1656 = vrot.lane.b32.xlu0 %v5856_v4, %s4915_s7  ;;  %4724 = vmatprep.mubr.msk.bf16.mxu1 %vm294_vm0, %v2196_v6 }
 0x10d   : > { %752 = vrot.lane.b32.xlu1 %v5375_v18, %s4915_s7  ;;  %v4119_v18 = vld [vmem:[%s4988_s30 + $0x1f0] sm:$0xff] }
 0x10e   : > { %v1380_v11 = vpop.permute.xlu0 %1379 }
 0x10f   : > { %1464 = vst.msk [vmem:[#allocation2 + $0x110] sm:$0xff] %vm551_vm1, %v1380_v11  ;;  %v478_v2 = vpop.permute.xlu1 %477  ;;  %v4185_v11 = vld [vmem:[%s4988_s30 + $0x209] sm:$0xff] }
 0x110   : > { %563 = vst.msk [vmem:[#allocation2 + $0x108] sm:$0xff] %vm551_vm1, %v478_v2  ;;  %1912 = vrot.lane.b32.xlu0 %v5870_v62, %s4916_s19  ;;  %v4186_v2 = vld [vmem:[%s4988_s30 + $0x211] sm:$0xff] }
 0x111   : > { %1012 = vrot.lane.b32.xlu1 %v5769_v45, %s4916_s19  ;;  %v5896_v45 = vpack.c.bf16 %v4120_v14, %v4119_v18  ;;  %v5902_v1 = vpop.f32.mrb[0].mxu1  ;;  %v5961_v40 = vpack.c.bf16 %v4186_v2, %v4185_v11  ;;  %v4126_v11 = vld [vmem:[%s4988_s30 + $0x238] sm:$0xff] }
 0x112   : > { %v1639_v16 = vpop.permute.xlu0 %1638  ;;  %v2159_v63 = vld [vmem:[#allocation2 + $0xf8] sm:$0xff]  ;;  %v5904_v33 = vpop.f32.mrb[1].mxu1 }
 0x113   : > { %1723 = vst.msk [vmem:[#allocation2 + $0x110] sm:$0xff] %vm808_vm2, %v1639_v16  ;;  %v735_v53 = vpop.permute.xlu1 %734  ;;  %2583 = vmatprep.mubr.bf16.mxu0 %v2159_v63  ;;  %v2158_v20 = vld [vmem:[#allocation2 + $0xf0] sm:$0xff]  ;;  %v5907_v44 = vpop.f32.mrb[2].mxu1 }
 0x114   : > { %820 = vst.msk [vmem:[#allocation2 + $0x108] sm:$0xff] %vm808_vm2, %v735_v53  ;;  %1399 = vrot.lane.b32.xlu0 %v5477_v17, %s4914_s6  ;;  %2584 = vmatmul.mubr.bf16.gmra.mrb[40].mxu0 %v2158_v20  ;;  %v5915_v35 = vpop.f32.mrb[3].mxu1  ;;  %v3995_v63 = vld [vmem:[%s4988_s30 + $0x209] sm:$0xff]  ;;  %v3996_v53 = vld [vmem:[%s4988_s30 + $0x211] sm:$0xff] }
 0x115   : > { %497 = vrot.lane.b32.xlu1 %v5745_v37, %s4914_s6  ;;  %v5912_v37 = vpack.c.bf16 %v4184_v21, %v4183_v22  ;;  %v1189_v20 = vpack.c.bf16 %v3996_v53, %v3995_v63  ;;  %v246_v22 = vld [vmem:[%s4988_s30 + $0x1e0] sm:$0xff]  ;;  %v247_v21 = vld [vmem:[%s4988_s30 + $0x1e8] sm:$0xff] }
 0x116   : > { %v1895_v27 = vpop.permute.xlu0 %1894  ;;  %v286_v15 = vpack.c.bf16 %v247_v21, %v246_v22  ;;  %v4190_v63 = vld [vmem:[%s4988_s30 + $0x239] sm:$0xff] }
 0x117   : > { %1979 = vst.msk [vmem:[#allocation2 + $0x110] sm:$0xff] %vm1068_vm3, %v1895_v27  ;;  %v995_v31 = vpop.permute.xlu1 %994  ;;  %v4123_v27 = vld [vmem:[%s4988_s30 + $0x218] sm:$0xff] }
 0x118   : > { %1080 = vst.msk [vmem:[#allocation2 + $0x108] sm:$0xff] %vm1068_vm3, %v995_v31  ;;  %1658 = vrot.lane.b32.xlu0 %v5896_v45, %s4915_s7  ;;  %v4124_v31 = vld [vmem:[%s4988_s30 + $0x220] sm:$0xff] }
 0x119   : > { %754 = vrot.lane.b32.xlu1 %v5407_v38, %s4915_s7  ;;  %v1188_v38 = vpack.c.bf16 %v3994_v57, %v3993_v30  ;;  %v5937_v49 = vpop.f32.mrb[4].mxu1  ;;  %1221 = vst.msk [vmem:[#allocation2 + $0x248] sm:$0xff] %vm294_vm0, %v1189_v20  ;;  %319 = vst.msk [vmem:[#allocation2 + $0x240] sm:$0xff] %vm294_vm0, %v286_v15  ;;  %v2205_v15 = vld [vmem:[#allocation2 + $0x268] sm:$0xff] }
 0x11a   : > { %v1382_v55 = vpop.permute.xlu0 %1381  ;;  %v5939_v12 = vpop.f32.mrb[5].mxu1 }
 0x11b   : > { %1465 = vst.msk [vmem:[#allocation2 + $0x128] sm:$0xff] %vm551_vm1, %v1382_v55  ;;  %v480_v25 = vpop.permute.xlu1 %479  ;;  %v5943_v8 = vpop.f32.mrb[6].mxu1 }
 0x11c   : > { %564 = vst.msk [vmem:[#allocation2 + $0x120] sm:$0xff] %vm551_vm1, %v480_v25  ;;  %1914 = vrot.lane.b32.xlu0 %v5912_v37, %s4916_s19  ;;  %v5951_v47 = vpop.f32.mrb[7].mxu1  ;;  %v4188_v25 = vld [vmem:[%s4988_s30 + $0x221] sm:$0xff] }
 0x11d   : > { %1014 = vrot.lane.b32.xlu1 %v5813_v10, %s4916_s19  ;;  %1220 = vst.msk [vmem:[#allocation2 + $0x230] sm:$0xff] %vm294_vm0, %v1188_v38  ;;  %v5949_v10 = vpack.c.bf16 %v4122_v7, %v4121_v19  ;;  %v6003_v38 = vpack.c.bf16 %v4188_v25, %v4187_v39  ;;  %v3997_v7 = vld [vmem:[%s4988_s30 + $0x219] sm:$0xff]  ;;  %v250_v25 = vld [vmem:[%s4988_s30 + $0x208] sm:$0xff] }
 0x11e   : > { %v1641_v50 = vpop.permute.xlu0 %1640  ;;  %v2162_v51 = vld [vmem:[#allocation2 + $0x110] sm:$0xff] }
 0x11f   : > { %1724 = vst.msk [vmem:[#allocation2 + $0x128] sm:$0xff] %vm808_vm2, %v1641_v50  ;;  %v737_v41 = vpop.permute.xlu1 %736  ;;  %2591 = vmatprep.mubr.bf16.mxu0 %v2162_v51  ;;  %v2161_v59 = vld [vmem:[#allocation2 + $0x108] sm:$0xff]  ;;  %v1190_v51 = vpack.c.bf16 %v3998_v48, %v3997_v7 }
 0x120   : > { %821 = vst.msk [vmem:[#allocation2 + $0x120] sm:$0xff] %vm808_vm2, %v737_v41  ;;  %1401 = vrot.lane.b32.xlu0 %v5928_v42, %s4914_s6  ;;  %2592 = vmatmul.mubr.bf16.gmra.mrb[44].mxu0 %v2161_v59  ;;  %v248_v41 = vld [vmem:[%s4988_s30 + $0x1f0] sm:$0xff]  ;;  %v249_v59 = vld [vmem:[%s4988_s30 + $0x1f8] sm:$0xff]  ;;  %v4191_v48 = vld [vmem:[%s4988_s30 + $0x241] sm:$0xff] }
 0x121   : > { %499 = vrot.lane.b32.xlu1 %v5783_v46, %s4914_s6  ;;  %v2199_v46 = vld [vmem:[#allocation2 + $0x238] sm:$0xff]  ;;  %v5966_v13 = vpop.f32.mrb[8].mxu1  ;;  %v287_v2 = vpack.c.bf16 %v249_v59, %v248_v41  ;;  %1222 = vst.msk [vmem:[#allocation2 + $0x260] sm:$0xff] %vm294_vm0, %v1190_v51  ;;  %v4192_v51 = vld [vmem:[%s4988_s30 + $0x249] sm:$0xff] }
 0x122   : > { %v1897_v3 = vpop.permute.xlu0 %1896  ;;  %4725 = vmatmul.mubr.msk.bf16.gmra.mrb[44].mxu1 %vm294_vm0, %v2199_v46  ;;  %v5969_v14 = vpop.f32.mrb[9].mxu1 }
 0x123   : > { %1980 = vst.msk [vmem:[#allocation2 + $0x128] sm:$0xff] %vm1068_vm3, %v1897_v3  ;;  %v997_v5 = vpop.permute.xlu1 %996  ;;  %v5972_v16 = vpop.f32.mrb[10].mxu1 }
 0x124   : > { %1081 = vst.msk [vmem:[#allocation2 + $0x120] sm:$0xff] %vm1068_vm3, %v997_v5  ;;  %1660 = vrot.lane.b32.xlu0 %v5949_v10, %s4915_s7 }
 0x125   : > { %756 = vrot.lane.b32.xlu1 %v5441_v52, %s4915_s7  ;;  %v5979_v52 = vpop.f32.mrb[11].mxu1  ;;  %320 = vst.msk [vmem:[#allocation2 + $0x258] sm:$0xff] %vm294_vm0, %v287_v2  ;;  %v4001_v2 = vld [vmem:[%s4988_s30 + $0x241] sm:$0xff] }
 0x126   : > { %v1384_v18 = vpop.permute.xlu0 %1383 }
 0x127   : > { %1466 = vst.msk [vmem:[#allocation2 + $0x140] sm:$0xff] %vm551_vm1, %v1384_v18  ;;  %v482_v9 = vpop.permute.xlu1 %481 }
 0x128   : > { %565 = vst.msk [vmem:[#allocation2 + $0x138] sm:$0xff] %vm551_vm1, %v482_v9  ;;  %1916 = vrot.lane.b32.xlu0 %v5961_v40, %s4916_s19  ;;  %v4189_v9 = vld [vmem:[%s4988_s30 + $0x231] sm:$0xff] }
 0x129   : > { %1016 = vrot.lane.b32.xlu1 %v5856_v4, %s4916_s19  ;;  %v5993_v4 = vpack.c.bf16 %v4124_v31, %v4123_v27  ;;  %v6031_v18 = vpop.f32.mrb[12].mxu1  ;;  %v2202_v31 = vld [vmem:[#allocation2 + $0x250] sm:$0xff] }
 0x12a   : > { %v1643_v36 = vpop.permute.xlu0 %1642  ;;  %v2165_v23 = vld [vmem:[#allocation2 + $0x128] sm:$0xff]  ;;  %v6037_v53 = vpop.f32.mrb[13].mxu1  ;;  %4728 = vmatprep.mubr.msk.bf16.mxu1 %vm294_vm0, %v2202_v31 }
 0x12b   : > { %1725 = vst.msk [vmem:[#allocation2 + $0x140] sm:$0xff] %vm808_vm2, %v1643_v36  ;;  %v739_v26 = vpop.permute.xlu1 %738  ;;  %2599 = vmatprep.mubr.bf16.mxu0 %v2165_v23  ;;  %v2164_v55 = vld [vmem:[#allocation2 + $0x120] sm:$0xff]  ;;  %v6039_v22 = vpop.f32.mrb[14].mxu1  ;;  %4729 = vmatmul.mubr.msk.bf16.gmra.mrb[48].mxu1 %vm294_vm0, %v2205_v15 }
 0x12c   : > { %822 = vst.msk [vmem:[#allocation2 + $0x138] sm:$0xff] %vm808_vm2, %v739_v26  ;;  %1403 = vrot.lane.b32.xlu0 %v5549_v61, %s4914_s6  ;;  %2600 = vmatmul.mubr.bf16.gmra.mrb[48].mxu0 %v2164_v55  ;;  %v6042_v27 = vpop.f32.mrb[15].mxu1  ;;  %v3999_v26 = vld [vmem:[%s4988_s30 + $0x231] sm:$0xff]  ;;  %v4000_v55 = vld [vmem:[%s4988_s30 + $0x239] sm:$0xff] }
 0x12d   : > { %501 = vrot.lane.b32.xlu1 %v5829_v32, %s4914_s6  ;;  %v4059_v32 = vld [vmem:[%s4988_s30 + $0x20a] sm:$0xff]  ;;  %v1191_v39 = vpack.c.bf16 %v4000_v55, %v3999_v26  ;;  %v4194_v26 = vld [vmem:[%s4988_s30 + $0x261] sm:$0xff] }
 0x12e   : > { %v1899_v30 = vpop.permute.xlu0 %1898  ;;  %v6015_v50 = vpack.c.bf16 %v4060_v43, %v4059_v32 }
 0x12f   : > { %1981 = vst.msk [vmem:[#allocation2 + $0x140] sm:$0xff] %vm1068_vm3, %v1899_v30  ;;  %v999_v57 = vpop.permute.xlu1 %998  ;;  %v251_v30 = vld [vmem:[%s4988_s30 + $0x210] sm:$0xff] }
 0x130   : > { %1082 = vst.msk [vmem:[#allocation2 + $0x138] sm:$0xff] %vm1068_vm3, %v999_v57  ;;  %1662 = vrot.lane.b32.xlu0 %v5993_v4, %s4915_s7  ;;  %v4128_v57 = vld [vmem:[%s4988_s30 + $0x248] sm:$0xff]  ;;  %v288_v32 = vpack.c.bf16 %v251_v30, %v250_v25 }
 0x131   : > { %758 = vrot.lane.b32.xlu1 %v5477_v17, %s4915_s7  ;;  %v4125_v17 = vld [vmem:[%s4988_s30 + $0x230] sm:$0xff]  ;;  %1223 = vst.msk [vmem:[#allocation2 + $0x278] sm:$0xff] %vm294_vm0, %v1191_v39 }
 0x132   : > { %v1386_v58 = vpop.permute.xlu0 %1385  ;;  %321 = vst.msk [vmem:[#allocation2 + $0x270] sm:$0xff] %vm294_vm0, %v288_v32  ;;  %v2211_v32 = vld [vmem:[#allocation2 + $0x298] sm:$0xff] }
 0x133   : > { %1467 = vst.msk [vmem:[#allocation2 + $0x158] sm:$0xff] %vm551_vm1, %v1386_v58  ;;  %v484_v19 = vpop.permute.xlu1 %483 }
 0x134   : > { %566 = vst.msk [vmem:[#allocation2 + $0x150] sm:$0xff] %vm551_vm1, %v484_v19  ;;  %1918 = vrot.lane.b32.xlu0 %v6003_v38, %s4916_s19 }
 0x135   : > { %1018 = vrot.lane.b32.xlu1 %v5896_v45, %s4916_s19  ;;  %v6029_v45 = vpack.c.bf16 %v4126_v11, %v4125_v17  ;;  %v6081_v17 = vpack.c.bf16 %v4192_v51, %v4191_v48  ;;  %v254_v51 = vld [vmem:[%s4988_s30 + $0x230] sm:$0xff] }
 0x136   : > { %v1645_v3 = vpop.permute.xlu0 %1644  ;;  %v2168_v5 = vld [vmem:[#allocation2 + $0x140] sm:$0xff] }
 0x137   : > { %1726 = vst.msk [vmem:[#allocation2 + $0x158] sm:$0xff] %vm808_vm2, %v1645_v3  ;;  %v741_v6 = vpop.permute.xlu1 %740  ;;  %2607 = vmatprep.mubr.bf16.mxu0 %v2168_v5  ;;  %v2167_v46 = vld [vmem:[#allocation2 + $0x138] sm:$0xff]  ;;  %v4002_v3 = vld [vmem:[%s4988_s30 + $0x249] sm:$0xff] }
 0x138   : > { %823 = vst.msk [vmem:[#allocation2 + $0x150] sm:$0xff] %vm808_vm2, %v741_v6  ;;  %1405 = vrot.lane.b32.xlu0 %v6015_v50, %s4914_s6  ;;  %2608 = vmatmul.mubr.bf16.gmra.mrb[52].mxu0 %v2167_v46  ;;  %v1192_v5 = vpack.c.bf16 %v4002_v3, %v4001_v2  ;;  %v252_v6 = vld [vmem:[%s4988_s30 + $0x218] sm:$0xff]  ;;  %v253_v46 = vld [vmem:[%s4988_s30 + $0x220] sm:$0xff] }
 0x139   : > { %503 = vrot.lane.b32.xlu1 %v5870_v62, %s4914_s6  ;;  %v6047_v62 = vpack.c.bf16 %v4190_v63, %v4189_v9  ;;  %v4129_v9 = vld [vmem:[%s4988_s30 + $0x258] sm:$0xff]  ;;  %v4130_v63 = vld [vmem:[%s4988_s30 + $0x260] sm:$0xff] }
 0x13a   : > { %v1901_v20 = vpop.permute.xlu0 %1900  ;;  %1224 = vst.msk [vmem:[#allocation2 + $0x290] sm:$0xff] %vm294_vm0, %v1192_v5 }
 0x13b   : > { %1982 = vst.msk [vmem:[#allocation2 + $0x158] sm:$0xff] %vm1068_vm3, %v1901_v20  ;;  %v1001_v21 = vpop.permute.xlu1 %1000 }
 0x13c   : > { %1083 = vst.msk [vmem:[#allocation2 + $0x150] sm:$0xff] %vm1068_vm3, %v1001_v21  ;;  %1664 = vrot.lane.b32.xlu0 %v6029_v45, %s4915_s7 }
 0x13d   : > { %760 = vrot.lane.b32.xlu1 %v5928_v42, %s4915_s7  ;;  %v4127_v42 = vld [vmem:[%s4988_s30 + $0x240] sm:$0xff] }
 0x13e   : > { %v1388_v36 = vpop.permute.xlu0 %1387 }
 0x13f   : > { %1468 = vst.msk [vmem:[#allocation2 + $0x170] sm:$0xff] %vm551_vm1, %v1388_v36  ;;  %v486_v23 = vpop.permute.xlu1 %485 }
 0x140   : > { %567 = vst.msk [vmem:[#allocation2 + $0x168] sm:$0xff] %vm551_vm1, %v486_v23  ;;  %1920 = vrot.lane.b32.xlu0 %v6047_v62, %s4916_s19  ;;  %v4193_v23 = vld [vmem:[%s4988_s30 + $0x259] sm:$0xff] }
 0x141   : > { %1020 = vrot.lane.b32.xlu1 %v5949_v10, %s4916_s19  ;;  %v6071_v10 = vpack.c.bf16 %v4128_v57, %v4127_v42  ;;  %v2208_v57 = vld [vmem:[#allocation2 + $0x280] sm:$0xff] }
 0x142   : > { %v1647_v43 = vpop.permute.xlu0 %1646  ;;  %v2171_v58 = vld [vmem:[#allocation2 + $0x158] sm:$0xff]  ;;  %4732 = vmatprep.mubr.msk.bf16.mxu1 %vm294_vm0, %v2208_v57 }
 0x143   : > { %1727 = vst.msk [vmem:[#allocation2 + $0x170] sm:$0xff] %vm808_vm2, %v1647_v43  ;;  %v743_v19 = vpop.permute.xlu1 %742  ;;  %2615 = vmatprep.mubr.bf16.mxu0 %v2171_v58  ;;  %v2170_v7 = vld [vmem:[#allocation2 + $0x150] sm:$0xff]  ;;  %4733 = vmatmul.mubr.msk.bf16.gmra.mrb[52].mxu1 %vm294_vm0, %v2211_v32 }
 0x144   : > { %824 = vst.msk [vmem:[#allocation2 + $0x168] sm:$0xff] %vm808_vm2, %v743_v19  ;;  %1407 = vrot.lane.b32.xlu0 %v5621_v0, %s4914_s6  ;;  %2616 = vmatmul.mubr.bf16.gmra.mrb[56].mxu0 %v2170_v7  ;;  %v4003_v19 = vld [vmem:[%s4988_s30 + $0x259] sm:$0xff]  ;;  %v4004_v7 = vld [vmem:[%s4988_s30 + $0x261] sm:$0xff] }
 0x145   : > { %505 = vrot.lane.b32.xlu1 %v5912_v37, %s4914_s6  ;;  %v1193_v48 = vpack.c.bf16 %v4004_v7, %v4003_v19  ;;  %v4197_v7 = vld [vmem:[%s4988_s30 + $0x281] sm:$0xff] }
 0x146   : > { %v1903_v41 = vpop.permute.xlu0 %1902 }
 0x147   : > { %1983 = vst.msk [vmem:[#allocation2 + $0x170] sm:$0xff] %vm1068_vm3, %v1903_v41  ;;  %v1003_v59 = vpop.permute.xlu1 %1002  ;;  %v255_v41 = vld [vmem:[%s4988_s30 + $0x238] sm:$0xff] }
 0x148   : > { %1084 = vst.msk [vmem:[#allocation2 + $0x168] sm:$0xff] %vm1068_vm3, %v1003_v59  ;;  %1666 = vrot.lane.b32.xlu0 %v6071_v10, %s4915_s7  ;;  %v4132_v59 = vld [vmem:[%s4988_s30 + $0x270] sm:$0xff] }
 0x149   : > { %762 = vrot.lane.b32.xlu1 %v5549_v61, %s4915_s7  ;;  %v289_v61 = vpack.c.bf16 %v253_v46, %v252_v6  ;;  %1225 = vst.msk [vmem:[#allocation2 + $0x2a8] sm:$0xff] %vm294_vm0, %v1193_v48  ;;  %v4195_v6 = vld [vmem:[%s4988_s30 + $0x269] sm:$0xff]  ;;  %v4196_v46 = vld [vmem:[%s4988_s30 + $0x271] sm:$0xff] }
 0x14a   : > { %v1390_v37 = vpop.permute.xlu0 %1389  ;;  %v6105_v36 = vpop.f32.mrb[16].mxu1  ;;  %v4198_v48 = vld [vmem:[%s4988_s30 + $0x289] sm:$0xff] }
 0x14b   : > { %1469 = vst.msk [vmem:[#allocation2 + $0x188] sm:$0xff] %vm551_vm1, %v1390_v37  ;;  %v488_v11 = vpop.permute.xlu1 %487  ;;  %v6111_v55 = vpop.f32.mrb[17].mxu1  ;;  %v290_v37 = vpack.c.bf16 %v255_v41, %v254_v51 }
 0x14c   : > { %568 = vst.msk [vmem:[#allocation2 + $0x180] sm:$0xff] %vm551_vm1, %v488_v11  ;;  %1922 = vrot.lane.b32.xlu0 %v6081_v17, %s4916_s19  ;;  %v6113_v25 = vpop.f32.mrb[18].mxu1 }
 0x14d   : > { %1022 = vrot.lane.b32.xlu1 %v5993_v4, %s4916_s19  ;;  %322 = vst.msk [vmem:[#allocation2 + $0x288] sm:$0xff] %vm294_vm0, %v289_v61  ;;  %v6103_v4 = vpack.c.bf16 %v4130_v63, %v4129_v9  ;;  %v6116_v42 = vpop.f32.mrb[19].mxu1  ;;  %323 = vst.msk [vmem:[#allocation2 + $0x2a0] sm:$0xff] %vm294_vm0, %v290_v37  ;;  %v6155_v61 = vpack.c.bf16 %v4196_v46, %v4195_v6 }
 0x14e   : > { %v1649_v20 = vpop.permute.xlu0 %1648  ;;  %v2174_v21 = vld [vmem:[#allocation2 + $0x170] sm:$0xff] }
 0x14f   : > { %1728 = vst.msk [vmem:[#allocation2 + $0x188] sm:$0xff] %vm808_vm2, %v1649_v20  ;;  %v745_v31 = vpop.permute.xlu1 %744  ;;  %2623 = vmatprep.mubr.bf16.mxu0 %v2174_v21  ;;  %v2173_v15 = vld [vmem:[#allocation2 + $0x168] sm:$0xff] }
 0x150   : > { %825 = vst.msk [vmem:[#allocation2 + $0x180] sm:$0xff] %vm808_vm2, %v745_v31  ;;  %1409 = vrot.lane.b32.xlu0 %v5661_v34, %s4914_s6  ;;  %2624 = vmatmul.mubr.bf16.gmra.mrb[60].mxu0 %v2173_v15  ;;  %v4005_v21 = vld [vmem:[%s4988_s30 + $0x269] sm:$0xff]  ;;  %v4006_v31 = vld [vmem:[%s4988_s30 + $0x271] sm:$0xff] }
 0x151   : > { %507 = vrot.lane.b32.xlu1 %v5961_v40, %s4914_s6  ;;  %v6121_v40 = vpack.c.bf16 %v4194_v26, %v4193_v23  ;;  %v1194_v15 = vpack.c.bf16 %v4006_v31, %v4005_v21  ;;  %v256_v23 = vld [vmem:[%s4988_s30 + $0x240] sm:$0xff]  ;;  %v257_v26 = vld [vmem:[%s4988_s30 + $0x248] sm:$0xff]  ;;  %v258_v21 = vld [vmem:[%s4988_s30 + $0x258] sm:$0xff] }
 0x152   : > { %v1905_v39 = vpop.permute.xlu0 %1904  ;;  %v6179_v19 = vpop.f32.mrb[20].mxu1  ;;  %v259_v31 = vld [vmem:[%s4988_s30 + $0x260] sm:$0xff] }
 0x153   : > { %1984 = vst.msk [vmem:[#allocation2 + $0x188] sm:$0xff] %vm1068_vm3, %v1905_v39  ;;  %v1005_v30 = vpop.permute.xlu1 %1004  ;;  %v4133_v39 = vld [vmem:[%s4988_s30 + $0x280] sm:$0xff]  ;;  %v6185_v51 = vpop.f32.mrb[21].mxu1 }
 0x154   : > { %1085 = vst.msk [vmem:[#allocation2 + $0x180] sm:$0xff] %vm1068_vm3, %v1005_v30  ;;  %1668 = vrot.lane.b32.xlu0 %v6103_v4, %s4915_s7  ;;  %v4134_v30 = vld [vmem:[%s4988_s30 + $0x288] sm:$0xff] }
 0x155   : > { %764 = vrot.lane.b32.xlu1 %v6015_v50, %s4915_s7  ;;  %v4131_v50 = vld [vmem:[%s4988_s30 + $0x268] sm:$0xff]  ;;  %1226 = vst.msk [vmem:[#allocation2 + $0x2c0] sm:$0xff] %vm294_vm0, %v1194_v15 }
 0x156   : > { %v1392_v43 = vpop.permute.xlu0 %1391 }
 0x157   : > { %1470 = vst.msk [vmem:[#allocation2 + $0x1a0] sm:$0xff] %vm551_vm1, %v1392_v43  ;;  %v490_v58 = vpop.permute.xlu1 %489 }
 0x158   : > { %569 = vst.msk [vmem:[#allocation2 + $0x198] sm:$0xff] %vm551_vm1, %v490_v58  ;;  %1924 = vrot.lane.b32.xlu0 %v6121_v40, %s4916_s19 }
 0x159   : > { %1024 = vrot.lane.b32.xlu1 %v6029_v45, %s4916_s19  ;;  %v6145_v45 = vpack.c.bf16 %v4132_v59, %v4131_v50  ;;  %v6187_v50 = vpop.f32.mrb[22].mxu1 }
 0x15a   : > { %v1651_v11 = vpop.permute.xlu0 %1650  ;;  %v2177_v2 = vld [vmem:[#allocation2 + $0x188] sm:$0xff]  ;;  %v6190_v37 = vpop.f32.mrb[23].mxu1 }
 0x15b   : > { %1729 = vst.msk [vmem:[#allocation2 + $0x1a0] sm:$0xff] %vm808_vm2, %v1651_v11  ;;  %v747_v3 = vpop.permute.xlu1 %746  ;;  %2631 = vmatprep.mubr.bf16.mxu0 %v2177_v2  ;;  %v2176_v5 = vld [vmem:[#allocation2 + $0x180] sm:$0xff]  ;;  %v2214_v11 = vld [vmem:[#allocation2 + $0x2b0] sm:$0xff]  ;;  %v2217_v2 = vld [vmem:[#allocation2 + $0x2c8] sm:$0xff] }
 0x15c   : > { %826 = vst.msk [vmem:[#allocation2 + $0x198] sm:$0xff] %vm808_vm2, %v747_v3  ;;  %1411 = vrot.lane.b32.xlu0 %v5699_v56, %s4914_s6  ;;  %2632 = vmatmul.mubr.bf16.gmra.mrb[64].mxu0 %v2176_v5  ;;  %v6201_v3 = vld [vmem:[%s6984_s2] ss:$0 sm:$0xff] }
 0x15d   : > { %509 = vrot.lane.b32.xlu1 %v6003_v38, %s4914_s6  ;;  %4736 = vmatprep.mubr.msk.bf16.mxu1 %vm294_vm0, %v2214_v11 }
 0x15e   : > { %v1907_v9 = vpop.permute.xlu0 %1906  ;;  %4737 = vmatmul.mubr.msk.bf16.gmra.mrb[56].mxu1 %vm294_vm0, %v2217_v2  ;;  %v4268_v2 = vld [vmem:[%s4988_s30 + $0x2c2] sm:$0xff] }
 0x15f   : > { %1985 = vst.msk [vmem:[#allocation2 + $0x1a0] sm:$0xff] %vm1068_vm3, %v1907_v9  ;;  %v1007_v63 = vpop.permute.xlu1 %1006  ;;  %v4007_v9 = vld [vmem:[%s4988_s30 + $0x281] sm:$0xff] }
 0x160   : > { %1086 = vst.msk [vmem:[#allocation2 + $0x198] sm:$0xff] %vm1068_vm3, %v1007_v63  ;;  %1670 = vrot.lane.b32.xlu0 %v6145_v45, %s4915_s7  ;;  %v4008_v63 = vld [vmem:[%s4988_s30 + $0x289] sm:$0xff] }
 0x161   : > { %766 = vrot.lane.b32.xlu1 %v5621_v0, %s4915_s7  ;;  %v291_v0 = vpack.c.bf16 %v257_v26, %v256_v23  ;;  %v4135_v23 = vld [vmem:[%s4988_s30 + $0x290] sm:$0xff]  ;;  %v4136_v26 = vld [vmem:[%s4988_s30 + $0x298] sm:$0xff] }
 0x162   : > { %v1394_v38 = vpop.permute.xlu0 %1393 }
 0x163   : > { %1471 = vst.msk [vmem:[#allocation2 + $0x1b8] sm:$0xff] %vm551_vm1, %v1394_v38  ;;  %v492_v20 = vpop.permute.xlu1 %491 }
 0x164   : > { %570 = vst.msk [vmem:[#allocation2 + $0x1b0] sm:$0xff] %vm551_vm1, %v492_v20  ;;  %1926 = vrot.lane.b32.xlu0 %v6155_v61, %s4916_s19  ;;  %v1195_v20 = vpack.c.bf16 %v4008_v63, %v4007_v9  ;;  %v260_v63 = vld [vmem:[%s4988_s30 + $0x268] sm:$0xff] }
 0x165   : > { %1026 = vrot.lane.b32.xlu1 %v6071_v10, %s4916_s19  ;;  %324 = vst.msk [vmem:[#allocation2 + $0x2b8] sm:$0xff] %vm294_vm0, %v291_v0  ;;  %v6177_v10 = vpack.c.bf16 %v4134_v30, %v4133_v39  ;;  %v292_v39 = vpack.c.bf16 %v259_v31, %v258_v21  ;;  %v4138_v21 = vld [vmem:[%s4988_s30 + $0x2b0] sm:$0xff] }
 0x166   : > { %v1653_v57 = vpop.permute.xlu0 %1652  ;;  %v2180_v32 = vld [vmem:[#allocation2 + $0x1a0] sm:$0xff]  ;;  %1227 = vst.msk [vmem:[#allocation2 + $0x2d8] sm:$0xff] %vm294_vm0, %v1195_v20  ;;  %v4137_v20 = vld [vmem:[%s4988_s30 + $0x2a8] sm:$0xff] }
 0x167   : > { %1730 = vst.msk [vmem:[#allocation2 + $0x1b8] sm:$0xff] %vm808_vm2, %v1653_v57  ;;  %v749_v43 = vpop.permute.xlu1 %748  ;;  %2639 = vmatprep.mubr.bf16.mxu0 %v2180_v32  ;;  %v2179_v58 = vld [vmem:[#allocation2 + $0x198] sm:$0xff] }
 0x168   : > { %827 = vst.msk [vmem:[#allocation2 + $0x1b0] sm:$0xff] %vm808_vm2, %v749_v43  ;;  %1413 = vrot.lane.b32.xlu0 %v5739_v29, %s4914_s6  ;;  %2640 = vmatmul.mubr.bf16.gmra.mrb[68].mxu0 %v2179_v58 }
 0x169   : > { %511 = vrot.lane.b32.xlu1 %v6047_v62, %s4914_s6  ;;  %v1836_v62 = vpack.c.bf16 %v4198_v48, %v4197_v7  ;;  %325 = vst.msk [vmem:[#allocation2 + $0x2d0] sm:$0xff] %vm294_vm0, %v292_v39 }
 0x16a   : > { %v1909_v41 = vpop.permute.xlu0 %1908 }
 0x16b   : > { %1986 = vst.msk [vmem:[#allocation2 + $0x1b8] sm:$0xff] %vm1068_vm3, %v1909_v41  ;;  %v1009_v59 = vpop.permute.xlu1 %1008 }
 0x16c   : > { %1087 = vst.msk [vmem:[#allocation2 + $0x1b0] sm:$0xff] %vm1068_vm3, %v1009_v59  ;;  %1672 = vrot.lane.b32.xlu0 %v6177_v10, %s4915_s7  ;;  %v4266_v59 = vld [vmem:[%s4988_s30 + $0x2b2] sm:$0xff] }
 0x16d   : > { %768 = vrot.lane.b32.xlu1 %v5661_v34, %s4915_s7 }
 0x16e   : > { %v1396_v5 = vpop.permute.xlu0 %1395 }
 0x16f   : > { %1472 = vst.msk [vmem:[#allocation2 + $0x1d0] sm:$0xff] %vm551_vm1, %v1396_v5  ;;  %v494_v6 = vpop.permute.xlu1 %493  ;;  %v2505_v46 = vpop.f32.mrb[0].mxu0 }
 0x170   : > { %571 = vst.msk [vmem:[#allocation2 + $0x1c8] sm:$0xff] %vm551_vm1, %v494_v6  ;;  %v2506_v34 = vadd.f32 %v6201_v3, %v2505_v46  ;;  %1928 = vrot.lane.b32.xlu0 %v1836_v62, %s4916_s19  ;;  %v2507_v38 = vpop.f32.mrb[1].mxu0 }
 0x171   : > { %1028 = vrot.lane.b32.xlu1 %v6103_v4, %s4916_s19  ;;  %v2508_v15 = vpop.f32.mrb[2].mxu0 }
 0x172   : > { %v6217_v30 = vadd.f32 %v5904_v33, %v2506_v34  ;;  %v2509_v0 = vadd.f32 %v6201_v3, %v2508_v15  ;;  %v1655_v57 = vpop.permute.xlu0 %1654  ;;  %v2510_v32 = vpop.f32.mrb[3].mxu0  ;;  %v2183_v43 = vld [vmem:[#allocation2 + $0x1b8] sm:$0xff]  ;;  %v6229_v33 = vpack.c.bf16 %v4136_v26, %v4135_v23  ;;  %v261_v34 = vld [vmem:[%s4988_s30 + $0x270] sm:$0xff] }
 0x173   : > { %1731 = vst.msk [vmem:[#allocation2 + $0x1d0] sm:$0xff] %vm808_vm2, %v1655_v57  ;;  %v751_v58 = vpop.permute.xlu1 %750  ;;  %2647 = vmatprep.mubr.bf16.mxu0 %v2183_v43  ;;  %v2182_v4 = vld [vmem:[#allocation2 + $0x1b0] sm:$0xff]  ;;  %v293_v31 = vpack.c.bf16 %v261_v34, %v260_v63  ;;  %v6268_v32 = vpop.f32.mrb[24].mxu1 }
 0x174   : > { %v6224_v7 = vadd.f32 %v5915_v35, %v2509_v0  ;;  %828 = vst.msk [vmem:[#allocation2 + $0x1c8] sm:$0xff] %vm808_vm2, %v751_v58  ;;  %1415 = vrot.lane.b32.xlu0 %v5777_v54, %s4914_s6  ;;  %2648 = vmatmul.mubr.bf16.gmra.mrb[72].mxu0 %v2182_v4  ;;  %v4265_v35 = vld [vmem:[%s4988_s30 + $0x2aa] sm:$0xff]  ;;  %v6274_v4 = vpop.f32.mrb[25].mxu1 }
 0x175   : > { %513 = vrot.lane.b32.xlu1 %v6081_v17, %s4914_s6  ;;  %v2094_v62 = vpack.c.bf16 %v4266_v59, %v4265_v35  ;;  %v4267_v17 = vld [vmem:[%s4988_s30 + $0x2ba] sm:$0xff]  ;;  %326 = vst.msk [vmem:[#allocation2 + $0x2e8] sm:$0xff] %vm294_vm0, %v293_v31  ;;  %v4201_v43 = vld [vmem:[%s4988_s30 + $0x2a9] sm:$0xff]  ;;  %v4202_v58 = vld [vmem:[%s4988_s30 + $0x2b1] sm:$0xff]  ;;  %v3049_v31 = vmax.f32 %v6217_v30, 0.0 }
 0x176   : > { %v1911_v48 = vpop.permute.xlu0 %1910  ;;  %v2095_v46 = vpack.c.bf16 %v4268_v2, %v4267_v17 }
 0x177   : > { %1987 = vst.msk [vmem:[#allocation2 + $0x1d0] sm:$0xff] %vm1068_vm3, %v1911_v48  ;;  %v1011_v41 = vpop.permute.xlu1 %1010 }
 0x178   : > { %1088 = vst.msk [vmem:[#allocation2 + $0x1c8] sm:$0xff] %vm1068_vm3, %v1011_v41  ;;  %1674 = vrot.lane.b32.xlu0 %v6229_v33, %s4915_s7  ;;  %v6276_v41 = vpop.f32.mrb[26].mxu1 }
 0x179   : > { %770 = vrot.lane.b32.xlu1 %v5699_v56, %s4915_s7  ;;  %2126 = vst.msk [vmem:[#allocation2 + $0x2e0] sm:$0xff] %vm294_vm0, %v2094_v62  ;;  %2127 = vst.msk [vmem:[#allocation2 + $0x2f8] sm:$0xff] %vm294_vm0, %v2095_v46  ;;  %v6279_v59 = vpop.f32.mrb[27].mxu1  ;;  %v4139_v46 = vld [vmem:[%s4988_s30 + $0x2b8] sm:$0xff] }
 0x17a   : > { %v1398_v11 = vpop.permute.xlu0 %1397 }
 0x17b   : > { %1473 = vst.msk [vmem:[#allocation2 + $0x1e8] sm:$0xff] %vm551_vm1, %v1398_v11  ;;  %v496_v5 = vpop.permute.xlu1 %495  ;;  %v2513_v6 = vpop.f32.mrb[4].mxu0 }
 0x17c   : > { %572 = vst.msk [vmem:[#allocation2 + $0x1e0] sm:$0xff] %vm551_vm1, %v496_v5  ;;  %v2514_v9 = vadd.f32 %v6201_v3, %v2513_v6  ;;  %1930 = vrot.lane.b32.xlu0 %v5806_v60, %s4916_s19  ;;  %v2515_v56 = vpop.f32.mrb[5].mxu0 }
 0x17d   : > { %1030 = vrot.lane.b32.xlu1 %v6145_v45, %s4916_s19  ;;  %v2516_v38 = vpop.f32.mrb[6].mxu0 }
 0x17e   : > { %v6257_v15 = vadd.f32 %v5902_v1, %v2514_v9  ;;  %v2517_v23 = vadd.f32 %v6201_v3, %v2516_v38  ;;  %v1657_v60 = vpop.permute.xlu0 %1656  ;;  %v2518_v26 = vpop.f32.mrb[7].mxu0  ;;  %v2186_v39 = vld [vmem:[#allocation2 + $0x1d0] sm:$0xff]  ;;  %v1582_v1 = vpack.c.bf16 %v4138_v21, %v4137_v20 }
 0x17f   : > { %1732 = vst.msk [vmem:[#allocation2 + $0x1e8] sm:$0xff] %vm808_vm2, %v1657_v60  ;;  %v753_v0 = vpop.permute.xlu1 %752  ;;  %2655 = vmatprep.mubr.bf16.mxu0 %v2186_v39  ;;  %v2185_v45 = vld [vmem:[#allocation2 + $0x1c8] sm:$0xff]  ;;  %v4203_v60 = vld [vmem:[%s4988_s30 + $0x2b9] sm:$0xff]  ;;  %v3050_v39 = vmax.f32 %v6224_v7, 0.0 }
 0x180   : > { %v6263_v57 = vadd.f32 %v5907_v44, %v2517_v23  ;;  %829 = vst.msk [vmem:[#allocation2 + $0x1e0] sm:$0xff] %vm808_vm2, %v753_v0  ;;  %1417 = vrot.lane.b32.xlu0 %v5823_v28, %s4914_s6  ;;  %2656 = vmatmul.mubr.bf16.gmra.mrb[76].mxu0 %v2185_v45  ;;  %v2220_v35 = vld [vmem:[#allocation2 + $0x2e0] sm:$0xff]  ;;  %v1838_v28 = vpack.c.bf16 %v4202_v58, %v4201_v43 }
 0x181   : > { %515 = vrot.lane.b32.xlu1 %v6121_v40, %s4914_s6  ;;  %4740 = vmatprep.mubr.msk.bf16.mxu1 %vm294_vm0, %v2220_v35  ;;  %v2223_v40 = vld [vmem:[#allocation2 + $0x2f8] sm:$0xff]  ;;  %v4204_v26 = vld [vmem:[%s4988_s30 + $0x2c1] sm:$0xff] }
 0x182   : > { %v1913_v48 = vpop.permute.xlu0 %1912  ;;  %4741 = vmatmul.mubr.msk.bf16.gmra.mrb[60].mxu1 %vm294_vm0, %v2223_v40 }
 0x183   : > { %1988 = vst.msk [vmem:[#allocation2 + $0x1e8] sm:$0xff] %vm1068_vm3, %v1913_v48  ;;  %v1013_v44 = vpop.permute.xlu1 %1012 }
 0x184   : > { %1089 = vst.msk [vmem:[#allocation2 + $0x1e0] sm:$0xff] %vm1068_vm3, %v1013_v44  ;;  %1676 = vrot.lane.b32.xlu0 %v1582_v1, %s4915_s7 }
 0x185   : > { %772 = vrot.lane.b32.xlu1 %v5739_v29, %s4915_s7  ;;  %v4140_v29 = vld [vmem:[%s4988_s30 + $0x2c0] sm:$0xff] }
 0x186   : > { %v1400_v11 = vpop.permute.xlu0 %1399 }
 0x187   : > { %1474 = vst.msk [vmem:[#allocation2 + $0x200] sm:$0xff] %vm551_vm1, %v1400_v11  ;;  %v498_v62 = vpop.permute.xlu1 %497  ;;  %v2521_v17 = vpop.f32.mrb[8].mxu0 }
 0x188   : > { %573 = vst.msk [vmem:[#allocation2 + $0x1f8] sm:$0xff] %vm551_vm1, %v498_v62  ;;  %v2522_v2 = vadd.f32 %v6201_v3, %v2521_v17  ;;  %1932 = vrot.lane.b32.xlu0 %v1838_v28, %s4916_s19  ;;  %v2523_v5 = vpop.f32.mrb[9].mxu0 }
 0x189   : > { %1032 = vrot.lane.b32.xlu1 %v6177_v10, %s4916_s19  ;;  %v2524_v6 = vpop.f32.mrb[10].mxu0  ;;  %v3051_v5 = vmax.f32 %v6257_v15, 0.0 }
 0x18a   : > { %v2811_v9 = vadd.f32 %v5939_v12, %v2522_v2  ;;  %v2525_v56 = vadd.f32 %v6201_v3, %v2524_v6  ;;  %v1659_v63 = vpop.permute.xlu0 %1658  ;;  %v2526_v34 = vpop.f32.mrb[11].mxu0  ;;  %v2189_v38 = vld [vmem:[#allocation2 + $0x1e8] sm:$0xff]  ;;  %v1583_v12 = vpack.c.bf16 %v4140_v29, %v4139_v46  ;;  %v3052_v29 = vmax.f32 %v6263_v57, 0.0 }
 0x18b   : > { %1733 = vst.msk [vmem:[#allocation2 + $0x200] sm:$0xff] %vm808_vm2, %v1659_v63  ;;  %v755_v20 = vpop.permute.xlu1 %754  ;;  %2663 = vmatprep.mubr.bf16.mxu0 %v2189_v38  ;;  %v2188_v21 = vld [vmem:[#allocation2 + $0x1e0] sm:$0xff] }
 0x18c   : > { %v3053_v10 = vmax.f32 %v2811_v9, 0.0  ;;  %v2814_v23 = vadd.f32 %v5951_v47, %v2525_v56  ;;  %830 = vst.msk [vmem:[#allocation2 + $0x1f8] sm:$0xff] %vm808_vm2, %v755_v20  ;;  %1419 = vrot.lane.b32.xlu0 %v5864_v24, %s4914_s6  ;;  %2664 = vmatmul.mubr.bf16.gmra.mrb[80].mxu0 %v2188_v21  ;;  %v1839_v24 = vpack.c.bf16 %v4204_v26, %v4203_v60 }
 0x18d   : > { %517 = vrot.lane.b32.xlu1 %v6155_v61, %s4914_s6 }
 0x18e   : > { %v3113_v0 = vmax.f32 %v3049_v31, %v3053_v10  ;;  %v3054_v45 = vmax.f32 %v2814_v23, 0.0  ;;  %v1915_v30 = vpop.permute.xlu0 %1914 }
 0x18f   : > { %1989 = vst.msk [vmem:[#allocation2 + $0x200] sm:$0xff] %vm1068_vm3, %v1915_v30  ;;  %v1015_v47 = vpop.permute.xlu1 %1014 }
 0x190   : > { %v3114_v1 = vmax.f32 %v3050_v39, %v3054_v45  ;;  %1090 = vst.msk [vmem:[#allocation2 + $0x1f8] sm:$0xff] %vm1068_vm3, %v1015_v47  ;;  %1678 = vrot.lane.b32.xlu0 %v1583_v12, %s4915_s7 }
 0x191   : > { %774 = vrot.lane.b32.xlu1 %v5777_v54, %s4915_s7  ;;  %s3876_s7 = sshll.u32 %s4895_s12, 4 }
 0x192   : > { %v6313_v61 = vpack.c.bf16 %v3114_v1, %v3113_v0  ;;  %v1402_v43 = vpop.permute.xlu0 %1401  ;;  %p187_p6 = scmp.lt.s32.totalorder %s3876_s7, 31 }
 0x193   : > { %1475 = vst.msk [vmem:[#allocation2 + $0x218] sm:$0xff] %vm551_vm1, %v1402_v43  ;;  %v500_v7 = vpop.permute.xlu1 %499  ;;  %v2529_v58 = vpop.f32.mrb[12].mxu0 }
 0x194   : > { %574 = vst.msk [vmem:[#allocation2 + $0x210] sm:$0xff] %vm551_vm1, %v500_v7  ;;  %v2530_v48 = vadd.f32 %v6201_v3, %v2529_v58  ;;  %1934 = vrot.lane.b32.xlu0 %v1839_v24, %s4916_s19  ;;  %v2531_v44 = vpop.f32.mrb[13].mxu0  ;;  %s6999_s7 = smov (!%p187_p6, %s3876_s7), 31 }
 0x195   : > { %1034 = vrot.lane.b32.xlu1 %v6229_v33, %s4916_s19  ;;  %v2532_v35 = vpop.f32.mrb[14].mxu0  ;;  %v6327_v33 = vpop.f32.mrb[28].mxu1  ;;  %s3877_s19 = sshll.u32 %s6997_s13, 5 }
 0x196   : > { %v2819_v54 = vadd.f32 %v5937_v49, %v2530_v48  ;;  %v2533_v28 = vadd.f32 %v6201_v3, %v2532_v35  ;;  %v1661_v40 = vpop.permute.xlu0 %1660  ;;  %v2534_v11 = vpop.f32.mrb[15].mxu0  ;;  %v2192_v62 = vld [vmem:[#allocation2 + $0x200] sm:$0xff]  ;;  %s190_s4 = sadd.s32 %s3877_s19, %s6999_s7 }
 0x197   : > { %1734 = vst.msk [vmem:[#allocation2 + $0x218] sm:$0xff] %vm808_vm2, %v1661_v40  ;;  %v757_v17 = vpop.permute.xlu1 %756  ;;  %2671 = vmatprep.mubr.bf16.mxu0 %v2192_v62  ;;  %v2191_v2 = vld [vmem:[#allocation2 + $0x1f8] sm:$0xff]  ;;  %v6329_v49 = vpop.f32.mrb[29].mxu1  ;;  %s3878_s5 = sshll.u32 %s190_s4, 2 }
 0x198   : > { %v3055_v6 = vmax.f32 %v2819_v54, 0.0  ;;  %v2822_v46 = vadd.f32 %v5943_v8, %v2533_v28  ;;  %831 = vst.msk [vmem:[#allocation2 + $0x210] sm:$0xff] %vm808_vm2, %v757_v17  ;;  %2672 = vmatmul.mubr.bf16.gmra.mrb[84].mxu0 %v2191_v2  ;;  %v6332_v34 = vpop.f32.mrb[30].mxu1  ;;  %s6919_s9 = scalar_lea.vmem %s6985_s3, %s3878_s5 }
 0x199   : > { %v6335_v38 = vpop.f32.mrb[31].mxu1 }
 0x19a   : > { %v3115_v9 = vmax.f32 %v3051_v5, %v3055_v6  ;;  %v3056_v56 = vmax.f32 %v2822_v46, 0.0  ;;  %v1917_v63 = vpop.permute.xlu0 %1916  ;;  %v6366_v5 = vpop.f32.mrb[32].mxu1 }
 0x19b   : > { %1990 = vst.msk [vmem:[#allocation2 + $0x218] sm:$0xff] %vm1068_vm3, %v1917_v63  ;;  %v1017_v15 = vpop.permute.xlu1 %1016 }
 0x19c   : > { %v3116_v8 = vmax.f32 %v3052_v29, %v3056_v56  ;;  %1091 = vst.msk [vmem:[#allocation2 + $0x210] sm:$0xff] %vm1068_vm3, %v1017_v15 }
 0x19e   : > { %v6338_v20 = vpack.c.bf16 %v3116_v8, %v3115_v9  ;;  %v1404_v21 = vpop.permute.xlu0 %1403 }
 0x19f   : > { %1476 = vst.msk [vmem:[#allocation2 + $0x230] sm:$0xff] %vm551_vm1, %v1404_v21  ;;  %v502_v31 = vpop.permute.xlu1 %501  ;;  %v2537_v57 = vpop.f32.mrb[16].mxu0 }
 0x1a0   : > { %575 = vst.msk [vmem:[#allocation2 + $0x228] sm:$0xff] %vm551_vm1, %v502_v31  ;;  %v2538_v10 = vadd.f32 %v6201_v3, %v2537_v57  ;;  %v2539_v23 = vpop.f32.mrb[17].mxu0 }
 0x1a1   : > { %v2540_v12 = vpop.f32.mrb[18].mxu0 }
 0x1a2   : > { %v2541_v60 = vadd.f32 %v6201_v3, %v2540_v12  ;;  %v6345_v26 = vadd.f32 %v5969_v14, %v2538_v10  ;;  %v1663_v39 = vpop.permute.xlu0 %1662  ;;  %v2542_v0 = vpop.f32.mrb[19].mxu0  ;;  %v2195_v45 = vld [vmem:[#allocation2 + $0x218] sm:$0xff] }
 0x1a3   : > { %1735 = vst.msk [vmem:[#allocation2 + $0x230] sm:$0xff] %vm808_vm2, %v1663_v39  ;;  %v759_v30 = vpop.permute.xlu1 %758  ;;  %2679 = vmatprep.mubr.bf16.mxu0 %v2195_v45  ;;  %v2194_v47 = vld [vmem:[#allocation2 + $0x210] sm:$0xff] }
 0x1a4   : > { %v6349_v1 = vadd.f32 %v5979_v52, %v2541_v60  ;;  %832 = vst.msk [vmem:[#allocation2 + $0x228] sm:$0xff] %vm808_vm2, %v759_v30  ;;  %2680 = vmatmul.mubr.bf16.gmra.mrb[88].mxu0 %v2194_v47  ;;  %v3057_v0 = vmax.f32 %v6345_v26, 0.0 }
 0x1a6   : > { %v1919_v24 = vpop.permute.xlu0 %1918  ;;  %v3058_v47 = vmax.f32 %v6349_v1, 0.0 }
 0x1a7   : > { %1991 = vst.msk [vmem:[#allocation2 + $0x230] sm:$0xff] %vm1068_vm3, %v1919_v24  ;;  %v1019_v43 = vpop.permute.xlu1 %1018 }
 0x1a8   : > { %1092 = vst.msk [vmem:[#allocation2 + $0x228] sm:$0xff] %vm1068_vm3, %v1019_v43 }
 0x1aa   : > { %v1406_v14 = vpop.permute.xlu0 %1405 }
 0x1ab   : > { %1477 = vst.msk [vmem:[#allocation2 + $0x248] sm:$0xff] %vm551_vm1, %v1406_v14  ;;  %v504_v7 = vpop.permute.xlu1 %503  ;;  %v2545_v58 = vpop.f32.mrb[20].mxu0 }
 0x1ac   : > { %576 = vst.msk [vmem:[#allocation2 + $0x240] sm:$0xff] %vm551_vm1, %v504_v7  ;;  %v2546_v48 = vadd.f32 %v6201_v3, %v2545_v58  ;;  %v2547_v52 = vpop.f32.mrb[21].mxu0 }
 0x1ad   : > { %v2548_v44 = vpop.f32.mrb[22].mxu0 }
 0x1ae   : > { %v6358_v35 = vadd.f32 %v5966_v13, %v2546_v48  ;;  %v2549_v54 = vadd.f32 %v6201_v3, %v2548_v44  ;;  %v1665_v28 = vpop.permute.xlu0 %1664  ;;  %v2550_v40 = vpop.f32.mrb[23].mxu0  ;;  %v2198_v11 = vld [vmem:[#allocation2 + $0x230] sm:$0xff] }
 0x1af   : > { %1736 = vst.msk [vmem:[#allocation2 + $0x248] sm:$0xff] %vm808_vm2, %v1665_v28  ;;  %v761_v62 = vpop.permute.xlu1 %760  ;;  %2687 = vmatprep.mubr.bf16.mxu0 %v2198_v11  ;;  %v2197_v17 = vld [vmem:[#allocation2 + $0x228] sm:$0xff]  ;;  %v6368_v13 = vpop.f32.mrb[33].mxu1 }
 0x1b0   : > { %v6363_v2 = vadd.f32 %v5972_v16, %v2549_v54  ;;  %833 = vst.msk [vmem:[#allocation2 + $0x240] sm:$0xff] %vm808_vm2, %v761_v62  ;;  %2688 = vmatmul.mubr.bf16.gmra.mrb[92].mxu0 %v2197_v17  ;;  %v6370_v46 = vpop.f32.mrb[34].mxu1 }
 0x1b1   : > { %v6373_v9 = vpop.f32.mrb[35].mxu1 }
 0x1b2   : > { %v1921_v6 = vpop.permute.xlu0 %1920 }
 0x1b3   : > { %1992 = vst.msk [vmem:[#allocation2 + $0x248] sm:$0xff] %vm1068_vm3, %v1921_v6  ;;  %v1021_v29 = vpop.permute.xlu1 %1020 }
 0x1b4   : > { %1093 = vst.msk [vmem:[#allocation2 + $0x240] sm:$0xff] %vm1068_vm3, %v1021_v29  ;;  %v3059_v29 = vmax.f32 %v6358_v35, 0.0 }
 0x1b6   : > { %v1408_v56 = vpop.permute.xlu0 %1407 }
 0x1b7   : > { %1478 = vst.msk [vmem:[#allocation2 + $0x260] sm:$0xff] %vm551_vm1, %v1408_v56  ;;  %v506_v16 = vpop.permute.xlu1 %505  ;;  %v2553_v63 = vpop.f32.mrb[24].mxu0 }
 0x1b8   : > { %577 = vst.msk [vmem:[#allocation2 + $0x258] sm:$0xff] %vm551_vm1, %v506_v16  ;;  %v2554_v15 = vadd.f32 %v6201_v3, %v2553_v63  ;;  %v2555_v8 = vpop.f32.mrb[25].mxu0  ;;  %v6399_v63 = vpop.f32.mrb[36].mxu1 }
 0x1b9   : > { %v2556_v21 = vpop.f32.mrb[26].mxu0 }
 0x1ba   : > { %v2557_v31 = vadd.f32 %v6201_v3, %v2556_v21  ;;  %v2843_v57 = vadd.f32 %v6037_v53, %v2554_v15  ;;  %v1667_v10 = vpop.permute.xlu0 %1666  ;;  %v2558_v23 = vpop.f32.mrb[27].mxu0  ;;  %v2201_v12 = vld [vmem:[#allocation2 + $0x248] sm:$0xff]  ;;  %v3060_v15 = vmax.f32 %v6363_v2, 0.0 }
 0x1bb   : > { %1737 = vst.msk [vmem:[#allocation2 + $0x260] sm:$0xff] %vm808_vm2, %v1667_v10  ;;  %v763_v60 = vpop.permute.xlu1 %762  ;;  %2695 = vmatprep.mubr.bf16.mxu0 %v2201_v12  ;;  %v2200_v39 = vld [vmem:[#allocation2 + $0x240] sm:$0xff] }
 0x1bc   : > { %v3061_v45 = vmax.f32 %v2843_v57, 0.0  ;;  %v2846_v30 = vadd.f32 %v6042_v27, %v2557_v31  ;;  %834 = vst.msk [vmem:[#allocation2 + $0x258] sm:$0xff] %vm808_vm2, %v763_v60  ;;  %2696 = vmatmul.mubr.bf16.gmra.mrb[96].mxu0 %v2200_v39 }
 0x1be   : > { %v3117_v24 = vmax.f32 %v3057_v0, %v3061_v45  ;;  %v3062_v53 = vmax.f32 %v2846_v30, 0.0  ;;  %v1923_v43 = vpop.permute.xlu0 %1922 }
 0x1bf   : > { %1993 = vst.msk [vmem:[#allocation2 + $0x260] sm:$0xff] %vm1068_vm3, %v1923_v43  ;;  %v1023_v14 = vpop.permute.xlu1 %1022 }
 0x1c0   : > { %v3118_v7 = vmax.f32 %v3058_v47, %v3062_v53  ;;  %1094 = vst.msk [vmem:[#allocation2 + $0x258] sm:$0xff] %vm1068_vm3, %v1023_v14 }
 0x1c2   : > { %v6388_v58 = vpack.c.bf16 %v3118_v7, %v3117_v24  ;;  %v1410_v26 = vpop.permute.xlu0 %1409 }
 0x1c3   : > { %1479 = vst.msk [vmem:[#allocation2 + $0x278] sm:$0xff] %vm551_vm1, %v1410_v26  ;;  %v508_v27 = vpop.permute.xlu1 %507  ;;  %v2561_v48 = vpop.f32.mrb[28].mxu0 }
 0x1c4   : > { %578 = vst.msk [vmem:[#allocation2 + $0x270] sm:$0xff] %vm551_vm1, %v508_v27  ;;  %v2562_v1 = vadd.f32 %v6201_v3, %v2561_v48  ;;  %v2563_v52 = vpop.f32.mrb[29].mxu0 }
 0x1c5   : > { %v2564_v44 = vpop.f32.mrb[30].mxu0 }
 0x1c6   : > { %v2851_v54 = vadd.f32 %v6031_v18, %v2562_v1  ;;  %v2565_v28 = vadd.f32 %v6201_v3, %v2564_v44  ;;  %v1669_v40 = vpop.permute.xlu0 %1668  ;;  %v2566_v11 = vpop.f32.mrb[31].mxu0  ;;  %v2204_v62 = vld [vmem:[#allocation2 + $0x260] sm:$0xff] }
 0x1c7   : > { %1738 = vst.msk [vmem:[#allocation2 + $0x278] sm:$0xff] %vm808_vm2, %v1669_v40  ;;  %v765_v17 = vpop.permute.xlu1 %764  ;;  %2703 = vmatprep.mubr.bf16.mxu0 %v2204_v62  ;;  %v2203_v6 = vld [vmem:[#allocation2 + $0x258] sm:$0xff]  ;;  %v6401_v18 = vpop.f32.mrb[37].mxu1 }
 0x1c8   : > { %v3063_v56 = vmax.f32 %v2851_v54, 0.0  ;;  %v2854_v16 = vadd.f32 %v6039_v22, %v2565_v28  ;;  %835 = vst.msk [vmem:[#allocation2 + $0x270] sm:$0xff] %vm808_vm2, %v765_v17  ;;  %2704 = vmatmul.mubr.bf16.gmra.mrb[100].mxu0 %v2203_v6  ;;  %v6404_v57 = vpop.f32.mrb[38].mxu1 }
 0x1c9   : > { %v6407_v10 = vpop.f32.mrb[39].mxu1 }
 0x1ca   : > { %v3119_v8 = vmax.f32 %v3059_v29, %v3063_v56  ;;  %v3064_v21 = vmax.f32 %v2854_v16, 0.0  ;;  %v1925_v31 = vpop.permute.xlu0 %1924 }
 0x1cb   : > { %1994 = vst.msk [vmem:[#allocation2 + $0x278] sm:$0xff] %vm1068_vm3, %v1925_v31  ;;  %v1025_v35 = vpop.permute.xlu1 %1024 }
 0x1cc   : > { %v3120_v22 = vmax.f32 %v3060_v15, %v3064_v21  ;;  %1095 = vst.msk [vmem:[#allocation2 + $0x270] sm:$0xff] %vm1068_vm3, %v1025_v35 }
 0x1ce   : > { %v6410_v23 = vpack.c.bf16 %v3120_v22, %v3119_v8  ;;  %v1412_v12 = vpop.permute.xlu0 %1411 }
 0x1cf   : > { %1480 = vst.msk [vmem:[#allocation2 + $0x290] sm:$0xff] %vm551_vm1, %v1412_v12  ;;  %v510_v60 = vpop.permute.xlu1 %509  ;;  %v2569_v2 = vpop.f32.mrb[32].mxu0 }
 0x1d0   : > { %579 = vst.msk [vmem:[#allocation2 + $0x288] sm:$0xff] %vm551_vm1, %v510_v60  ;;  %v2570_v39 = vadd.f32 %v6201_v3, %v2569_v2  ;;  %v2571_v0 = vpop.f32.mrb[33].mxu0 }
 0x1d1   : > { %v2572_v45 = vpop.f32.mrb[34].mxu0 }
 0x1d2   : > { %v2573_v30 = vadd.f32 %v6201_v3, %v2572_v45  ;;  %v6417_v47 = vadd.f32 %v6111_v55, %v2570_v39  ;;  %v1671_v24 = vpop.permute.xlu0 %1670  ;;  %v2574_v53 = vpop.f32.mrb[35].mxu0  ;;  %v2207_v43 = vld [vmem:[#allocation2 + $0x278] sm:$0xff] }
 0x1d3   : > { %1739 = vst.msk [vmem:[#allocation2 + $0x290] sm:$0xff] %vm808_vm2, %v1671_v24  ;;  %v767_v14 = vpop.permute.xlu1 %766  ;;  %2711 = vmatprep.mubr.bf16.mxu0 %v2207_v43  ;;  %v2206_v7 = vld [vmem:[#allocation2 + $0x270] sm:$0xff] }
 0x1d4   : > { %v6421_v26 = vadd.f32 %v6116_v42, %v2573_v30  ;;  %836 = vst.msk [vmem:[#allocation2 + $0x288] sm:$0xff] %vm808_vm2, %v767_v14  ;;  %2712 = vmatmul.mubr.bf16.gmra.mrb[104].mxu0 %v2206_v7  ;;  %v3065_v14 = vmax.f32 %v6417_v47, 0.0 }
 0x1d6   : > { %v1927_v27 = vpop.permute.xlu0 %1926 }
 0x1d7   : > { %1995 = vst.msk [vmem:[#allocation2 + $0x290] sm:$0xff] %vm1068_vm3, %v1927_v27  ;;  %v1027_v48 = vpop.permute.xlu1 %1026 }
 0x1d8   : > { %1096 = vst.msk [vmem:[#allocation2 + $0x288] sm:$0xff] %vm1068_vm3, %v1027_v48  ;;  %v3066_v48 = vmax.f32 %v6421_v26, 0.0 }
 0x1da   : > { %v1414_v55 = vpop.permute.xlu0 %1413 }
 0x1db   : > { %1481 = vst.msk [vmem:[#allocation2 + $0x2a8] sm:$0xff] %vm551_vm1, %v1414_v55  ;;  %v512_v1 = vpop.permute.xlu1 %511  ;;  %v2577_v52 = vpop.f32.mrb[36].mxu0 }
 0x1dc   : > { %580 = vst.msk [vmem:[#allocation2 + $0x2a0] sm:$0xff] %vm551_vm1, %v512_v1  ;;  %v2578_v44 = vadd.f32 %v6201_v3, %v2577_v52  ;;  %v2579_v42 = vpop.f32.mrb[37].mxu0 }
 0x1dd   : > { %v2580_v54 = vpop.f32.mrb[38].mxu0 }
 0x1de   : > { %v6430_v28 = vadd.f32 %v6105_v36, %v2578_v44  ;;  %v2581_v40 = vadd.f32 %v6201_v3, %v2580_v54  ;;  %v1673_v11 = vpop.permute.xlu0 %1672  ;;  %v2582_v62 = vpop.f32.mrb[39].mxu0  ;;  %v2210_v17 = vld [vmem:[#allocation2 + $0x290] sm:$0xff] }
 0x1df   : > { %1740 = vst.msk [vmem:[#allocation2 + $0x2a8] sm:$0xff] %vm808_vm2, %v1673_v11  ;;  %v769_v6 = vpop.permute.xlu1 %768  ;;  %2719 = vmatprep.mubr.bf16.mxu0 %v2210_v17  ;;  %v2209_v29 = vld [vmem:[#allocation2 + $0x288] sm:$0xff]  ;;  %v6438_v16 = vpop.f32.mrb[40].mxu1 }
 0x1e0   : > { %v6435_v56 = vadd.f32 %v6113_v25, %v2581_v40  ;;  %837 = vst.msk [vmem:[#allocation2 + $0x2a0] sm:$0xff] %vm808_vm2, %v769_v6  ;;  %2720 = vmatmul.mubr.bf16.gmra.mrb[108].mxu0 %v2209_v29  ;;  %v6440_v15 = vpop.f32.mrb[41].mxu1 }
 0x1e1   : > { %v6443_v21 = vpop.f32.mrb[42].mxu1 }
 0x1e2   : > { %v1929_v36 = vpop.permute.xlu0 %1928  ;;  %v6446_v31 = vpop.f32.mrb[43].mxu1 }
 0x1e3   : > { %1996 = vst.msk [vmem:[#allocation2 + $0x2a8] sm:$0xff] %vm1068_vm3, %v1929_v36  ;;  %v1029_v8 = vpop.permute.xlu1 %1028 }
 0x1e4   : > { %1097 = vst.msk [vmem:[#allocation2 + $0x2a0] sm:$0xff] %vm1068_vm3, %v1029_v8 }
 0x1e6   : > { %v1416_v35 = vpop.permute.xlu0 %1415 }
 0x1e7   : > { %1482 = vst.msk [vmem:[#allocation2 + $0x2c0] sm:$0xff] %vm551_vm1, %v1416_v35  ;;  %v514_v25 = vpop.permute.xlu1 %513  ;;  %v2585_v22 = vpop.f32.mrb[40].mxu0 }
 0x1e8   : > { %581 = vst.msk [vmem:[#allocation2 + $0x2b8] sm:$0xff] %vm551_vm1, %v514_v25  ;;  %v2586_v12 = vadd.f32 %v6201_v3, %v2585_v22  ;;  %v2587_v60 = vpop.f32.mrb[41].mxu0  ;;  %v3067_v25 = vmax.f32 %v6430_v28, 0.0 }
 0x1e9   : > { %v2588_v2 = vpop.f32.mrb[42].mxu0 }
 0x1ea   : > { %v2589_v39 = vadd.f32 %v6201_v3, %v2588_v2  ;;  %v2875_v0 = vadd.f32 %v6185_v51, %v2586_v12  ;;  %v1675_v45 = vpop.permute.xlu0 %1674  ;;  %v2590_v30 = vpop.f32.mrb[43].mxu0  ;;  %v2213_v24 = vld [vmem:[#allocation2 + $0x2a8] sm:$0xff]  ;;  %v3068_v2 = vmax.f32 %v6435_v56, 0.0 }
 0x1eb   : > { %1741 = vst.msk [vmem:[#allocation2 + $0x2c0] sm:$0xff] %vm808_vm2, %v1675_v45  ;;  %v771_v53 = vpop.permute.xlu1 %770  ;;  %2727 = vmatprep.mubr.bf16.mxu0 %v2213_v24  ;;  %v2212_v43 = vld [vmem:[#allocation2 + $0x2a0] sm:$0xff] }
 0x1ec   : > { %v3069_v7 = vmax.f32 %v2875_v0, 0.0  ;;  %v2878_v27 = vadd.f32 %v6190_v37, %v2589_v39  ;;  %838 = vst.msk [vmem:[#allocation2 + $0x2b8] sm:$0xff] %vm808_vm2, %v771_v53  ;;  %2728 = vmatmul.mubr.bf16.gmra.mrb[112].mxu0 %v2212_v43 }
 0x1ee   : > { %v3121_v55 = vmax.f32 %v3065_v14, %v3069_v7  ;;  %v3070_v51 = vmax.f32 %v2878_v27, 0.0  ;;  %v1931_v1 = vpop.permute.xlu0 %1930 }
 0x1ef   : > { %1997 = vst.msk [vmem:[#allocation2 + $0x2c0] sm:$0xff] %vm1068_vm3, %v1931_v1  ;;  %v1031_v52 = vpop.permute.xlu1 %1030 }
 0x1f0   : > { %v3122_v44 = vmax.f32 %v3066_v48, %v3070_v51  ;;  %1098 = vst.msk [vmem:[#allocation2 + $0x2b8] sm:$0xff] %vm1068_vm3, %v1031_v52 }
 0x1f2   : > { %v6460_v42 = vpack.c.bf16 %v3122_v44, %v3121_v55  ;;  %v1418_v47 = vpop.permute.xlu0 %1417 }
 0x1f3   : > { %1483 = vst.msk [vmem:[#allocation2 + $0x2d8] sm:$0xff] %vm551_vm1, %v1418_v47  ;;  %v516_v37 = vpop.permute.xlu1 %515  ;;  %v2593_v54 = vpop.f32.mrb[44].mxu0 }
 0x1f4   : > { %582 = vst.msk [vmem:[#allocation2 + $0x2d0] sm:$0xff] %vm551_vm1, %v516_v37  ;;  %v2594_v26 = vadd.f32 %v6201_v3, %v2593_v54  ;;  %v2595_v40 = vpop.f32.mrb[45].mxu0 }
 0x1f5   : > { %v2596_v11 = vpop.f32.mrb[46].mxu0  ;;  %v6471_v60 = vpop.f32.mrb[44].mxu1 }
 0x1f6   : > { %v2883_v62 = vadd.f32 %v6179_v19, %v2594_v26  ;;  %v2597_v17 = vadd.f32 %v6201_v3, %v2596_v11  ;;  %v1677_v6 = vpop.permute.xlu0 %1676  ;;  %v2598_v29 = vpop.f32.mrb[47].mxu0  ;;  %v2216_v36 = vld [vmem:[#allocation2 + $0x2c0] sm:$0xff] }
 0x1f7   : > { %1742 = vst.msk [vmem:[#allocation2 + $0x2d8] sm:$0xff] %vm808_vm2, %v1677_v6  ;;  %v773_v8 = vpop.permute.xlu1 %772  ;;  %2735 = vmatprep.mubr.bf16.mxu0 %v2216_v36  ;;  %v2215_v35 = vld [vmem:[#allocation2 + $0x2b8] sm:$0xff]  ;;  %v6473_v19 = vpop.f32.mrb[45].mxu1 }
 0x1f8   : > { %v3071_v22 = vmax.f32 %v2883_v62, 0.0  ;;  %v2886_v12 = vadd.f32 %v6187_v50, %v2597_v17  ;;  %839 = vst.msk [vmem:[#allocation2 + $0x2d0] sm:$0xff] %vm808_vm2, %v773_v8  ;;  %2736 = vmatmul.mubr.bf16.gmra.mrb[116].mxu0 %v2215_v35  ;;  %v6476_v30 = vpop.f32.mrb[46].mxu1 }
 0x1f9   : > { %v6479_v24 = vpop.f32.mrb[47].mxu1 }
 0x1fa   : > { %v3123_v39 = vmax.f32 %v3067_v25, %v3071_v22  ;;  %v3072_v0 = vmax.f32 %v2886_v12, 0.0  ;;  %v1933_v45 = vpop.permute.xlu0 %1932 }
 0x1fb   : > { %1998 = vst.msk [vmem:[#allocation2 + $0x2d8] sm:$0xff] %vm1068_vm3, %v1933_v45  ;;  %v1033_v28 = vpop.permute.xlu1 %1032 }
 0x1fc   : > { %v3124_v50 = vmax.f32 %v3068_v2, %v3072_v0  ;;  %1099 = vst.msk [vmem:[#allocation2 + $0x2d0] sm:$0xff] %vm1068_vm3, %v1033_v28 }
 0x1fe   : > { %v6482_v53 = vpack.c.bf16 %v3124_v50, %v3123_v39  ;;  %v1420_v43 = vpop.permute.xlu0 %1419  ;;  %v6498_v25 = vpop.f32.mrb[48].mxu1 }
 0x1ff   : > { %1484 = vst.msk [vmem:[#allocation2 + $0x2f0] sm:$0xff] %vm551_vm1, %v1420_v43  ;;  %v518_v14 = vpop.permute.xlu1 %517  ;;  %v2601_v56 = vpop.f32.mrb[48].mxu0 }
 0x200   : > { %583 = vst.msk [vmem:[#allocation2 + $0x2e8] sm:$0xff] %vm551_vm1, %v518_v14  ;;  %v2602_v7 = vadd.f32 %v6201_v3, %v2601_v56  ;;  %v2603_v27 = vpop.f32.mrb[49].mxu0  ;;  %v6500_v22 = vpop.f32.mrb[49].mxu1 }
 0x201   : > { %v2604_v48 = vpop.f32.mrb[50].mxu0  ;;  %v6502_v12 = vpop.f32.mrb[50].mxu1 }
 0x202   : > { %v2605_v55 = vadd.f32 %v6201_v3, %v2604_v48  ;;  %v2891_v51 = vadd.f32 %v6274_v4, %v2602_v7  ;;  %v1679_v1 = vpop.permute.xlu0 %1678  ;;  %v2606_v52 = vpop.f32.mrb[51].mxu0  ;;  %v2219_v44 = vld [vmem:[#allocation2 + $0x2d8] sm:$0xff] }
 0x203   : > { %1743 = vst.msk [vmem:[#allocation2 + $0x2f0] sm:$0xff] %vm808_vm2, %v1679_v1  ;;  %v775_v47 = vpop.permute.xlu1 %774  ;;  %2743 = vmatprep.mubr.bf16.mxu0 %v2219_v44  ;;  %v2218_v37 = vld [vmem:[#allocation2 + $0x2d0] sm:$0xff]  ;;  %v6504_v2 = vpop.f32.mrb[51].mxu1 }
 0x204   : > { %v2894_v54 = vadd.f32 %v6279_v59, %v2605_v55  ;;  %840 = vst.msk [vmem:[#allocation2 + $0x2e8] sm:$0xff] %vm808_vm2, %v775_v47  ;;  %2744 = vmatmul.mubr.bf16.gmra.mrb[120].mxu0 %v2218_v37 }
 0x206   : > { %v1935_v26 = vpop.permute.xlu0 %1934  ;;  %v3074_v7 = vmax.f32 %v2894_v54, 0.0 }
 0x207   : > { %1999 = vst.msk [vmem:[#allocation2 + $0x2f0] sm:$0xff] %vm1068_vm3, %v1935_v26  ;;  %v1035_v40 = vpop.permute.xlu1 %1034 }
 0x208   : > { %1100 = vst.msk [vmem:[#allocation2 + $0x2e8] sm:$0xff] %vm1068_vm3, %v1035_v40 }
 0x20b   : > { %v2609_v4 = vpop.f32.mrb[52].mxu0 }
 0x20c   : > { %v2610_v11 = vadd.f32 %v6201_v3, %v2609_v4  ;;  %v2611_v62 = vpop.f32.mrb[53].mxu0 }
 0x20d   : > { %v2612_v17 = vpop.f32.mrb[54].mxu0 }
 0x20e   : > { %v2899_v6 = vadd.f32 %v6268_v32, %v2610_v11  ;;  %v2613_v29 = vadd.f32 %v6201_v3, %v2612_v17  ;;  %v2614_v36 = vpop.f32.mrb[55].mxu0  ;;  %v2222_v59 = vld [vmem:[#allocation2 + $0x2f0] sm:$0xff] }
 0x20f   : > { %2751 = vmatprep.mubr.bf16.mxu0 %v2222_v59  ;;  %v2221_v8 = vld [vmem:[#allocation2 + $0x2e8] sm:$0xff] }
 0x210   : > { %v2902_v35 = vadd.f32 %v6276_v41, %v2613_v29  ;;  %2752 = vmatmul.mubr.bf16.gmra.mrb[124].mxu0 %v2221_v8  ;;  %v3073_v41 = vmax.f32 %v2891_v51, 0.0  ;;  %v3075_v51 = vmax.f32 %v2899_v6, 0.0 }
 0x212   : > { %v3076_v62 = vmax.f32 %v2902_v35, 0.0 }
 0x216   : > { %v6516_v54 = vpop.f32.mrb[52].mxu1 }
 0x217   : > { %v2617_v39 = vpop.f32.mrb[56].mxu0  ;;  %v6518_v11 = vpop.f32.mrb[53].mxu1 }
 0x218   : > { %v2618_v32 = vadd.f32 %v6201_v3, %v2617_v39  ;;  %v2619_v0 = vpop.f32.mrb[57].mxu0  ;;  %v6520_v36 = vpop.f32.mrb[54].mxu1 }
 0x219   : > { %v2620_v45 = vpop.f32.mrb[58].mxu0  ;;  %v6522_v59 = vpop.f32.mrb[55].mxu1 }
 0x21a   : > { %v2621_v28 = vadd.f32 %v6201_v3, %v2620_v45  ;;  %v2907_v50 = vadd.f32 %v6329_v49, %v2618_v32  ;;  %v2622_v43 = vpop.f32.mrb[59].mxu0 }
 0x21c   : > { %v3077_v14 = vmax.f32 %v2907_v50, 0.0  ;;  %v2910_v56 = vadd.f32 %v6335_v38, %v2621_v28 }
 0x21e   : > { %v3125_v27 = vmax.f32 %v3073_v41, %v3077_v14  ;;  %v3078_v48 = vmax.f32 %v2910_v56, 0.0 }
 0x220   : > { %v3126_v55 = vmax.f32 %v3074_v7, %v3078_v48 }
 0x222   : > { %v6510_v1 = vpack.c.bf16 %v3126_v55, %v3125_v27 }
 0x223   : > { %v2625_v52 = vpop.f32.mrb[60].mxu0 }
 0x224   : > { %v2626_v44 = vadd.f32 %v6201_v3, %v2625_v52  ;;  %v2627_v47 = vpop.f32.mrb[61].mxu0 }
 0x225   : > { %v2628_v37 = vpop.f32.mrb[62].mxu0 }
 0x226   : > { %v2915_v26 = vadd.f32 %v6327_v33, %v2626_v44  ;;  %v2629_v49 = vadd.f32 %v6201_v3, %v2628_v37  ;;  %v2630_v40 = vpop.f32.mrb[63].mxu0 }
 0x228   : > { %v3079_v4 = vmax.f32 %v2915_v26, 0.0  ;;  %v2918_v38 = vadd.f32 %v6332_v34, %v2629_v49 }
 0x22a   : > { %v3127_v17 = vmax.f32 %v3075_v51, %v3079_v4  ;;  %v3080_v29 = vmax.f32 %v2918_v38, 0.0 }
 0x22c   : > { %v3128_v8 = vmax.f32 %v3076_v62, %v3080_v29 }
 0x22e   : > { %v6524_v33 = vpack.c.bf16 %v3128_v8, %v3127_v17 }
 0x22f   : > { %v2633_v39 = vpop.f32.mrb[64].mxu0 }
 0x230   : > { %v2634_v6 = vadd.f32 %v6201_v3, %v2633_v39  ;;  %v2635_v32 = vpop.f32.mrb[65].mxu0 }
 0x231   : > { %v2636_v0 = vpop.f32.mrb[66].mxu0  ;;  %v6534_v55 = vpop.f32.mrb[56].mxu1 }
 0x232   : > { %v2637_v34 = vadd.f32 %v6201_v3, %v2636_v0  ;;  %v2923_v45 = vadd.f32 %v6368_v13, %v2634_v6  ;;  %v2638_v28 = vpop.f32.mrb[67].mxu0  ;;  %v6536_v52 = vpop.f32.mrb[57].mxu1 }
 0x233   : > { %v6538_v13 = vpop.f32.mrb[58].mxu1 }
 0x234   : > { %v2926_v35 = vadd.f32 %v6373_v9, %v2637_v34  ;;  %v6540_v44 = vpop.f32.mrb[59].mxu1  ;;  %v3081_v51 = vmax.f32 %v2923_v45, 0.0 }
 0x236   : > { %v3082_v62 = vmax.f32 %v2926_v35, 0.0 }
 0x23b   : > { %v2641_v50 = vpop.f32.mrb[68].mxu0 }
 0x23c   : > { %v2642_v43 = vadd.f32 %v6201_v3, %v2641_v50  ;;  %v2643_v41 = vpop.f32.mrb[69].mxu0 }
 0x23d   : > { %v2644_v14 = vpop.f32.mrb[70].mxu0 }
 0x23e   : > { %v2931_v56 = vadd.f32 %v6366_v5, %v2642_v43  ;;  %v2645_v7 = vadd.f32 %v6201_v3, %v2644_v14  ;;  %v2646_v27 = vpop.f32.mrb[71].mxu0  ;;  %v6546_v5 = vld [vmem:[%s6984_s2] ss:$0 sm:$0xff] }
 0x240   : > { %v2934_v48 = vadd.f32 %v6370_v46, %v2645_v7  ;;  %v3083_v45 = vmax.f32 %v2931_v56, 0.0 }
 0x242   : > { %v3084_v41 = vmax.f32 %v2934_v48, 0.0 }
 0x247   : > { %v2649_v9 = vpop.f32.mrb[72].mxu0 }
 0x248   : > { %v2650_v47 = vadd.f32 %v6201_v3, %v2649_v9  ;;  %v2651_v37 = vpop.f32.mrb[73].mxu0 }
 0x249   : > { %v2652_v26 = vpop.f32.mrb[74].mxu0 }
 0x24a   : > { %v2653_v46 = vadd.f32 %v6546_v5, %v2652_v26  ;;  %v2939_v49 = vadd.f32 %v6401_v18, %v2650_v47  ;;  %v2654_v40 = vpop.f32.mrb[75].mxu0 }
 0x24c   : > { %v3085_v4 = vmax.f32 %v2939_v49, 0.0  ;;  %v2942_v38 = vadd.f32 %v6407_v10, %v2653_v46 }
 0x24e   : > { %v3129_v17 = vmax.f32 %v3081_v51, %v3085_v4  ;;  %v3086_v29 = vmax.f32 %v2942_v38, 0.0 }
 0x250   : > { %v3130_v3 = vmax.f32 %v3082_v62, %v3086_v29  ;;  %v3145_v62 = vlaneseq }
 0x252   : > { %v6551_v8 = vpack.c.bf16 %v3130_v3, %v3129_v17 }
 0x253   : > { %v2657_v39 = vpop.f32.mrb[76].mxu0 }
 0x254   : > { %v2658_v6 = vadd.f32 %v6546_v5, %v2657_v39  ;;  %v2659_v32 = vpop.f32.mrb[77].mxu0  ;;  %4745 = vmatprep.subr.bf16.mxu1 %v6551_v8 }
 0x255   : > { %v2660_v0 = vpop.f32.mrb[78].mxu0  ;;  %4747 = vmatpush3.bf16.msra.mxu1 %v6313_v61  ;;  %v6559_v50 = vpop.f32.mrb[60].mxu1  ;;  %v6580_v32 = vand.u32 127, %v3145_v62 }
 0x256   : > { %v2947_v18 = vadd.f32 %v6399_v63, %v2658_v6  ;;  %v2661_v34 = vadd.f32 %v6546_v5, %v2660_v0  ;;  %v2662_v10 = vpop.f32.mrb[79].mxu0  ;;  %v6561_v43 = vpop.f32.mrb[61].mxu1  ;;  %v6578_v6 = vshrl.u32 %v3145_v62, 7 }
 0x257   : > { %v6563_v27 = vpop.f32.mrb[62].mxu1  ;;  %v6584_v0 = vadd.s32 128, %v6580_v32 }
 0x258   : > { %v3087_v28 = vmax.f32 %v2947_v18, 0.0  ;;  %v2950_v35 = vadd.f32 %v6404_v57, %v2661_v34  ;;  %v6565_v9 = vpop.f32.mrb[63].mxu1  ;;  %v4917_v18 = vmov 1.0  }
 0x25a   : > { %v3131_v14 = vmax.f32 %v3083_v45, %v3087_v28  ;;  %v3088_v7 = vmax.f32 %v2950_v35, 0.0 }
 0x25c   : > { %v3132_v47 = vmax.f32 %v3084_v41, %v3088_v7 }
 0x25e   : > { %v6567_v63 = vpack.c.bf16 %v3132_v47, %v3131_v14 }
 0x25f   : > { %v2665_v37 = vpop.f32.mrb[80].mxu0 }
 0x260   : > { %v2666_v56 = vadd.f32 %v6546_v5, %v2665_v37  ;;  %v2667_v26 = vpop.f32.mrb[81].mxu0  ;;  %4749 = vmatprep.subr.bf16.mxu1 %v6567_v63 }
 0x261   : > { %v2668_v57 = vpop.f32.mrb[82].mxu0  ;;  %4751 = vmatpush3.bf16.msra.mxu1 %v6338_v20 }
 0x262   : > { %v2669_v48 = vadd.f32 %v6546_v5, %v2668_v57  ;;  %v2955_v46 = vadd.f32 %v6440_v15, %v2666_v56  ;;  %v2670_v49 = vpop.f32.mrb[83].mxu0 }
 0x264   : > { %v2958_v40 = vadd.f32 %v6446_v31, %v2669_v48  ;;  %v6587_v31 = vmul.u32 2, %v6578_v6  ;;  %v3089_v41 = vmax.f32 %v2955_v46, 0.0 }
 0x266   : > { %vm3182_vm4 = vcmp.eq.s32.totalorder %v6584_v0, %v6587_v31  ;;  %v3090_v47 = vmax.f32 %v2958_v40, 0.0  ;;  %vm3181_vm5 = vcmp.eq.s32.totalorder %v6580_v32, %v6587_v31 }
 0x267   : > { %4384 = vmatprep.mubr.msk.f32.mxu1 %vm3182_vm4, %v4917_v18 }
 0x26b   : > { %v2673_v51 = vpop.f32.mrb[84].mxu0 }
 0x26c   : > { %v2674_v4 = vadd.f32 %v6546_v5, %v2673_v51  ;;  %v2675_v38 = vpop.f32.mrb[85].mxu0 }
 0x26d   : > { %v2676_v17 = vpop.f32.mrb[86].mxu0 }
 0x26e   : > { %v2963_v29 = vadd.f32 %v6438_v16, %v2674_v4  ;;  %v2677_v3 = vadd.f32 %v6546_v5, %v2676_v17  ;;  %v2678_v39 = vpop.f32.mrb[87].mxu0 }
 0x270   : > { %v2966_v15 = vadd.f32 %v6443_v21, %v2677_v3  ;;  %v3091_v40 = vmax.f32 %v2963_v29, 0.0 }
 0x272   : > { %v3092_v17 = vmax.f32 %v2966_v15, 0.0 }
 0x277   : > { %v2681_v16 = vpop.f32.mrb[88].mxu0 }
 0x278   : > { %v2682_v34 = vadd.f32 %v6546_v5, %v2681_v16  ;;  %v2683_v10 = vpop.f32.mrb[89].mxu0 }
 0x279   : > { %v2684_v45 = vpop.f32.mrb[90].mxu0 }
 0x27a   : > { %v2685_v28 = vadd.f32 %v6546_v5, %v2684_v45  ;;  %v2971_v21 = vadd.f32 %v6473_v19, %v2682_v34  ;;  %v2686_v35 = vpop.f32.mrb[91].mxu0 }
 0x27c   : > { %v3093_v14 = vmax.f32 %v2971_v21, 0.0  ;;  %v2974_v7 = vadd.f32 %v6479_v24, %v2685_v28 }
 0x27e   : > { %v3133_v37 = vmax.f32 %v3089_v41, %v3093_v14  ;;  %v3094_v56 = vmax.f32 %v2974_v7, 0.0 }
 0x280   : > { %v3134_v26 = vmax.f32 %v3090_v47, %v3094_v56 }
 0x282   : > { %v6596_v57 = vpack.c.bf16 %v3134_v26, %v3133_v37 }
 0x283   : > { %v2689_v48 = vpop.f32.mrb[92].mxu0 }
 0x284   : > { %v2690_v49 = vadd.f32 %v6546_v5, %v2689_v48  ;;  %v2691_v51 = vpop.f32.mrb[93].mxu0  ;;  %4753 = vmatprep.subr.bf16.mxu1 %v6596_v57 }
 0x285   : > { %v2692_v4 = vpop.f32.mrb[94].mxu0  ;;  %4755 = vmatpush3.bf16.msra.mxu1 %v6388_v58 }
 0x286   : > { %v2979_v19 = vadd.f32 %v6471_v60, %v2690_v49  ;;  %v2693_v46 = vadd.f32 %v6546_v5, %v2692_v4  ;;  %v2694_v24 = vpop.f32.mrb[95].mxu0 }
 0x288   : > { %v3095_v38 = vmax.f32 %v2979_v19, 0.0  ;;  %v2982_v62 = vadd.f32 %v6476_v30, %v2693_v46 }
 0x28a   : > { %v3135_v3 = vmax.f32 %v3091_v40, %v3095_v38  ;;  %v3096_v39 = vmax.f32 %v2982_v62, 0.0 }
 0x28c   : > { %v3136_v16 = vmax.f32 %v3092_v17, %v3096_v39 }
 0x28e   : > { %v6604_v34 = vpack.c.bf16 %v3136_v16, %v3135_v3 }
 0x28f   : > { %v2697_v10 = vpop.f32.mrb[96].mxu0 }
 0x290   : > { %v2698_v45 = vadd.f32 %v6546_v5, %v2697_v10  ;;  %v2699_v28 = vpop.f32.mrb[97].mxu0  ;;  %4757 = vmatprep.subr.bf16.mxu1 %v6604_v34 }
 0x291   : > { %v2700_v60 = vpop.f32.mrb[98].mxu0  ;;  %4759 = vmatpush3.bf16.msra.mxu1 %v6410_v23 }
 0x292   : > { %v2701_v29 = vadd.f32 %v6546_v5, %v2700_v60  ;;  %v2987_v21 = vadd.f32 %v6500_v22, %v2698_v45  ;;  %v2702_v30 = vpop.f32.mrb[99].mxu0 }
 0x294   : > { %v2990_v15 = vadd.f32 %v6504_v2, %v2701_v29  ;;  %v3097_v46 = vmax.f32 %v2987_v21, 0.0 }
 0x29b   : > { %v2705_v35 = vpop.f32.mrb[100].mxu0 }
 0x29c   : > { %v2706_v41 = vadd.f32 %v6546_v5, %v2705_v35  ;;  %v2707_v14 = vpop.f32.mrb[101].mxu0 }
 0x29d   : > { %v2708_v7 = vpop.f32.mrb[102].mxu0 }
 0x29e   : > { %v2995_v47 = vadd.f32 %v6498_v25, %v2706_v41  ;;  %v2709_v37 = vadd.f32 %v6546_v5, %v2708_v7  ;;  %v2710_v56 = vpop.f32.mrb[103].mxu0  ;;  %v3098_v25 = vmax.f32 %v2990_v15, 0.0 }
 0x2a0   : > { %v2998_v26 = vadd.f32 %v6502_v12, %v2709_v37  ;;  %v3099_v28 = vmax.f32 %v2995_v47, 0.0 }
 0x2a2   : > { %v3100_v21 = vmax.f32 %v2998_v26, 0.0 }
 0x2a7   : > { %v2713_v48 = vpop.f32.mrb[104].mxu0 }
 0x2a8   : > { %v2714_v49 = vadd.f32 %v6546_v5, %v2713_v48  ;;  %v2715_v51 = vpop.f32.mrb[105].mxu0 }
 0x2a9   : > { %v2716_v22 = vpop.f32.mrb[106].mxu0 }
 0x2aa   : > { %v2717_v4 = vadd.f32 %v6546_v5, %v2716_v22  ;;  %v3003_v2 = vadd.f32 %v6518_v11, %v2714_v49  ;;  %v2718_v19 = vpop.f32.mrb[107].mxu0 }
 0x2ac   : > { %v3101_v24 = vmax.f32 %v3003_v2, 0.0  ;;  %v3006_v40 = vadd.f32 %v6522_v59, %v2717_v4 }
 0x2ae   : > { %v3137_v38 = vmax.f32 %v3097_v46, %v3101_v24  ;;  %v3102_v62 = vmax.f32 %v3006_v40, 0.0 }
 0x2b0   : > { %v3138_v17 = vmax.f32 %v3098_v25, %v3102_v62 }
 0x2b2   : > { %v6620_v3 = vpack.c.bf16 %v3138_v17, %v3137_v38 }
 0x2b3   : > { %v2721_v12 = vpop.f32.mrb[108].mxu0 }
 0x2b4   : > { %v2722_v39 = vadd.f32 %v6546_v5, %v2721_v12  ;;  %v2723_v16 = vpop.f32.mrb[109].mxu0  ;;  %4761 = vmatprep.subr.bf16.mxu1 %v6620_v3 }
 0x2b5   : > { %v2724_v10 = vpop.f32.mrb[110].mxu0  ;;  %4763 = vmatpush3.bf16.msra.mxu1 %v6460_v42 }
 0x2b6   : > { %v3011_v11 = vadd.f32 %v6516_v54, %v2722_v39  ;;  %v2725_v45 = vadd.f32 %v6546_v5, %v2724_v10  ;;  %v2726_v59 = vpop.f32.mrb[111].mxu0 }
 0x2b8   : > { %v3103_v60 = vmax.f32 %v3011_v11, 0.0  ;;  %v3014_v29 = vadd.f32 %v6520_v36, %v2725_v45 }
 0x2ba   : > { %v3139_v30 = vmax.f32 %v3099_v28, %v3103_v60  ;;  %v3104_v15 = vmax.f32 %v3014_v29, 0.0 }
 0x2bc   : > { %v3140_v35 = vmax.f32 %v3100_v21, %v3104_v15 }
 0x2be   : > { %v6628_v41 = vpack.c.bf16 %v3140_v35, %v3139_v30 }
 0x2bf   : > { %v2729_v14 = vpop.f32.mrb[112].mxu0 }
 0x2c0   : > { %v2730_v7 = vadd.f32 %v6546_v5, %v2729_v14  ;;  %v2731_v37 = vpop.f32.mrb[113].mxu0  ;;  %4765 = vmatprep.subr.bf16.mxu1 %v6628_v41 }
 0x2c1   : > { %v2732_v54 = vpop.f32.mrb[114].mxu0  ;;  %4767 = vmatpush3.bf16.msra.mxu1 %v6482_v53  ;;  %v3147_v37 = vadd.s32 8, %v6578_v6 }
 0x2c2   : > { %v2733_v47 = vadd.f32 %v6546_v5, %v2732_v54  ;;  %v3019_v56 = vadd.f32 %v6536_v52, %v2730_v7  ;;  %v2734_v36 = vpop.f32.mrb[115].mxu0 }
 0x2c3   : > { %v3148_v36 = vadd.s32 16, %v6578_v6 }
 0x2c4   : > { %v3022_v26 = vadd.f32 %v6540_v44, %v2733_v47  ;;  %v3105_v17 = vmax.f32 %v3019_v56, 0.0  ;;  %v6653_v56 = vmul.u32 2, %v3147_v37 }
 0x2c6   : > { %vm3184_vm6 = vcmp.eq.s32.totalorder %v6584_v0, %v6653_v56  ;;  %vm3183_vm7 = vcmp.eq.s32.totalorder %v6580_v32, %v6653_v56 }
 0x2cb   : > { %v2737_v48 = vpop.f32.mrb[116].mxu0 }
 0x2cc   : > { %v2738_v49 = vadd.f32 %v6546_v5, %v2737_v48  ;;  %v2739_v51 = vpop.f32.mrb[117].mxu0  ;;  %v3157_v48 = vadd.s32 88, %v6578_v6 }
 0x2cd   : > { %v2740_v22 = vpop.f32.mrb[118].mxu0 }
 0x2ce   : > { %v3027_v4 = vadd.f32 %v6534_v55, %v2738_v49  ;;  %v2741_v2 = vadd.f32 %v6546_v5, %v2740_v22  ;;  %v2742_v19 = vpop.f32.mrb[119].mxu0  ;;  %v3106_v55 = vmax.f32 %v3022_v26, 0.0  ;;  %v3156_v26 = vadd.s32 80, %v6578_v6 }
 0x2cf   : > { %v3158_v49 = vadd.s32 96, %v6578_v6  ;;  %v3159_v22 = vadd.s32 104, %v6578_v6 }
 0x2d0   : > { %v3030_v46 = vadd.f32 %v6538_v13, %v2741_v2  ;;  %v3107_v21 = vmax.f32 %v3027_v4, 0.0  ;;  %v3160_v2 = vadd.s32 112, %v6578_v6 }
 0x2d1   : > { %v6766_v51 = vmul.u32 2, %v3158_v49  ;;  %v6775_v4 = vmul.u32 2, %v3159_v22 }
 0x2d2   : > { %v3108_v35 = vmax.f32 %v3030_v46, 0.0  ;;  %v6784_v19 = vmul.u32 2, %v3160_v2  ;;  %v3161_v46 = vadd.s32 120, %v6578_v6 }
 0x2d7   : > { %v2745_v24 = vpop.f32.mrb[120].mxu0 }
 0x2d8   : > { %v2746_v40 = vadd.f32 %v6546_v5, %v2745_v24  ;;  %v2747_v25 = vpop.f32.mrb[121].mxu0  ;;  %v6793_v24 = vmul.u32 2, %v3161_v46 }
 0x2d9   : > { %v2748_v52 = vpop.f32.mrb[122].mxu0 }
 0x2da   : > { %v3035_v38 = vadd.f32 %v6561_v43, %v2746_v40  ;;  %v2749_v44 = vadd.f32 %v6546_v5, %v2748_v52  ;;  %v2750_v62 = vpop.f32.mrb[123].mxu0  ;;  %v3278_v40 = vadd.s32 1, %v6653_v56 }
 0x2dc   : > { %v3109_v12 = vmax.f32 %v3035_v38, 0.0  ;;  %v3038_v39 = vadd.f32 %v6565_v9, %v2749_v44 }
 0x2de   : > { %v3141_v16 = vmax.f32 %v3105_v17, %v3109_v12  ;;  %v3110_v10 = vmax.f32 %v3038_v39, 0.0 }
 0x2e0   : > { %v3142_v11 = vmax.f32 %v3106_v55, %v3110_v10  ;;  %v3290_v10 = vadd.s32 1, %v6775_v4 }
 0x2e2   : > { %v6644_v45 = vpack.c.bf16 %v3142_v11, %v3141_v16  ;;  %v3289_v16 = vadd.s32 1, %v6766_v51  ;;  %v3291_v11 = vadd.s32 1, %v6784_v19 }
 0x2e3   : > { %v2753_v13 = vpop.f32.mrb[124].mxu0 }
 0x2e4   : > { %v2754_v59 = vadd.f32 %v6546_v5, %v2753_v13  ;;  %v2755_v28 = vpop.f32.mrb[125].mxu0  ;;  %4769 = vmatprep.subr.bf16.mxu1 %v6644_v45 }
 0x2e5   : > { %v2756_v43 = vpop.f32.mrb[126].mxu0  ;;  %4771 = vmatpush3.bf16.msra.mxu1 %v6510_v1 }
 0x2e6   : > { %v3043_v60 = vadd.f32 %v6559_v50, %v2754_v59  ;;  %v2757_v29 = vadd.f32 %v6546_v5, %v2756_v43  ;;  %v2758_v9 = vpop.f32.mrb[127].mxu0  ;;  %v6662_v5 = vmul.u32 2, %v3148_v36  ;;  %v3149_v50 = vadd.s32 24, %v6578_v6 }
 0x2e8   : > { %v3111_v30 = vmax.f32 %v3043_v60, 0.0  ;;  %v3046_v15 = vadd.f32 %v6563_v27, %v2757_v29  ;;  %vm3186_vm8 = vcmp.eq.s32.totalorder %v6584_v0, %v6662_v5  ;;  %v3150_v27 = vadd.s32 32, %v6578_v6 }
 0x2e9   : > { %vm3185_vm9 = vcmp.eq.s32.totalorder %v6580_v32, %v6662_v5 }
 0x2ea   : > { %v3143_v14 = vmax.f32 %v3107_v21, %v3111_v30  ;;  %v3112_v7 = vmax.f32 %v3046_v15, 0.0 }
 0x2ec   : > { %v3144_v54 = vmax.f32 %v3108_v35, %v3112_v7 }
 0x2ee   : > { %v4772_v47 = vpack.c.bf16 %v3144_v54, %v3143_v14 }
 0x2f0   : > { %4773 = vmatprep.subr.bf16.mxu1 %v4772_v47 }
 0x2f1   : > { %4775 = vmatpush3.bf16.msra.mxu1 %v6524_v33 }
 0x2f2   : > { %4777 = vmatprep.subr.bf16.mxu1 %v6551_v8  ;;  %v6673_v8 = vmul.u32 2, %v3149_v50 }
 0x2f4   : > { %4385 = vmatmul.mubr.msk.f32.vlgmr.msra.gmra.mrb[64].mxu1 %vm3181_vm5, %v4917_v18  ;;  %vm3188_vm10 = vcmp.eq.s32.totalorder %v6584_v0, %v6673_v8  ;;  %vm3187_vm11 = vcmp.eq.s32.totalorder %v6580_v32, %v6673_v8  ;;  %v3280_v25 = vadd.s32 1, %v6673_v8 }
 0x2f5   : > { %4779 = vmatpush3.bf16.msra.mxu1 %v6313_v61  ;;  %4386 = vmatprep.mubr.msk.f32.mxu1 %vm3184_vm6, %v4917_v18  ;;  %v6684_v61 = vmul.u32 2, %v3150_v27 }
 0x2f6   : > { %4781 = vmatprep.subr.bf16.mxu1 %v6567_v63  ;;  %v3151_v63 = vadd.s32 40, %v6578_v6 }
 0x2f7   : > { %vm3190_vm12 = vcmp.eq.s32.totalorder %v6584_v0, %v6684_v61  ;;  %vm3189_vm13 = vcmp.eq.s32.totalorder %v6580_v32, %v6684_v61  ;;  %v3281_v52 = vadd.s32 1, %v6684_v61 }
 0x2f8   : > { %4387 = vmatmul.mubr.msk.f32.gmra.mrb[66].mxu1 %vm3183_vm7, %v4917_v18 }
 0x2f9   : > { %4783 = vmatpush3.bf16.msra.mxu1 %v6338_v20  ;;  %4388 = vmatprep.mubr.msk.f32.mxu1 %vm3186_vm8, %v4917_v18  ;;  %v6695_v20 = vmul.u32 2, %v3151_v63 }
 0x2fa   : > { %4785 = vmatprep.subr.bf16.mxu1 %v6596_v57  ;;  %v3152_v57 = vadd.s32 48, %v6578_v6 }
 0x2fb   : > { %vm3192_vm14 = vcmp.eq.s32.totalorder %v6584_v0, %v6695_v20  ;;  %vm3191_vm15 = vcmp.eq.s32.totalorder %v6580_v32, %v6695_v20  ;;  %v3282_v38 = vadd.s32 1, %v6695_v20 }
 0x2fc   : > { %4389 = vmatmul.mubr.msk.f32.gmra.mrb[68].mxu1 %vm3185_vm9, %v4917_v18 }
 0x2fd   : > { %4787 = vmatpush3.bf16.msra.mxu1 %v6388_v58  ;;  %4390 = vmatprep.mubr.msk.f32.mxu1 %vm3188_vm10, %v4917_v18  ;;  %v6706_v58 = vmul.u32 2, %v3152_v57 }
 0x2fe   : > { %4789 = vmatprep.subr.bf16.mxu1 %v6604_v34  ;;  %v3153_v34 = vadd.s32 56, %v6578_v6 }
 0x2ff   : > { %vm3194_vm0 = vcmp.eq.s32.totalorder %v6584_v0, %v6706_v58  ;;  %vm3193_vm1 = vcmp.eq.s32.totalorder %v6580_v32, %v6706_v58  ;;  %v3283_v44 = vadd.s32 1, %v6706_v58 }
 0x300   : > { %4391 = vmatmul.mubr.msk.f32.gmra.mrb[70].mxu1 %vm3187_vm11, %v4917_v18 }
 0x301   : > { %4791 = vmatpush3.bf16.msra.mxu1 %v6410_v23  ;;  %4392 = vmatprep.mubr.msk.f32.mxu1 %vm3190_vm12, %v4917_v18  ;;  %v6717_v23 = vmul.u32 2, %v3153_v34  ;;  %vm3206_vm12 = vcmp.eq.s32.totalorder %v6584_v0, %v6766_v51 }
 0x302   : > { %4793 = vmatprep.subr.bf16.mxu1 %v6620_v3  ;;  %v3154_v3 = vadd.s32 64, %v6578_v6 }
 0x303   : > { %vm3196_vm2 = vcmp.eq.s32.totalorder %v6584_v0, %v6717_v23  ;;  %vm3195_vm3 = vcmp.eq.s32.totalorder %v6580_v32, %v6717_v23  ;;  %v3284_v62 = vadd.s32 1, %v6717_v23 }
 0x304   : > { %4393 = vmatmul.mubr.msk.f32.gmra.mrb[72].mxu1 %vm3189_vm13, %v4917_v18  ;;  %vm3205_vm13 = vcmp.eq.s32.totalorder %v6580_v32, %v6766_v51 }
 0x305   : > { %4795 = vmatpush3.bf16.msra.mxu1 %v6460_v42  ;;  %4394 = vmatprep.mubr.msk.f32.mxu1 %vm3192_vm14, %v4917_v18  ;;  %v6728_v42 = vmul.u32 2, %v3154_v3  ;;  %vm3208_vm14 = vcmp.eq.s32.totalorder %v6584_v0, %v6775_v4 }
 0x306   : > { %4797 = vmatprep.subr.bf16.mxu1 %v6628_v41  ;;  %v3155_v41 = vadd.s32 72, %v6578_v6  ;;  %v3277_v6 = vadd.s32 1, %v6587_v31  ;;  %v3279_v31 = vadd.s32 1, %v6662_v5 }
 0x307   : > { %vm3198_vm4 = vcmp.eq.s32.totalorder %v6584_v0, %v6728_v42  ;;  %vm3197_vm5 = vcmp.eq.s32.totalorder %v6580_v32, %v6728_v42  ;;  %v3285_v17 = vadd.s32 1, %v6728_v42 }
 0x308   : > { %4395 = vmatmul.mubr.msk.f32.gmra.mrb[74].mxu1 %vm3191_vm15, %v4917_v18  ;;  %vm3207_vm15 = vcmp.eq.s32.totalorder %v6580_v32, %v6775_v4 }
 0x309   : > { %4799 = vmatpush3.bf16.msra.mxu1 %v6482_v53  ;;  %4396 = vmatprep.mubr.msk.f32.mxu1 %vm3194_vm0, %v4917_v18  ;;  %v6738_v53 = vmul.u32 2, %v3155_v41  ;;  %vm3210_vm0 = vcmp.eq.s32.totalorder %v6584_v0, %v6784_v19 }
 0x30a   : > { %4801 = vmatprep.subr.bf16.mxu1 %v6644_v45  ;;  %v3292_v45 = vadd.s32 1, %v6793_v24 }
 0x30b   : > { %vm3200_vm6 = vcmp.eq.s32.totalorder %v6584_v0, %v6738_v53  ;;  %vm3199_vm7 = vcmp.eq.s32.totalorder %v6580_v32, %v6738_v53  ;;  %v3286_v12 = vadd.s32 1, %v6738_v53 }
 0x30c   : > { %4397 = vmatmul.mubr.msk.f32.gmra.mrb[76].mxu1 %vm3193_vm1, %v4917_v18  ;;  %vm3209_vm1 = vcmp.eq.s32.totalorder %v6580_v32, %v6784_v19 }
 0x30d   : > { %4803 = vmatpush3.bf16.msra.mxu1 %v6510_v1  ;;  %4398 = vmatprep.mubr.msk.f32.mxu1 %vm3196_vm2, %v4917_v18  ;;  %v6748_v1 = vmul.u32 2, %v3156_v26  ;;  %vm3212_vm2 = vcmp.eq.s32.totalorder %v6584_v0, %v6793_v24 }
 0x30e   : > { %4805 = vmatprep.subr.bf16.mxu1 %v4772_v47 }
 0x30f   : > { %vm3202_vm8 = vcmp.eq.s32.totalorder %v6584_v0, %v6748_v1  ;;  %vm3201_vm9 = vcmp.eq.s32.totalorder %v6580_v32, %v6748_v1  ;;  %v3287_v39 = vadd.s32 1, %v6748_v1 }
 0x310   : > { %4399 = vmatmul.mubr.msk.f32.gmra.mrb[78].mxu1 %vm3195_vm3, %v4917_v18  ;;  %vm3211_vm3 = vcmp.eq.s32.totalorder %v6580_v32, %v6793_v24 }
 0x311   : > { %4807 = vmatpush3.bf16.msra.mxu1 %v6524_v33  ;;  %4400 = vmatprep.mubr.msk.f32.mxu1 %vm3198_vm4, %v4917_v18  ;;  %v6757_v33 = vmul.u32 2, %v3157_v48  ;;  %vm3294_vm4 = vcmp.eq.s32.totalorder %v6584_v0, %v3277_v6 }
 0x313   : > { %vm3204_vm10 = vcmp.eq.s32.totalorder %v6584_v0, %v6757_v33  ;;  %vm3203_vm11 = vcmp.eq.s32.totalorder %v6580_v32, %v6757_v33  ;;  %v3288_v55 = vadd.s32 1, %v6757_v33 }
 0x314   : > { %4401 = vmatmul.mubr.msk.f32.gmra.mrb[80].mxu1 %vm3197_vm5, %v4917_v18  ;;  %vm3293_vm5 = vcmp.eq.s32.totalorder %v6580_v32, %v3277_v6 }
 0x315   : > { %4402 = vmatprep.mubr.msk.f32.mxu1 %vm3200_vm6, %v4917_v18  ;;  %vm3296_vm6 = vcmp.eq.s32.totalorder %v6584_v0, %v3278_v40 }
 0x318   : > { %4403 = vmatmul.mubr.msk.f32.gmra.mrb[82].mxu1 %vm3199_vm7, %v4917_v18  ;;  %vm3295_vm7 = vcmp.eq.s32.totalorder %v6580_v32, %v3278_v40 }
 0x319   : > { %4404 = vmatprep.mubr.msk.f32.mxu1 %vm3202_vm8, %v4917_v18  ;;  %vm3298_vm8 = vcmp.eq.s32.totalorder %v6584_v0, %v3279_v31 }
 0x31c   : > { %4405 = vmatmul.mubr.msk.f32.gmra.mrb[84].mxu1 %vm3201_vm9, %v4917_v18  ;;  %vm3297_vm9 = vcmp.eq.s32.totalorder %v6580_v32, %v3279_v31 }
 0x31d   : > { %4406 = vmatprep.mubr.msk.f32.mxu1 %vm3204_vm10, %v4917_v18  ;;  %vm3300_vm10 = vcmp.eq.s32.totalorder %v6584_v0, %v3280_v25 }
 0x320   : > { %4407 = vmatmul.mubr.msk.f32.gmra.mrb[86].mxu1 %vm3203_vm11, %v4917_v18  ;;  %vm3299_vm11 = vcmp.eq.s32.totalorder %v6580_v32, %v3280_v25 }
 0x321   : > { %4408 = vmatprep.mubr.msk.f32.mxu1 %vm3206_vm12, %v4917_v18  ;;  %vm3302_vm12 = vcmp.eq.s32.totalorder %v6584_v0, %v3281_v52 }
 0x324   : > { %4409 = vmatmul.mubr.msk.f32.gmra.mrb[88].mxu1 %vm3205_vm13, %v4917_v18  ;;  %vm3301_vm13 = vcmp.eq.s32.totalorder %v6580_v32, %v3281_v52 }
 0x325   : > { %4410 = vmatprep.mubr.msk.f32.mxu1 %vm3208_vm14, %v4917_v18  ;;  %vm3304_vm14 = vcmp.eq.s32.totalorder %v6584_v0, %v3282_v38 }
 0x328   : > { %4411 = vmatmul.mubr.msk.f32.gmra.mrb[90].mxu1 %vm3207_vm15, %v4917_v18  ;;  %vm3303_vm15 = vcmp.eq.s32.totalorder %v6580_v32, %v3282_v38 }
 0x329   : > { %4412 = vmatprep.mubr.msk.f32.mxu1 %vm3210_vm0, %v4917_v18  ;;  %vm3306_vm0 = vcmp.eq.s32.totalorder %v6584_v0, %v3283_v44 }
 0x32c   : > { %4413 = vmatmul.mubr.msk.f32.gmra.mrb[92].mxu1 %vm3209_vm1, %v4917_v18  ;;  %vm3305_vm1 = vcmp.eq.s32.totalorder %v6580_v32, %v3283_v44 }
 0x32d   : > { %4414 = vmatprep.mubr.msk.f32.mxu1 %vm3212_vm2, %v4917_v18  ;;  %vm3308_vm2 = vcmp.eq.s32.totalorder %v6584_v0, %v3284_v62 }
 0x330   : > { %4415 = vmatmul.mubr.msk.f32.gmra.mrb[94].mxu1 %vm3211_vm3, %v4917_v18  ;;  %vm3307_vm3 = vcmp.eq.s32.totalorder %v6580_v32, %v3284_v62 }
 0x331   : > { %4416 = vmatprep.mubr.msk.f32.mxu1 %vm3294_vm4, %v4917_v18  ;;  %vm3310_vm4 = vcmp.eq.s32.totalorder %v6584_v0, %v3285_v17 }
 0x334   : > { %4417 = vmatmul.mubr.msk.f32.vlgmr.msra.gmra.mrb[96].mxu1 %vm3293_vm5, %v4917_v18  ;;  %vm3309_vm5 = vcmp.eq.s32.totalorder %v6580_v32, %v3285_v17 }
 0x335   : > { %4418 = vmatprep.mubr.msk.f32.mxu1 %vm3296_vm6, %v4917_v18  ;;  %vm3312_vm6 = vcmp.eq.s32.totalorder %v6584_v0, %v3286_v12 }
 0x338   : > { %4419 = vmatmul.mubr.msk.f32.gmra.mrb[98].mxu1 %vm3295_vm7, %v4917_v18  ;;  %vm3311_vm7 = vcmp.eq.s32.totalorder %v6580_v32, %v3286_v12 }
 0x339   : > { %4420 = vmatprep.mubr.msk.f32.mxu1 %vm3298_vm8, %v4917_v18  ;;  %vm3314_vm8 = vcmp.eq.s32.totalorder %v6584_v0, %v3287_v39 }
 0x33c   : > { %4421 = vmatmul.mubr.msk.f32.gmra.mrb[100].mxu1 %vm3297_vm9, %v4917_v18  ;;  %vm3313_vm9 = vcmp.eq.s32.totalorder %v6580_v32, %v3287_v39 }
 0x33d   : > { %4422 = vmatprep.mubr.msk.f32.mxu1 %vm3300_vm10, %v4917_v18  ;;  %vm3316_vm10 = vcmp.eq.s32.totalorder %v6584_v0, %v3288_v55 }
 0x340   : > { %4423 = vmatmul.mubr.msk.f32.gmra.mrb[102].mxu1 %vm3299_vm11, %v4917_v18  ;;  %vm3315_vm11 = vcmp.eq.s32.totalorder %v6580_v32, %v3288_v55 }
 0x341   : > { %4424 = vmatprep.mubr.msk.f32.mxu1 %vm3302_vm12, %v4917_v18  ;;  %vm3318_vm12 = vcmp.eq.s32.totalorder %v6584_v0, %v3289_v16 }
 0x344   : > { %4425 = vmatmul.mubr.msk.f32.gmra.mrb[104].mxu1 %vm3301_vm13, %v4917_v18  ;;  %vm3317_vm13 = vcmp.eq.s32.totalorder %v6580_v32, %v3289_v16 }
 0x345   : > { %4426 = vmatprep.mubr.msk.f32.mxu1 %vm3304_vm14, %v4917_v18  ;;  %vm3320_vm14 = vcmp.eq.s32.totalorder %v6584_v0, %v3290_v10 }
 0x348   : > { %4427 = vmatmul.mubr.msk.f32.gmra.mrb[106].mxu1 %vm3303_vm15, %v4917_v18  ;;  %vm3319_vm15 = vcmp.eq.s32.totalorder %v6580_v32, %v3290_v10 }
 0x349   : > { %4428 = vmatprep.mubr.msk.f32.mxu1 %vm3306_vm0, %v4917_v18  ;;  %vm3322_vm0 = vcmp.eq.s32.totalorder %v6584_v0, %v3291_v11 }
 0x34c   : > { %4429 = vmatmul.mubr.msk.f32.gmra.mrb[108].mxu1 %vm3305_vm1, %v4917_v18  ;;  %vm3321_vm1 = vcmp.eq.s32.totalorder %v6580_v32, %v3291_v11 }
 0x34d   : > { %4430 = vmatprep.mubr.msk.f32.mxu1 %vm3308_vm2, %v4917_v18  ;;  %vm3324_vm2 = vcmp.eq.s32.totalorder %v6584_v0, %v3292_v45 }
 0x350   : > { %4431 = vmatmul.mubr.msk.f32.gmra.mrb[110].mxu1 %vm3307_vm3, %v4917_v18  ;;  %vm3323_vm3 = vcmp.eq.s32.totalorder %v6580_v32, %v3292_v45 }
 0x351   : > { %4432 = vmatprep.mubr.msk.f32.mxu1 %vm3310_vm4, %v4917_v18  ;;  %vm3759_vm4 = vcmask 519168  }
 0x354   : > { %4433 = vmatmul.mubr.msk.f32.gmra.mrb[112].mxu1 %vm3309_vm5, %v4917_v18 }
 0x355   : > { %4434 = vmatprep.mubr.msk.f32.mxu1 %vm3312_vm6, %v4917_v18 }
 0x358   : > { %4435 = vmatmul.mubr.msk.f32.gmra.mrb[114].mxu1 %vm3311_vm7, %v4917_v18 }
 0x359   : > { %4436 = vmatprep.mubr.msk.f32.mxu1 %vm3314_vm8, %v4917_v18 }
 0x35c   : > { %4437 = vmatmul.mubr.msk.f32.gmra.mrb[116].mxu1 %vm3313_vm9, %v4917_v18 }
 0x35d   : > { %4438 = vmatprep.mubr.msk.f32.mxu1 %vm3316_vm10, %v4917_v18 }
 0x360   : > { %4439 = vmatmul.mubr.msk.f32.gmra.mrb[118].mxu1 %vm3315_vm11, %v4917_v18 }
 0x361   : > { %4440 = vmatprep.mubr.msk.f32.mxu1 %vm3318_vm12, %v4917_v18 }
 0x364   : > { %4441 = vmatmul.mubr.msk.f32.gmra.mrb[120].mxu1 %vm3317_vm13, %v4917_v18 }
 0x365   : > { %4442 = vmatprep.mubr.msk.f32.mxu1 %vm3320_vm14, %v4917_v18 }
 0x368   : > { %4443 = vmatmul.mubr.msk.f32.gmra.mrb[122].mxu1 %vm3319_vm15, %v4917_v18 }
 0x369   : > { %4444 = vmatprep.mubr.msk.f32.mxu1 %vm3322_vm0, %v4917_v18 }
 0x36c   : > { %4445 = vmatmul.mubr.msk.f32.gmra.mrb[124].mxu1 %vm3321_vm1, %v4917_v18 }
 0x36d   : > { %4446 = vmatprep.mubr.msk.f32.mxu1 %vm3324_vm2, %v4917_v18 }
 0x370   : > { %4447 = vmatmul.mubr.msk.f32.gmra.mrb[126].mxu1 %vm3323_vm3, %v4917_v18 }
 0x3c7   : > { %v4548_v13 = vpop.f32.mrb[64].mxu1 }
 0x3c8   : > { %v4549_v59 = vpop.f32.mrb[65].mxu1 }
 0x3c9   : > { %v4550_v28 = vadd.f32 %v4549_v59, %v4548_v13 }
 0x3cb   : > { %v4551_v43 = vpop.f32.mrb[66].mxu1 }
 0x3cc   : > { %v4552_v60 = vpop.f32.mrb[67].mxu1 }
 0x3cd   : > { %v4553_v29 = vadd.f32 %v4552_v60, %v4551_v43 }
 0x3cf   : > { %v4554_v9 = vpop.f32.mrb[68].mxu1 }
 0x3d0   : > { %v4555_v21 = vpop.f32.mrb[69].mxu1 }
 0x3d1   : > { %v6886_v30 = vadd.f32 %v4555_v21, %v4554_v9 }
 0x3d3   : > { %v4557_v15 = vpop.f32.mrb[70].mxu1 }
 0x3d4   : > { %v4558_v0 = vpop.f32.mrb[71].mxu1 }
 0x3d5   : > { %v6888_v35 = vadd.f32 %v4558_v0, %v4557_v15 }
 0x3d7   : > { %v4560_v14 = vpop.f32.mrb[72].mxu1 }
 0x3d8   : > { %v4561_v7 = vpop.f32.mrb[73].mxu1 }
 0x3d9   : > { %v6890_v37 = vadd.f32 %v4561_v7, %v4560_v14 }
 0x3db   : > { %v4563_v32 = vpop.f32.mrb[74].mxu1 }
 0x3dc   : > { %v4564_v18 = vpop.f32.mrb[75].mxu1 }
 0x3dd   : > { %v6892_v54 = vadd.f32 %v4564_v18, %v4563_v32 }
 0x3df   : > { %v4566_v47 = vpop.f32.mrb[76].mxu1 }
 0x3e0   : > { %v4567_v56 = vpop.f32.mrb[77].mxu1 }
 0x3e1   : > { %v6894_v36 = vadd.f32 %v4567_v56, %v4566_v47 }
 0x3e3   : > { %v4569_v5 = vpop.f32.mrb[78].mxu1 }
 0x3e4   : > { %v4570_v50 = vpop.f32.mrb[79].mxu1 }
 0x3e5   : > { %v6896_v8 = vadd.f32 %v4570_v50, %v4569_v5 }
 0x3e7   : > { %v4572_v27 = vpop.f32.mrb[80].mxu1 }
 0x3e8   : > { %v4573_v61 = vpop.f32.mrb[81].mxu1 }
 0x3e9   : > { %v6898_v63 = vadd.f32 %v4573_v61, %v4572_v27 }
 0x3eb   : > { %v4575_v20 = vpop.f32.mrb[82].mxu1 }
 0x3ec   : > { %v4576_v57 = vpop.f32.mrb[83].mxu1 }
 0x3ed   : > { %v6900_v58 = vadd.f32 %v4576_v57, %v4575_v20 }
 0x3ef   : > { %v4578_v34 = vpop.f32.mrb[84].mxu1 }
 0x3f0   : > { %v4579_v23 = vpop.f32.mrb[85].mxu1 }
 0x3f1   : > { %v6902_v3 = vadd.f32 %v4579_v23, %v4578_v34 }
 0x3f3   : > { %v4581_v42 = vpop.f32.mrb[86].mxu1 }
 0x3f4   : > { %v4582_v41 = vpop.f32.mrb[87].mxu1 }
 0x3f5   : > { %v6904_v53 = vadd.f32 %v4582_v41, %v4581_v42 }
 0x3f7   : > { %v4584_v26 = vpop.f32.mrb[88].mxu1 }
 0x3f8   : > { %v4585_v1 = vpop.f32.mrb[89].mxu1 }
 0x3f9   : > { %v6906_v48 = vadd.f32 %v4585_v1, %v4584_v26 }
 0x3fb   : > { %v4587_v33 = vpop.f32.mrb[90].mxu1 }
 0x3fc   : > { %v4588_v49 = vpop.f32.mrb[91].mxu1 }
 0x3fd   : > { %v6909_v51 = vadd.f32 %v4588_v49, %v4587_v33 }
 0x3ff   : > { %v4590_v22 = vpop.f32.mrb[92].mxu1 }
 0x400   : > { %v4591_v4 = vpop.f32.mrb[93].mxu1 }
 0x401   : > { %v6911_v2 = vadd.f32 %v4591_v4, %v4590_v22 }
 0x403   : > { %v4593_v19 = vpop.f32.mrb[94].mxu1 }
 0x404   : > { %v4594_v46 = vpop.f32.mrb[95].mxu1 }
 0x405   : > { %v6914_v24 = vadd.f32 %v4594_v46, %v4593_v19 }
 0x407   : > { %v4628_v6 = vpop.f32.mrb[96].mxu1 }
 0x408   : > { %v4629_v40 = vpop.f32.mrb[97].mxu1 }
 0x409   : > { %v4630_v31 = vadd.f32 %v4629_v40, %v4628_v6 }
 0x40b   : > { %v3679_v25 = vmax.f32 %v4550_v28, %v4630_v31  ;;  %v4631_v52 = vpop.f32.mrb[98].mxu1 }
 0x40c   : > { %v4632_v38 = vpop.f32.mrb[99].mxu1 }
 0x40d   : > { %v4466_v44 = vpack.c.bf16 %v3679_v25, %v3679_v25  ;;  %v4633_v62 = vadd.f32 %v4632_v38, %v4631_v52 }
 0x40f   : > { %3760 = vst.msk [vmem:[%s6919_s9] sm:$0xf] %vm3759_vm4, %v4466_v44  ;;  %v3680_v17 = vmax.f32 %v4553_v29, %v4633_v62  ;;  %v4634_v12 = vpop.f32.mrb[100].mxu1 }
 0x410   : > { %v4635_v39 = vpop.f32.mrb[101].mxu1 }
 0x411   : > { %v4467_v55 = vpack.c.bf16 %v3680_v17, %v3680_v17  ;;  %v4636_v16 = vadd.f32 %v4635_v39, %v4634_v12 }
 0x413   : > { %3761 = vst.msk [vmem:[%s6919_s9 + $0x4] sm:$0xf] %vm3759_vm4, %v4467_v55  ;;  %v3681_v10 = vmax.f32 %v6886_v30, %v4636_v16  ;;  %v4637_v11 = vpop.f32.mrb[102].mxu1 }
 0x414   : > { %v4638_v45 = vpop.f32.mrb[103].mxu1 }
 0x415   : > { %v4468_v13 = vpack.c.bf16 %v3681_v10, %v3681_v10  ;;  %v4639_v59 = vadd.f32 %v4638_v45, %v4637_v11 }
 0x417   : > { %3762 = vst.msk [vmem:[%s6919_s9 + $0x8] sm:$0xf] %vm3759_vm4, %v4468_v13  ;;  %v3682_v28 = vmax.f32 %v6888_v35, %v4639_v59  ;;  %v4640_v43 = vpop.f32.mrb[104].mxu1 }
 0x418   : > { %v4641_v60 = vpop.f32.mrb[105].mxu1 }
 0x419   : > { %v4469_v29 = vpack.c.bf16 %v3682_v28, %v3682_v28  ;;  %v4642_v9 = vadd.f32 %v4641_v60, %v4640_v43 }
 0x41b   : > { %3763 = vst.msk [vmem:[%s6919_s9 + $0xc] sm:$0xf] %vm3759_vm4, %v4469_v29  ;;  %v3683_v21 = vmax.f32 %v6890_v37, %v4642_v9  ;;  %v4643_v15 = vpop.f32.mrb[106].mxu1 }
 0x41c   : > { %v4644_v30 = vpop.f32.mrb[107].mxu1 }
 0x41d   : > { %v4470_v0 = vpack.c.bf16 %v3683_v21, %v3683_v21  ;;  %v4645_v14 = vadd.f32 %v4644_v30, %v4643_v15 }
 0x41f   : > { %3764 = vst.msk [vmem:[%s6919_s9 + $0x10] sm:$0xf] %vm3759_vm4, %v4470_v0  ;;  %v3684_v7 = vmax.f32 %v6892_v54, %v4645_v14  ;;  %v4646_v32 = vpop.f32.mrb[108].mxu1 }
 0x420   : > { %v4647_v35 = vpop.f32.mrb[109].mxu1 }
 0x421   : > { %v4471_v18 = vpack.c.bf16 %v3684_v7, %v3684_v7  ;;  %v4648_v47 = vadd.f32 %v4647_v35, %v4646_v32 }
 0x423   : > { %3765 = vst.msk [vmem:[%s6919_s9 + $0x14] sm:$0xf] %vm3759_vm4, %v4471_v18  ;;  %v3685_v56 = vmax.f32 %v6894_v36, %v4648_v47  ;;  %v4649_v5 = vpop.f32.mrb[110].mxu1 }
 0x424   : > { %v4650_v37 = vpop.f32.mrb[111].mxu1 }
 0x425   : > { %v4472_v50 = vpack.c.bf16 %v3685_v56, %v3685_v56  ;;  %v4651_v27 = vadd.f32 %v4650_v37, %v4649_v5 }
 0x427   : > { %3766 = vst.msk [vmem:[%s6919_s9 + $0x18] sm:$0xf] %vm3759_vm4, %v4472_v50  ;;  %v3686_v61 = vmax.f32 %v6896_v8, %v4651_v27  ;;  %v4652_v20 = vpop.f32.mrb[112].mxu1 }
 0x428   : > { %v4653_v54 = vpop.f32.mrb[113].mxu1 }
 0x429   : > { %v4473_v57 = vpack.c.bf16 %v3686_v61, %v3686_v61  ;;  %v4654_v34 = vadd.f32 %v4653_v54, %v4652_v20 }
 0x42b   : > { %3767 = vst.msk [vmem:[%s6919_s9 + $0x1c] sm:$0xf] %vm3759_vm4, %v4473_v57  ;;  %v3687_v23 = vmax.f32 %v6898_v63, %v4654_v34  ;;  %v4655_v42 = vpop.f32.mrb[114].mxu1 }
 0x42c   : > { %v4656_v36 = vpop.f32.mrb[115].mxu1 }
 0x42d   : > { %v4474_v41 = vpack.c.bf16 %v3687_v23, %v3687_v23  ;;  %v4657_v26 = vadd.f32 %v4656_v36, %v4655_v42 }
 0x42f   : > { %3768 = vst.msk [vmem:[%s6919_s9 + $0x20] sm:$0xf] %vm3759_vm4, %v4474_v41  ;;  %v3688_v1 = vmax.f32 %v6900_v58, %v4657_v26  ;;  %v4658_v33 = vpop.f32.mrb[116].mxu1 }
 0x430   : > { %v4659_v8 = vpop.f32.mrb[117].mxu1 }
 0x431   : > { %v4475_v49 = vpack.c.bf16 %v3688_v1, %v3688_v1  ;;  %v4660_v22 = vadd.f32 %v4659_v8, %v4658_v33 }
 0x433   : > { %3769 = vst.msk [vmem:[%s6919_s9 + $0x24] sm:$0xf] %vm3759_vm4, %v4475_v49  ;;  %v3689_v4 = vmax.f32 %v6902_v3, %v4660_v22  ;;  %v4661_v19 = vpop.f32.mrb[118].mxu1 }
 0x434   : > { %v4662_v63 = vpop.f32.mrb[119].mxu1 }
 0x435   : > { %v4476_v46 = vpack.c.bf16 %v3689_v4, %v3689_v4  ;;  %v4663_v6 = vadd.f32 %v4662_v63, %v4661_v19 }
 0x437   : > { %3770 = vst.msk [vmem:[%s6919_s9 + $0x28] sm:$0xf] %vm3759_vm4, %v4476_v46  ;;  %v3690_v40 = vmax.f32 %v6904_v53, %v4663_v6  ;;  %v4664_v31 = vpop.f32.mrb[120].mxu1 }
 0x438   : > { %v4665_v58 = vpop.f32.mrb[121].mxu1 }
 0x439   : > { %v4477_v25 = vpack.c.bf16 %v3690_v40, %v3690_v40  ;;  %v4666_v52 = vadd.f32 %v4665_v58, %v4664_v31 }
 0x43b   : > { %3771 = vst.msk [vmem:[%s6919_s9 + $0x2c] sm:$0xf] %vm3759_vm4, %v4477_v25  ;;  %v3691_v38 = vmax.f32 %v6906_v48, %v4666_v52  ;;  %v4667_v44 = vpop.f32.mrb[122].mxu1 }
 0x43c   : > { %v4668_v3 = vpop.f32.mrb[123].mxu1 }
 0x43d   : > { %v4478_v62 = vpack.c.bf16 %v3691_v38, %v3691_v38  ;;  %v4669_v17 = vadd.f32 %v4668_v3, %v4667_v44 }
 0x43f   : > { %3772 = vst.msk [vmem:[%s6919_s9 + $0x30] sm:$0xf] %vm3759_vm4, %v4478_v62  ;;  %v3692_v12 = vmax.f32 %v6909_v51, %v4669_v17  ;;  %v4670_v53 = vpop.f32.mrb[124].mxu1 }
 0x440   : > { %v4671_v39 = vpop.f32.mrb[125].mxu1 }
 0x441   : > { %v4479_v55 = vpack.c.bf16 %v3692_v12, %v3692_v12  ;;  %v4672_v16 = vadd.f32 %v4671_v39, %v4670_v53 }
 0x443   : > { %3773 = vst.msk [vmem:[%s6919_s9 + $0x34] sm:$0xf] %vm3759_vm4, %v4479_v55  ;;  %v3693_v10 = vmax.f32 %v6911_v2, %v4672_v16  ;;  %v4673_v11 = vpop.f32.mrb[126].mxu1 }
 0x444   : > { %v4674_v48 = vpop.f32.mrb[127].mxu1 }
 0x445   : > { %v4480_v45 = vpack.c.bf16 %v3693_v10, %v3693_v10  ;;  %v4675_v13 = vadd.f32 %v4674_v48, %v4673_v11 }
 0x447   : > { %3774 = vst.msk [vmem:[%s6919_s9 + $0x38] sm:$0xf] %vm3759_vm4, %v4480_v45  ;;  %v3694_v59 = vmax.f32 %v6914_v24, %v4675_v13 }
 0x449   : > { %v4481_v28 = vpack.c.bf16 %v3694_v59, %v3694_v59 }
 0x44b   : > { %3775 = vst.msk [vmem:[%s6919_s9 + $0x3c] sm:$0xf] %vm3759_vm4, %v4481_v28 }
 0x44c PF: > { %s13_s16 = sadd.s32 1, %s4911_s16   ;;  %s6986_s12 = smov %s4903_s14 }
 0x44d   : > { %p10_p7 = scmp.ge.s32.totalorder %s13_s16, 6   ;;  %s6987_s13 = smov %s4907_s15 }
 0x44e   : > { %s6988_s14 = smov %s6991_s17  ;;  %s6989_s15 = smov %s6995_s18 }
 0x44f   :  { %12 = sbr.rel (!%p10_p7) target bundleno = 3 (0x3), region = 65 }

// kernel: cnn_forward.5
= control target key start
LH: loop header
LB: loop body
LE: loop exit
PB: predicated region body
PF: predicated region fallthrough
CT: control target
= control target key end

     0   :  { %s7854_s9 = smov 0   ;;  %s8521_s0 = inlined_call_operand.vmem [shape: bf16[2,16384], index: 0, kind: input, shape index: {}]   ;;  %s8522_s1 = inlined_call_operand.vmem [shape: bf16[2,8192,128], index: 1, kind: input, shape index: {}]   ;;  %s8523_s2 = inlined_call_operand.vmem [shape: f32[2,2,128], index: 2, kind: output, shape index: {}]  }
   0x1 LB: > { %s7860_s10 = sadd.s32 4294967295, %s7836_s9   ;;  %p6077_p0 = scmp.ge.s32.totalorder %s7836_s9, 1  ;;  %s7836_s9 = sphi %s7854_s9, %s12_s9  }
   0x2   : > { %p122_p1 = scmp.lt.s32.totalorder %s7836_s9, 3 }
   0x4   : > { %p123_p2 = pnand %p6077_p0, %p122_p1 }
   0x5   : > { %p152_p3 = scmp.lt.s32.totalorder (!%p123_p2), %s7860_s10, 1  ;;  %s6078_s16 = sshll.u32 (!%p123_p2), %s7860_s10, 6  ;;  %v1206_v21 = vlaneseq (!%p123_p2)  ;;  %v7838_v23 = vmov (!%p123_p2), 1966171168  }
   0x6   : > { %126 = sbr.rel (%p123_p2) target bundleno = 751 (0x2ef), region = 28  ;;  %p148_p4 = scmp.lt.s32.totalorder (!%p123_p2), %s6078_s16, 127  ;;  %v1204_v24 = vunpack.c.l.s4 (!%p123_p2), %v7838_v23 }
   0x7   : > { %v1207_v28 = vshrl.u32 (!%p123_p2), %v1206_v21, 7 }
   0x8   : > { %v1205_v30 = vunpack.c.0.s8 (!%p123_p2), %v1204_v24 }
   0xa   : > { %v7910_v35 = vsub.s32 (!%p123_p2), %v1205_v30, %v1207_v28 }
   0xd   : > { %s7866_s11 = scalar_select %p152_p3, %s7860_s10, 1 }
   0xe   : > { %s8525_s16 = smov (!%p148_p4, %s6078_s16), 127 }
   0xf   : > { %s6596_s12 = sshll.u32 %s7866_s11, 12  ;;  %s7908_s19 = scalar_lea.vmem %s8521_s0, %s8525_s16 }
  0x10   : > { %s7872_s15 = scalar_lea.vmem %s8522_s1, %s6596_s12  ;;  %v162_v38 = vld [vmem:[%s7908_s19] sm:$0xff]  ;;  %s6081_s20 = sshll.u32 %s7866_s11, 1 }
  0x11   : > { %v7310_v0 = vld [vmem:[%s7872_s15 + $0x40] sm:$0xff]   ;;  %v7314_v4 = vld [vmem:[%s7872_s15 + $0x48] sm:$0xff]   ;;  %v7318_v8 = vld [vmem:[%s7872_s15 + $0x50] sm:$0xff]   ;;  %v1202_v39 = vcombine.high %v162_v38, %v162_v38  ;;  %v1209_v40 = vrot.slane %v162_v38, %v7910_v35  ;;  %s160_s23 = scalar_lea.vmem %s8523_s2, %s6081_s20 }
  0x12   : > { %v7311_v1 = vld [vmem:[%s7872_s15 + $0xc0] sm:$0xff]   ;;  %6597 = vmatprep.subr.bf16.mxu0 %v7310_v0  ;;  %v7315_v5 = vld [vmem:[%s7872_s15 + $0xc8] sm:$0xff]   ;;  %v7319_v9 = vld [vmem:[%s7872_s15 + $0xd0] sm:$0xff]  }
  0x13   : > { %v7312_v2 = vld [vmem:[%s7872_s15] sm:$0xff]   ;;  %6619 = vmatprep.subr.bf16.mxu1 %v7311_v1  ;;  %v7316_v6 = vld [vmem:[%s7872_s15 + $0x8] sm:$0xff]   ;;  %v7320_v10 = vld [vmem:[%s7872_s15 + $0x10] sm:$0xff]   ;;  %v1217_v43 = vcombine.high %v1209_v40, %v1209_v40  ;;  %v1225_v44 = vrot.slane %v1209_v40, %v7910_v35  ;;  %v7920_v45 = vrot.slane %v1202_v39, %v7910_v35 }
  0x14   : > { %v7313_v3 = vld [vmem:[%s7872_s15 + $0x80] sm:$0xff]   ;;  %6598 = vmatpush3.bf16.msra.mxu0 %v7312_v2  ;;  %v7317_v7 = vld [vmem:[%s7872_s15 + $0x88] sm:$0xff]   ;;  %v7321_v11 = vld [vmem:[%s7872_s15 + $0x90] sm:$0xff]  }
  0x15   : > { %6620 = vmatpush3.bf16.msra.mxu1 %v7313_v3  ;;  %6599 = vmatprep.subr.bf16.mxu0 %v7314_v4  ;;  %v7322_v12 = vld [vmem:[%s7872_s15 + $0x58] sm:$0xff]   ;;  %v7326_v16 = vld [vmem:[%s7872_s15 + $0x60] sm:$0xff]   ;;  %v7330_v20 = vld [vmem:[%s7872_s15 + $0x68] sm:$0xff]   ;;  %v1239_v47 = vrot.slane %v1217_v43, %v7910_v35  ;;  %v1218_v49 = vcombine.high %v7920_v45, %v7920_v45  ;;  %v1247_v50 = vcombine.high %v1225_v44, %v1225_v44 }
  0x16   : > { %6621 = vmatprep.subr.bf16.mxu1 %v7315_v5  ;;  %v7323_v13 = vld [vmem:[%s7872_s15 + $0xd8] sm:$0xff]   ;;  %v7327_v17 = vld [vmem:[%s7872_s15 + $0xe0] sm:$0xff]   ;;  %v7331_v22 = vld [vmem:[%s7872_s15 + $0xe8] sm:$0xff]  }
  0x17   : > { %v7324_v14 = vld [vmem:[%s7872_s15 + $0x18] sm:$0xff]   ;;  %v7328_v18 = vld [vmem:[%s7872_s15 + $0x20] sm:$0xff]   ;;  %v7332_v25 = vld [vmem:[%s7872_s15 + $0x28] sm:$0xff]   ;;  %4762 = vmatprep.mubr.bf16.mxu0 %v1239_v47  ;;  %v1249_v52 = vcombine.high %v1239_v47, %v1239_v47  ;;  %v1246_v54 = vrot.slane %v1218_v49, %v7910_v35 }
  0x18   : > { %6600 = vmatpush3.bf16.msra.mxu0 %v7316_v6  ;;  %v7325_v15 = vld [vmem:[%s7872_s15 + $0x98] sm:$0xff]   ;;  %v7329_v19 = vld [vmem:[%s7872_s15 + $0xa0] sm:$0xff]   ;;  %v7333_v26 = vld [vmem:[%s7872_s15 + $0xa8] sm:$0xff]  }
  0x19   : > { %6622 = vmatpush3.bf16.msra.mxu1 %v7317_v7  ;;  %6601 = vmatprep.subr.bf16.mxu0 %v7318_v8  ;;  %v7334_v27 = vld [vmem:[%s7872_s15 + $0x70] sm:$0xff]   ;;  %v7338_v33 = vld [vmem:[%s7872_s15 + $0x78] sm:$0xff]   ;;  %v7343_v41 = vld [vmem:[%s7872_s15 + $0x140] sm:$0xff]   ;;  %v1250_v57 = vcombine.high %v1246_v54, %v1246_v54 }
  0x1a   : > { %6623 = vmatprep.subr.bf16.mxu1 %v7319_v9  ;;  %v7335_v29 = vld [vmem:[%s7872_s15 + $0xf0] sm:$0xff]   ;;  %v7339_v34 = vld [vmem:[%s7872_s15 + $0xf8] sm:$0xff]   ;;  %v7344_v42 = vld [vmem:[%s7872_s15 + $0x1c0] sm:$0xff]   ;;  %4802 = vmatprep.mubr.bf16.mxu1 %v1249_v52 }
  0x1b   : > { %v7336_v31 = vld [vmem:[%s7872_s15 + $0x30] sm:$0xff]   ;;  %v7340_v36 = vld [vmem:[%s7872_s15 + $0x38] sm:$0xff]   ;;  %v7345_v46 = vld [vmem:[%s7872_s15 + $0x100] sm:$0xff]  }
  0x1c   : > { %6602 = vmatpush3.bf16.msra.mxu0 %v7320_v10  ;;  %v7337_v32 = vld [vmem:[%s7872_s15 + $0xb0] sm:$0xff]   ;;  %v7341_v37 = vld [vmem:[%s7872_s15 + $0xb8] sm:$0xff]   ;;  %v7346_v48 = vld [vmem:[%s7872_s15 + $0x180] sm:$0xff]  }
  0x1d   : > { %6624 = vmatpush3.bf16.msra.mxu1 %v7321_v11  ;;  %6603 = vmatprep.subr.bf16.mxu0 %v7322_v12  ;;  %v7347_v51 = vld [vmem:[%s7872_s15 + $0x148] sm:$0xff]   ;;  %v7351_v58 = vld [vmem:[%s7872_s15 + $0x150] sm:$0xff]   ;;  %v7355_v62 = vld [vmem:[%s7872_s15 + $0x158] sm:$0xff]  }
  0x1e   : > { %6625 = vmatprep.subr.bf16.mxu1 %v7323_v13  ;;  %v7348_v53 = vld [vmem:[%s7872_s15 + $0x1c8] sm:$0xff]   ;;  %v7352_v59 = vld [vmem:[%s7872_s15 + $0x1d0] sm:$0xff]   ;;  %v7356_v63 = vld [vmem:[%s7872_s15 + $0x1d8] sm:$0xff]  }
  0x1f   : > { %v7349_v55 = vld [vmem:[%s7872_s15 + $0x108] sm:$0xff]   ;;  %v7353_v60 = vld [vmem:[%s7872_s15 + $0x110] sm:$0xff]   ;;  %v7357_v0 = vld [vmem:[%s7872_s15 + $0x118] sm:$0xff]  }
  0x20   : > { %6604 = vmatpush3.bf16.msra.mxu0 %v7324_v14  ;;  %v7350_v56 = vld [vmem:[%s7872_s15 + $0x188] sm:$0xff]   ;;  %v7354_v61 = vld [vmem:[%s7872_s15 + $0x190] sm:$0xff]   ;;  %v7358_v1 = vld [vmem:[%s7872_s15 + $0x198] sm:$0xff]  }
  0x21   : > { %6626 = vmatpush3.bf16.msra.mxu1 %v7325_v15  ;;  %6605 = vmatprep.subr.bf16.mxu0 %v7326_v16  ;;  %v7359_v2 = vld [vmem:[%s7872_s15 + $0x160] sm:$0xff]   ;;  %v7363_v6 = vld [vmem:[%s7872_s15 + $0x168] sm:$0xff]   ;;  %v7367_v10 = vld [vmem:[%s7872_s15 + $0x170] sm:$0xff]  }
  0x22   : > { %6627 = vmatprep.subr.bf16.mxu1 %v7327_v17  ;;  %v7360_v3 = vld [vmem:[%s7872_s15 + $0x1e0] sm:$0xff]   ;;  %v7364_v7 = vld [vmem:[%s7872_s15 + $0x1e8] sm:$0xff]   ;;  %v7368_v11 = vld [vmem:[%s7872_s15 + $0x1f0] sm:$0xff]  }
  0x23   : > { %v7361_v4 = vld [vmem:[%s7872_s15 + $0x120] sm:$0xff]   ;;  %v7365_v8 = vld [vmem:[%s7872_s15 + $0x128] sm:$0xff]   ;;  %v7369_v12 = vld [vmem:[%s7872_s15 + $0x130] sm:$0xff]  }
  0x24   : > { %6606 = vmatpush3.bf16.msra.mxu0 %v7328_v18  ;;  %v7362_v5 = vld [vmem:[%s7872_s15 + $0x1a0] sm:$0xff]   ;;  %v7366_v9 = vld [vmem:[%s7872_s15 + $0x1a8] sm:$0xff]   ;;  %v7370_v13 = vld [vmem:[%s7872_s15 + $0x1b0] sm:$0xff]   ;;  %v1232_v18 = vrot.slane %v7920_v45, %v7910_v35 }
  0x25   : > { %6628 = vmatpush3.bf16.msra.mxu1 %v7329_v19  ;;  %6607 = vmatprep.subr.bf16.mxu0 %v7330_v20  ;;  %v7371_v14 = vld [vmem:[%s7872_s15 + $0x178] sm:$0xff]   ;;  %v7375_v19 = vld [vmem:[%s7872_s15 + $0x240] sm:$0xff]   ;;  %v7379_v24 = vld [vmem:[%s7872_s15 + $0x248] sm:$0xff]  }
  0x26   : > { %6629 = vmatprep.subr.bf16.mxu1 %v7331_v22  ;;  %v7372_v15 = vld [vmem:[%s7872_s15 + $0x1f8] sm:$0xff]   ;;  %v7376_v20 = vld [vmem:[%s7872_s15 + $0x2c0] sm:$0xff]   ;;  %v1248_v23 = vcombine.high %v1232_v18, %v1232_v18  ;;  %v7383_v28 = vld [vmem:[%s7872_s15 + $0x250] sm:$0xff]  }
  0x27   : > { %v7373_v16 = vld [vmem:[%s7872_s15 + $0x138] sm:$0xff]   ;;  %v7377_v21 = vld [vmem:[%s7872_s15 + $0x200] sm:$0xff]   ;;  %v7385_v30 = vld [vmem:[%s7872_s15 + $0x210] sm:$0xff]  }
  0x28   : > { %6608 = vmatpush3.bf16.msra.mxu0 %v7332_v25  ;;  %v7374_v17 = vld [vmem:[%s7872_s15 + $0x1b8] sm:$0xff]   ;;  %v7378_v22 = vld [vmem:[%s7872_s15 + $0x280] sm:$0xff]   ;;  %v7380_v25 = vld [vmem:[%s7872_s15 + $0x2c8] sm:$0xff]  }
  0x29   : > { %6630 = vmatpush3.bf16.msra.mxu1 %v7333_v26  ;;  %6609 = vmatprep.subr.bf16.mxu0 %v7334_v27  ;;  %v7381_v26 = vld [vmem:[%s7872_s15 + $0x208] sm:$0xff]   ;;  %v7392_v38 = vld [vmem:[%s7872_s15 + $0x2e0] sm:$0xff]   ;;  %v7399_v45 = vld [vmem:[%s7872_s15 + $0x270] sm:$0xff]  }
  0x2a   : > { %6631 = vmatprep.subr.bf16.mxu1 %v7335_v29  ;;  %v7382_v27 = vld [vmem:[%s7872_s15 + $0x288] sm:$0xff]   ;;  %v7384_v29 = vld [vmem:[%s7872_s15 + $0x2d0] sm:$0xff]   ;;  %v7393_v39 = vld [vmem:[%s7872_s15 + $0x220] sm:$0xff]  }
  0x2b   : > { %v7394_v40 = vld [vmem:[%s7872_s15 + $0x2a0] sm:$0xff]   ;;  %v7397_v43 = vld [vmem:[%s7872_s15 + $0x228] sm:$0xff]   ;;  %v7401_v47 = vld [vmem:[%s7872_s15 + $0x230] sm:$0xff]  }
  0x2c   : > { %6610 = vmatpush3.bf16.msra.mxu0 %v7336_v31  ;;  %v7386_v31 = vld [vmem:[%s7872_s15 + $0x290] sm:$0xff]   ;;  %v7403_v49 = vld [vmem:[%s7872_s15 + $0x278] sm:$0xff]   ;;  %v163_v52 = vld [vmem:[%s7908_s19 + $0x8] sm:$0xff] }
  0x2d   : > { %6632 = vmatpush3.bf16.msra.mxu1 %v7337_v32  ;;  %6611 = vmatprep.subr.bf16.mxu0 %v7338_v33  ;;  %v7387_v32 = vld [vmem:[%s7872_s15 + $0x258] sm:$0xff]  }
  0x2e   : > { %6633 = vmatprep.subr.bf16.mxu1 %v7339_v34  ;;  %v7388_v33 = vld [vmem:[%s7872_s15 + $0x2d8] sm:$0xff]  }
  0x2f   : > { %v7389_v34 = vld [vmem:[%s7872_s15 + $0x218] sm:$0xff]  }
  0x30   : > { %6612 = vmatpush3.bf16.msra.mxu0 %v7340_v36  ;;  %v7390_v36 = vld [vmem:[%s7872_s15 + $0x298] sm:$0xff]  }
  0x31   : > { %6634 = vmatpush3.bf16.msra.mxu1 %v7341_v37  ;;  %6641 = vmatprep.subr.bf16.mxu0 %v7343_v41  ;;  %v7391_v37 = vld [vmem:[%s7872_s15 + $0x260] sm:$0xff]   ;;  %v7395_v41 = vld [vmem:[%s7872_s15 + $0x268] sm:$0xff]  }
  0x32   : > { %6663 = vmatprep.subr.bf16.mxu1 %v7344_v42  ;;  %v7396_v42 = vld [vmem:[%s7872_s15 + $0x2e8] sm:$0xff]  }
  0x33   : > { %4763 = vmatmul.mubr.bf16.vlgmr.msra.gmra.mrb[0].mxu0 %v1225_v44  ;;  %v7398_v44 = vld [vmem:[%s7872_s15 + $0x2a8] sm:$0xff]  }
  0x34   : > { %6642 = vmatpush3.bf16.msra.mxu0 %v7345_v46  ;;  %4803 = vmatmul.mubr.bf16.vlgmr.msra.gmra.mrb[0].mxu1 %v1247_v50  ;;  %v7400_v46 = vld [vmem:[%s7872_s15 + $0x2f0] sm:$0xff]   ;;  %v7404_v50 = vld [vmem:[%s7872_s15 + $0x2f8] sm:$0xff]  }
  0x35   : > { %6643 = vmatprep.subr.bf16.mxu0 %v7347_v51  ;;  %6664 = vmatpush3.bf16.msra.mxu1 %v7346_v48  ;;  %v7402_v48 = vld [vmem:[%s7872_s15 + $0x2b0] sm:$0xff]   ;;  %v7405_v51 = vld [vmem:[%s7872_s15 + $0x238] sm:$0xff]  }
  0x36   : > { %4842 = vmatprep.mubr.bf16.mxu0 %v1246_v54  ;;  %6665 = vmatprep.subr.bf16.mxu1 %v7348_v53  ;;  %v7406_v53 = vld [vmem:[%s7872_s15 + $0x2b8] sm:$0xff]   ;;  %v1258_v54 = vrot.slane %v163_v52, %v7910_v35 }
  0x37   : > { %4882 = vmatprep.mubr.bf16.mxu1 %v1250_v57 }
  0x38   : > { %6644 = vmatpush3.bf16.msra.mxu0 %v7349_v55  ;;  %v1251_v55 = vcombine.high %v163_v52, %v163_v52  ;;  %v1266_v57 = vcombine.high %v1258_v54, %v1258_v54  ;;  %v7456_v52 = vld [vmem:[%s7872_s15 + $0x460] sm:$0xff]  }
  0x39   : > { %6645 = vmatprep.subr.bf16.mxu0 %v7351_v58  ;;  %6666 = vmatpush3.bf16.msra.mxu1 %v7350_v56  ;;  %v7407_v56 = vld [vmem:[%s7872_s15 + $0x340] sm:$0xff]   ;;  %v1274_v58 = vrot.slane %v1258_v54, %v7910_v35 }
  0x3a   : > { %6667 = vmatprep.subr.bf16.mxu1 %v7352_v59  ;;  %v7408_v59 = vld [vmem:[%s7872_s15 + $0x3c0] sm:$0xff]  }
  0x3b   : > { %v7458_v54 = vld [vmem:[%s7872_s15 + $0x420] sm:$0xff]  }
  0x3c   : > { %6646 = vmatpush3.bf16.msra.mxu0 %v7353_v60  ;;  %v7996_v60 = vrot.slane %v1251_v55, %v7910_v35  ;;  %v7459_v55 = vld [vmem:[%s7872_s15 + $0x4a0] sm:$0xff]  }
  0x3d   : > { %6647 = vmatprep.subr.bf16.mxu0 %v7355_v62  ;;  %6668 = vmatpush3.bf16.msra.mxu1 %v7354_v61  ;;  %v7409_v61 = vld [vmem:[%s7872_s15 + $0x300] sm:$0xff]   ;;  %v1288_v62 = vrot.slane %v1266_v57, %v7910_v35  ;;  %v7461_v57 = vld [vmem:[%s7872_s15 + $0x4e8] sm:$0xff]  }
  0x3e   : > { %6669 = vmatprep.subr.bf16.mxu1 %v7356_v63  ;;  %v7410_v63 = vld [vmem:[%s7872_s15 + $0x380] sm:$0xff]  }
  0x40   : > { %6648 = vmatpush3.bf16.msra.mxu0 %v7357_v0  ;;  %v1267_v0 = vcombine.high %v7996_v60, %v7996_v60 }
  0x41   : > { %6649 = vmatprep.subr.bf16.mxu0 %v7359_v2  ;;  %6670 = vmatpush3.bf16.msra.mxu1 %v7358_v1  ;;  %v1296_v1 = vcombine.high %v1274_v58, %v1274_v58  ;;  %v7411_v2 = vld [vmem:[%s7872_s15 + $0x348] sm:$0xff]  }
  0x42   : > { %6671 = vmatprep.subr.bf16.mxu1 %v7360_v3  ;;  %v1298_v3 = vcombine.high %v1288_v62, %v1288_v62 }
  0x44   : > { %6650 = vmatpush3.bf16.msra.mxu0 %v7361_v4  ;;  %v7412_v4 = vld [vmem:[%s7872_s15 + $0x3c8] sm:$0xff]  }
  0x45   : > { %6651 = vmatprep.subr.bf16.mxu0 %v7363_v6  ;;  %6672 = vmatpush3.bf16.msra.mxu1 %v7362_v5  ;;  %v1295_v5 = vrot.slane %v1267_v0, %v7910_v35  ;;  %v7413_v6 = vld [vmem:[%s7872_s15 + $0x308] sm:$0xff]   ;;  %v7468_v0 = vld [vmem:[%s7872_s15 + $0x478] sm:$0xff]  }
  0x46   : > { %6673 = vmatprep.subr.bf16.mxu1 %v7364_v7  ;;  %v7414_v7 = vld [vmem:[%s7872_s15 + $0x388] sm:$0xff]  }
  0x48   : > { %6652 = vmatpush3.bf16.msra.mxu0 %v7365_v8  ;;  %v1299_v8 = vcombine.high %v1295_v5, %v1295_v5 }
  0x49   : > { %6653 = vmatprep.subr.bf16.mxu0 %v7367_v10  ;;  %6674 = vmatpush3.bf16.msra.mxu1 %v7366_v9  ;;  %v7415_v9 = vld [vmem:[%s7872_s15 + $0x350] sm:$0xff]  }
  0x4a   : > { %6675 = vmatprep.subr.bf16.mxu1 %v7368_v11  ;;  %v7416_v10 = vld [vmem:[%s7872_s15 + $0x3d0] sm:$0xff]  }
  0x4b   : > { %v7417_v11 = vld [vmem:[%s7872_s15 + $0x310] sm:$0xff]  }
  0x4c   : > { %6654 = vmatpush3.bf16.msra.mxu0 %v7369_v12  ;;  %v7418_v12 = vld [vmem:[%s7872_s15 + $0x390] sm:$0xff]  }
  0x4d   : > { %6655 = vmatprep.subr.bf16.mxu0 %v7371_v14  ;;  %6676 = vmatpush3.bf16.msra.mxu1 %v7370_v13  ;;  %v7419_v13 = vld [vmem:[%s7872_s15 + $0x358] sm:$0xff]  }
  0x4e   : > { %6677 = vmatprep.subr.bf16.mxu1 %v7372_v15  ;;  %v7420_v14 = vld [vmem:[%s7872_s15 + $0x3d8] sm:$0xff]  }
  0x4f   : > { %v7421_v15 = vld [vmem:[%s7872_s15 + $0x318] sm:$0xff]  }
  0x50   : > { %6656 = vmatpush3.bf16.msra.mxu0 %v7373_v16  ;;  %v7422_v16 = vld [vmem:[%s7872_s15 + $0x398] sm:$0xff]  }
  0x51   : > { %6685 = vmatprep.subr.bf16.mxu0 %v7375_v19  ;;  %6678 = vmatpush3.bf16.msra.mxu1 %v7374_v17  ;;  %v7423_v17 = vld [vmem:[%s7872_s15 + $0x360] sm:$0xff]  }
  0x52   : > { %6707 = vmatprep.subr.bf16.mxu1 %v7376_v20  ;;  %v7425_v19 = vld [vmem:[%s7872_s15 + $0x320] sm:$0xff]  }
  0x53   : > { %4843 = vmatmul.mubr.bf16.vlgmr.msra.gmra.mrb[4].mxu0 %v1232_v18  ;;  %v7424_v18 = vld [vmem:[%s7872_s15 + $0x3e0] sm:$0xff]  }
  0x54   : > { %6686 = vmatpush3.bf16.msra.mxu0 %v7377_v21  ;;  %4883 = vmatmul.mubr.bf16.vlgmr.msra.gmra.mrb[4].mxu1 %v1248_v23  ;;  %v7426_v20 = vld [vmem:[%s7872_s15 + $0x3a0] sm:$0xff]   ;;  %v7427_v21 = vld [vmem:[%s7872_s15 + $0x368] sm:$0xff]  }
  0x55   : > { %6687 = vmatprep.subr.bf16.mxu0 %v7379_v24  ;;  %6708 = vmatpush3.bf16.msra.mxu1 %v7378_v22  ;;  %v7428_v22 = vld [vmem:[%s7872_s15 + $0x3e8] sm:$0xff]  }
  0x56   : > { %6709 = vmatprep.subr.bf16.mxu1 %v7380_v25  ;;  %4922 = vmatprep.mubr.bf16.mxu0 %v1288_v62  ;;  %v7429_v23 = vld [vmem:[%s7872_s15 + $0x328] sm:$0xff]   ;;  %v7431_v25 = vld [vmem:[%s7872_s15 + $0x370] sm:$0xff]  }
  0x57   : > { %4962 = vmatprep.mubr.bf16.mxu1 %v1298_v3  ;;  %v7430_v24 = vld [vmem:[%s7872_s15 + $0x3a8] sm:$0xff]   ;;  %v7466_v62 = vld [vmem:[%s7872_s15 + $0x430] sm:$0xff]  }
  0x58   : > { %6688 = vmatpush3.bf16.msra.mxu0 %v7381_v26  ;;  %v7432_v26 = vld [vmem:[%s7872_s15 + $0x3f0] sm:$0xff]  }
  0x59   : > { %6689 = vmatprep.subr.bf16.mxu0 %v7383_v28  ;;  %6710 = vmatpush3.bf16.msra.mxu1 %v7382_v27  ;;  %v7433_v27 = vld [vmem:[%s7872_s15 + $0x330] sm:$0xff]  }
  0x5a   : > { %6711 = vmatprep.subr.bf16.mxu1 %v7384_v29  ;;  %v7434_v28 = vld [vmem:[%s7872_s15 + $0x3b0] sm:$0xff]   ;;  %v7435_v29 = vld [vmem:[%s7872_s15 + $0x378] sm:$0xff]  }
  0x5b   : > { %v164_v3 = vld [vmem:[%s7908_s19 + $0x10] sm:$0xff] }
  0x5c   : > { %6690 = vmatpush3.bf16.msra.mxu0 %v7385_v30  ;;  %v7436_v30 = vld [vmem:[%s7872_s15 + $0x3f8] sm:$0xff]  }
  0x5d   : > { %6691 = vmatprep.subr.bf16.mxu0 %v7387_v32  ;;  %6712 = vmatpush3.bf16.msra.mxu1 %v7386_v31  ;;  %v7437_v31 = vld [vmem:[%s7872_s15 + $0x338] sm:$0xff]  }
  0x5e   : > { %6713 = vmatprep.subr.bf16.mxu1 %v7388_v33  ;;  %v7438_v32 = vld [vmem:[%s7872_s15 + $0x3b8] sm:$0xff]   ;;  %v1281_v33 = vrot.slane %v7996_v60, %v7910_v35  ;;  %v7464_v60 = vld [vmem:[%s7872_s15 + $0x470] sm:$0xff]  }
  0x60   : > { %6692 = vmatpush3.bf16.msra.mxu0 %v7389_v34  ;;  %v7440_v34 = vld [vmem:[%s7872_s15 + $0x440] sm:$0xff]  }
  0x61   : > { %6693 = vmatprep.subr.bf16.mxu0 %v7391_v37  ;;  %6714 = vmatpush3.bf16.msra.mxu1 %v7390_v36  ;;  %v7441_v36 = vld [vmem:[%s7872_s15 + $0x4c0] sm:$0xff]  }
  0x62   : > { %6715 = vmatprep.subr.bf16.mxu1 %v7392_v38  ;;  %v7442_v37 = vld [vmem:[%s7872_s15 + $0x400] sm:$0xff]  }
  0x63   : > { %v7443_v38 = vld [vmem:[%s7872_s15 + $0x480] sm:$0xff]  }
  0x64   : > { %6694 = vmatpush3.bf16.msra.mxu0 %v7393_v39  ;;  %v1297_v39 = vcombine.high %v1281_v33, %v1281_v33 }
  0x65   : > { %6695 = vmatprep.subr.bf16.mxu0 %v7395_v41  ;;  %6716 = vmatpush3.bf16.msra.mxu1 %v7394_v40  ;;  %v7444_v40 = vld [vmem:[%s7872_s15 + $0x448] sm:$0xff]  }
  0x66   : > { %6717 = vmatprep.subr.bf16.mxu1 %v7396_v42  ;;  %v7445_v41 = vld [vmem:[%s7872_s15 + $0x4c8] sm:$0xff]  }
  0x67   : > { %v7446_v42 = vld [vmem:[%s7872_s15 + $0x408] sm:$0xff]  }
  0x68   : > { %6696 = vmatpush3.bf16.msra.mxu0 %v7397_v43  ;;  %v7447_v43 = vld [vmem:[%s7872_s15 + $0x488] sm:$0xff]  }
  0x69   : > { %6697 = vmatprep.subr.bf16.mxu0 %v7399_v45  ;;  %6718 = vmatpush3.bf16.msra.mxu1 %v7398_v44  ;;  %v7448_v44 = vld [vmem:[%s7872_s15 + $0x450] sm:$0xff]  }
  0x6a   : > { %6719 = vmatprep.subr.bf16.mxu1 %v7400_v46  ;;  %v7449_v45 = vld [vmem:[%s7872_s15 + $0x4d0] sm:$0xff]  }
  0x6b   : > { %v7450_v46 = vld [vmem:[%s7872_s15 + $0x410] sm:$0xff]  }
  0x6c   : > { %6698 = vmatpush3.bf16.msra.mxu0 %v7401_v47  ;;  %v7451_v47 = vld [vmem:[%s7872_s15 + $0x490] sm:$0xff]  }
  0x6d   : > { %6699 = vmatprep.subr.bf16.mxu0 %v7403_v49  ;;  %6720 = vmatpush3.bf16.msra.mxu1 %v7402_v48  ;;  %v7452_v48 = vld [vmem:[%s7872_s15 + $0x458] sm:$0xff]  }
  0x6e   : > { %6721 = vmatprep.subr.bf16.mxu1 %v7404_v50  ;;  %v7453_v49 = vld [vmem:[%s7872_s15 + $0x4d8] sm:$0xff]  }
  0x6f   : > { %v7454_v50 = vld [vmem:[%s7872_s15 + $0x418] sm:$0xff]  }
  0x70   : > { %6700 = vmatpush3.bf16.msra.mxu0 %v7405_v51  ;;  %v7455_v51 = vld [vmem:[%s7872_s15 + $0x498] sm:$0xff]  }
  0x71   : > { %6729 = vmatprep.subr.bf16.mxu0 %v7407_v56  ;;  %6722 = vmatpush3.bf16.msra.mxu1 %v7406_v53  ;;  %v7457_v53 = vld [vmem:[%s7872_s15 + $0x4e0] sm:$0xff]   ;;  %v7460_v56 = vld [vmem:[%s7872_s15 + $0x468] sm:$0xff]  }
  0x72   : > { %6751 = vmatprep.subr.bf16.mxu1 %v7408_v59  ;;  %v7463_v59 = vld [vmem:[%s7872_s15 + $0x4a8] sm:$0xff]  }
  0x73   : > { %4923 = vmatmul.mubr.bf16.vlgmr.msra.gmra.mrb[8].mxu0 %v1274_v58  ;;  %v7462_v58 = vld [vmem:[%s7872_s15 + $0x428] sm:$0xff]  }
  0x74   : > { %6730 = vmatpush3.bf16.msra.mxu0 %v7409_v61  ;;  %4963 = vmatmul.mubr.bf16.vlgmr.msra.gmra.mrb[8].mxu1 %v1296_v1  ;;  %v7465_v61 = vld [vmem:[%s7872_s15 + $0x4f0] sm:$0xff]   ;;  %v7469_v1 = vld [vmem:[%s7872_s15 + $0x4f8] sm:$0xff]  }
  0x75   : > { %6731 = vmatprep.subr.bf16.mxu0 %v7411_v2  ;;  %6752 = vmatpush3.bf16.msra.mxu1 %v7410_v63  ;;  %v7467_v63 = vld [vmem:[%s7872_s15 + $0x4b0] sm:$0xff]   ;;  %v7470_v2 = vld [vmem:[%s7872_s15 + $0x438] sm:$0xff]  }
  0x76   : > { %5002 = vmatprep.mubr.bf16.mxu0 %v1295_v5  ;;  %6753 = vmatprep.subr.bf16.mxu1 %v7412_v4  ;;  %v7471_v4 = vld [vmem:[%s7872_s15 + $0x4b8] sm:$0xff]   ;;  %v1307_v5 = vrot.slane %v164_v3, %v7910_v35 }
  0x77   : > { %5042 = vmatprep.mubr.bf16.mxu1 %v1299_v8 }
  0x78   : > { %6732 = vmatpush3.bf16.msra.mxu0 %v7413_v6  ;;  %v1300_v6 = vcombine.high %v164_v3, %v164_v3  ;;  %v1315_v8 = vcombine.high %v1307_v5, %v1307_v5  ;;  %v7521_v3 = vld [vmem:[%s7872_s15 + $0x660] sm:$0xff]  }
  0x79   : > { %6733 = vmatprep.subr.bf16.mxu0 %v7415_v9  ;;  %6754 = vmatpush3.bf16.msra.mxu1 %v7414_v7  ;;  %v7472_v7 = vld [vmem:[%s7872_s15 + $0x540] sm:$0xff]   ;;  %v1323_v9 = vrot.slane %v1307_v5, %v7910_v35 }
  0x7a   : > { %6755 = vmatprep.subr.bf16.mxu1 %v7416_v10  ;;  %v7473_v10 = vld [vmem:[%s7872_s15 + $0x5c0] sm:$0xff]  }
  0x7b   : > { %v7523_v5 = vld [vmem:[%s7872_s15 + $0x620] sm:$0xff]  }
  0x7c   : > { %6734 = vmatpush3.bf16.msra.mxu0 %v7417_v11  ;;  %v8072_v11 = vrot.slane %v1300_v6, %v7910_v35  ;;  %v7524_v6 = vld [vmem:[%s7872_s15 + $0x6a0] sm:$0xff]  }
  0x7d   : > { %6735 = vmatprep.subr.bf16.mxu0 %v7419_v13  ;;  %6756 = vmatpush3.bf16.msra.mxu1 %v7418_v12  ;;  %v7474_v12 = vld [vmem:[%s7872_s15 + $0x500] sm:$0xff]   ;;  %v1337_v13 = vrot.slane %v1315_v8, %v7910_v35  ;;  %v7526_v8 = vld [vmem:[%s7872_s15 + $0x6e8] sm:$0xff]  }
  0x7e   : > { %6757 = vmatprep.subr.bf16.mxu1 %v7420_v14  ;;  %v7475_v14 = vld [vmem:[%s7872_s15 + $0x580] sm:$0xff]  }
  0x80   : > { %6736 = vmatpush3.bf16.msra.mxu0 %v7421_v15  ;;  %v1316_v15 = vcombine.high %v8072_v11, %v8072_v11 }
  0x81   : > { %6737 = vmatprep.subr.bf16.mxu0 %v7423_v17  ;;  %6758 = vmatpush3.bf16.msra.mxu1 %v7422_v16  ;;  %v1345_v16 = vcombine.high %v1323_v9, %v1323_v9  ;;  %v7476_v17 = vld [vmem:[%s7872_s15 + $0x548] sm:$0xff]  }
  0x82   : > { %6759 = vmatprep.subr.bf16.mxu1 %v7424_v18  ;;  %v1347_v18 = vcombine.high %v1337_v13, %v1337_v13 }
  0x84   : > { %6738 = vmatpush3.bf16.msra.mxu0 %v7425_v19  ;;  %v7477_v19 = vld [vmem:[%s7872_s15 + $0x5c8] sm:$0xff]  }
  0x85   : > { %6739 = vmatprep.subr.bf16.mxu0 %v7427_v21  ;;  %6760 = vmatpush3.bf16.msra.mxu1 %v7426_v20  ;;  %v1344_v20 = vrot.slane %v1316_v15, %v7910_v35  ;;  %v7478_v21 = vld [vmem:[%s7872_s15 + $0x508] sm:$0xff]   ;;  %v7533_v15 = vld [vmem:[%s7872_s15 + $0x678] sm:$0xff]  }
  0x86   : > { %6761 = vmatprep.subr.bf16.mxu1 %v7428_v22  ;;  %v7479_v22 = vld [vmem:[%s7872_s15 + $0x588] sm:$0xff]  }
  0x88   : > { %6740 = vmatpush3.bf16.msra.mxu0 %v7429_v23  ;;  %v1348_v23 = vcombine.high %v1344_v20, %v1344_v20 }
  0x89   : > { %6741 = vmatprep.subr.bf16.mxu0 %v7431_v25  ;;  %6762 = vmatpush3.bf16.msra.mxu1 %v7430_v24  ;;  %v7480_v24 = vld [vmem:[%s7872_s15 + $0x550] sm:$0xff]  }
  0x8a   : > { %6763 = vmatprep.subr.bf16.mxu1 %v7432_v26  ;;  %v7481_v25 = vld [vmem:[%s7872_s15 + $0x5d0] sm:$0xff]  }
  0x8b   : > { %v7482_v26 = vld [vmem:[%s7872_s15 + $0x510] sm:$0xff]  }
  0x8c   : > { %6742 = vmatpush3.bf16.msra.mxu0 %v7433_v27  ;;  %v7483_v27 = vld [vmem:[%s7872_s15 + $0x590] sm:$0xff]  }
  0x8d   : > { %6743 = vmatprep.subr.bf16.mxu0 %v7435_v29  ;;  %6764 = vmatpush3.bf16.msra.mxu1 %v7434_v28  ;;  %v7484_v28 = vld [vmem:[%s7872_s15 + $0x558] sm:$0xff]  }
  0x8e   : > { %6765 = vmatprep.subr.bf16.mxu1 %v7436_v30  ;;  %v7485_v29 = vld [vmem:[%s7872_s15 + $0x5d8] sm:$0xff]  }
  0x8f   : > { %v7486_v30 = vld [vmem:[%s7872_s15 + $0x518] sm:$0xff]  }
  0x90   : > { %6744 = vmatpush3.bf16.msra.mxu0 %v7437_v31  ;;  %v7487_v31 = vld [vmem:[%s7872_s15 + $0x598] sm:$0xff]  }
  0x91   : > { %6773 = vmatprep.subr.bf16.mxu0 %v7440_v34  ;;  %6766 = vmatpush3.bf16.msra.mxu1 %v7438_v32  ;;  %v7488_v32 = vld [vmem:[%s7872_s15 + $0x560] sm:$0xff]  }
  0x92   : > { %6795 = vmatprep.subr.bf16.mxu1 %v7441_v36  ;;  %v7490_v34 = vld [vmem:[%s7872_s15 + $0x520] sm:$0xff]  }
  0x93   : > { %5003 = vmatmul.mubr.bf16.vlgmr.msra.gmra.mrb[12].mxu0 %v1281_v33  ;;  %v7489_v33 = vld [vmem:[%s7872_s15 + $0x5e0] sm:$0xff]  }
  0x94   : > { %6774 = vmatpush3.bf16.msra.mxu0 %v7442_v37  ;;  %5043 = vmatmul.mubr.bf16.vlgmr.msra.gmra.mrb[12].mxu1 %v1297_v39  ;;  %v7491_v36 = vld [vmem:[%s7872_s15 + $0x5a0] sm:$0xff]   ;;  %v7492_v37 = vld [vmem:[%s7872_s15 + $0x568] sm:$0xff]  }
  0x95   : > { %6775 = vmatprep.subr.bf16.mxu0 %v7444_v40  ;;  %6796 = vmatpush3.bf16.msra.mxu1 %v7443_v38  ;;  %v7493_v38 = vld [vmem:[%s7872_s15 + $0x5e8] sm:$0xff]  }
  0x96   : > { %6797 = vmatprep.subr.bf16.mxu1 %v7445_v41  ;;  %5082 = vmatprep.mubr.bf16.mxu0 %v1337_v13  ;;  %v7494_v39 = vld [vmem:[%s7872_s15 + $0x528] sm:$0xff]   ;;  %v7496_v41 = vld [vmem:[%s7872_s15 + $0x570] sm:$0xff]  }
  0x97   : > { %5122 = vmatprep.mubr.bf16.mxu1 %v1347_v18  ;;  %v7495_v40 = vld [vmem:[%s7872_s15 + $0x5a8] sm:$0xff]   ;;  %v7531_v13 = vld [vmem:[%s7872_s15 + $0x630] sm:$0xff]   ;;  %v165_v18 = vld [vmem:[%s7908_s19 + $0x18] sm:$0xff] }
  0x98   : > { %6776 = vmatpush3.bf16.msra.mxu0 %v7446_v42  ;;  %v7497_v42 = vld [vmem:[%s7872_s15 + $0x5f0] sm:$0xff]  }
  0x99   : > { %6777 = vmatprep.subr.bf16.mxu0 %v7448_v44  ;;  %6798 = vmatpush3.bf16.msra.mxu1 %v7447_v43  ;;  %v7498_v43 = vld [vmem:[%s7872_s15 + $0x530] sm:$0xff]  }
  0x9a   : > { %6799 = vmatprep.subr.bf16.mxu1 %v7449_v45  ;;  %v7499_v44 = vld [vmem:[%s7872_s15 + $0x5b0] sm:$0xff]   ;;  %v7500_v45 = vld [vmem:[%s7872_s15 + $0x578] sm:$0xff]  }
  0x9c   : > { %6778 = vmatpush3.bf16.msra.mxu0 %v7450_v46  ;;  %v7501_v46 = vld [vmem:[%s7872_s15 + $0x5f8] sm:$0xff]  }
  0x9d   : > { %6779 = vmatprep.subr.bf16.mxu0 %v7452_v48  ;;  %6800 = vmatpush3.bf16.msra.mxu1 %v7451_v47  ;;  %v7502_v47 = vld [vmem:[%s7872_s15 + $0x538] sm:$0xff]  }
  0x9e   : > { %6801 = vmatprep.subr.bf16.mxu1 %v7453_v49  ;;  %v7503_v48 = vld [vmem:[%s7872_s15 + $0x5b8] sm:$0xff]   ;;  %v1330_v49 = vrot.slane %v8072_v11, %v7910_v35  ;;  %v7529_v11 = vld [vmem:[%s7872_s15 + $0x670] sm:$0xff]  }
  0xa0   : > { %6780 = vmatpush3.bf16.msra.mxu0 %v7454_v50  ;;  %v7505_v50 = vld [vmem:[%s7872_s15 + $0x640] sm:$0xff]  }
  0xa1   : > { %6781 = vmatprep.subr.bf16.mxu0 %v7456_v52  ;;  %6802 = vmatpush3.bf16.msra.mxu1 %v7455_v51  ;;  %v7506_v51 = vld [vmem:[%s7872_s15 + $0x6c0] sm:$0xff]  }
  0xa2   : > { %6803 = vmatprep.subr.bf16.mxu1 %v7457_v53  ;;  %v7507_v52 = vld [vmem:[%s7872_s15 + $0x600] sm:$0xff]  }
  0xa3   : > { %v7508_v53 = vld [vmem:[%s7872_s15 + $0x680] sm:$0xff]  }
  0xa4   : > { %6782 = vmatpush3.bf16.msra.mxu0 %v7458_v54  ;;  %v1346_v54 = vcombine.high %v1330_v49, %v1330_v49 }
  0xa5   : > { %6783 = vmatprep.subr.bf16.mxu0 %v7460_v56  ;;  %6804 = vmatpush3.bf16.msra.mxu1 %v7459_v55  ;;  %v7509_v55 = vld [vmem:[%s7872_s15 + $0x648] sm:$0xff]  }
  0xa6   : > { %6805 = vmatprep.subr.bf16.mxu1 %v7461_v57  ;;  %v7510_v56 = vld [vmem:[%s7872_s15 + $0x6c8] sm:$0xff]  }
  0xa7   : > { %v7511_v57 = vld [vmem:[%s7872_s15 + $0x608] sm:$0xff]  }
  0xa8   : > { %6784 = vmatpush3.bf16.msra.mxu0 %v7462_v58  ;;  %v7512_v58 = vld [vmem:[%s7872_s15 + $0x688] sm:$0xff]  }
  0xa9   : > { %6785 = vmatprep.subr.bf16.mxu0 %v7464_v60  ;;  %6806 = vmatpush3.bf16.msra.mxu1 %v7463_v59  ;;  %v7513_v59 = vld [vmem:[%s7872_s15 + $0x650] sm:$0xff]  }
  0xaa   : > { %6807 = vmatprep.subr.bf16.mxu1 %v7465_v61  ;;  %v7514_v60 = vld [vmem:[%s7872_s15 + $0x6d0] sm:$0xff]  }
  0xab   : > { %v7515_v61 = vld [vmem:[%s7872_s15 + $0x610] sm:$0xff]  }
  0xac   : > { %6786 = vmatpush3.bf16.msra.mxu0 %v7466_v62  ;;  %v7516_v62 = vld [vmem:[%s7872_s15 + $0x690] sm:$0xff]  }
  0xad   : > { %6787 = vmatprep.subr.bf16.mxu0 %v7468_v0  ;;  %6808 = vmatpush3.bf16.msra.mxu1 %v7467_v63  ;;  %v7517_v63 = vld [vmem:[%s7872_s15 + $0x658] sm:$0xff]  }
  0xae   : > { %6809 = vmatprep.subr.bf16.mxu1 %v7469_v1  ;;  %v7518_v0 = vld [vmem:[%s7872_s15 + $0x6d8] sm:$0xff]  }
  0xaf   : > { %v7519_v1 = vld [vmem:[%s7872_s15 + $0x618] sm:$0xff]  }
  0xb0   : > { %6788 = vmatpush3.bf16.msra.mxu0 %v7470_v2  ;;  %v7520_v2 = vld [vmem:[%s7872_s15 + $0x698] sm:$0xff]  }
  0xb1   : > { %6817 = vmatprep.subr.bf16.mxu0 %v7472_v7  ;;  %6810 = vmatpush3.bf16.msra.mxu1 %v7471_v4  ;;  %v7522_v4 = vld [vmem:[%s7872_s15 + $0x6e0] sm:$0xff]   ;;  %v7525_v7 = vld [vmem:[%s7872_s15 + $0x668] sm:$0xff]  }
  0xb2   : > { %6839 = vmatprep.subr.bf16.mxu1 %v7473_v10  ;;  %v7528_v10 = vld [vmem:[%s7872_s15 + $0x6a8] sm:$0xff]  }
  0xb3   : > { %5083 = vmatmul.mubr.bf16.vlgmr.msra.gmra.mrb[16].mxu0 %v1323_v9  ;;  %v7527_v9 = vld [vmem:[%s7872_s15 + $0x628] sm:$0xff]  }
  0xb4   : > { %6818 = vmatpush3.bf16.msra.mxu0 %v7474_v12  ;;  %5123 = vmatmul.mubr.bf16.vlgmr.msra.gmra.mrb[16].mxu1 %v1345_v16  ;;  %v7530_v12 = vld [vmem:[%s7872_s15 + $0x6f0] sm:$0xff]   ;;  %v7534_v16 = vld [vmem:[%s7872_s15 + $0x6f8] sm:$0xff]  }
  0xb5   : > { %6819 = vmatprep.subr.bf16.mxu0 %v7476_v17  ;;  %6840 = vmatpush3.bf16.msra.mxu1 %v7475_v14  ;;  %v7532_v14 = vld [vmem:[%s7872_s15 + $0x6b0] sm:$0xff]   ;;  %v7535_v17 = vld [vmem:[%s7872_s15 + $0x638] sm:$0xff]  }
  0xb6   : > { %5162 = vmatprep.mubr.bf16.mxu0 %v1344_v20  ;;  %6841 = vmatprep.subr.bf16.mxu1 %v7477_v19  ;;  %v1356_v19 = vrot.slane %v165_v18, %v7910_v35  ;;  %v7537_v20 = vld [vmem:[%s7872_s15 + $0x740] sm:$0xff]  }
  0xb7   : > { %5202 = vmatprep.mubr.bf16.mxu1 %v1348_v23 }
  0xb8   : > { %6820 = vmatpush3.bf16.msra.mxu0 %v7478_v21  ;;  %v1349_v21 = vcombine.high %v165_v18, %v165_v18  ;;  %v1364_v23 = vcombine.high %v1356_v19, %v1356_v19  ;;  %v7575_v18 = vld [vmem:[%s7872_s15 + $0x8c8] sm:$0xff]  }
  0xb9   : > { %6821 = vmatprep.subr.bf16.mxu0 %v7480_v24  ;;  %6842 = vmatpush3.bf16.msra.mxu1 %v7479_v22  ;;  %v7536_v22 = vld [vmem:[%s7872_s15 + $0x6b8] sm:$0xff]   ;;  %v1372_v24 = vrot.slane %v1356_v19, %v7910_v35  ;;  %v7576_v19 = vld [vmem:[%s7872_s15 + $0x808] sm:$0xff]  }
  0xba   : > { %6843 = vmatprep.subr.bf16.mxu1 %v7481_v25  ;;  %v7538_v25 = vld [vmem:[%s7872_s15 + $0x7c0] sm:$0xff]  }
  0xbc   : > { %6822 = vmatpush3.bf16.msra.mxu0 %v7482_v26  ;;  %v8148_v26 = vrot.slane %v1349_v21, %v7910_v35  ;;  %v7577_v21 = vld [vmem:[%s7872_s15 + $0x888] sm:$0xff]  }
  0xbd   : > { %6823 = vmatprep.subr.bf16.mxu0 %v7484_v28  ;;  %6844 = vmatpush3.bf16.msra.mxu1 %v7483_v27  ;;  %v1386_v27 = vrot.slane %v1364_v23, %v7910_v35  ;;  %v7539_v28 = vld [vmem:[%s7872_s15 + $0x700] sm:$0xff]   ;;  %v7580_v23 = vld [vmem:[%s7872_s15 + $0x810] sm:$0xff]  }
  0xbe   : > { %6845 = vmatprep.subr.bf16.mxu1 %v7485_v29  ;;  %v1365_v29 = vcombine.high %v8148_v26, %v8148_v26 }
  0xc0   : > { %6824 = vmatpush3.bf16.msra.mxu0 %v7486_v30  ;;  %v1394_v30 = vcombine.high %v1372_v24, %v1372_v24 }
  0xc1   : > { %6825 = vmatprep.subr.bf16.mxu0 %v7488_v32  ;;  %6846 = vmatpush3.bf16.msra.mxu1 %v7487_v31  ;;  %v7541_v31 = vld [vmem:[%s7872_s15 + $0x748] sm:$0xff]   ;;  %v1396_v32 = vcombine.high %v1386_v27, %v1386_v27 }
  0xc2   : > { %6847 = vmatprep.subr.bf16.mxu1 %v7489_v33  ;;  %v7540_v33 = vld [vmem:[%s7872_s15 + $0x780] sm:$0xff]  }
  0xc4   : > { %6826 = vmatpush3.bf16.msra.mxu0 %v7490_v34  ;;  %v1393_v34 = vrot.slane %v1365_v29, %v7910_v35  ;;  %v7585_v29 = vld [vmem:[%s7872_s15 + $0x898] sm:$0xff]  }
  0xc5   : > { %6827 = vmatprep.subr.bf16.mxu0 %v7492_v37  ;;  %6848 = vmatpush3.bf16.msra.mxu1 %v7491_v36  ;;  %v7542_v36 = vld [vmem:[%s7872_s15 + $0x7c8] sm:$0xff]  }
  0xc6   : > { %6849 = vmatprep.subr.bf16.mxu1 %v7493_v38  ;;  %v7543_v37 = vld [vmem:[%s7872_s15 + $0x708] sm:$0xff]   ;;  %v1397_v38 = vcombine.high %v1393_v34, %v1393_v34 }
  0xc8   : > { %6828 = vmatpush3.bf16.msra.mxu0 %v7494_v39  ;;  %v7545_v39 = vld [vmem:[%s7872_s15 + $0x750] sm:$0xff]  }
  0xc9   : > { %6829 = vmatprep.subr.bf16.mxu0 %v7496_v41  ;;  %6850 = vmatpush3.bf16.msra.mxu1 %v7495_v40  ;;  %v7544_v40 = vld [vmem:[%s7872_s15 + $0x788] sm:$0xff]   ;;  %v7546_v41 = vld [vmem:[%s7872_s15 + $0x7d0] sm:$0xff]  }
  0xca   : > { %6851 = vmatprep.subr.bf16.mxu1 %v7497_v42  ;;  %v7547_v42 = vld [vmem:[%s7872_s15 + $0x710] sm:$0xff]  }
  0xcc   : > { %6830 = vmatpush3.bf16.msra.mxu0 %v7498_v43  ;;  %v7549_v43 = vld [vmem:[%s7872_s15 + $0x758] sm:$0xff]  }
  0xcd   : > { %6831 = vmatprep.subr.bf16.mxu0 %v7500_v45  ;;  %6852 = vmatpush3.bf16.msra.mxu1 %v7499_v44  ;;  %v7548_v44 = vld [vmem:[%s7872_s15 + $0x790] sm:$0xff]   ;;  %v7550_v45 = vld [vmem:[%s7872_s15 + $0x7d8] sm:$0xff]  }
  0xce   : > { %6853 = vmatprep.subr.bf16.mxu1 %v7501_v46  ;;  %v7551_v46 = vld [vmem:[%s7872_s15 + $0x718] sm:$0xff]  }
  0xd0   : > { %6832 = vmatpush3.bf16.msra.mxu0 %v7502_v47  ;;  %v7553_v47 = vld [vmem:[%s7872_s15 + $0x760] sm:$0xff]  }
  0xd1   : > { %6861 = vmatprep.subr.bf16.mxu0 %v7505_v50  ;;  %6854 = vmatpush3.bf16.msra.mxu1 %v7503_v48  ;;  %v7552_v48 = vld [vmem:[%s7872_s15 + $0x798] sm:$0xff]   ;;  %v7555_v50 = vld [vmem:[%s7872_s15 + $0x720] sm:$0xff]  }
  0xd2   : > { %6883 = vmatprep.subr.bf16.mxu1 %v7506_v51  ;;  %v7557_v51 = vld [vmem:[%s7872_s15 + $0x768] sm:$0xff]  }
  0xd3   : > { %5163 = vmatmul.mubr.bf16.vlgmr.msra.gmra.mrb[20].mxu0 %v1330_v49  ;;  %v7554_v49 = vld [vmem:[%s7872_s15 + $0x7e0] sm:$0xff]  }
  0xd4   : > { %6862 = vmatpush3.bf16.msra.mxu0 %v7507_v52  ;;  %5203 = vmatmul.mubr.bf16.vlgmr.msra.gmra.mrb[20].mxu1 %v1346_v54  ;;  %v7556_v52 = vld [vmem:[%s7872_s15 + $0x7a0] sm:$0xff]   ;;  %v7559_v54 = vld [vmem:[%s7872_s15 + $0x728] sm:$0xff]  }
  0xd5   : > { %6863 = vmatprep.subr.bf16.mxu0 %v7509_v55  ;;  %6884 = vmatpush3.bf16.msra.mxu1 %v7508_v53  ;;  %v7558_v53 = vld [vmem:[%s7872_s15 + $0x7e8] sm:$0xff]  }
  0xd6   : > { %6885 = vmatprep.subr.bf16.mxu1 %v7510_v56  ;;  %5242 = vmatprep.mubr.bf16.mxu0 %v1386_v27  ;;  %v7561_v56 = vld [vmem:[%s7872_s15 + $0x770] sm:$0xff]   ;;  %v7584_v27 = vld [vmem:[%s7872_s15 + $0x818] sm:$0xff]  }
  0xd7   : > { %5282 = vmatprep.mubr.bf16.mxu1 %v1396_v32  ;;  %v7590_v32 = vld [vmem:[%s7872_s15 + $0x868] sm:$0xff]  }
  0xd8   : > { %6864 = vmatpush3.bf16.msra.mxu0 %v7511_v57 }
  0xd9   : > { %6865 = vmatprep.subr.bf16.mxu0 %v7513_v59  ;;  %6886 = vmatpush3.bf16.msra.mxu1 %v7512_v58  ;;  %v7560_v58 = vld [vmem:[%s7872_s15 + $0x7a8] sm:$0xff]  }
  0xda   : > { %6887 = vmatprep.subr.bf16.mxu1 %v7514_v60 }
  0xdc   : > { %6866 = vmatpush3.bf16.msra.mxu0 %v7515_v61 }
  0xdd   : > { %6867 = vmatprep.subr.bf16.mxu0 %v7517_v63  ;;  %6888 = vmatpush3.bf16.msra.mxu1 %v7516_v62  ;;  %v7562_v62 = vld [vmem:[%s7872_s15 + $0x7f0] sm:$0xff]  }
  0xde   : > { %6889 = vmatprep.subr.bf16.mxu1 %v7518_v0  ;;  %v7563_v63 = vld [vmem:[%s7872_s15 + $0x730] sm:$0xff]  }
  0xe0   : > { %6868 = vmatpush3.bf16.msra.mxu0 %v7519_v1 }
  0xe1   : > { %6869 = vmatprep.subr.bf16.mxu0 %v7521_v3  ;;  %6890 = vmatpush3.bf16.msra.mxu1 %v7520_v2 }
  0xe2   : > { %6891 = vmatprep.subr.bf16.mxu1 %v7522_v4  ;;  %v7565_v4 = vld [vmem:[%s7872_s15 + $0x778] sm:$0xff]  }
  0xe4   : > { %6870 = vmatpush3.bf16.msra.mxu0 %v7523_v5 }
  0xe5   : > { %6871 = vmatprep.subr.bf16.mxu0 %v7525_v7  ;;  %6892 = vmatpush3.bf16.msra.mxu1 %v7524_v6  ;;  %v7564_v6 = vld [vmem:[%s7872_s15 + $0x7b0] sm:$0xff]  }
  0xe6   : > { %6893 = vmatprep.subr.bf16.mxu1 %v7526_v8  ;;  %v7566_v8 = vld [vmem:[%s7872_s15 + $0x7f8] sm:$0xff]  }
  0xe8   : > { %6872 = vmatpush3.bf16.msra.mxu0 %v7527_v9  ;;  %v7567_v9 = vld [vmem:[%s7872_s15 + $0x738] sm:$0xff]  }
  0xe9   : > { %6873 = vmatprep.subr.bf16.mxu0 %v7529_v11  ;;  %6894 = vmatpush3.bf16.msra.mxu1 %v7528_v10  ;;  %v1379_v10 = vrot.slane %v8148_v26, %v7910_v35  ;;  %v7570_v11 = vld [vmem:[%s7872_s15 + $0x840] sm:$0xff]   ;;  %v7583_v26 = vld [vmem:[%s7872_s15 + $0x8d8] sm:$0xff]  }
  0xea   : > { %6895 = vmatprep.subr.bf16.mxu1 %v7530_v12  ;;  %v7568_v12 = vld [vmem:[%s7872_s15 + $0x7b8] sm:$0xff]  }
  0xec   : > { %6874 = vmatpush3.bf16.msra.mxu0 %v7531_v13  ;;  %v7571_v13 = vld [vmem:[%s7872_s15 + $0x8c0] sm:$0xff]  }
  0xed   : > { %6875 = vmatprep.subr.bf16.mxu0 %v7533_v15  ;;  %6896 = vmatpush3.bf16.msra.mxu1 %v7532_v14  ;;  %v7572_v14 = vld [vmem:[%s7872_s15 + $0x800] sm:$0xff]   ;;  %v1395_v15 = vcombine.high %v1379_v10, %v1379_v10 }
  0xee   : > { %6897 = vmatprep.subr.bf16.mxu1 %v7534_v16  ;;  %v7574_v16 = vld [vmem:[%s7872_s15 + $0x848] sm:$0xff]  }
  0xf0   : > { %6876 = vmatpush3.bf16.msra.mxu0 %v7535_v17  ;;  %v7573_v17 = vld [vmem:[%s7872_s15 + $0x880] sm:$0xff]  }
  0xf1   : > { %6905 = vmatprep.subr.bf16.mxu0 %v7537_v20  ;;  %6898 = vmatpush3.bf16.msra.mxu1 %v7536_v22  ;;  %v7578_v20 = vld [vmem:[%s7872_s15 + $0x850] sm:$0xff]  }
  0xf2   : > { %6927 = vmatprep.subr.bf16.mxu1 %v7538_v25  ;;  %v7579_v22 = vld [vmem:[%s7872_s15 + $0x8d0] sm:$0xff]  }
  0xf3   : > { %5243 = vmatmul.mubr.bf16.vlgmr.msra.gmra.mrb[24].mxu0 %v1372_v24  ;;  %v7582_v24 = vld [vmem:[%s7872_s15 + $0x858] sm:$0xff]   ;;  %v7581_v25 = vld [vmem:[%s7872_s15 + $0x890] sm:$0xff]  }
  0xf4   : > { %6906 = vmatpush3.bf16.msra.mxu0 %v7539_v28  ;;  %5283 = vmatmul.mubr.bf16.vlgmr.msra.gmra.mrb[24].mxu1 %v1394_v30  ;;  %v7586_v28 = vld [vmem:[%s7872_s15 + $0x860] sm:$0xff]  }
  0xf5   : > { %6907 = vmatprep.subr.bf16.mxu0 %v7541_v31  ;;  %6928 = vmatpush3.bf16.msra.mxu1 %v7540_v33  ;;  %v7587_v30 = vld [vmem:[%s7872_s15 + $0x8e0] sm:$0xff]  }
  0xf6   : > { %5322 = vmatprep.mubr.bf16.mxu0 %v1393_v34  ;;  %6929 = vmatprep.subr.bf16.mxu1 %v7542_v36  ;;  %v7588_v31 = vld [vmem:[%s7872_s15 + $0x820] sm:$0xff]   ;;  %v7591_v34 = vld [vmem:[%s7872_s15 + $0x8e8] sm:$0xff]  }
  0xf7   : > { %5362 = vmatprep.mubr.bf16.mxu1 %v1397_v38  ;;  %v7589_v33 = vld [vmem:[%s7872_s15 + $0x8a0] sm:$0xff]   ;;  %v7592_v36 = vld [vmem:[%s7872_s15 + $0x828] sm:$0xff]   ;;  %v7594_v38 = vld [vmem:[%s7872_s15 + $0x870] sm:$0xff]  }
  0xf8   : > { %6908 = vmatpush3.bf16.msra.mxu0 %v7543_v37 }
  0xf9   : > { %6909 = vmatprep.subr.bf16.mxu0 %v7545_v39  ;;  %6930 = vmatpush3.bf16.msra.mxu1 %v7544_v40  ;;  %v7593_v40 = vld [vmem:[%s7872_s15 + $0x8a8] sm:$0xff]  }
  0xfa   : > { %6931 = vmatprep.subr.bf16.mxu1 %v7546_v41 }
  0xfc   : > { %6910 = vmatpush3.bf16.msra.mxu0 %v7547_v42 }
  0xfd   : > { %6911 = vmatprep.subr.bf16.mxu0 %v7549_v43  ;;  %6932 = vmatpush3.bf16.msra.mxu1 %v7548_v44  ;;  %v7595_v44 = vld [vmem:[%s7872_s15 + $0x8f0] sm:$0xff]  }
  0xfe   : > { %6933 = vmatprep.subr.bf16.mxu1 %v7550_v45  ;;  %v7596_v45 = vld [vmem:[%s7872_s15 + $0x830] sm:$0xff]  }
 0x100   : > { %6912 = vmatpush3.bf16.msra.mxu0 %v7551_v46 }
 0x101   : > { %6913 = vmatprep.subr.bf16.mxu0 %v7553_v47  ;;  %6934 = vmatpush3.bf16.msra.mxu1 %v7552_v48  ;;  %v7597_v48 = vld [vmem:[%s7872_s15 + $0x8b0] sm:$0xff]  }
 0x102   : > { %6935 = vmatprep.subr.bf16.mxu1 %v7554_v49 }
 0x104   : > { %6914 = vmatpush3.bf16.msra.mxu0 %v7555_v50 }
 0x105   : > { %6915 = vmatprep.subr.bf16.mxu0 %v7557_v51  ;;  %6936 = vmatpush3.bf16.msra.mxu1 %v7556_v52  ;;  %v7598_v52 = vld [vmem:[%s7872_s15 + $0x878] sm:$0xff]  }
 0x106   : > { %v6613_v55 = vpop.f32.mrb[0].mxu0  ;;  %6937 = vmatprep.subr.bf16.mxu1 %v7558_v53 }
 0x107   : > { %v6614_v57 = vpop.f32.mrb[1].mxu0  ;;  %v6635_v59 = vpop.f32.mrb[0].mxu1 }
 0x108   : > { %v6615_v60 = vadd.f32 %v6614_v57, %v6613_v55  ;;  %v6616_v61 = vpop.f32.mrb[2].mxu0  ;;  %v6636_v0 = vpop.f32.mrb[1].mxu1  ;;  %6916 = vmatpush3.bf16.msra.mxu0 %v7559_v54  ;;  %v7599_v54 = vld [vmem:[%s7872_s15 + $0x8f8] sm:$0xff]   ;;  %v166_v57 = vld [vmem:[%s7908_s19 + $0x20] sm:$0xff] }
 0x109   : > { %v6617_v1 = vpop.f32.mrb[3].mxu0  ;;  %v6637_v2 = vadd.f32 %v6636_v0, %v6635_v59  ;;  %v6638_v3 = vpop.f32.mrb[2].mxu1  ;;  %6917 = vmatprep.subr.bf16.mxu0 %v7561_v56  ;;  %6938 = vmatpush3.bf16.msra.mxu1 %v7560_v58  ;;  %v7600_v56 = vld [vmem:[%s7872_s15 + $0x838] sm:$0xff]   ;;  %v1405_v58 = vrot.slane %v166_v57, %v7910_v35  ;;  %v7602_v59 = vld [vmem:[%s7872_s15 + $0x940] sm:$0xff]  }
 0x10a   : > { %v6639_v5 = vpop.f32.mrb[3].mxu1  ;;  %6939 = vmatprep.subr.bf16.mxu1 %v7562_v62  ;;  %v7601_v61 = vld [vmem:[%s7872_s15 + $0x8b8] sm:$0xff]   ;;  %v7603_v0 = vld [vmem:[%s7872_s15 + $0x9c0] sm:$0xff]  }
 0x10b   : > { %v8181_v7 = vadd.f32 %v6637_v2, %v6615_v60  ;;  %v1398_v60 = vcombine.high %v166_v57, %v166_v57  ;;  %v1413_v62 = vcombine.high %v1405_v58, %v1405_v58  ;;  %v7604_v2 = vld [vmem:[%s7872_s15 + $0x900] sm:$0xff]   ;;  %v7639_v57 = vld [vmem:[%s7872_s15 + $0xa48] sm:$0xff]  }
 0x10c   : > { %6918 = vmatpush3.bf16.msra.mxu0 %v7563_v63  ;;  %v1421_v63 = vrot.slane %v1405_v58, %v7910_v35  ;;  %v7640_v58 = vld [vmem:[%s7872_s15 + $0xac8] sm:$0xff]  }
 0x10d   : > { %6919 = vmatprep.subr.bf16.mxu0 %v7565_v4  ;;  %6940 = vmatpush3.bf16.msra.mxu1 %v7564_v6  ;;  %v8229_v1 = vrot.slane %v1398_v60, %v7910_v35  ;;  %v1435_v3 = vrot.slane %v1413_v62, %v7910_v35  ;;  %v7605_v4 = vld [vmem:[%s7872_s15 + $0x980] sm:$0xff]   ;;  %v7642_v60 = vld [vmem:[%s7872_s15 + $0xa88] sm:$0xff]   ;;  %v7644_v62 = vld [vmem:[%s7872_s15 + $0xad0] sm:$0xff]  }
 0x10e   : > { %6941 = vmatprep.subr.bf16.mxu1 %v7566_v8  ;;  %v1443_v6 = vcombine.high %v1421_v63, %v1421_v63 }
 0x10f   : > { %v1414_v5 = vcombine.high %v8229_v1, %v8229_v1  ;;  %v1445_v8 = vcombine.high %v1435_v3, %v1435_v3 }
 0x110   : > { %6920 = vmatpush3.bf16.msra.mxu0 %v7567_v9  ;;  %v7607_v9 = vld [vmem:[%s7872_s15 + $0x9c8] sm:$0xff]  }
 0x111   : > { %6949 = vmatprep.subr.bf16.mxu0 %v7570_v11  ;;  %6942 = vmatpush3.bf16.msra.mxu1 %v7568_v12  ;;  %v7608_v11 = vld [vmem:[%s7872_s15 + $0x908] sm:$0xff]  }
 0x112   : > { %6971 = vmatprep.subr.bf16.mxu1 %v7571_v13  ;;  %v7609_v12 = vld [vmem:[%s7872_s15 + $0x988] sm:$0xff]  }
 0x113   : > { %5323 = vmatmul.mubr.bf16.vlgmr.msra.gmra.mrb[28].mxu0 %v1379_v10  ;;  %v1442_v10 = vrot.slane %v1414_v5, %v7910_v35  ;;  %v7651_v5 = vld [vmem:[%s7872_s15 + $0xa60] sm:$0xff]  }
 0x114   : > { %6950 = vmatpush3.bf16.msra.mxu0 %v7572_v14  ;;  %5363 = vmatmul.mubr.bf16.vlgmr.msra.gmra.mrb[28].mxu1 %v1395_v15  ;;  %v7610_v14 = vld [vmem:[%s7872_s15 + $0x950] sm:$0xff]  }
 0x115   : > { %6951 = vmatprep.subr.bf16.mxu0 %v7574_v16  ;;  %6972 = vmatpush3.bf16.msra.mxu1 %v7573_v17  ;;  %v1446_v13 = vcombine.high %v1442_v10, %v1442_v10  ;;  %v7611_v15 = vld [vmem:[%s7872_s15 + $0x9d0] sm:$0xff]  }
 0x116   : > { %6973 = vmatprep.subr.bf16.mxu1 %v7575_v18  ;;  %5402 = vmatprep.mubr.bf16.mxu0 %v1435_v3  ;;  %v7612_v16 = vld [vmem:[%s7872_s15 + $0x910] sm:$0xff]   ;;  %v7614_v18 = vld [vmem:[%s7872_s15 + $0x958] sm:$0xff]  }
 0x117   : > { %5442 = vmatprep.mubr.bf16.mxu1 %v1445_v8  ;;  %v7613_v17 = vld [vmem:[%s7872_s15 + $0x990] sm:$0xff]   ;;  %v7649_v3 = vld [vmem:[%s7872_s15 + $0xa18] sm:$0xff]   ;;  %v7654_v8 = vld [vmem:[%s7872_s15 + $0xaa0] sm:$0xff]  }
 0x118   : > { %6952 = vmatpush3.bf16.msra.mxu0 %v7576_v19  ;;  %v7615_v19 = vld [vmem:[%s7872_s15 + $0x9d8] sm:$0xff]  }
 0x119   : > { %6953 = vmatprep.subr.bf16.mxu0 %v7578_v20  ;;  %6974 = vmatpush3.bf16.msra.mxu1 %v7577_v21  ;;  %v7616_v20 = vld [vmem:[%s7872_s15 + $0x918] sm:$0xff]  }
 0x11a   : > { %6975 = vmatprep.subr.bf16.mxu1 %v7579_v22  ;;  %v7617_v21 = vld [vmem:[%s7872_s15 + $0x998] sm:$0xff]   ;;  %v7618_v22 = vld [vmem:[%s7872_s15 + $0x960] sm:$0xff]  }
 0x11c   : > { %6954 = vmatpush3.bf16.msra.mxu0 %v7580_v23  ;;  %v7619_v23 = vld [vmem:[%s7872_s15 + $0x9e0] sm:$0xff]  }
 0x11d   : > { %6955 = vmatprep.subr.bf16.mxu0 %v7582_v24  ;;  %6976 = vmatpush3.bf16.msra.mxu1 %v7581_v25  ;;  %v7620_v24 = vld [vmem:[%s7872_s15 + $0x920] sm:$0xff]  }
 0x11e   : > { %6977 = vmatprep.subr.bf16.mxu1 %v7583_v26  ;;  %v7621_v25 = vld [vmem:[%s7872_s15 + $0x9a0] sm:$0xff]   ;;  %v7622_v26 = vld [vmem:[%s7872_s15 + $0x968] sm:$0xff]  }
 0x120   : > { %6956 = vmatpush3.bf16.msra.mxu0 %v7584_v27  ;;  %v7623_v27 = vld [vmem:[%s7872_s15 + $0x9e8] sm:$0xff]  }
 0x121   : > { %6957 = vmatprep.subr.bf16.mxu0 %v7586_v28  ;;  %6978 = vmatpush3.bf16.msra.mxu1 %v7585_v29  ;;  %v7624_v28 = vld [vmem:[%s7872_s15 + $0x928] sm:$0xff]  }
 0x122   : > { %6979 = vmatprep.subr.bf16.mxu1 %v7587_v30  ;;  %v7625_v30 = vld [vmem:[%s7872_s15 + $0x9a8] sm:$0xff]  }
 0x124   : > { %6958 = vmatpush3.bf16.msra.mxu0 %v7588_v31 }
 0x125   : > { %6959 = vmatprep.subr.bf16.mxu0 %v7590_v32  ;;  %6980 = vmatpush3.bf16.msra.mxu1 %v7589_v33  ;;  %v7626_v32 = vld [vmem:[%s7872_s15 + $0x970] sm:$0xff]  }
 0x126   : > { %v6657_v37 = vpop.f32.mrb[4].mxu0  ;;  %6981 = vmatprep.subr.bf16.mxu1 %v7591_v34 }
 0x127   : > { %v6658_v39 = vpop.f32.mrb[5].mxu0  ;;  %v6679_v41 = vpop.f32.mrb[4].mxu1 }
 0x128   : > { %v6659_v42 = vadd.f32 %v6658_v39, %v6657_v37  ;;  %v6660_v43 = vpop.f32.mrb[6].mxu0  ;;  %v6680_v46 = vpop.f32.mrb[5].mxu1  ;;  %6960 = vmatpush3.bf16.msra.mxu0 %v7592_v36  ;;  %v7627_v37 = vld [vmem:[%s7872_s15 + $0x9f0] sm:$0xff]  }
 0x129   : > { %v6661_v47 = vpop.f32.mrb[7].mxu0  ;;  %v6681_v50 = vadd.f32 %v6680_v46, %v6679_v41  ;;  %v6682_v51 = vpop.f32.mrb[6].mxu1  ;;  %6961 = vmatprep.subr.bf16.mxu0 %v7594_v38  ;;  %6982 = vmatpush3.bf16.msra.mxu1 %v7593_v40  ;;  %v7628_v38 = vld [vmem:[%s7872_s15 + $0x930] sm:$0xff]   ;;  %v7630_v46 = vld [vmem:[%s7872_s15 + $0x978] sm:$0xff]  }
 0x12a   : > { %v4845_v49 = vadd.f32 %v6659_v42, %v8181_v7  ;;  %v6683_v53 = vpop.f32.mrb[7].mxu1  ;;  %6983 = vmatprep.subr.bf16.mxu1 %v7595_v44  ;;  %v7606_v7 = vld [vmem:[%s7872_s15 + $0x948] sm:$0xff]   ;;  %v7629_v44 = vld [vmem:[%s7872_s15 + $0x9b0] sm:$0xff]   ;;  %v1428_v51 = vrot.slane %v8229_v1, %v7910_v35  ;;  %v7647_v1 = vld [vmem:[%s7872_s15 + $0xa58] sm:$0xff]  }
 0x12b   : > { %v7636_v53 = vld [vmem:[%s7872_s15 + $0xac0] sm:$0xff]  }
 0x12c   : > { %v8219_v55 = vadd.f32 %v6681_v50, %v4845_v49  ;;  %6962 = vmatpush3.bf16.msra.mxu0 %v7596_v45  ;;  %v7632_v49 = vld [vmem:[%s7872_s15 + $0x938] sm:$0xff]  }
 0x12d   : > { %6963 = vmatprep.subr.bf16.mxu0 %v7598_v52  ;;  %6984 = vmatpush3.bf16.msra.mxu1 %v7597_v48  ;;  %v7631_v48 = vld [vmem:[%s7872_s15 + $0x9f8] sm:$0xff]   ;;  %v7635_v52 = vld [vmem:[%s7872_s15 + $0xa40] sm:$0xff]  }
 0x12e   : > { %6985 = vmatprep.subr.bf16.mxu1 %v7599_v54  ;;  %v7633_v50 = vld [vmem:[%s7872_s15 + $0x9b8] sm:$0xff]   ;;  %v7637_v54 = vld [vmem:[%s7872_s15 + $0xa00] sm:$0xff]  }
 0x130   : > { %6964 = vmatpush3.bf16.msra.mxu0 %v7600_v56  ;;  %v1444_v56 = vcombine.high %v1428_v51, %v1428_v51 }
 0x131   : > { %6993 = vmatprep.subr.bf16.mxu0 %v7602_v59  ;;  %6986 = vmatpush3.bf16.msra.mxu1 %v7601_v61  ;;  %v7641_v59 = vld [vmem:[%s7872_s15 + $0xa08] sm:$0xff]   ;;  %v7643_v61 = vld [vmem:[%s7872_s15 + $0xa50] sm:$0xff]  }
 0x132   : > { %7015 = vmatprep.subr.bf16.mxu1 %v7603_v0  ;;  %v7646_v0 = vld [vmem:[%s7872_s15 + $0xa90] sm:$0xff]  }
 0x133   : > { %5403 = vmatmul.mubr.bf16.vlgmr.msra.gmra.mrb[32].mxu0 %v1421_v63  ;;  %v7645_v63 = vld [vmem:[%s7872_s15 + $0xa10] sm:$0xff]  }
 0x134   : > { %6994 = vmatpush3.bf16.msra.mxu0 %v7604_v2  ;;  %5443 = vmatmul.mubr.bf16.vlgmr.msra.gmra.mrb[32].mxu1 %v1443_v6  ;;  %v7648_v2 = vld [vmem:[%s7872_s15 + $0xad8] sm:$0xff]   ;;  %v7652_v6 = vld [vmem:[%s7872_s15 + $0xae0] sm:$0xff]  }
 0x135   : > { %6995 = vmatprep.subr.bf16.mxu0 %v7606_v7  ;;  %7016 = vmatpush3.bf16.msra.mxu1 %v7605_v4  ;;  %v7650_v4 = vld [vmem:[%s7872_s15 + $0xa98] sm:$0xff]   ;;  %v7653_v7 = vld [vmem:[%s7872_s15 + $0xa20] sm:$0xff]  }
 0x136   : > { %5482 = vmatprep.mubr.bf16.mxu0 %v1442_v10  ;;  %7017 = vmatprep.subr.bf16.mxu1 %v7607_v9  ;;  %v7655_v9 = vld [vmem:[%s7872_s15 + $0xa68] sm:$0xff]  }
 0x137   : > { %5522 = vmatprep.mubr.bf16.mxu1 %v1446_v13  ;;  %v7656_v10 = vld [vmem:[%s7872_s15 + $0xae8] sm:$0xff]  }
 0x138   : > { %6996 = vmatpush3.bf16.msra.mxu0 %v7608_v11  ;;  %v7657_v11 = vld [vmem:[%s7872_s15 + $0xa28] sm:$0xff]  }
 0x139   : > { %6997 = vmatprep.subr.bf16.mxu0 %v7610_v14  ;;  %7018 = vmatpush3.bf16.msra.mxu1 %v7609_v12  ;;  %v7658_v13 = vld [vmem:[%s7872_s15 + $0xaa8] sm:$0xff]  }
 0x13a   : > { %7019 = vmatprep.subr.bf16.mxu1 %v7611_v15  ;;  %v7659_v15 = vld [vmem:[%s7872_s15 + $0xa70] sm:$0xff]  }
 0x13c   : > { %6998 = vmatpush3.bf16.msra.mxu0 %v7612_v16 }
 0x13d   : > { %6999 = vmatprep.subr.bf16.mxu0 %v7614_v18  ;;  %7020 = vmatpush3.bf16.msra.mxu1 %v7613_v17 }
 0x13e   : > { %7021 = vmatprep.subr.bf16.mxu1 %v7615_v19  ;;  %v7660_v19 = vld [vmem:[%s7872_s15 + $0xaf0] sm:$0xff]  }
 0x140   : > { %7000 = vmatpush3.bf16.msra.mxu0 %v7616_v20  ;;  %v7661_v20 = vld [vmem:[%s7872_s15 + $0xa30] sm:$0xff]  }
 0x141   : > { %7001 = vmatprep.subr.bf16.mxu0 %v7618_v22  ;;  %7022 = vmatpush3.bf16.msra.mxu1 %v7617_v21 }
 0x142   : > { %7023 = vmatprep.subr.bf16.mxu1 %v7619_v23 }
 0x144   : > { %7002 = vmatpush3.bf16.msra.mxu0 %v7620_v24 }
 0x145   : > { %7003 = vmatprep.subr.bf16.mxu0 %v7622_v26  ;;  %7024 = vmatpush3.bf16.msra.mxu1 %v7621_v25  ;;  %v7662_v26 = vld [vmem:[%s7872_s15 + $0xab0] sm:$0xff]  }
 0x146   : > { %v6701_v29 = vpop.f32.mrb[8].mxu0  ;;  %7025 = vmatprep.subr.bf16.mxu1 %v7623_v27 }
 0x147   : > { %v6702_v31 = vpop.f32.mrb[9].mxu0  ;;  %v6723_v33 = vpop.f32.mrb[8].mxu1 }
 0x148   : > { %v6703_v34 = vadd.f32 %v6702_v31, %v6701_v29  ;;  %v6704_v36 = vpop.f32.mrb[10].mxu0  ;;  %v6724_v39 = vpop.f32.mrb[9].mxu1  ;;  %7004 = vmatpush3.bf16.msra.mxu0 %v7624_v28  ;;  %v7663_v28 = vld [vmem:[%s7872_s15 + $0xa78] sm:$0xff]  }
 0x149   : > { %v6705_v40 = vpop.f32.mrb[11].mxu0  ;;  %v6725_v42 = vadd.f32 %v6724_v39, %v6723_v33  ;;  %v6726_v43 = vpop.f32.mrb[10].mxu1  ;;  %7005 = vmatprep.subr.bf16.mxu0 %v7626_v32  ;;  %7026 = vmatpush3.bf16.msra.mxu1 %v7625_v30  ;;  %v7664_v30 = vld [vmem:[%s7872_s15 + $0xaf8] sm:$0xff]   ;;  %v167_v32 = vld [vmem:[%s7908_s19 + $0x28] sm:$0xff] }
 0x14a   : > { %v4925_v41 = vadd.f32 %v6703_v34, %v8219_v55  ;;  %v6727_v45 = vpop.f32.mrb[11].mxu1  ;;  %7027 = vmatprep.subr.bf16.mxu1 %v7627_v37  ;;  %v7638_v55 = vld [vmem:[%s7872_s15 + $0xa80] sm:$0xff]   ;;  %v7665_v31 = vld [vmem:[%s7872_s15 + $0xa38] sm:$0xff]   ;;  %v1454_v33 = vrot.slane %v167_v32, %v7910_v35  ;;  %v1447_v36 = vcombine.high %v167_v32, %v167_v32  ;;  %v7704_v32 = vld [vmem:[%s7872_s15 + $0xc48] sm:$0xff]  }
 0x14b   : > { %v7667_v34 = vld [vmem:[%s7872_s15 + $0xb40] sm:$0xff]   ;;  %v7666_v37 = vld [vmem:[%s7872_s15 + $0xab8] sm:$0xff]  }
 0x14c   : > { %v8263_v47 = vadd.f32 %v6725_v42, %v4925_v41  ;;  %7006 = vmatpush3.bf16.msra.mxu0 %v7628_v38  ;;  %v1462_v38 = vcombine.high %v1454_v33, %v1454_v33  ;;  %v1470_v39 = vrot.slane %v1454_v33, %v7910_v35  ;;  %v7668_v40 = vld [vmem:[%s7872_s15 + $0xbc0] sm:$0xff]   ;;  %v8311_v41 = vrot.slane %v1447_v36, %v7910_v35  ;;  %v7705_v33 = vld [vmem:[%s7872_s15 + $0xcc8] sm:$0xff]  }
 0x14d   : > { %7007 = vmatprep.subr.bf16.mxu0 %v7630_v46  ;;  %7028 = vmatpush3.bf16.msra.mxu1 %v7629_v44  ;;  %v7669_v42 = vld [vmem:[%s7872_s15 + $0xb00] sm:$0xff]   ;;  %v7707_v36 = vld [vmem:[%s7872_s15 + $0xc88] sm:$0xff]  }
 0x14e   : > { %7029 = vmatprep.subr.bf16.mxu1 %v7631_v48  ;;  %v1484_v43 = vrot.slane %v1462_v38, %v7910_v35  ;;  %v7670_v44 = vld [vmem:[%s7872_s15 + $0xb80] sm:$0xff]   ;;  %v1463_v45 = vcombine.high %v8311_v41, %v8311_v41  ;;  %v1492_v46 = vcombine.high %v1470_v39, %v1470_v39  ;;  %v7709_v38 = vld [vmem:[%s7872_s15 + $0xcd0] sm:$0xff]  }
 0x150   : > { %7008 = vmatpush3.bf16.msra.mxu0 %v7632_v49  ;;  %v1494_v48 = vcombine.high %v1484_v43, %v1484_v43  ;;  %v7672_v49 = vld [vmem:[%s7872_s15 + $0xbc8] sm:$0xff]  }
 0x151   : > { %7037 = vmatprep.subr.bf16.mxu0 %v7635_v52  ;;  %7030 = vmatpush3.bf16.msra.mxu1 %v7633_v50  ;;  %v1491_v50 = vrot.slane %v1463_v45, %v7910_v35  ;;  %v7674_v52 = vld [vmem:[%s7872_s15 + $0xb88] sm:$0xff]   ;;  %v7716_v45 = vld [vmem:[%s7872_s15 + $0xc60] sm:$0xff]  }
 0x152   : > { %7059 = vmatprep.subr.bf16.mxu1 %v7636_v53 }
 0x153   : > { %5483 = vmatmul.mubr.bf16.vlgmr.msra.gmra.mrb[36].mxu0 %v1428_v51  ;;  %v7673_v51 = vld [vmem:[%s7872_s15 + $0xb08] sm:$0xff]   ;;  %v1495_v53 = vcombine.high %v1491_v50, %v1491_v50 }
 0x154   : > { %7038 = vmatpush3.bf16.msra.mxu0 %v7637_v54  ;;  %5523 = vmatmul.mubr.bf16.vlgmr.msra.gmra.mrb[36].mxu1 %v1444_v56  ;;  %v7675_v54 = vld [vmem:[%s7872_s15 + $0xb50] sm:$0xff]  }
 0x155   : > { %7039 = vmatprep.subr.bf16.mxu0 %v7639_v57  ;;  %7060 = vmatpush3.bf16.msra.mxu1 %v7638_v55  ;;  %v7676_v55 = vld [vmem:[%s7872_s15 + $0xbd0] sm:$0xff]  }
 0x156   : > { %7061 = vmatprep.subr.bf16.mxu1 %v7640_v58  ;;  %5562 = vmatprep.mubr.bf16.mxu0 %v1484_v43  ;;  %v7677_v56 = vld [vmem:[%s7872_s15 + $0xb10] sm:$0xff]   ;;  %v7679_v58 = vld [vmem:[%s7872_s15 + $0xb58] sm:$0xff]  }
 0x157   : > { %5602 = vmatprep.mubr.bf16.mxu1 %v1494_v48  ;;  %v7678_v57 = vld [vmem:[%s7872_s15 + $0xb90] sm:$0xff]   ;;  %v7714_v43 = vld [vmem:[%s7872_s15 + $0xc18] sm:$0xff]   ;;  %v7719_v48 = vld [vmem:[%s7872_s15 + $0xca0] sm:$0xff]  }
 0x158   : > { %7040 = vmatpush3.bf16.msra.mxu0 %v7641_v59  ;;  %v7680_v59 = vld [vmem:[%s7872_s15 + $0xbd8] sm:$0xff]  }
 0x159   : > { %7041 = vmatprep.subr.bf16.mxu0 %v7643_v61  ;;  %7062 = vmatpush3.bf16.msra.mxu1 %v7642_v60  ;;  %v7681_v60 = vld [vmem:[%s7872_s15 + $0xb18] sm:$0xff]  }
 0x15a   : > { %7063 = vmatprep.subr.bf16.mxu1 %v7644_v62  ;;  %v7682_v61 = vld [vmem:[%s7872_s15 + $0xb98] sm:$0xff]   ;;  %v7683_v62 = vld [vmem:[%s7872_s15 + $0xb60] sm:$0xff]  }
 0x15c   : > { %7042 = vmatpush3.bf16.msra.mxu0 %v7645_v63  ;;  %v7684_v63 = vld [vmem:[%s7872_s15 + $0xbe0] sm:$0xff]  }
 0x15d   : > { %7043 = vmatprep.subr.bf16.mxu0 %v7647_v1  ;;  %7064 = vmatpush3.bf16.msra.mxu1 %v7646_v0  ;;  %v7685_v0 = vld [vmem:[%s7872_s15 + $0xb20] sm:$0xff]  }
 0x15e   : > { %7065 = vmatprep.subr.bf16.mxu1 %v7648_v2  ;;  %v7686_v1 = vld [vmem:[%s7872_s15 + $0xba0] sm:$0xff]   ;;  %v7687_v2 = vld [vmem:[%s7872_s15 + $0xb68] sm:$0xff]  }
 0x160   : > { %7044 = vmatpush3.bf16.msra.mxu0 %v7649_v3  ;;  %v7688_v3 = vld [vmem:[%s7872_s15 + $0xbe8] sm:$0xff]  }
 0x161   : > { %7045 = vmatprep.subr.bf16.mxu0 %v7651_v5  ;;  %7066 = vmatpush3.bf16.msra.mxu1 %v7650_v4  ;;  %v7689_v5 = vld [vmem:[%s7872_s15 + $0xb28] sm:$0xff]  }
 0x162   : > { %7067 = vmatprep.subr.bf16.mxu1 %v7652_v6 }
 0x164   : > { %7046 = vmatpush3.bf16.msra.mxu0 %v7653_v7  ;;  %v7690_v7 = vld [vmem:[%s7872_s15 + $0xba8] sm:$0xff]  }
 0x165   : > { %7047 = vmatprep.subr.bf16.mxu0 %v7655_v9  ;;  %7068 = vmatpush3.bf16.msra.mxu1 %v7654_v8 }
 0x166   : > { %v6745_v12 = vpop.f32.mrb[12].mxu0  ;;  %7069 = vmatprep.subr.bf16.mxu1 %v7656_v10 }
 0x167   : > { %v6746_v14 = vpop.f32.mrb[13].mxu0  ;;  %v6767_v16 = vpop.f32.mrb[12].mxu1 }
 0x168   : > { %v6747_v17 = vadd.f32 %v6746_v14, %v6745_v12  ;;  %v6748_v18 = vpop.f32.mrb[14].mxu0  ;;  %v6768_v21 = vpop.f32.mrb[13].mxu1  ;;  %7048 = vmatpush3.bf16.msra.mxu0 %v7657_v11  ;;  %v7691_v11 = vld [vmem:[%s7872_s15 + $0xb70] sm:$0xff]  }
 0x169   : > { %v6749_v22 = vpop.f32.mrb[15].mxu0  ;;  %v6769_v24 = vadd.f32 %v6768_v21, %v6767_v16  ;;  %v6770_v25 = vpop.f32.mrb[14].mxu1  ;;  %7049 = vmatprep.subr.bf16.mxu0 %v7659_v15  ;;  %7070 = vmatpush3.bf16.msra.mxu1 %v7658_v13  ;;  %v7692_v12 = vld [vmem:[%s7872_s15 + $0xbf0] sm:$0xff]  }
 0x16a   : > { %v5005_v23 = vadd.f32 %v6747_v17, %v8263_v47  ;;  %v6771_v27 = vpop.f32.mrb[15].mxu1  ;;  %7071 = vmatprep.subr.bf16.mxu1 %v7660_v19  ;;  %v7671_v47 = vld [vmem:[%s7872_s15 + $0xb48] sm:$0xff]   ;;  %v7693_v18 = vld [vmem:[%s7872_s15 + $0xb30] sm:$0xff]   ;;  %v7695_v22 = vld [vmem:[%s7872_s15 + $0xb78] sm:$0xff]  }
 0x16b   : > { %v7698_v25 = vld [vmem:[%s7872_s15 + $0xbb8] sm:$0xff]   ;;  %v7700_v27 = vld [vmem:[%s7872_s15 + $0xc40] sm:$0xff]  }
 0x16c   : > { %v8300_v29 = vadd.f32 %v6769_v24, %v5005_v23  ;;  %7050 = vmatpush3.bf16.msra.mxu0 %v7661_v20  ;;  %v7694_v20 = vld [vmem:[%s7872_s15 + $0xbb0] sm:$0xff]   ;;  %v7696_v23 = vld [vmem:[%s7872_s15 + $0xbf8] sm:$0xff]  }
 0x16d   : > { %7051 = vmatprep.subr.bf16.mxu0 %v7663_v28  ;;  %7072 = vmatpush3.bf16.msra.mxu1 %v7662_v26  ;;  %v7697_v24 = vld [vmem:[%s7872_s15 + $0xb38] sm:$0xff]   ;;  %v1477_v26 = vrot.slane %v8311_v41, %v7910_v35  ;;  %v7701_v28 = vld [vmem:[%s7872_s15 + $0xcc0] sm:$0xff]  }
 0x16e   : > { %7073 = vmatprep.subr.bf16.mxu1 %v7664_v30  ;;  %v7703_v30 = vld [vmem:[%s7872_s15 + $0xc80] sm:$0xff]   ;;  %v7712_v41 = vld [vmem:[%s7872_s15 + $0xc58] sm:$0xff]  }
 0x170   : > { %7052 = vmatpush3.bf16.msra.mxu0 %v7665_v31  ;;  %v1493_v31 = vcombine.high %v1477_v26, %v1477_v26 }
 0x171   : > { %7081 = vmatprep.subr.bf16.mxu0 %v7667_v34  ;;  %7074 = vmatpush3.bf16.msra.mxu1 %v7666_v37  ;;  %v7706_v34 = vld [vmem:[%s7872_s15 + $0xc08] sm:$0xff]   ;;  %v7708_v37 = vld [vmem:[%s7872_s15 + $0xc50] sm:$0xff]  }
 0x172   : > { %7103 = vmatprep.subr.bf16.mxu1 %v7668_v40  ;;  %v7711_v40 = vld [vmem:[%s7872_s15 + $0xc90] sm:$0xff]  }
 0x173   : > { %5563 = vmatmul.mubr.bf16.vlgmr.msra.gmra.mrb[40].mxu0 %v1470_v39  ;;  %v7710_v39 = vld [vmem:[%s7872_s15 + $0xc10] sm:$0xff]  }
 0x174   : > { %7082 = vmatpush3.bf16.msra.mxu0 %v7669_v42  ;;  %5603 = vmatmul.mubr.bf16.vlgmr.msra.gmra.mrb[40].mxu1 %v1492_v46  ;;  %v7713_v42 = vld [vmem:[%s7872_s15 + $0xcd8] sm:$0xff]   ;;  %v7717_v46 = vld [vmem:[%s7872_s15 + $0xce0] sm:$0xff]  }
 0x175   : > { %7083 = vmatprep.subr.bf16.mxu0 %v7671_v47  ;;  %7104 = vmatpush3.bf16.msra.mxu1 %v7670_v44  ;;  %v7715_v44 = vld [vmem:[%s7872_s15 + $0xc98] sm:$0xff]   ;;  %v7718_v47 = vld [vmem:[%s7872_s15 + $0xc20] sm:$0xff]  }
 0x176   : > { %5642 = vmatprep.mubr.bf16.mxu0 %v1491_v50  ;;  %7105 = vmatprep.subr.bf16.mxu1 %v7672_v49  ;;  %v7720_v49 = vld [vmem:[%s7872_s15 + $0xc68] sm:$0xff]  }
 0x177   : > { %5682 = vmatprep.mubr.bf16.mxu1 %v1495_v53  ;;  %v7721_v50 = vld [vmem:[%s7872_s15 + $0xce8] sm:$0xff]  }
 0x178   : > { %7084 = vmatpush3.bf16.msra.mxu0 %v7673_v51 }
 0x179   : > { %7085 = vmatprep.subr.bf16.mxu0 %v7675_v54  ;;  %7106 = vmatpush3.bf16.msra.mxu1 %v7674_v52  ;;  %v7722_v52 = vld [vmem:[%s7872_s15 + $0xc28] sm:$0xff]  }
 0x17a   : > { %7107 = vmatprep.subr.bf16.mxu1 %v7676_v55  ;;  %v7723_v54 = vld [vmem:[%s7872_s15 + $0xca8] sm:$0xff]  }
 0x17c   : > { %7086 = vmatpush3.bf16.msra.mxu0 %v7677_v56 }
 0x17d   : > { %7087 = vmatprep.subr.bf16.mxu0 %v7679_v58  ;;  %7108 = vmatpush3.bf16.msra.mxu1 %v7678_v57  ;;  %v7724_v58 = vld [vmem:[%s7872_s15 + $0xc70] sm:$0xff]  }
 0x17e   : > { %7109 = vmatprep.subr.bf16.mxu1 %v7680_v59  ;;  %v7725_v59 = vld [vmem:[%s7872_s15 + $0xcf0] sm:$0xff]  }
 0x180   : > { %7088 = vmatpush3.bf16.msra.mxu0 %v7681_v60 }
 0x181   : > { %7089 = vmatprep.subr.bf16.mxu0 %v7683_v62  ;;  %7110 = vmatpush3.bf16.msra.mxu1 %v7682_v61 }
 0x182   : > { %7111 = vmatprep.subr.bf16.mxu1 %v7684_v63 }
 0x184   : > { %7090 = vmatpush3.bf16.msra.mxu0 %v7685_v0 }
 0x185   : > { %7091 = vmatprep.subr.bf16.mxu0 %v7687_v2  ;;  %7112 = vmatpush3.bf16.msra.mxu1 %v7686_v1  ;;  %v7726_v1 = vld [vmem:[%s7872_s15 + $0xc30] sm:$0xff]  }
 0x186   : > { %v6789_v4 = vpop.f32.mrb[16].mxu0  ;;  %7113 = vmatprep.subr.bf16.mxu1 %v7688_v3  ;;  %v7727_v3 = vld [vmem:[%s7872_s15 + $0xcb0] sm:$0xff]  }
 0x187   : > { %v6790_v6 = vpop.f32.mrb[17].mxu0  ;;  %v6811_v8 = vpop.f32.mrb[16].mxu1 }
 0x188   : > { %v6791_v9 = vadd.f32 %v6790_v6, %v6789_v4  ;;  %v6792_v10 = vpop.f32.mrb[18].mxu0  ;;  %v6812_v13 = vpop.f32.mrb[17].mxu1  ;;  %7092 = vmatpush3.bf16.msra.mxu0 %v7689_v5  ;;  %v7728_v5 = vld [vmem:[%s7872_s15 + $0xc78] sm:$0xff]  }
 0x189   : > { %v6793_v14 = vpop.f32.mrb[19].mxu0  ;;  %v6813_v16 = vadd.f32 %v6812_v13, %v6811_v8  ;;  %v6814_v17 = vpop.f32.mrb[18].mxu1  ;;  %7093 = vmatprep.subr.bf16.mxu0 %v7691_v11  ;;  %7114 = vmatpush3.bf16.msra.mxu1 %v7690_v7  ;;  %v7729_v6 = vld [vmem:[%s7872_s15 + $0xcf8] sm:$0xff]   ;;  %v168_v8 = vld [vmem:[%s7908_s19 + $0x30] sm:$0xff]  ;;  %v7732_v10 = vld [vmem:[%s7872_s15 + $0xd40] sm:$0xff]  }
 0x18a   : > { %v5085_v15 = vadd.f32 %v6791_v9, %v8300_v29  ;;  %v6815_v19 = vpop.f32.mrb[19].mxu1  ;;  %7115 = vmatprep.subr.bf16.mxu1 %v7692_v12  ;;  %v7702_v29 = vld [vmem:[%s7872_s15 + $0xc00] sm:$0xff]   ;;  %v7730_v7 = vld [vmem:[%s7872_s15 + $0xc38] sm:$0xff]   ;;  %v1503_v9 = vrot.slane %v168_v8, %v7910_v35  ;;  %v1496_v11 = vcombine.high %v168_v8, %v168_v8  ;;  %v7769_v8 = vld [vmem:[%s7872_s15 + $0xe48] sm:$0xff]  }
 0x18b   : > { %v7731_v12 = vld [vmem:[%s7872_s15 + $0xcb8] sm:$0xff]   ;;  %v7734_v17 = vld [vmem:[%s7872_s15 + $0xd00] sm:$0xff]  }
 0x18c   : > { %v8344_v21 = vadd.f32 %v6813_v16, %v5085_v15  ;;  %7094 = vmatpush3.bf16.msra.mxu0 %v7693_v18  ;;  %v1511_v13 = vcombine.high %v1503_v9, %v1503_v9  ;;  %v1519_v14 = vrot.slane %v1503_v9, %v7910_v35  ;;  %v7733_v15 = vld [vmem:[%s7872_s15 + $0xdc0] sm:$0xff]   ;;  %v8393_v16 = vrot.slane %v1496_v11, %v7910_v35  ;;  %v7770_v9 = vld [vmem:[%s7872_s15 + $0xec8] sm:$0xff]  }
 0x18d   : > { %7095 = vmatprep.subr.bf16.mxu0 %v7695_v22  ;;  %7116 = vmatpush3.bf16.msra.mxu1 %v7694_v20  ;;  %v7735_v19 = vld [vmem:[%s7872_s15 + $0xd80] sm:$0xff]   ;;  %v7736_v22 = vld [vmem:[%s7872_s15 + $0xd48] sm:$0xff]  }
 0x18e   : > { %7117 = vmatprep.subr.bf16.mxu1 %v7696_v23  ;;  %v1533_v18 = vrot.slane %v1511_v13, %v7910_v35  ;;  %v1512_v20 = vcombine.high %v8393_v16, %v8393_v16  ;;  %v7772_v11 = vld [vmem:[%s7872_s15 + $0xe88] sm:$0xff]   ;;  %v7774_v13 = vld [vmem:[%s7872_s15 + $0xed0] sm:$0xff]  }
 0x190   : > { %7096 = vmatpush3.bf16.msra.mxu0 %v7697_v24  ;;  %v1543_v23 = vcombine.high %v1533_v18, %v1533_v18  ;;  %v7737_v24 = vld [vmem:[%s7872_s15 + $0xdc8] sm:$0xff]  }
 0x191   : > { %7125 = vmatprep.subr.bf16.mxu0 %v7700_v27  ;;  %7118 = vmatpush3.bf16.msra.mxu1 %v7698_v25  ;;  %v1540_v25 = vrot.slane %v1512_v20, %v7910_v35  ;;  %v7739_v27 = vld [vmem:[%s7872_s15 + $0xd88] sm:$0xff]   ;;  %v7781_v20 = vld [vmem:[%s7872_s15 + $0xe60] sm:$0xff]  }
 0x192   : > { %7147 = vmatprep.subr.bf16.mxu1 %v7701_v28 }
 0x193   : > { %5643 = vmatmul.mubr.bf16.vlgmr.msra.gmra.mrb[44].mxu0 %v1477_v26  ;;  %v7738_v26 = vld [vmem:[%s7872_s15 + $0xd08] sm:$0xff]   ;;  %v1544_v28 = vcombine.high %v1540_v25, %v1540_v25 }
 0x194   : > { %7126 = vmatpush3.bf16.msra.mxu0 %v7702_v29  ;;  %5683 = vmatmul.mubr.bf16.vlgmr.msra.gmra.mrb[44].mxu1 %v1493_v31  ;;  %v7740_v29 = vld [vmem:[%s7872_s15 + $0xd50] sm:$0xff]  }
 0x195   : > { %7127 = vmatprep.subr.bf16.mxu0 %v7704_v32  ;;  %7148 = vmatpush3.bf16.msra.mxu1 %v7703_v30  ;;  %v7741_v30 = vld [vmem:[%s7872_s15 + $0xdd0] sm:$0xff]  }
 0x196   : > { %7149 = vmatprep.subr.bf16.mxu1 %v7705_v33  ;;  %5722 = vmatprep.mubr.bf16.mxu0 %v1533_v18  ;;  %v7742_v31 = vld [vmem:[%s7872_s15 + $0xd10] sm:$0xff]   ;;  %v7744_v33 = vld [vmem:[%s7872_s15 + $0xd58] sm:$0xff]  }
 0x197   : > { %5762 = vmatprep.mubr.bf16.mxu1 %v1543_v23  ;;  %v7743_v32 = vld [vmem:[%s7872_s15 + $0xd90] sm:$0xff]   ;;  %v7779_v18 = vld [vmem:[%s7872_s15 + $0xe18] sm:$0xff]   ;;  %v7784_v23 = vld [vmem:[%s7872_s15 + $0xea0] sm:$0xff]  }
 0x198   : > { %7128 = vmatpush3.bf16.msra.mxu0 %v7706_v34  ;;  %v7745_v34 = vld [vmem:[%s7872_s15 + $0xdd8] sm:$0xff]  }
 0x199   : > { %7129 = vmatprep.subr.bf16.mxu0 %v7708_v37  ;;  %7150 = vmatpush3.bf16.msra.mxu1 %v7707_v36  ;;  %v7746_v36 = vld [vmem:[%s7872_s15 + $0xd18] sm:$0xff]  }
 0x19a   : > { %7151 = vmatprep.subr.bf16.mxu1 %v7709_v38  ;;  %v7747_v37 = vld [vmem:[%s7872_s15 + $0xd98] sm:$0xff]   ;;  %v7748_v38 = vld [vmem:[%s7872_s15 + $0xd60] sm:$0xff]  }
 0x19c   : > { %7130 = vmatpush3.bf16.msra.mxu0 %v7710_v39  ;;  %v7749_v39 = vld [vmem:[%s7872_s15 + $0xde0] sm:$0xff]  }
 0x19d   : > { %7131 = vmatprep.subr.bf16.mxu0 %v7712_v41  ;;  %7152 = vmatpush3.bf16.msra.mxu1 %v7711_v40  ;;  %v7750_v40 = vld [vmem:[%s7872_s15 + $0xd20] sm:$0xff]  }
 0x19e   : > { %7153 = vmatprep.subr.bf16.mxu1 %v7713_v42  ;;  %v7751_v41 = vld [vmem:[%s7872_s15 + $0xda0] sm:$0xff]   ;;  %v7752_v42 = vld [vmem:[%s7872_s15 + $0xd68] sm:$0xff]  }
 0x1a0   : > { %7132 = vmatpush3.bf16.msra.mxu0 %v7714_v43  ;;  %v7753_v43 = vld [vmem:[%s7872_s15 + $0xde8] sm:$0xff]  }
 0x1a1   : > { %7133 = vmatprep.subr.bf16.mxu0 %v7716_v45  ;;  %7154 = vmatpush3.bf16.msra.mxu1 %v7715_v44  ;;  %v7754_v45 = vld [vmem:[%s7872_s15 + $0xd28] sm:$0xff]  }
 0x1a2   : > { %7155 = vmatprep.subr.bf16.mxu1 %v7717_v46 }
 0x1a4   : > { %7134 = vmatpush3.bf16.msra.mxu0 %v7718_v47  ;;  %v7755_v47 = vld [vmem:[%s7872_s15 + $0xda8] sm:$0xff]  }
 0x1a5   : > { %7135 = vmatprep.subr.bf16.mxu0 %v7720_v49  ;;  %7156 = vmatpush3.bf16.msra.mxu1 %v7719_v48 }
 0x1a6   : > { %v6833_v51 = vpop.f32.mrb[20].mxu0  ;;  %7157 = vmatprep.subr.bf16.mxu1 %v7721_v50 }
 0x1a7   : > { %v6834_v53 = vpop.f32.mrb[21].mxu0  ;;  %v6855_v55 = vpop.f32.mrb[20].mxu1 }
 0x1a8   : > { %v6835_v56 = vadd.f32 %v6834_v53, %v6833_v51  ;;  %v6836_v57 = vpop.f32.mrb[22].mxu0  ;;  %v6856_v60 = vpop.f32.mrb[21].mxu1  ;;  %7136 = vmatpush3.bf16.msra.mxu0 %v7722_v52  ;;  %v7756_v51 = vld [vmem:[%s7872_s15 + $0xd70] sm:$0xff]  }
 0x1a9   : > { %v6837_v61 = vpop.f32.mrb[23].mxu0  ;;  %v6857_v63 = vadd.f32 %v6856_v60, %v6855_v55  ;;  %v6858_v0 = vpop.f32.mrb[22].mxu1  ;;  %7137 = vmatprep.subr.bf16.mxu0 %v7724_v58  ;;  %7158 = vmatpush3.bf16.msra.mxu1 %v7723_v54  ;;  %v7757_v52 = vld [vmem:[%s7872_s15 + $0xdf0] sm:$0xff]  }
 0x1aa   : > { %v5165_v62 = vadd.f32 %v6835_v56, %v8344_v21  ;;  %v6859_v2 = vpop.f32.mrb[23].mxu1  ;;  %7159 = vmatprep.subr.bf16.mxu1 %v7725_v59  ;;  %v1541_v21 = vcombine.high %v1519_v14, %v1519_v14  ;;  %v7758_v58 = vld [vmem:[%s7872_s15 + $0xd30] sm:$0xff]   ;;  %v7762_v0 = vld [vmem:[%s7872_s15 + $0xd38] sm:$0xff]  }
 0x1ab   : > { %v7759_v60 = vld [vmem:[%s7872_s15 + $0xdb0] sm:$0xff]   ;;  %v1526_v2 = vrot.slane %v8393_v16, %v7910_v35  ;;  %v7777_v16 = vld [vmem:[%s7872_s15 + $0xe58] sm:$0xff]  }
 0x1ac   : > { %v8381_v4 = vadd.f32 %v6857_v63, %v5165_v62  ;;  %7138 = vmatpush3.bf16.msra.mxu0 %v7726_v1  ;;  %v7760_v62 = vld [vmem:[%s7872_s15 + $0xd78] sm:$0xff]  }
 0x1ad   : > { %7139 = vmatprep.subr.bf16.mxu0 %v7728_v5  ;;  %7160 = vmatpush3.bf16.msra.mxu1 %v7727_v3  ;;  %v7761_v63 = vld [vmem:[%s7872_s15 + $0xdf8] sm:$0xff]   ;;  %v7765_v3 = vld [vmem:[%s7872_s15 + $0xe40] sm:$0xff]  }
 0x1ae   : > { %7161 = vmatprep.subr.bf16.mxu1 %v7729_v6  ;;  %v7763_v1 = vld [vmem:[%s7872_s15 + $0xdb8] sm:$0xff]   ;;  %v7767_v5 = vld [vmem:[%s7872_s15 + $0xe00] sm:$0xff]  }
 0x1af   : > { %v7768_v6 = vld [vmem:[%s7872_s15 + $0xe80] sm:$0xff]  }
 0x1b0   : > { %7140 = vmatpush3.bf16.msra.mxu0 %v7730_v7  ;;  %v1542_v7 = vcombine.high %v1526_v2, %v1526_v2 }
 0x1b1   : > { %7169 = vmatprep.subr.bf16.mxu0 %v7732_v10  ;;  %7162 = vmatpush3.bf16.msra.mxu1 %v7731_v12  ;;  %v7771_v10 = vld [vmem:[%s7872_s15 + $0xe08] sm:$0xff]   ;;  %v7773_v12 = vld [vmem:[%s7872_s15 + $0xe50] sm:$0xff]  }
 0x1b2   : > { %7191 = vmatprep.subr.bf16.mxu1 %v7733_v15  ;;  %v7776_v15 = vld [vmem:[%s7872_s15 + $0xe90] sm:$0xff]  }
 0x1b3   : > { %5723 = vmatmul.mubr.bf16.vlgmr.msra.gmra.mrb[48].mxu0 %v1519_v14  ;;  %v7775_v14 = vld [vmem:[%s7872_s15 + $0xe10] sm:$0xff]  }
 0x1b4   : > { %7170 = vmatpush3.bf16.msra.mxu0 %v7734_v17  ;;  %5763 = vmatmul.mubr.bf16.vlgmr.msra.gmra.mrb[48].mxu1 %v1541_v21  ;;  %v7778_v17 = vld [vmem:[%s7872_s15 + $0xed8] sm:$0xff]   ;;  %v7782_v21 = vld [vmem:[%s7872_s15 + $0xee0] sm:$0xff]  }
 0x1b5   : > { %7171 = vmatprep.subr.bf16.mxu0 %v7736_v22  ;;  %7192 = vmatpush3.bf16.msra.mxu1 %v7735_v19  ;;  %v7780_v19 = vld [vmem:[%s7872_s15 + $0xe98] sm:$0xff]   ;;  %v7783_v22 = vld [vmem:[%s7872_s15 + $0xe20] sm:$0xff]  }
 0x1b6   : > { %5802 = vmatprep.mubr.bf16.mxu0 %v1540_v25  ;;  %7193 = vmatprep.subr.bf16.mxu1 %v7737_v24  ;;  %v7785_v24 = vld [vmem:[%s7872_s15 + $0xe68] sm:$0xff]  }
 0x1b7   : > { %5842 = vmatprep.mubr.bf16.mxu1 %v1544_v28  ;;  %v7786_v25 = vld [vmem:[%s7872_s15 + $0xee8] sm:$0xff]  }
 0x1b8   : > { %7172 = vmatpush3.bf16.msra.mxu0 %v7738_v26 }
 0x1b9   : > { %7173 = vmatprep.subr.bf16.mxu0 %v7740_v29  ;;  %7194 = vmatpush3.bf16.msra.mxu1 %v7739_v27  ;;  %v7787_v27 = vld [vmem:[%s7872_s15 + $0xe28] sm:$0xff]  }
 0x1ba   : > { %7195 = vmatprep.subr.bf16.mxu1 %v7741_v30  ;;  %v7788_v29 = vld [vmem:[%s7872_s15 + $0xea8] sm:$0xff]  }
 0x1bc   : > { %7174 = vmatpush3.bf16.msra.mxu0 %v7742_v31 }
 0x1bd   : > { %7175 = vmatprep.subr.bf16.mxu0 %v7744_v33  ;;  %7196 = vmatpush3.bf16.msra.mxu1 %v7743_v32  ;;  %v7789_v33 = vld [vmem:[%s7872_s15 + $0xe70] sm:$0xff]  }
 0x1be   : > { %7197 = vmatprep.subr.bf16.mxu1 %v7745_v34  ;;  %v7790_v34 = vld [vmem:[%s7872_s15 + $0xef0] sm:$0xff]  }
 0x1c0   : > { %7176 = vmatpush3.bf16.msra.mxu0 %v7746_v36 }
 0x1c1   : > { %7177 = vmatprep.subr.bf16.mxu0 %v7748_v38  ;;  %7198 = vmatpush3.bf16.msra.mxu1 %v7747_v37 }
 0x1c2   : > { %7199 = vmatprep.subr.bf16.mxu1 %v7749_v39 }
 0x1c4   : > { %7178 = vmatpush3.bf16.msra.mxu0 %v7750_v40 }
 0x1c5   : > { %7179 = vmatprep.subr.bf16.mxu0 %v7752_v42  ;;  %7200 = vmatpush3.bf16.msra.mxu1 %v7751_v41  ;;  %v7791_v41 = vld [vmem:[%s7872_s15 + $0xe30] sm:$0xff]  }
 0x1c6   : > { %v6877_v44 = vpop.f32.mrb[24].mxu0  ;;  %7201 = vmatprep.subr.bf16.mxu1 %v7753_v43  ;;  %v7792_v43 = vld [vmem:[%s7872_s15 + $0xeb0] sm:$0xff]  }
 0x1c7   : > { %v6878_v46 = vpop.f32.mrb[25].mxu0  ;;  %v6899_v48 = vpop.f32.mrb[24].mxu1 }
 0x1c8   : > { %v6879_v49 = vadd.f32 %v6878_v46, %v6877_v44  ;;  %v6880_v50 = vpop.f32.mrb[26].mxu0  ;;  %v6900_v53 = vpop.f32.mrb[25].mxu1  ;;  %7180 = vmatpush3.bf16.msra.mxu0 %v7754_v45  ;;  %v7793_v45 = vld [vmem:[%s7872_s15 + $0xe78] sm:$0xff]  }
 0x1c9   : > { %v6881_v54 = vpop.f32.mrb[27].mxu0  ;;  %v6901_v56 = vadd.f32 %v6900_v53, %v6899_v48  ;;  %v6902_v57 = vpop.f32.mrb[26].mxu1  ;;  %7181 = vmatprep.subr.bf16.mxu0 %v7756_v51  ;;  %7202 = vmatpush3.bf16.msra.mxu1 %v7755_v47  ;;  %v7794_v46 = vld [vmem:[%s7872_s15 + $0xef8] sm:$0xff]   ;;  %v7797_v50 = vld [vmem:[%s7872_s15 + $0xf40] sm:$0xff]  }
 0x1ca   : > { %v5245_v55 = vadd.f32 %v6879_v49, %v8381_v4  ;;  %v6903_v59 = vpop.f32.mrb[27].mxu1  ;;  %7203 = vmatprep.subr.bf16.mxu1 %v7757_v52  ;;  %v7766_v4 = vld [vmem:[%s7872_s15 + $0xec0] sm:$0xff]   ;;  %v7795_v47 = vld [vmem:[%s7872_s15 + $0xe38] sm:$0xff]  }
 0x1cb   : > { %v169_v48 = vld [vmem:[%s7908_s19 + $0x38] sm:$0xff] }
 0x1cc   : > { %v8426_v61 = vadd.f32 %v6901_v56, %v5245_v55  ;;  %7182 = vmatpush3.bf16.msra.mxu0 %v7758_v58  ;;  %v1552_v49 = vrot.slane %v169_v48, %v7910_v35  ;;  %v1545_v51 = vcombine.high %v169_v48, %v169_v48  ;;  %v7796_v52 = vld [vmem:[%s7872_s15 + $0xeb8] sm:$0xff]   ;;  %v7798_v55 = vld [vmem:[%s7872_s15 + $0xfc0] sm:$0xff]  }
 0x1cd   : > { %7183 = vmatprep.subr.bf16.mxu0 %v7760_v62  ;;  %7204 = vmatpush3.bf16.msra.mxu1 %v7759_v60  ;;  %v7799_v58 = vld [vmem:[%s7872_s15 + $0xf00] sm:$0xff]  }
 0x1ce   : > { %7205 = vmatprep.subr.bf16.mxu1 %v7761_v63  ;;  %v1560_v53 = vcombine.high %v1552_v49, %v1552_v49  ;;  %v1568_v54 = vrot.slane %v1552_v49, %v7910_v35  ;;  %v8475_v56 = vrot.slane %v1545_v51, %v7910_v35  ;;  %v7800_v63 = vld [vmem:[%s7872_s15 + $0xf80] sm:$0xff]  }
 0x1d0   : > { %7184 = vmatpush3.bf16.msra.mxu0 %v7762_v0  ;;  %v1582_v57 = vrot.slane %v1560_v53, %v7910_v35  ;;  %v1561_v59 = vcombine.high %v8475_v56, %v8475_v56  ;;  %v1590_v60 = vcombine.high %v1568_v54, %v1568_v54 }
 0x1d1   : > { %7213 = vmatprep.subr.bf16.mxu0 %v7765_v3  ;;  %7206 = vmatpush3.bf16.msra.mxu1 %v7763_v1  ;;  %v7802_v1 = vld [vmem:[%s7872_s15 + $0xfc8] sm:$0xff]  }
 0x1d2   : > { %7235 = vmatprep.subr.bf16.mxu1 %v7766_v4  ;;  %v1592_v62 = vcombine.high %v1582_v57, %v1582_v57  ;;  %v1589_v0 = vrot.slane %v1561_v59, %v7910_v35  ;;  %v7805_v4 = vld [vmem:[%s7872_s15 + $0xf50] sm:$0xff]  }
 0x1d3   : > { %5803 = vmatmul.mubr.bf16.vlgmr.msra.gmra.mrb[52].mxu0 %v1526_v2  ;;  %v7803_v2 = vld [vmem:[%s7872_s15 + $0xf08] sm:$0xff]  }
 0x1d4   : > { %7214 = vmatpush3.bf16.msra.mxu0 %v7767_v5  ;;  %5843 = vmatmul.mubr.bf16.vlgmr.msra.gmra.mrb[52].mxu1 %v1542_v7  ;;  %v1593_v3 = vcombine.high %v1589_v0, %v1589_v0  ;;  %v7804_v5 = vld [vmem:[%s7872_s15 + $0xf88] sm:$0xff]   ;;  %v7807_v7 = vld [vmem:[%s7872_s15 + $0xf10] sm:$0xff]  }
 0x1d5   : > { %7215 = vmatprep.subr.bf16.mxu0 %v7769_v8  ;;  %7236 = vmatpush3.bf16.msra.mxu1 %v7768_v6  ;;  %v7806_v6 = vld [vmem:[%s7872_s15 + $0xfd0] sm:$0xff]   ;;  %v7809_v8 = vld [vmem:[%s7872_s15 + $0xf58] sm:$0xff]  }
 0x1d6   : > { %7237 = vmatprep.subr.bf16.mxu1 %v7770_v9  ;;  %5882 = vmatprep.mubr.bf16.mxu0 %v1582_v57  ;;  %v7808_v9 = vld [vmem:[%s7872_s15 + $0xf90] sm:$0xff]  }
 0x1d7   : > { %5922 = vmatprep.mubr.bf16.mxu1 %v1592_v62 }
 0x1d8   : > { %7216 = vmatpush3.bf16.msra.mxu0 %v7771_v10  ;;  %v7810_v10 = vld [vmem:[%s7872_s15 + $0xfd8] sm:$0xff]  }
 0x1d9   : > { %7217 = vmatprep.subr.bf16.mxu0 %v7773_v12  ;;  %7238 = vmatpush3.bf16.msra.mxu1 %v7772_v11  ;;  %v7811_v11 = vld [vmem:[%s7872_s15 + $0xf18] sm:$0xff]   ;;  %v7813_v12 = vld [vmem:[%s7872_s15 + $0xf60] sm:$0xff]  }
 0x1da   : > { %7239 = vmatprep.subr.bf16.mxu1 %v7774_v13  ;;  %v7812_v13 = vld [vmem:[%s7872_s15 + $0xf98] sm:$0xff]  }
 0x1dc   : > { %7218 = vmatpush3.bf16.msra.mxu0 %v7775_v14  ;;  %v7814_v14 = vld [vmem:[%s7872_s15 + $0xfe0] sm:$0xff]  }
 0x1dd   : > { %7219 = vmatprep.subr.bf16.mxu0 %v7777_v16  ;;  %7240 = vmatpush3.bf16.msra.mxu1 %v7776_v15  ;;  %v7815_v15 = vld [vmem:[%s7872_s15 + $0xf20] sm:$0xff]   ;;  %v7817_v16 = vld [vmem:[%s7872_s15 + $0xf68] sm:$0xff]  }
 0x1de   : > { %7241 = vmatprep.subr.bf16.mxu1 %v7778_v17  ;;  %v7816_v17 = vld [vmem:[%s7872_s15 + $0xfa0] sm:$0xff]  }
 0x1e0   : > { %7220 = vmatpush3.bf16.msra.mxu0 %v7779_v18 }
 0x1e1   : > { %7221 = vmatprep.subr.bf16.mxu0 %v7781_v20  ;;  %7242 = vmatpush3.bf16.msra.mxu1 %v7780_v19  ;;  %v7818_v19 = vld [vmem:[%s7872_s15 + $0xfe8] sm:$0xff]  }
 0x1e2   : > { %7243 = vmatprep.subr.bf16.mxu1 %v7782_v21  ;;  %v7819_v21 = vld [vmem:[%s7872_s15 + $0xf28] sm:$0xff]  }
 0x1e4   : > { %7222 = vmatpush3.bf16.msra.mxu0 %v7783_v22 }
 0x1e5   : > { %7223 = vmatprep.subr.bf16.mxu0 %v7785_v24  ;;  %7244 = vmatpush3.bf16.msra.mxu1 %v7784_v23 }
 0x1e6   : > { %v6921_v26 = vpop.f32.mrb[28].mxu0  ;;  %7245 = vmatprep.subr.bf16.mxu1 %v7786_v25  ;;  %v7820_v25 = vld [vmem:[%s7872_s15 + $0xfa8] sm:$0xff]  }
 0x1e7   : > { %v6922_v28 = vpop.f32.mrb[29].mxu0  ;;  %v6943_v30 = vpop.f32.mrb[28].mxu1 }
 0x1e8   : > { %v6923_v31 = vadd.f32 %v6922_v28, %v6921_v26  ;;  %v6924_v32 = vpop.f32.mrb[30].mxu0  ;;  %v6944_v36 = vpop.f32.mrb[29].mxu1  ;;  %7224 = vmatpush3.bf16.msra.mxu0 %v7787_v27  ;;  %v7821_v26 = vld [vmem:[%s7872_s15 + $0xf70] sm:$0xff]  }
 0x1e9   : > { %v6925_v37 = vpop.f32.mrb[31].mxu0  ;;  %v6945_v39 = vadd.f32 %v6944_v36, %v6943_v30  ;;  %v6946_v40 = vpop.f32.mrb[30].mxu1  ;;  %7225 = vmatprep.subr.bf16.mxu0 %v7789_v33  ;;  %7246 = vmatpush3.bf16.msra.mxu1 %v7788_v29  ;;  %v7822_v32 = vld [vmem:[%s7872_s15 + $0xff0] sm:$0xff]  }
 0x1ea   : > { %v5325_v38 = vadd.f32 %v6923_v31, %v8426_v61  ;;  %v6947_v42 = vpop.f32.mrb[31].mxu1  ;;  %7247 = vmatprep.subr.bf16.mxu1 %v7790_v34  ;;  %v7801_v61 = vld [vmem:[%s7872_s15 + $0xf48] sm:$0xff]   ;;  %v7823_v34 = vld [vmem:[%s7872_s15 + $0xf30] sm:$0xff]   ;;  %v7825_v37 = vld [vmem:[%s7872_s15 + $0xf78] sm:$0xff]  }
 0x1eb   : > { %v7827_v40 = vld [vmem:[%s7872_s15 + $0xf38] sm:$0xff]  }
 0x1ec   : > { %v8463_v44 = vadd.f32 %v6945_v39, %v5325_v38  ;;  %7226 = vmatpush3.bf16.msra.mxu0 %v7791_v41  ;;  %v7824_v38 = vld [vmem:[%s7872_s15 + $0xfb0] sm:$0xff]   ;;  %v7826_v39 = vld [vmem:[%s7872_s15 + $0xff8] sm:$0xff]   ;;  %v1575_v41 = vrot.slane %v8475_v56, %v7910_v35 }
 0x1ed   : > { %7227 = vmatprep.subr.bf16.mxu0 %v7793_v45  ;;  %7248 = vmatpush3.bf16.msra.mxu1 %v7792_v43  ;;  %v7828_v42 = vld [vmem:[%s7872_s15 + $0xfb8] sm:$0xff]  }
 0x1ee   : > { %7249 = vmatprep.subr.bf16.mxu1 %v7794_v46  ;;  %v1591_v43 = vcombine.high %v1575_v41, %v1575_v41 }
 0x1f0   : > { %7228 = vmatpush3.bf16.msra.mxu0 %v7795_v47 }
 0x1f1   : > { %7257 = vmatprep.subr.bf16.mxu0 %v7797_v50  ;;  %7250 = vmatpush3.bf16.msra.mxu1 %v7796_v52 }
 0x1f2   : > { %7279 = vmatprep.subr.bf16.mxu1 %v7798_v55 }
 0x1f3   : > { %5883 = vmatmul.mubr.bf16.vlgmr.msra.gmra.mrb[56].mxu0 %v1568_v54 }
 0x1f4   : > { %7258 = vmatpush3.bf16.msra.mxu0 %v7799_v58  ;;  %5923 = vmatmul.mubr.bf16.vlgmr.msra.gmra.mrb[56].mxu1 %v1590_v60 }
 0x1f5   : > { %7259 = vmatprep.subr.bf16.mxu0 %v7801_v61  ;;  %7280 = vmatpush3.bf16.msra.mxu1 %v7800_v63 }
 0x1f6   : > { %5962 = vmatprep.mubr.bf16.mxu0 %v1589_v0  ;;  %7281 = vmatprep.subr.bf16.mxu1 %v7802_v1 }
 0x1f7   : > { %6002 = vmatprep.mubr.bf16.mxu1 %v1593_v3 }
 0x1f8   : > { %7260 = vmatpush3.bf16.msra.mxu0 %v7803_v2 }
 0x1f9   : > { %7261 = vmatprep.subr.bf16.mxu0 %v7805_v4  ;;  %7282 = vmatpush3.bf16.msra.mxu1 %v7804_v5 }
 0x1fa   : > { %7283 = vmatprep.subr.bf16.mxu1 %v7806_v6 }
 0x1fc   : > { %7262 = vmatpush3.bf16.msra.mxu0 %v7807_v7 }
 0x1fd   : > { %7263 = vmatprep.subr.bf16.mxu0 %v7809_v8  ;;  %7284 = vmatpush3.bf16.msra.mxu1 %v7808_v9 }
 0x1fe   : > { %7285 = vmatprep.subr.bf16.mxu1 %v7810_v10 }
 0x200   : > { %7264 = vmatpush3.bf16.msra.mxu0 %v7811_v11 }
 0x201   : > { %7265 = vmatprep.subr.bf16.mxu0 %v7813_v12  ;;  %7286 = vmatpush3.bf16.msra.mxu1 %v7812_v13 }
 0x202   : > { %7287 = vmatprep.subr.bf16.mxu1 %v7814_v14 }
 0x204   : > { %7266 = vmatpush3.bf16.msra.mxu0 %v7815_v15 }
 0x205   : > { %7267 = vmatprep.subr.bf16.mxu0 %v7817_v16  ;;  %7288 = vmatpush3.bf16.msra.mxu1 %v7816_v17 }
 0x206   : > { %v6965_v18 = vpop.f32.mrb[32].mxu0  ;;  %7289 = vmatprep.subr.bf16.mxu1 %v7818_v19 }
 0x207   : > { %v6966_v20 = vpop.f32.mrb[33].mxu0  ;;  %v6987_v22 = vpop.f32.mrb[32].mxu1 }
 0x208   : > { %v6967_v23 = vadd.f32 %v6966_v20, %v6965_v18  ;;  %v6968_v24 = vpop.f32.mrb[34].mxu0  ;;  %v6988_v27 = vpop.f32.mrb[33].mxu1  ;;  %7268 = vmatpush3.bf16.msra.mxu0 %v7819_v21 }
 0x209   : > { %v6969_v28 = vpop.f32.mrb[35].mxu0  ;;  %v6989_v30 = vadd.f32 %v6988_v27, %v6987_v22  ;;  %v6990_v31 = vpop.f32.mrb[34].mxu1  ;;  %7269 = vmatprep.subr.bf16.mxu0 %v7821_v26  ;;  %7290 = vmatpush3.bf16.msra.mxu1 %v7820_v25 }
 0x20a   : > { %v5405_v29 = vadd.f32 %v6967_v23, %v8463_v44  ;;  %v6991_v33 = vpop.f32.mrb[35].mxu1  ;;  %7291 = vmatprep.subr.bf16.mxu1 %v7822_v32 }
 0x20c   : > { %v5445_v36 = vadd.f32 %v6989_v30, %v5405_v29  ;;  %7270 = vmatpush3.bf16.msra.mxu0 %v7823_v34 }
 0x20d   : > { %7271 = vmatprep.subr.bf16.mxu0 %v7825_v37  ;;  %7292 = vmatpush3.bf16.msra.mxu1 %v7824_v38 }
 0x20e   : > { %7293 = vmatprep.subr.bf16.mxu1 %v7826_v39 }
 0x210   : > { %7272 = vmatpush3.bf16.msra.mxu0 %v7827_v40 }
 0x211   : > { %7294 = vmatpush3.bf16.msra.mxu1 %v7828_v42 }
 0x213   : > { %5963 = vmatmul.mubr.bf16.vlgmr.msra.gmra.mrb[60].mxu0 %v1575_v41 }
 0x214   : > { %6003 = vmatmul.mubr.bf16.vlgmr.msra.gmra.mrb[60].mxu1 %v1591_v43 }
 0x226   : > { %v7009_v44 = vpop.f32.mrb[36].mxu0 }
 0x227   : > { %v7010_v45 = vpop.f32.mrb[37].mxu0  ;;  %v7031_v46 = vpop.f32.mrb[36].mxu1 }
 0x228   : > { %v7011_v47 = vadd.f32 %v7010_v45, %v7009_v44  ;;  %v7012_v48 = vpop.f32.mrb[38].mxu0  ;;  %v7032_v49 = vpop.f32.mrb[37].mxu1 }
 0x229   : > { %v7013_v50 = vpop.f32.mrb[39].mxu0  ;;  %v7033_v52 = vadd.f32 %v7032_v49, %v7031_v46  ;;  %v7034_v53 = vpop.f32.mrb[38].mxu1 }
 0x22a   : > { %v5485_v51 = vadd.f32 %v7011_v47, %v5445_v36  ;;  %v7035_v54 = vpop.f32.mrb[39].mxu1 }
 0x22c   : > { %v5525_v35 = vadd.f32 %v7033_v52, %v5485_v51 }
 0x246   : > { %v7053_v55 = vpop.f32.mrb[40].mxu0 }
 0x247   : > { %v7054_v56 = vpop.f32.mrb[41].mxu0  ;;  %v7075_v57 = vpop.f32.mrb[40].mxu1 }
 0x248   : > { %v7055_v58 = vadd.f32 %v7054_v56, %v7053_v55  ;;  %v7056_v59 = vpop.f32.mrb[42].mxu0  ;;  %v7076_v60 = vpop.f32.mrb[41].mxu1 }
 0x249   : > { %v7057_v61 = vpop.f32.mrb[43].mxu0  ;;  %v7077_v63 = vadd.f32 %v7076_v60, %v7075_v57  ;;  %v7078_v0 = vpop.f32.mrb[42].mxu1 }
 0x24a   : > { %v5565_v62 = vadd.f32 %v7055_v58, %v5525_v35  ;;  %v7079_v1 = vpop.f32.mrb[43].mxu1 }
 0x24c   : > { %v5605_v2 = vadd.f32 %v7077_v63, %v5565_v62 }
 0x266   : > { %v7097_v3 = vpop.f32.mrb[44].mxu0 }
 0x267   : > { %v7098_v4 = vpop.f32.mrb[45].mxu0  ;;  %v7119_v5 = vpop.f32.mrb[44].mxu1 }
 0x268   : > { %v7099_v6 = vadd.f32 %v7098_v4, %v7097_v3  ;;  %v7100_v7 = vpop.f32.mrb[46].mxu0  ;;  %v7120_v8 = vpop.f32.mrb[45].mxu1 }
 0x269   : > { %v7101_v9 = vpop.f32.mrb[47].mxu0  ;;  %v7121_v11 = vadd.f32 %v7120_v8, %v7119_v5  ;;  %v7122_v12 = vpop.f32.mrb[46].mxu1 }
 0x26a   : > { %v5645_v10 = vadd.f32 %v7099_v6, %v5605_v2  ;;  %v7123_v13 = vpop.f32.mrb[47].mxu1 }
 0x26c   : > { %v5685_v14 = vadd.f32 %v7121_v11, %v5645_v10 }
 0x286   : > { %v7141_v15 = vpop.f32.mrb[48].mxu0 }
 0x287   : > { %v7142_v16 = vpop.f32.mrb[49].mxu0  ;;  %v7163_v17 = vpop.f32.mrb[48].mxu1 }
 0x288   : > { %v7143_v18 = vadd.f32 %v7142_v16, %v7141_v15  ;;  %v7144_v19 = vpop.f32.mrb[50].mxu0  ;;  %v7164_v20 = vpop.f32.mrb[49].mxu1 }
 0x289   : > { %v7145_v21 = vpop.f32.mrb[51].mxu0  ;;  %v7165_v23 = vadd.f32 %v7164_v20, %v7163_v17  ;;  %v7166_v24 = vpop.f32.mrb[50].mxu1 }
 0x28a   : > { %v5725_v22 = vadd.f32 %v7143_v18, %v5685_v14  ;;  %v7167_v25 = vpop.f32.mrb[51].mxu1 }
 0x28c   : > { %v5765_v26 = vadd.f32 %v7165_v23, %v5725_v22 }
 0x2a6   : > { %v7185_v27 = vpop.f32.mrb[52].mxu0 }
 0x2a7   : > { %v7186_v28 = vpop.f32.mrb[53].mxu0  ;;  %v7207_v29 = vpop.f32.mrb[52].mxu1 }
 0x2a8   : > { %v7187_v30 = vadd.f32 %v7186_v28, %v7185_v27  ;;  %v7188_v31 = vpop.f32.mrb[54].mxu0  ;;  %v7208_v32 = vpop.f32.mrb[53].mxu1 }
 0x2a9   : > { %v7189_v33 = vpop.f32.mrb[55].mxu0  ;;  %v7209_v36 = vadd.f32 %v7208_v32, %v7207_v29  ;;  %v7210_v37 = vpop.f32.mrb[54].mxu1 }
 0x2aa   : > { %v5805_v34 = vadd.f32 %v7187_v30, %v5765_v26  ;;  %v7211_v38 = vpop.f32.mrb[55].mxu1 }
 0x2ac   : > { %v5845_v39 = vadd.f32 %v7209_v36, %v5805_v34 }
 0x2c6   : > { %v7229_v40 = vpop.f32.mrb[56].mxu0 }
 0x2c7   : > { %v7230_v41 = vpop.f32.mrb[57].mxu0  ;;  %v7251_v42 = vpop.f32.mrb[56].mxu1 }
 0x2c8   : > { %v7231_v43 = vadd.f32 %v7230_v41, %v7229_v40  ;;  %v7232_v44 = vpop.f32.mrb[58].mxu0  ;;  %v7252_v45 = vpop.f32.mrb[57].mxu1 }
 0x2c9   : > { %v7233_v46 = vpop.f32.mrb[59].mxu0  ;;  %v7253_v48 = vadd.f32 %v7252_v45, %v7251_v42  ;;  %v7254_v49 = vpop.f32.mrb[58].mxu1 }
 0x2ca   : > { %v5885_v47 = vadd.f32 %v7231_v43, %v5845_v39  ;;  %v7255_v50 = vpop.f32.mrb[59].mxu1 }
 0x2cc   : > { %v5925_v51 = vadd.f32 %v7253_v48, %v5885_v47 }
 0x2e6   : > { %v7273_v52 = vpop.f32.mrb[60].mxu0 }
 0x2e7   : > { %v7274_v53 = vpop.f32.mrb[61].mxu0  ;;  %v7295_v54 = vpop.f32.mrb[60].mxu1 }
 0x2e8   : > { %v7275_v35 = vadd.f32 %v7274_v53, %v7273_v52  ;;  %v7276_v55 = vpop.f32.mrb[62].mxu0  ;;  %v7296_v56 = vpop.f32.mrb[61].mxu1 }
 0x2e9   : > { %v7277_v57 = vpop.f32.mrb[63].mxu0  ;;  %v7297_v59 = vadd.f32 %v7296_v56, %v7295_v54  ;;  %v7298_v60 = vpop.f32.mrb[62].mxu1 }
 0x2ea   : > { %v5965_v58 = vadd.f32 %v7275_v35, %v5925_v51  ;;  %v7299_v61 = vpop.f32.mrb[63].mxu1 }
 0x2ec   : > { %v6005_v62 = vadd.f32 %v7297_v59, %v5965_v58 }
 0x2ee   : > { %6010 = vst [vmem:[%s160_s23] sm:$0x3] %v6005_v62 }
 0x2ef PF: > { %s12_s9 = sadd.s32 1, %s7836_s9  }
 0x2f0   : > { %p9_p5 = scmp.ge.s32.totalorder %s12_s9, 4  }
 0x2f2   :  { %11 = sbr.rel (!%p9_p5) target bundleno = 1 (0x1), region = 61 }

</bundles_post_ra>
